<compile_context>
chip_gen: v6e
topology: v6e:2x2x1
jax: 0.10.0
libtpu: 0.0.40
codegen_flags: <defaults>
</compile_context>

<pallas_src>
import functools

import jax
import jax.numpy as jnp
from jax.experimental import pallas as pl
from jax.experimental.pallas import tpu as pltpu

# ----------------------------- configuration (small shapes) -----------------------------
NUM_EXPERTS = 3
BATCH = 2
C_IN = 3
IMG = 16
PATCH = 4
D_MODEL = 32
N_HEADS = 4
MLP_DIM = 128
FEAT = 32
SEQ_TXT = 8
VOCAB = 64
N_PATCH = (IMG // PATCH) ** 2
SEQ_IMG = N_PATCH + 1            # +1 class token
CPP = C_IN * PATCH * PATCH       # flattened patch size


def _layernorm(x, scale, bias, eps=1e-5):
    mu = jnp.mean(x, axis=-1, keepdims=True)
    var = jnp.mean(jnp.square(x - mu), axis=-1, keepdims=True)
    return (x - mu) * jax.lax.rsqrt(var + eps) * scale + bias


def _tower_features(x0, dvec, wqkv, bqkv, wo, fc1, fb1, fc2, proj,
                    *, num_experts, num_heads, batch, seq, pool_offset):
    """One CLIP resblock + head with `num_experts` expert attentions sharing x0.

    x0:   (batch*seq, D) activations, batch stacked on sublanes.
    dvec: (7+E, D) slab: ln1_s, ln1_b, ln2_s, ln2_b, lnf_s, lnf_b, bo[0..E-1], fb2.
    wqkv: (D, E*3*D) per-expert [Wq|Wk|Wv] packed along lanes;  wo: (E, D, D).
    Returns (E*batch, F) pooled, projected features.
    """
    D = x0.shape[-1]
    hd = D // num_heads
    qscale = 1.0 / float(hd) ** 0.5
    ln1_s, ln1_b = dvec[0:1], dvec[1:2]
    ln2_s, ln2_b = dvec[2:3], dvec[3:4]
    lnf_s, lnf_b = dvec[4:5], dvec[5:6]
    fb2 = dvec[6 + num_experts:7 + num_experts]

    # ---- LN1 is expert-invariant -> ONE fused QKV matmul for all experts ----
    y = _layernorm(x0, ln1_s, ln1_b)
    qkv = jnp.dot(y, wqkv, preferred_element_type=jnp.float32) + bqkv      # (B*S, E*3D)
    # (B, S, E*3D) view for batched attention (built with slices + stack, no reshape).
    qkv_b = jnp.stack([qkv[b * seq:(b + 1) * seq, :] for b in range(batch)], axis=0)

    x_experts = []
    for e in range(num_experts):
        off = e * 3 * D
        ctx_heads = []
        for h in range(num_heads):
            q = qkv_b[:, :, off + h * hd:off + (h + 1) * hd] * qscale
            k = qkv_b[:, :, off + D + h * hd:off + D + (h + 1) * hd]
            v = qkv_b[:, :, off + 2 * D + h * hd:off + 2 * D + (h + 1) * hd]
            s = jnp.einsum("bqd,bkd->bqk", q, k, preferred_element_type=jnp.float32)
            m = jnp.max(s, axis=-1, keepdims=True)
            p = jnp.exp(s - m)
            p = p * pl.reciprocal(jnp.sum(p, axis=-1, keepdims=True), approx=True)
            ctx_heads.append(
                jnp.einsum("bqk,bkd->bqd", p, v, preferred_element_type=jnp.float32))
        # Lane-concat head outputs -> ONE (B*S, D) @ (D, D) out-projection per expert.
        ctx3 = jnp.concatenate(ctx_heads, axis=-1)                         # (B, S, D)
        ctx = jnp.concatenate([ctx3[b] for b in range(batch)], axis=0)     # (B*S, D)
        attn = jnp.dot(ctx, wo[e], preferred_element_type=jnp.float32) + dvec[6 + e:7 + e]
        x_experts.append(x0 + attn)                    # residual, out-proj bias folded in

    # ---- LN2 + MLP weights are shared -> stack experts on sublanes, single matmuls ----
    x = jnp.concatenate(x_experts, axis=0) if num_experts > 1 else x_experts[0]
    y2 = _layernorm(x, ln2_s, ln2_b)
    h1 = jnp.dot(y2, fc1, preferred_element_type=jnp.float32) + fb1
    h1 = h1 * pl.reciprocal(1.0 + jnp.exp(-1.702 * h1), approx=True)       # QuickGELU (EUP)
    x = x + jnp.dot(h1, fc2, preferred_element_type=jnp.float32) + fb2

    # ---- pool one token per (expert, batch) sequence, final LN, feature projection ----
    rows = [e * batch * seq + b * seq + pool_offset
            for e in range(num_experts) for b in range(batch)]
    pooled = jnp.concatenate([x[r:r + 1, :] for r in rows], axis=0)        # (E*B, D)
    pooled = _layernorm(pooled, lnf_s, lnf_b)
    return jnp.dot(pooled, proj, preferred_element_type=jnp.float32)       # (E*B, F)


def _multi_clip_kernel(
    # visual tower
    patches_ref, patch_w_ref, base_ref,
    v_dvec_ref, v_wqkv_ref, v_bqkv_ref, v_wo_ref, v_fc1_ref, v_fb1_ref, v_fc2_ref,
    v_proj_ref,
    # text tower
    xt_ref, t_dvec_ref, t_wqkv_ref, t_bqkv_ref, t_wo_ref, t_fc1_ref, t_fb1_ref,
    t_fc2_ref, t_proj_ref,
    # outputs
    img_ref, txt_ref,
    *, num_experts, num_heads, batch, seq_img, seq_txt,
):
    # Visual patch stem fused into the main kernel: one (B*S, CPP) @ (CPP, D) matmul;
    # `base` already carries cls-token + positional embeddings (zero patch row -> cls slot).
    x0v = (jnp.dot(patches_ref[...], patch_w_ref[...],
                   preferred_element_type=jnp.float32) + base_ref[...])
    img_ref[...] = _tower_features(
        x0v, v_dvec_ref[...], v_wqkv_ref[...], v_bqkv_ref[...], v_wo_ref[...],
        v_fc1_ref[...], v_fb1_ref[...], v_fc2_ref[...], v_proj_ref[...],
        num_experts=num_experts, num_heads=num_heads, batch=batch, seq=seq_img,
        pool_offset=0)
    # TODO(synk): real CLIP text towers use a causal mask and pool at argmax(token);
    # kept unmasked / last-token pooling to preserve the previous reference semantics.
    txt_ref[...] = _tower_features(
        xt_ref[...], t_dvec_ref[...], t_wqkv_ref[...], t_bqkv_ref[...], t_wo_ref[...],
        t_fc1_ref[...], t_fb1_ref[...], t_fc2_ref[...], t_proj_ref[...],
        num_experts=1, num_heads=num_heads, batch=batch, seq=seq_txt,
        pool_offset=seq_txt - 1)


# -------------------------------------- model glue ---------------------------------------
def multi_expert_clip_forward(image, text, params, num_experts=NUM_EXPERTS):
    """Mirrors MultiExpertCLIP.forward.  Instead of materializing torch.cat([image]*E)
    (and the text copies) in HBM, expert replication happens inside one fused kernel: the
    shared LN1 activations feed a single lane-packed QKV matmul for all experts, and the
    non-expert text tower is computed once and broadcast."""
    B = image.shape[0]
    P = PATCH
    # Conv2d(C, D, kernel=P, stride=P, bias=False) as im2col (tiny XLA glue); prepend a
    # zero row per image so the stem matmul emits the class-token slot directly; flatten
    # batch onto sublanes.
    patches = image.reshape(B, C_IN, IMG // P, P, IMG // P, P)
    patches = patches.transpose(0, 2, 4, 1, 3, 5).reshape(B, N_PATCH, CPP)
    patches = jnp.pad(patches, ((0, 0), (1, 0), (0, 0))).reshape(B * SEQ_IMG, CPP)
    base = jnp.concatenate(
        [params["cls_tok"] + params["pos_v"][:1], params["pos_v"][1:]], axis=0)
    base = jnp.tile(base, (B, 1))                                   # (B*S_img, D)
    # Token-embedding gather + positional add kept as XLA glue (data-dependent gather).
    x0_t = (params["tok_emb"][text] + params["pos_t"]).reshape(B * SEQ_TXT, D_MODEL)

    v, t = params["visual"], params["text"]
    inputs = (patches, params["patch_w"], base,
              v["dvec"], v["wqkv"], v["bqkv"], v["wo"], v["fc1"], v["fb1"], v["fc2"],
              v["proj"],
              x0_t, t["dvec"], t["wqkv"], t["bqkv"], t["wo"], t["fc1"], t["fb1"],
              t["fc2"], t["proj"])

    def full_spec(a):                      # whole array as a single VMEM block
        nd = a.ndim
        return pl.BlockSpec(a.shape, lambda i: (0,) * nd)

    kern = functools.partial(
        _multi_clip_kernel, num_experts=num_experts, num_heads=N_HEADS,
        batch=B, seq_img=SEQ_IMG, seq_txt=SEQ_TXT)
    img_flat, txt_flat = pl.pallas_call(
        kern,
        out_shape=(jax.ShapeDtypeStruct((num_experts * B, FEAT), jnp.float32),
                   jax.ShapeDtypeStruct((B, FEAT), jnp.float32)),
        grid=(1,),                         # single grid step: overhead-bound regime
        in_specs=[full_spec(a) for a in inputs],
        out_specs=(pl.BlockSpec((num_experts * B, FEAT), lambda i: (0, 0)),
                   pl.BlockSpec((B, FEAT), lambda i: (0, 0))),
        compiler_params=pltpu.CompilerParams(dimension_semantics=("arbitrary",)),
    )(*inputs)

    image_features = img_flat.reshape(num_experts, B, FEAT)
    # Text transformer is NOT expert-modified -> broadcast instead of recomputing E times.
    text_features = jnp.broadcast_to(txt_flat[None], (num_experts, B, FEAT))
    return image_features, text_features


# ---------------------------------- deterministic params ---------------------------------
def init_params(key):
    keys = iter(jax.random.split(key, 32))
    D = D_MODEL

    def nrm(shape, std=0.02):
        return (std * jax.random.normal(next(keys), shape)).astype(jnp.float32)

    def tower(num_expert_attn):
        E = num_expert_attn
        # Per-expert attention weights: the PyTorch module deep-copies one MHA (identical
        # weights); distinct values here exercise the per-expert routing, same structure.
        dvec = jnp.concatenate(
            [jnp.ones((1, D)), jnp.zeros((1, D)),       # ln1 scale/bias
             jnp.ones((1, D)), jnp.zeros((1, D)),       # ln2 scale/bias
             jnp.ones((1, D)), jnp.zeros((1, D)),       # final ln scale/bias
             nrm((E, D)),                               # per-expert out-proj bias
             nrm((1, D))], axis=0).astype(jnp.float32)  # fc2 bias
        return {
            "dvec": dvec,                               # (7+E, D) lane-dense param slab
            "wqkv": nrm((D, E * 3 * D)),                # per-expert [Wq|Wk|Wv] along lanes
            "bqkv": nrm((1, E * 3 * D)),
            "wo": nrm((E, D, D)),
            "fc1": nrm((D, MLP_DIM)), "fb1": nrm((1, MLP_DIM)),
            "fc2": nrm((MLP_DIM, D)),
            "proj": nrm((D, FEAT)),
        }

    return {
        "patch_w": nrm((CPP, D)),
        "cls_tok": nrm((1, D)),
        "pos_v": nrm((SEQ_IMG, D)),
        "visual": tower(NUM_EXPERTS),                   # visual attention is expert-modified
        "tok_emb": nrm((VOCAB, D)),
        "pos_t": nrm((SEQ_TXT, D)),
        "text": tower(1),                               # text transformer stays shared
    }


if __name__ == "__main__":
    key = jax.random.PRNGKey(0)
    k_img, k_txt, k_par = jax.random.split(key, 3)
    image = jax.random.normal(k_img, (BATCH, C_IN, IMG, IMG), jnp.float32)
    text = jax.random.randint(k_txt, (BATCH, SEQ_TXT), 0, VOCAB, dtype=jnp.int32)
    params = init_params(k_par)

    fwd = jax.jit(functools.partial(multi_expert_clip_forward, num_experts=NUM_EXPERTS))
    img_feat, txt_feat = fwd(image, text, params)
    jax.block_until_ready((img_feat, txt_feat))

    assert img_feat.shape == (NUM_EXPERTS, BATCH, FEAT), img_feat.shape
    assert txt_feat.shape == (NUM_EXPERTS, BATCH, FEAT), txt_feat.shape
    assert jnp.all(jnp.isfinite(img_feat)) and jnp.all(jnp.isfinite(txt_feat))
    print("KERNEL_OK")
</pallas_src>

<mosaic_0001>
module attributes {stable_mosaic.version = 11 : i64} {
  func.func @_multi_clip_kernel(%arg0: i32, %arg1: memref<34x48xf32, #tpu.memory_space<vmem>>, %arg2: memref<48x32xf32, #tpu.memory_space<vmem>>, %arg3: memref<34x32xf32, #tpu.memory_space<vmem>>, %arg4: memref<10x32xf32, #tpu.memory_space<vmem>>, %arg5: memref<32x288xf32, #tpu.memory_space<vmem>>, %arg6: memref<1x288xf32, #tpu.memory_space<vmem>>, %arg7: memref<3x32x32xf32, #tpu.memory_space<vmem>>, %arg8: memref<32x128xf32, #tpu.memory_space<vmem>>, %arg9: memref<1x128xf32, #tpu.memory_space<vmem>>, %arg10: memref<128x32xf32, #tpu.memory_space<vmem>>, %arg11: memref<32x32xf32, #tpu.memory_space<vmem>>, %arg12: memref<16x32xf32, #tpu.memory_space<vmem>>, %arg13: memref<8x32xf32, #tpu.memory_space<vmem>>, %arg14: memref<32x96xf32, #tpu.memory_space<vmem>>, %arg15: memref<1x96xf32, #tpu.memory_space<vmem>>, %arg16: memref<1x32x32xf32, #tpu.memory_space<vmem>>, %arg17: memref<32x128xf32, #tpu.memory_space<vmem>>, %arg18: memref<1x128xf32, #tpu.memory_space<vmem>>, %arg19: memref<128x32xf32, #tpu.memory_space<vmem>>, %arg20: memref<32x32xf32, #tpu.memory_space<vmem>>, %arg21: memref<6x32xf32, #tpu.memory_space<vmem>>, %arg22: memref<2x32xf32, #tpu.memory_space<vmem>>) attributes {dimension_semantics = [#tpu.dimension_semantics<arbitrary>], iteration_bounds = array<i64: 1>, scalar_prefetch = 0 : i64, scratch_operands = 0 : i64, tpu.core_type = #tpu.core_type<tc>, window_params = [{pipeline_mode = #tpu.pipeline_mode<synchronous>, transform_indices = @transform_0, window_bounds = array<i64: 34, 48>}, {pipeline_mode = #tpu.pipeline_mode<synchronous>, transform_indices = @transform_1, window_bounds = array<i64: 48, 32>}, {pipeline_mode = #tpu.pipeline_mode<synchronous>, transform_indices = @transform_2, window_bounds = array<i64: 34, 32>}, {pipeline_mode = #tpu.pipeline_mode<synchronous>, transform_indices = @transform_3, window_bounds = array<i64: 10, 32>}, {pipeline_mode = #tpu.pipeline_mode<synchronous>, transform_indices = @transform_4, window_bounds = array<i64: 32, 288>}, {pipeline_mode = #tpu.pipeline_mode<synchronous>, transform_indices = @transform_5, window_bounds = array<i64: 1, 288>}, {pipeline_mode = #tpu.pipeline_mode<synchronous>, transform_indices = @transform_6, window_bounds = array<i64: 3, 32, 32>}, {pipeline_mode = #tpu.pipeline_mode<synchronous>, transform_indices = @transform_7, window_bounds = array<i64: 32, 128>}, {pipeline_mode = #tpu.pipeline_mode<synchronous>, transform_indices = @transform_8, window_bounds = array<i64: 1, 128>}, {pipeline_mode = #tpu.pipeline_mode<synchronous>, transform_indices = @transform_9, window_bounds = array<i64: 128, 32>}, {pipeline_mode = #tpu.pipeline_mode<synchronous>, transform_indices = @transform_10, window_bounds = array<i64: 32, 32>}, {pipeline_mode = #tpu.pipeline_mode<synchronous>, transform_indices = @transform_11, window_bounds = array<i64: 16, 32>}, {pipeline_mode = #tpu.pipeline_mode<synchronous>, transform_indices = @transform_12, window_bounds = array<i64: 8, 32>}, {pipeline_mode = #tpu.pipeline_mode<synchronous>, transform_indices = @transform_13, window_bounds = array<i64: 32, 96>}, {pipeline_mode = #tpu.pipeline_mode<synchronous>, transform_indices = @transform_14, window_bounds = array<i64: 1, 96>}, {pipeline_mode = #tpu.pipeline_mode<synchronous>, transform_indices = @transform_15, window_bounds = array<i64: 1, 32, 32>}, {pipeline_mode = #tpu.pipeline_mode<synchronous>, transform_indices = @transform_16, window_bounds = array<i64: 32, 128>}, {pipeline_mode = #tpu.pipeline_mode<synchronous>, transform_indices = @transform_17, window_bounds = array<i64: 1, 128>}, {pipeline_mode = #tpu.pipeline_mode<synchronous>, transform_indices = @transform_18, window_bounds = array<i64: 128, 32>}, {pipeline_mode = #tpu.pipeline_mode<synchronous>, transform_indices = @transform_19, window_bounds = array<i64: 32, 32>}, {pipeline_mode = #tpu.pipeline_mode<synchronous>, transform_indices = @transform_20, window_bounds = array<i64: 6, 32>}, {pipeline_mode = #tpu.pipeline_mode<synchronous>, transform_indices = @transform_21, window_bounds = array<i64: 2, 32>}]} {
    %c0 = arith.constant 0 : index
    %c0_0 = arith.constant 0 : index
    %0 = vector.load %arg1[%c0, %c0_0] : memref<34x48xf32, #tpu.memory_space<vmem>>, vector<34x48xf32>
    %c0_1 = arith.constant 0 : index
    %c0_2 = arith.constant 0 : index
    %1 = vector.load %arg2[%c0_1, %c0_2] : memref<48x32xf32, #tpu.memory_space<vmem>>, vector<48x32xf32>
    %cst = arith.constant dense<0.000000e+00> : vector<34x32xf32>
    %2 = tpu.matmul %0, %1, %cst {dimension_numbers = #tpu.dot_dimension_numbers<[1], [0], [0], [1], [0, 0, 1, 1], [], []>} : vector<34x48xf32>, vector<48x32xf32>, vector<34x32xf32> -> vector<34x32xf32>
    %c0_3 = arith.constant 0 : index
    %c0_4 = arith.constant 0 : index
    %3 = vector.load %arg3[%c0_3, %c0_4] : memref<34x32xf32, #tpu.memory_space<vmem>>, vector<34x32xf32>
    %4 = arith.addf %2, %3 : vector<34x32xf32>
    %c0_5 = arith.constant 0 : index
    %c0_6 = arith.constant 0 : index
    %5 = vector.load %arg4[%c0_5, %c0_6] : memref<10x32xf32, #tpu.memory_space<vmem>>, vector<10x32xf32>
    %c0_7 = arith.constant 0 : index
    %c0_8 = arith.constant 0 : index
    %6 = vector.load %arg5[%c0_7, %c0_8] : memref<32x288xf32, #tpu.memory_space<vmem>>, vector<32x288xf32>
    %c0_9 = arith.constant 0 : index
    %c0_10 = arith.constant 0 : index
    %7 = vector.load %arg6[%c0_9, %c0_10] : memref<1x288xf32, #tpu.memory_space<vmem>>, vector<1x288xf32>
    %c0_11 = arith.constant 0 : index
    %c0_12 = arith.constant 0 : index
    %c0_13 = arith.constant 0 : index
    %8 = vector.load %arg7[%c0_11, %c0_12, %c0_13] : memref<3x32x32xf32, #tpu.memory_space<vmem>>, vector<3x32x32xf32>
    %c0_14 = arith.constant 0 : index
    %c0_15 = arith.constant 0 : index
    %9 = vector.load %arg8[%c0_14, %c0_15] : memref<32x128xf32, #tpu.memory_space<vmem>>, vector<32x128xf32>
    %c0_16 = arith.constant 0 : index
    %c0_17 = arith.constant 0 : index
    %10 = vector.load %arg9[%c0_16, %c0_17] : memref<1x128xf32, #tpu.memory_space<vmem>>, vector<1x128xf32>
    %c0_18 = arith.constant 0 : index
    %c0_19 = arith.constant 0 : index
    %11 = vector.load %arg10[%c0_18, %c0_19] : memref<128x32xf32, #tpu.memory_space<vmem>>, vector<128x32xf32>
    %c0_20 = arith.constant 0 : index
    %c0_21 = arith.constant 0 : index
    %12 = vector.load %arg11[%c0_20, %c0_21] : memref<32x32xf32, #tpu.memory_space<vmem>>, vector<32x32xf32>
    %13 = vector.extract_strided_slice %5 {offsets = [0, 0], sizes = [1, 32], strides = [1, 1]} : vector<10x32xf32> to vector<1x32xf32>
    %14 = vector.extract_strided_slice %5 {offsets = [1, 0], sizes = [1, 32], strides = [1, 1]} : vector<10x32xf32> to vector<1x32xf32>
    %15 = vector.extract_strided_slice %5 {offsets = [2, 0], sizes = [1, 32], strides = [1, 1]} : vector<10x32xf32> to vector<1x32xf32>
    %16 = vector.extract_strided_slice %5 {offsets = [3, 0], sizes = [1, 32], strides = [1, 1]} : vector<10x32xf32> to vector<1x32xf32>
    %17 = vector.extract_strided_slice %5 {offsets = [4, 0], sizes = [1, 32], strides = [1, 1]} : vector<10x32xf32> to vector<1x32xf32>
    %18 = vector.extract_strided_slice %5 {offsets = [5, 0], sizes = [1, 32], strides = [1, 1]} : vector<10x32xf32> to vector<1x32xf32>
    %19 = vector.extract_strided_slice %5 {offsets = [9, 0], sizes = [1, 32], strides = [1, 1]} : vector<10x32xf32> to vector<1x32xf32>
    %cst_22 = arith.constant dense<0.000000e+00> : vector<34xf32>
    %20 = vector.multi_reduction <add>, %4, %cst_22 [1] : vector<34x32xf32> to vector<34xf32>
    %21 = vector.shape_cast %20 : vector<34xf32> to vector<34x1xf32>
    %cst_23 = arith.constant 3.200000e+01 : f32
    %22 = vector.broadcast %cst_23 : f32 to vector<34x1xf32>
    %23 = arith.divf %21, %22 : vector<34x1xf32>
    %24 = vector.broadcast %23 : vector<34x1xf32> to vector<34x32xf32>
    %25 = arith.subf %4, %24 : vector<34x32xf32>
    %26 = arith.mulf %25, %25 : vector<34x32xf32>
    %cst_24 = arith.constant dense<0.000000e+00> : vector<34xf32>
    %27 = vector.multi_reduction <add>, %26, %cst_24 [1] : vector<34x32xf32> to vector<34xf32>
    %28 = vector.shape_cast %27 : vector<34xf32> to vector<34x1xf32>
    %cst_25 = arith.constant 3.200000e+01 : f32
    %29 = vector.broadcast %cst_25 : f32 to vector<34x1xf32>
    %30 = arith.divf %28, %29 : vector<34x1xf32>
    %31 = vector.broadcast %23 : vector<34x1xf32> to vector<34x32xf32>
    %32 = arith.subf %4, %31 : vector<34x32xf32>
    %cst_26 = arith.constant 9.99999974E-6 : f32
    %33 = vector.broadcast %cst_26 : f32 to vector<34x1xf32>
    %34 = arith.addf %30, %33 : vector<34x1xf32>
    %35 = math.rsqrt %34 : vector<34x1xf32>
    %36 = vector.broadcast %35 : vector<34x1xf32> to vector<34x32xf32>
    %37 = arith.mulf %32, %36 : vector<34x32xf32>
    %38 = vector.broadcast %13 : vector<1x32xf32> to vector<34x32xf32>
    %39 = arith.mulf %37, %38 : vector<34x32xf32>
    %40 = vector.broadcast %14 : vector<1x32xf32> to vector<34x32xf32>
    %41 = arith.addf %39, %40 : vector<34x32xf32>
    %cst_27 = arith.constant dense<0.000000e+00> : vector<34x288xf32>
    %42 = tpu.matmul %41, %6, %cst_27 {dimension_numbers = #tpu.dot_dimension_numbers<[1], [0], [0], [1], [0, 0, 1, 1], [], []>} : vector<34x32xf32>, vector<32x288xf32>, vector<34x288xf32> -> vector<34x288xf32>
    %43 = vector.broadcast %7 : vector<1x288xf32> to vector<34x288xf32>
    %44 = arith.addf %42, %43 : vector<34x288xf32>
    %45 = vector.extract_strided_slice %44 {offsets = [0, 0], sizes = [17, 288], strides = [1, 1]} : vector<34x288xf32> to vector<17x288xf32>
    %46 = vector.extract_strided_slice %44 {offsets = [17, 0], sizes = [17, 288], strides = [1, 1]} : vector<34x288xf32> to vector<17x288xf32>
    %47 = vector.shape_cast %45 : vector<17x288xf32> to vector<1x17x288xf32>
    %48 = vector.shape_cast %46 : vector<17x288xf32> to vector<1x17x288xf32>
    %49 = tpu.concatenate %47, %48 in 0 : vector<1x17x288xf32>, vector<1x17x288xf32> -> vector<2x17x288xf32>
    %50 = vector.extract_strided_slice %49 {offsets = [0, 0, 0], sizes = [2, 17, 8], strides = [1, 1, 1]} : vector<2x17x288xf32> to vector<2x17x8xf32>
    %cst_28 = arith.constant 0.353553385 : f32
    %51 = vector.broadcast %cst_28 : f32 to vector<2x17x8xf32>
    %52 = arith.mulf %50, %51 : vector<2x17x8xf32>
    %53 = vector.extract_strided_slice %49 {offsets = [0, 0, 32], sizes = [2, 17, 8], strides = [1, 1, 1]} : vector<2x17x288xf32> to vector<2x17x8xf32>
    %54 = vector.extract_strided_slice %49 {offsets = [0, 0, 64], sizes = [2, 17, 8], strides = [1, 1, 1]} : vector<2x17x288xf32> to vector<2x17x8xf32>
    "tpu.trace_start"() <{level = 10 : i32, message = "bqd,bkd->bqk"}> : () -> ()
    %cst_29 = arith.constant dense<0.000000e+00> : vector<2x17x17xf32>
    %55 = tpu.matmul %52, %53, %cst_29 {dimension_numbers = #tpu.dot_dimension_numbers<[2], [2], [1], [1], [0, 0, 0, 1, 1, 1], [0], [0]>} : vector<2x17x8xf32>, vector<2x17x8xf32>, vector<2x17x17xf32> -> vector<2x17x17xf32>
    "tpu.trace_stop"() : () -> ()
    %cst_30 = arith.constant dense<0xFF800000> : vector<2x17xf32>
    %56 = vector.multi_reduction <maximumf>, %55, %cst_30 [2] : vector<2x17x17xf32> to vector<2x17xf32>
    %57 = vector.shape_cast %56 : vector<2x17xf32> to vector<2x17x1xf32>
    %58 = vector.broadcast %57 : vector<2x17x1xf32> to vector<2x17x17xf32>
    %59 = arith.subf %55, %58 : vector<2x17x17xf32>
    %60 = math.exp %59 : vector<2x17x17xf32>
    %cst_31 = arith.constant dense<0.000000e+00> : vector<2x17xf32>
    %61 = vector.multi_reduction <add>, %60, %cst_31 [2] : vector<2x17x17xf32> to vector<2x17xf32>
    %62 = vector.shape_cast %61 : vector<2x17xf32> to vector<2x17x1xf32>
    %63 = tpu.reciprocal %62 {approx = true} : vector<2x17x1xf32> -> vector<2x17x1xf32>
    %64 = vector.broadcast %63 : vector<2x17x1xf32> to vector<2x17x17xf32>
    %65 = arith.mulf %60, %64 : vector<2x17x17xf32>
    "tpu.trace_start"() <{level = 10 : i32, message = "bqk,bkd->bqd"}> : () -> ()
    %cst_32 = arith.constant dense<0.000000e+00> : vector<2x17x8xf32>
    %66 = tpu.matmul %65, %54, %cst_32 {dimension_numbers = #tpu.dot_dimension_numbers<[2], [1], [1], [2], [0, 0, 0, 1, 1, 2], [0], [0]>} : vector<2x17x17xf32>, vector<2x17x8xf32>, vector<2x17x8xf32> -> vector<2x17x8xf32>
    "tpu.trace_stop"() : () -> ()
    %67 = vector.extract_strided_slice %49 {offsets = [0, 0, 8], sizes = [2, 17, 8], strides = [1, 1, 1]} : vector<2x17x288xf32> to vector<2x17x8xf32>
    %cst_33 = arith.constant 0.353553385 : f32
    %68 = vector.broadcast %cst_33 : f32 to vector<2x17x8xf32>
    %69 = arith.mulf %67, %68 : vector<2x17x8xf32>
    %70 = vector.extract_strided_slice %49 {offsets = [0, 0, 40], sizes = [2, 17, 8], strides = [1, 1, 1]} : vector<2x17x288xf32> to vector<2x17x8xf32>
    %71 = vector.extract_strided_slice %49 {offsets = [0, 0, 72], sizes = [2, 17, 8], strides = [1, 1, 1]} : vector<2x17x288xf32> to vector<2x17x8xf32>
    "tpu.trace_start"() <{level = 10 : i32, message = "bqd,bkd->bqk"}> : () -> ()
    %cst_34 = arith.constant dense<0.000000e+00> : vector<2x17x17xf32>
    %72 = tpu.matmul %69, %70, %cst_34 {dimension_numbers = #tpu.dot_dimension_numbers<[2], [2], [1], [1], [0, 0, 0, 1, 1, 1], [0], [0]>} : vector<2x17x8xf32>, vector<2x17x8xf32>, vector<2x17x17xf32> -> vector<2x17x17xf32>
    "tpu.trace_stop"() : () -> ()
    %cst_35 = arith.constant dense<0xFF800000> : vector<2x17xf32>
    %73 = vector.multi_reduction <maximumf>, %72, %cst_35 [2] : vector<2x17x17xf32> to vector<2x17xf32>
    %74 = vector.shape_cast %73 : vector<2x17xf32> to vector<2x17x1xf32>
    %75 = vector.broadcast %74 : vector<2x17x1xf32> to vector<2x17x17xf32>
    %76 = arith.subf %72, %75 : vector<2x17x17xf32>
    %77 = math.exp %76 : vector<2x17x17xf32>
    %cst_36 = arith.constant dense<0.000000e+00> : vector<2x17xf32>
    %78 = vector.multi_reduction <add>, %77, %cst_36 [2] : vector<2x17x17xf32> to vector<2x17xf32>
    %79 = vector.shape_cast %78 : vector<2x17xf32> to vector<2x17x1xf32>
    %80 = tpu.reciprocal %79 {approx = true} : vector<2x17x1xf32> -> vector<2x17x1xf32>
    %81 = vector.broadcast %80 : vector<2x17x1xf32> to vector<2x17x17xf32>
    %82 = arith.mulf %77, %81 : vector<2x17x17xf32>
    "tpu.trace_start"() <{level = 10 : i32, message = "bqk,bkd->bqd"}> : () -> ()
    %cst_37 = arith.constant dense<0.000000e+00> : vector<2x17x8xf32>
    %83 = tpu.matmul %82, %71, %cst_37 {dimension_numbers = #tpu.dot_dimension_numbers<[2], [1], [1], [2], [0, 0, 0, 1, 1, 2], [0], [0]>} : vector<2x17x17xf32>, vector<2x17x8xf32>, vector<2x17x8xf32> -> vector<2x17x8xf32>
    "tpu.trace_stop"() : () -> ()
    %84 = vector.extract_strided_slice %49 {offsets = [0, 0, 16], sizes = [2, 17, 8], strides = [1, 1, 1]} : vector<2x17x288xf32> to vector<2x17x8xf32>
    %cst_38 = arith.constant 0.353553385 : f32
    %85 = vector.broadcast %cst_38 : f32 to vector<2x17x8xf32>
    %86 = arith.mulf %84, %85 : vector<2x17x8xf32>
    %87 = vector.extract_strided_slice %49 {offsets = [0, 0, 48], sizes = [2, 17, 8], strides = [1, 1, 1]} : vector<2x17x288xf32> to vector<2x17x8xf32>
    %88 = vector.extract_strided_slice %49 {offsets = [0, 0, 80], sizes = [2, 17, 8], strides = [1, 1, 1]} : vector<2x17x288xf32> to vector<2x17x8xf32>
    "tpu.trace_start"() <{level = 10 : i32, message = "bqd,bkd->bqk"}> : () -> ()
    %cst_39 = arith.constant dense<0.000000e+00> : vector<2x17x17xf32>
    %89 = tpu.matmul %86, %87, %cst_39 {dimension_numbers = #tpu.dot_dimension_numbers<[2], [2], [1], [1], [0, 0, 0, 1, 1, 1], [0], [0]>} : vector<2x17x8xf32>, vector<2x17x8xf32>, vector<2x17x17xf32> -> vector<2x17x17xf32>
    "tpu.trace_stop"() : () -> ()
    %cst_40 = arith.constant dense<0xFF800000> : vector<2x17xf32>
    %90 = vector.multi_reduction <maximumf>, %89, %cst_40 [2] : vector<2x17x17xf32> to vector<2x17xf32>
    %91 = vector.shape_cast %90 : vector<2x17xf32> to vector<2x17x1xf32>
    %92 = vector.broadcast %91 : vector<2x17x1xf32> to vector<2x17x17xf32>
    %93 = arith.subf %89, %92 : vector<2x17x17xf32>
    %94 = math.exp %93 : vector<2x17x17xf32>
    %cst_41 = arith.constant dense<0.000000e+00> : vector<2x17xf32>
    %95 = vector.multi_reduction <add>, %94, %cst_41 [2] : vector<2x17x17xf32> to vector<2x17xf32>
    %96 = vector.shape_cast %95 : vector<2x17xf32> to vector<2x17x1xf32>
    %97 = tpu.reciprocal %96 {approx = true} : vector<2x17x1xf32> -> vector<2x17x1xf32>
    %98 = vector.broadcast %97 : vector<2x17x1xf32> to vector<2x17x17xf32>
    %99 = arith.mulf %94, %98 : vector<2x17x17xf32>
    "tpu.trace_start"() <{level = 10 : i32, message = "bqk,bkd->bqd"}> : () -> ()
    %cst_42 = arith.constant dense<0.000000e+00> : vector<2x17x8xf32>
    %100 = tpu.matmul %99, %88, %cst_42 {dimension_numbers = #tpu.dot_dimension_numbers<[2], [1], [1], [2], [0, 0, 0, 1, 1, 2], [0], [0]>} : vector<2x17x17xf32>, vector<2x17x8xf32>, vector<2x17x8xf32> -> vector<2x17x8xf32>
    "tpu.trace_stop"() : () -> ()
    %101 = vector.extract_strided_slice %49 {offsets = [0, 0, 24], sizes = [2, 17, 8], strides = [1, 1, 1]} : vector<2x17x288xf32> to vector<2x17x8xf32>
    %cst_43 = arith.constant 0.353553385 : f32
    %102 = vector.broadcast %cst_43 : f32 to vector<2x17x8xf32>
    %103 = arith.mulf %101, %102 : vector<2x17x8xf32>
    %104 = vector.extract_strided_slice %49 {offsets = [0, 0, 56], sizes = [2, 17, 8], strides = [1, 1, 1]} : vector<2x17x288xf32> to vector<2x17x8xf32>
    %105 = vector.extract_strided_slice %49 {offsets = [0, 0, 88], sizes = [2, 17, 8], strides = [1, 1, 1]} : vector<2x17x288xf32> to vector<2x17x8xf32>
    "tpu.trace_start"() <{level = 10 : i32, message = "bqd,bkd->bqk"}> : () -> ()
    %cst_44 = arith.constant dense<0.000000e+00> : vector<2x17x17xf32>
    %106 = tpu.matmul %103, %104, %cst_44 {dimension_numbers = #tpu.dot_dimension_numbers<[2], [2], [1], [1], [0, 0, 0, 1, 1, 1], [0], [0]>} : vector<2x17x8xf32>, vector<2x17x8xf32>, vector<2x17x17xf32> -> vector<2x17x17xf32>
    "tpu.trace_stop"() : () -> ()
    %cst_45 = arith.constant dense<0xFF800000> : vector<2x17xf32>
    %107 = vector.multi_reduction <maximumf>, %106, %cst_45 [2] : vector<2x17x17xf32> to vector<2x17xf32>
    %108 = vector.shape_cast %107 : vector<2x17xf32> to vector<2x17x1xf32>
    %109 = vector.broadcast %108 : vector<2x17x1xf32> to vector<2x17x17xf32>
    %110 = arith.subf %106, %109 : vector<2x17x17xf32>
    %111 = math.exp %110 : vector<2x17x17xf32>
    %cst_46 = arith.constant dense<0.000000e+00> : vector<2x17xf32>
    %112 = vector.multi_reduction <add>, %111, %cst_46 [2] : vector<2x17x17xf32> to vector<2x17xf32>
    %113 = vector.shape_cast %112 : vector<2x17xf32> to vector<2x17x1xf32>
    %114 = tpu.reciprocal %113 {approx = true} : vector<2x17x1xf32> -> vector<2x17x1xf32>
    %115 = vector.broadcast %114 : vector<2x17x1xf32> to vector<2x17x17xf32>
    %116 = arith.mulf %111, %115 : vector<2x17x17xf32>
    "tpu.trace_start"() <{level = 10 : i32, message = "bqk,bkd->bqd"}> : () -> ()
    %cst_47 = arith.constant dense<0.000000e+00> : vector<2x17x8xf32>
    %117 = tpu.matmul %116, %105, %cst_47 {dimension_numbers = #tpu.dot_dimension_numbers<[2], [1], [1], [2], [0, 0, 0, 1, 1, 2], [0], [0]>} : vector<2x17x17xf32>, vector<2x17x8xf32>, vector<2x17x8xf32> -> vector<2x17x8xf32>
    "tpu.trace_stop"() : () -> ()
    %118 = tpu.concatenate %66, %83, %100, %117 in 2 : vector<2x17x8xf32>, vector<2x17x8xf32>, vector<2x17x8xf32>, vector<2x17x8xf32> -> vector<2x17x32xf32>
    %119 = vector.extract_strided_slice %118 {offsets = [0, 0, 0], sizes = [1, 17, 32], strides = [1, 1, 1]} : vector<2x17x32xf32> to vector<1x17x32xf32>
    %120 = vector.shape_cast %119 : vector<1x17x32xf32> to vector<17x32xf32>
    %121 = vector.extract_strided_slice %118 {offsets = [1, 0, 0], sizes = [1, 17, 32], strides = [1, 1, 1]} : vector<2x17x32xf32> to vector<1x17x32xf32>
    %122 = vector.shape_cast %121 : vector<1x17x32xf32> to vector<17x32xf32>
    %123 = tpu.concatenate %120, %122 in 0 : vector<17x32xf32>, vector<17x32xf32> -> vector<34x32xf32>
    %124 = vector.extract_strided_slice %8 {offsets = [0, 0, 0], sizes = [1, 32, 32], strides = [1, 1, 1]} : vector<3x32x32xf32> to vector<1x32x32xf32>
    %125 = vector.shape_cast %124 : vector<1x32x32xf32> to vector<32x32xf32>
    %cst_48 = arith.constant dense<0.000000e+00> : vector<34x32xf32>
    %126 = tpu.matmul %123, %125, %cst_48 {dimension_numbers = #tpu.dot_dimension_numbers<[1], [0], [0], [1], [0, 0, 1, 1], [], []>} : vector<34x32xf32>, vector<32x32xf32>, vector<34x32xf32> -> vector<34x32xf32>
    %127 = vector.extract_strided_slice %5 {offsets = [6, 0], sizes = [1, 32], strides = [1, 1]} : vector<10x32xf32> to vector<1x32xf32>
    %128 = vector.broadcast %127 : vector<1x32xf32> to vector<34x32xf32>
    %129 = arith.addf %126, %128 : vector<34x32xf32>
    %130 = arith.addf %4, %129 : vector<34x32xf32>
    %131 = vector.extract_strided_slice %49 {offsets = [0, 0, 96], sizes = [2, 17, 8], strides = [1, 1, 1]} : vector<2x17x288xf32> to vector<2x17x8xf32>
    %cst_49 = arith.constant 0.353553385 : f32
    %132 = vector.broadcast %cst_49 : f32 to vector<2x17x8xf32>
    %133 = arith.mulf %131, %132 : vector<2x17x8xf32>
    %134 = vector.extract_strided_slice %49 {offsets = [0, 0, 128], sizes = [2, 17, 8], strides = [1, 1, 1]} : vector<2x17x288xf32> to vector<2x17x8xf32>
    %135 = vector.extract_strided_slice %49 {offsets = [0, 0, 160], sizes = [2, 17, 8], strides = [1, 1, 1]} : vector<2x17x288xf32> to vector<2x17x8xf32>
    "tpu.trace_start"() <{level = 10 : i32, message = "bqd,bkd->bqk"}> : () -> ()
    %cst_50 = arith.constant dense<0.000000e+00> : vector<2x17x17xf32>
    %136 = tpu.matmul %133, %134, %cst_50 {dimension_numbers = #tpu.dot_dimension_numbers<[2], [2], [1], [1], [0, 0, 0, 1, 1, 1], [0], [0]>} : vector<2x17x8xf32>, vector<2x17x8xf32>, vector<2x17x17xf32> -> vector<2x17x17xf32>
    "tpu.trace_stop"() : () -> ()
    %cst_51 = arith.constant dense<0xFF800000> : vector<2x17xf32>
    %137 = vector.multi_reduction <maximumf>, %136, %cst_51 [2] : vector<2x17x17xf32> to vector<2x17xf32>
    %138 = vector.shape_cast %137 : vector<2x17xf32> to vector<2x17x1xf32>
    %139 = vector.broadcast %138 : vector<2x17x1xf32> to vector<2x17x17xf32>
    %140 = arith.subf %136, %139 : vector<2x17x17xf32>
    %141 = math.exp %140 : vector<2x17x17xf32>
    %cst_52 = arith.constant dense<0.000000e+00> : vector<2x17xf32>
    %142 = vector.multi_reduction <add>, %141, %cst_52 [2] : vector<2x17x17xf32> to vector<2x17xf32>
    %143 = vector.shape_cast %142 : vector<2x17xf32> to vector<2x17x1xf32>
    %144 = tpu.reciprocal %143 {approx = true} : vector<2x17x1xf32> -> vector<2x17x1xf32>
    %145 = vector.broadcast %144 : vector<2x17x1xf32> to vector<2x17x17xf32>
    %146 = arith.mulf %141, %145 : vector<2x17x17xf32>
    "tpu.trace_start"() <{level = 10 : i32, message = "bqk,bkd->bqd"}> : () -> ()
    %cst_53 = arith.constant dense<0.000000e+00> : vector<2x17x8xf32>
    %147 = tpu.matmul %146, %135, %cst_53 {dimension_numbers = #tpu.dot_dimension_numbers<[2], [1], [1], [2], [0, 0, 0, 1, 1, 2], [0], [0]>} : vector<2x17x17xf32>, vector<2x17x8xf32>, vector<2x17x8xf32> -> vector<2x17x8xf32>
    "tpu.trace_stop"() : () -> ()
    %148 = vector.extract_strided_slice %49 {offsets = [0, 0, 104], sizes = [2, 17, 8], strides = [1, 1, 1]} : vector<2x17x288xf32> to vector<2x17x8xf32>
    %cst_54 = arith.constant 0.353553385 : f32
    %149 = vector.broadcast %cst_54 : f32 to vector<2x17x8xf32>
    %150 = arith.mulf %148, %149 : vector<2x17x8xf32>
    %151 = vector.extract_strided_slice %49 {offsets = [0, 0, 136], sizes = [2, 17, 8], strides = [1, 1, 1]} : vector<2x17x288xf32> to vector<2x17x8xf32>
    %152 = vector.extract_strided_slice %49 {offsets = [0, 0, 168], sizes = [2, 17, 8], strides = [1, 1, 1]} : vector<2x17x288xf32> to vector<2x17x8xf32>
    "tpu.trace_start"() <{level = 10 : i32, message = "bqd,bkd->bqk"}> : () -> ()
    %cst_55 = arith.constant dense<0.000000e+00> : vector<2x17x17xf32>
    %153 = tpu.matmul %150, %151, %cst_55 {dimension_numbers = #tpu.dot_dimension_numbers<[2], [2], [1], [1], [0, 0, 0, 1, 1, 1], [0], [0]>} : vector<2x17x8xf32>, vector<2x17x8xf32>, vector<2x17x17xf32> -> vector<2x17x17xf32>
    "tpu.trace_stop"() : () -> ()
    %cst_56 = arith.constant dense<0xFF800000> : vector<2x17xf32>
    %154 = vector.multi_reduction <maximumf>, %153, %cst_56 [2] : vector<2x17x17xf32> to vector<2x17xf32>
    %155 = vector.shape_cast %154 : vector<2x17xf32> to vector<2x17x1xf32>
    %156 = vector.broadcast %155 : vector<2x17x1xf32> to vector<2x17x17xf32>
    %157 = arith.subf %153, %156 : vector<2x17x17xf32>
    %158 = math.exp %157 : vector<2x17x17xf32>
    %cst_57 = arith.constant dense<0.000000e+00> : vector<2x17xf32>
    %159 = vector.multi_reduction <add>, %158, %cst_57 [2] : vector<2x17x17xf32> to vector<2x17xf32>
    %160 = vector.shape_cast %159 : vector<2x17xf32> to vector<2x17x1xf32>
    %161 = tpu.reciprocal %160 {approx = true} : vector<2x17x1xf32> -> vector<2x17x1xf32>
    %162 = vector.broadcast %161 : vector<2x17x1xf32> to vector<2x17x17xf32>
    %163 = arith.mulf %158, %162 : vector<2x17x17xf32>
    "tpu.trace_start"() <{level = 10 : i32, message = "bqk,bkd->bqd"}> : () -> ()
    %cst_58 = arith.constant dense<0.000000e+00> : vector<2x17x8xf32>
    %164 = tpu.matmul %163, %152, %cst_58 {dimension_numbers = #tpu.dot_dimension_numbers<[2], [1], [1], [2], [0, 0, 0, 1, 1, 2], [0], [0]>} : vector<2x17x17xf32>, vector<2x17x8xf32>, vector<2x17x8xf32> -> vector<2x17x8xf32>
    "tpu.trace_stop"() : () -> ()
    %165 = vector.extract_strided_slice %49 {offsets = [0, 0, 112], sizes = [2, 17, 8], strides = [1, 1, 1]} : vector<2x17x288xf32> to vector<2x17x8xf32>
    %cst_59 = arith.constant 0.353553385 : f32
    %166 = vector.broadcast %cst_59 : f32 to vector<2x17x8xf32>
    %167 = arith.mulf %165, %166 : vector<2x17x8xf32>
    %168 = vector.extract_strided_slice %49 {offsets = [0, 0, 144], sizes = [2, 17, 8], strides = [1, 1, 1]} : vector<2x17x288xf32> to vector<2x17x8xf32>
    %169 = vector.extract_strided_slice %49 {offsets = [0, 0, 176], sizes = [2, 17, 8], strides = [1, 1, 1]} : vector<2x17x288xf32> to vector<2x17x8xf32>
    "tpu.trace_start"() <{level = 10 : i32, message = "bqd,bkd->bqk"}> : () -> ()
    %cst_60 = arith.constant dense<0.000000e+00> : vector<2x17x17xf32>
    %170 = tpu.matmul %167, %168, %cst_60 {dimension_numbers = #tpu.dot_dimension_numbers<[2], [2], [1], [1], [0, 0, 0, 1, 1, 1], [0], [0]>} : vector<2x17x8xf32>, vector<2x17x8xf32>, vector<2x17x17xf32> -> vector<2x17x17xf32>
    "tpu.trace_stop"() : () -> ()
    %cst_61 = arith.constant dense<0xFF800000> : vector<2x17xf32>
    %171 = vector.multi_reduction <maximumf>, %170, %cst_61 [2] : vector<2x17x17xf32> to vector<2x17xf32>
    %172 = vector.shape_cast %171 : vector<2x17xf32> to vector<2x17x1xf32>
    %173 = vector.broadcast %172 : vector<2x17x1xf32> to vector<2x17x17xf32>
    %174 = arith.subf %170, %173 : vector<2x17x17xf32>
    %175 = math.exp %174 : vector<2x17x17xf32>
    %cst_62 = arith.constant dense<0.000000e+00> : vector<2x17xf32>
    %176 = vector.multi_reduction <add>, %175, %cst_62 [2] : vector<2x17x17xf32> to vector<2x17xf32>
    %177 = vector.shape_cast %176 : vector<2x17xf32> to vector<2x17x1xf32>
    %178 = tpu.reciprocal %177 {approx = true} : vector<2x17x1xf32> -> vector<2x17x1xf32>
    %179 = vector.broadcast %178 : vector<2x17x1xf32> to vector<2x17x17xf32>
    %180 = arith.mulf %175, %179 : vector<2x17x17xf32>
    "tpu.trace_start"() <{level = 10 : i32, message = "bqk,bkd->bqd"}> : () -> ()
    %cst_63 = arith.constant dense<0.000000e+00> : vector<2x17x8xf32>
    %181 = tpu.matmul %180, %169, %cst_63 {dimension_numbers = #tpu.dot_dimension_numbers<[2], [1], [1], [2], [0, 0, 0, 1, 1, 2], [0], [0]>} : vector<2x17x17xf32>, vector<2x17x8xf32>, vector<2x17x8xf32> -> vector<2x17x8xf32>
    "tpu.trace_stop"() : () -> ()
    %182 = vector.extract_strided_slice %49 {offsets = [0, 0, 120], sizes = [2, 17, 8], strides = [1, 1, 1]} : vector<2x17x288xf32> to vector<2x17x8xf32>
    %cst_64 = arith.constant 0.353553385 : f32
    %183 = vector.broadcast %cst_64 : f32 to vector<2x17x8xf32>
    %184 = arith.mulf %182, %183 : vector<2x17x8xf32>
    %185 = vector.extract_strided_slice %49 {offsets = [0, 0, 152], sizes = [2, 17, 8], strides = [1, 1, 1]} : vector<2x17x288xf32> to vector<2x17x8xf32>
    %186 = vector.extract_strided_slice %49 {offsets = [0, 0, 184], sizes = [2, 17, 8], strides = [1, 1, 1]} : vector<2x17x288xf32> to vector<2x17x8xf32>
    "tpu.trace_start"() <{level = 10 : i32, message = "bqd,bkd->bqk"}> : () -> ()
    %cst_65 = arith.constant dense<0.000000e+00> : vector<2x17x17xf32>
    %187 = tpu.matmul %184, %185, %cst_65 {dimension_numbers = #tpu.dot_dimension_numbers<[2], [2], [1], [1], [0, 0, 0, 1, 1, 1], [0], [0]>} : vector<2x17x8xf32>, vector<2x17x8xf32>, vector<2x17x17xf32> -> vector<2x17x17xf32>
    "tpu.trace_stop"() : () -> ()
    %cst_66 = arith.constant dense<0xFF800000> : vector<2x17xf32>
    %188 = vector.multi_reduction <maximumf>, %187, %cst_66 [2] : vector<2x17x17xf32> to vector<2x17xf32>
    %189 = vector.shape_cast %188 : vector<2x17xf32> to vector<2x17x1xf32>
    %190 = vector.broadcast %189 : vector<2x17x1xf32> to vector<2x17x17xf32>
    %191 = arith.subf %187, %190 : vector<2x17x17xf32>
    %192 = math.exp %191 : vector<2x17x17xf32>
    %cst_67 = arith.constant dense<0.000000e+00> : vector<2x17xf32>
    %193 = vector.multi_reduction <add>, %192, %cst_67 [2] : vector<2x17x17xf32> to vector<2x17xf32>
    %194 = vector.shape_cast %193 : vector<2x17xf32> to vector<2x17x1xf32>
    %195 = tpu.reciprocal %194 {approx = true} : vector<2x17x1xf32> -> vector<2x17x1xf32>
    %196 = vector.broadcast %195 : vector<2x17x1xf32> to vector<2x17x17xf32>
    %197 = arith.mulf %192, %196 : vector<2x17x17xf32>
    "tpu.trace_start"() <{level = 10 : i32, message = "bqk,bkd->bqd"}> : () -> ()
    %cst_68 = arith.constant dense<0.000000e+00> : vector<2x17x8xf32>
    %198 = tpu.matmul %197, %186, %cst_68 {dimension_numbers = #tpu.dot_dimension_numbers<[2], [1], [1], [2], [0, 0, 0, 1, 1, 2], [0], [0]>} : vector<2x17x17xf32>, vector<2x17x8xf32>, vector<2x17x8xf32> -> vector<2x17x8xf32>
    "tpu.trace_stop"() : () -> ()
    %199 = tpu.concatenate %147, %164, %181, %198 in 2 : vector<2x17x8xf32>, vector<2x17x8xf32>, vector<2x17x8xf32>, vector<2x17x8xf32> -> vector<2x17x32xf32>
    %200 = vector.extract_strided_slice %199 {offsets = [0, 0, 0], sizes = [1, 17, 32], strides = [1, 1, 1]} : vector<2x17x32xf32> to vector<1x17x32xf32>
    %201 = vector.shape_cast %200 : vector<1x17x32xf32> to vector<17x32xf32>
    %202 = vector.extract_strided_slice %199 {offsets = [1, 0, 0], sizes = [1, 17, 32], strides = [1, 1, 1]} : vector<2x17x32xf32> to vector<1x17x32xf32>
    %203 = vector.shape_cast %202 : vector<1x17x32xf32> to vector<17x32xf32>
    %204 = tpu.concatenate %201, %203 in 0 : vector<17x32xf32>, vector<17x32xf32> -> vector<34x32xf32>
    %205 = vector.extract_strided_slice %8 {offsets = [1, 0, 0], sizes = [1, 32, 32], strides = [1, 1, 1]} : vector<3x32x32xf32> to vector<1x32x32xf32>
    %206 = vector.shape_cast %205 : vector<1x32x32xf32> to vector<32x32xf32>
    %cst_69 = arith.constant dense<0.000000e+00> : vector<34x32xf32>
    %207 = tpu.matmul %204, %206, %cst_69 {dimension_numbers = #tpu.dot_dimension_numbers<[1], [0], [0], [1], [0, 0, 1, 1], [], []>} : vector<34x32xf32>, vector<32x32xf32>, vector<34x32xf32> -> vector<34x32xf32>
    %208 = vector.extract_strided_slice %5 {offsets = [7, 0], sizes = [1, 32], strides = [1, 1]} : vector<10x32xf32> to vector<1x32xf32>
    %209 = vector.broadcast %208 : vector<1x32xf32> to vector<34x32xf32>
    %210 = arith.addf %207, %209 : vector<34x32xf32>
    %211 = arith.addf %4, %210 : vector<34x32xf32>
    %212 = vector.extract_strided_slice %49 {offsets = [0, 0, 192], sizes = [2, 17, 8], strides = [1, 1, 1]} : vector<2x17x288xf32> to vector<2x17x8xf32>
    %cst_70 = arith.constant 0.353553385 : f32
    %213 = vector.broadcast %cst_70 : f32 to vector<2x17x8xf32>
    %214 = arith.mulf %212, %213 : vector<2x17x8xf32>
    %215 = vector.extract_strided_slice %49 {offsets = [0, 0, 224], sizes = [2, 17, 8], strides = [1, 1, 1]} : vector<2x17x288xf32> to vector<2x17x8xf32>
    %216 = vector.extract_strided_slice %49 {offsets = [0, 0, 256], sizes = [2, 17, 8], strides = [1, 1, 1]} : vector<2x17x288xf32> to vector<2x17x8xf32>
    "tpu.trace_start"() <{level = 10 : i32, message = "bqd,bkd->bqk"}> : () -> ()
    %cst_71 = arith.constant dense<0.000000e+00> : vector<2x17x17xf32>
    %217 = tpu.matmul %214, %215, %cst_71 {dimension_numbers = #tpu.dot_dimension_numbers<[2], [2], [1], [1], [0, 0, 0, 1, 1, 1], [0], [0]>} : vector<2x17x8xf32>, vector<2x17x8xf32>, vector<2x17x17xf32> -> vector<2x17x17xf32>
    "tpu.trace_stop"() : () -> ()
    %cst_72 = arith.constant dense<0xFF800000> : vector<2x17xf32>
    %218 = vector.multi_reduction <maximumf>, %217, %cst_72 [2] : vector<2x17x17xf32> to vector<2x17xf32>
    %219 = vector.shape_cast %218 : vector<2x17xf32> to vector<2x17x1xf32>
    %220 = vector.broadcast %219 : vector<2x17x1xf32> to vector<2x17x17xf32>
    %221 = arith.subf %217, %220 : vector<2x17x17xf32>
    %222 = math.exp %221 : vector<2x17x17xf32>
    %cst_73 = arith.constant dense<0.000000e+00> : vector<2x17xf32>
    %223 = vector.multi_reduction <add>, %222, %cst_73 [2] : vector<2x17x17xf32> to vector<2x17xf32>
    %224 = vector.shape_cast %223 : vector<2x17xf32> to vector<2x17x1xf32>
    %225 = tpu.reciprocal %224 {approx = true} : vector<2x17x1xf32> -> vector<2x17x1xf32>
    %226 = vector.broadcast %225 : vector<2x17x1xf32> to vector<2x17x17xf32>
    %227 = arith.mulf %222, %226 : vector<2x17x17xf32>
    "tpu.trace_start"() <{level = 10 : i32, message = "bqk,bkd->bqd"}> : () -> ()
    %cst_74 = arith.constant dense<0.000000e+00> : vector<2x17x8xf32>
    %228 = tpu.matmul %227, %216, %cst_74 {dimension_numbers = #tpu.dot_dimension_numbers<[2], [1], [1], [2], [0, 0, 0, 1, 1, 2], [0], [0]>} : vector<2x17x17xf32>, vector<2x17x8xf32>, vector<2x17x8xf32> -> vector<2x17x8xf32>
    "tpu.trace_stop"() : () -> ()
    %229 = vector.extract_strided_slice %49 {offsets = [0, 0, 200], sizes = [2, 17, 8], strides = [1, 1, 1]} : vector<2x17x288xf32> to vector<2x17x8xf32>
    %cst_75 = arith.constant 0.353553385 : f32
    %230 = vector.broadcast %cst_75 : f32 to vector<2x17x8xf32>
    %231 = arith.mulf %229, %230 : vector<2x17x8xf32>
    %232 = vector.extract_strided_slice %49 {offsets = [0, 0, 232], sizes = [2, 17, 8], strides = [1, 1, 1]} : vector<2x17x288xf32> to vector<2x17x8xf32>
    %233 = vector.extract_strided_slice %49 {offsets = [0, 0, 264], sizes = [2, 17, 8], strides = [1, 1, 1]} : vector<2x17x288xf32> to vector<2x17x8xf32>
    "tpu.trace_start"() <{level = 10 : i32, message = "bqd,bkd->bqk"}> : () -> ()
    %cst_76 = arith.constant dense<0.000000e+00> : vector<2x17x17xf32>
    %234 = tpu.matmul %231, %232, %cst_76 {dimension_numbers = #tpu.dot_dimension_numbers<[2], [2], [1], [1], [0, 0, 0, 1, 1, 1], [0], [0]>} : vector<2x17x8xf32>, vector<2x17x8xf32>, vector<2x17x17xf32> -> vector<2x17x17xf32>
    "tpu.trace_stop"() : () -> ()
    %cst_77 = arith.constant dense<0xFF800000> : vector<2x17xf32>
    %235 = vector.multi_reduction <maximumf>, %234, %cst_77 [2] : vector<2x17x17xf32> to vector<2x17xf32>
    %236 = vector.shape_cast %235 : vector<2x17xf32> to vector<2x17x1xf32>
    %237 = vector.broadcast %236 : vector<2x17x1xf32> to vector<2x17x17xf32>
    %238 = arith.subf %234, %237 : vector<2x17x17xf32>
    %239 = math.exp %238 : vector<2x17x17xf32>
    %cst_78 = arith.constant dense<0.000000e+00> : vector<2x17xf32>
    %240 = vector.multi_reduction <add>, %239, %cst_78 [2] : vector<2x17x17xf32> to vector<2x17xf32>
    %241 = vector.shape_cast %240 : vector<2x17xf32> to vector<2x17x1xf32>
    %242 = tpu.reciprocal %241 {approx = true} : vector<2x17x1xf32> -> vector<2x17x1xf32>
    %243 = vector.broadcast %242 : vector<2x17x1xf32> to vector<2x17x17xf32>
    %244 = arith.mulf %239, %243 : vector<2x17x17xf32>
    "tpu.trace_start"() <{level = 10 : i32, message = "bqk,bkd->bqd"}> : () -> ()
    %cst_79 = arith.constant dense<0.000000e+00> : vector<2x17x8xf32>
    %245 = tpu.matmul %244, %233, %cst_79 {dimension_numbers = #tpu.dot_dimension_numbers<[2], [1], [1], [2], [0, 0, 0, 1, 1, 2], [0], [0]>} : vector<2x17x17xf32>, vector<2x17x8xf32>, vector<2x17x8xf32> -> vector<2x17x8xf32>
    "tpu.trace_stop"() : () -> ()
    %246 = vector.extract_strided_slice %49 {offsets = [0, 0, 208], sizes = [2, 17, 8], strides = [1, 1, 1]} : vector<2x17x288xf32> to vector<2x17x8xf32>
    %cst_80 = arith.constant 0.353553385 : f32
    %247 = vector.broadcast %cst_80 : f32 to vector<2x17x8xf32>
    %248 = arith.mulf %246, %247 : vector<2x17x8xf32>
    %249 = vector.extract_strided_slice %49 {offsets = [0, 0, 240], sizes = [2, 17, 8], strides = [1, 1, 1]} : vector<2x17x288xf32> to vector<2x17x8xf32>
    %250 = vector.extract_strided_slice %49 {offsets = [0, 0, 272], sizes = [2, 17, 8], strides = [1, 1, 1]} : vector<2x17x288xf32> to vector<2x17x8xf32>
    "tpu.trace_start"() <{level = 10 : i32, message = "bqd,bkd->bqk"}> : () -> ()
    %cst_81 = arith.constant dense<0.000000e+00> : vector<2x17x17xf32>
    %251 = tpu.matmul %248, %249, %cst_81 {dimension_numbers = #tpu.dot_dimension_numbers<[2], [2], [1], [1], [0, 0, 0, 1, 1, 1], [0], [0]>} : vector<2x17x8xf32>, vector<2x17x8xf32>, vector<2x17x17xf32> -> vector<2x17x17xf32>
    "tpu.trace_stop"() : () -> ()
    %cst_82 = arith.constant dense<0xFF800000> : vector<2x17xf32>
    %252 = vector.multi_reduction <maximumf>, %251, %cst_82 [2] : vector<2x17x17xf32> to vector<2x17xf32>
    %253 = vector.shape_cast %252 : vector<2x17xf32> to vector<2x17x1xf32>
    %254 = vector.broadcast %253 : vector<2x17x1xf32> to vector<2x17x17xf32>
    %255 = arith.subf %251, %254 : vector<2x17x17xf32>
    %256 = math.exp %255 : vector<2x17x17xf32>
    %cst_83 = arith.constant dense<0.000000e+00> : vector<2x17xf32>
    %257 = vector.multi_reduction <add>, %256, %cst_83 [2] : vector<2x17x17xf32> to vector<2x17xf32>
    %258 = vector.shape_cast %257 : vector<2x17xf32> to vector<2x17x1xf32>
    %259 = tpu.reciprocal %258 {approx = true} : vector<2x17x1xf32> -> vector<2x17x1xf32>
    %260 = vector.broadcast %259 : vector<2x17x1xf32> to vector<2x17x17xf32>
    %261 = arith.mulf %256, %260 : vector<2x17x17xf32>
    "tpu.trace_start"() <{level = 10 : i32, message = "bqk,bkd->bqd"}> : () -> ()
    %cst_84 = arith.constant dense<0.000000e+00> : vector<2x17x8xf32>
    %262 = tpu.matmul %261, %250, %cst_84 {dimension_numbers = #tpu.dot_dimension_numbers<[2], [1], [1], [2], [0, 0, 0, 1, 1, 2], [0], [0]>} : vector<2x17x17xf32>, vector<2x17x8xf32>, vector<2x17x8xf32> -> vector<2x17x8xf32>
    "tpu.trace_stop"() : () -> ()
    %263 = vector.extract_strided_slice %49 {offsets = [0, 0, 216], sizes = [2, 17, 8], strides = [1, 1, 1]} : vector<2x17x288xf32> to vector<2x17x8xf32>
    %cst_85 = arith.constant 0.353553385 : f32
    %264 = vector.broadcast %cst_85 : f32 to vector<2x17x8xf32>
    %265 = arith.mulf %263, %264 : vector<2x17x8xf32>
    %266 = vector.extract_strided_slice %49 {offsets = [0, 0, 248], sizes = [2, 17, 8], strides = [1, 1, 1]} : vector<2x17x288xf32> to vector<2x17x8xf32>
    %267 = vector.extract_strided_slice %49 {offsets = [0, 0, 280], sizes = [2, 17, 8], strides = [1, 1, 1]} : vector<2x17x288xf32> to vector<2x17x8xf32>
    "tpu.trace_start"() <{level = 10 : i32, message = "bqd,bkd->bqk"}> : () -> ()
    %cst_86 = arith.constant dense<0.000000e+00> : vector<2x17x17xf32>
    %268 = tpu.matmul %265, %266, %cst_86 {dimension_numbers = #tpu.dot_dimension_numbers<[2], [2], [1], [1], [0, 0, 0, 1, 1, 1], [0], [0]>} : vector<2x17x8xf32>, vector<2x17x8xf32>, vector<2x17x17xf32> -> vector<2x17x17xf32>
    "tpu.trace_stop"() : () -> ()
    %cst_87 = arith.constant dense<0xFF800000> : vector<2x17xf32>
    %269 = vector.multi_reduction <maximumf>, %268, %cst_87 [2] : vector<2x17x17xf32> to vector<2x17xf32>
    %270 = vector.shape_cast %269 : vector<2x17xf32> to vector<2x17x1xf32>
    %271 = vector.broadcast %270 : vector<2x17x1xf32> to vector<2x17x17xf32>
    %272 = arith.subf %268, %271 : vector<2x17x17xf32>
    %273 = math.exp %272 : vector<2x17x17xf32>
    %cst_88 = arith.constant dense<0.000000e+00> : vector<2x17xf32>
    %274 = vector.multi_reduction <add>, %273, %cst_88 [2] : vector<2x17x17xf32> to vector<2x17xf32>
    %275 = vector.shape_cast %274 : vector<2x17xf32> to vector<2x17x1xf32>
    %276 = tpu.reciprocal %275 {approx = true} : vector<2x17x1xf32> -> vector<2x17x1xf32>
    %277 = vector.broadcast %276 : vector<2x17x1xf32> to vector<2x17x17xf32>
    %278 = arith.mulf %273, %277 : vector<2x17x17xf32>
    "tpu.trace_start"() <{level = 10 : i32, message = "bqk,bkd->bqd"}> : () -> ()
    %cst_89 = arith.constant dense<0.000000e+00> : vector<2x17x8xf32>
    %279 = tpu.matmul %278, %267, %cst_89 {dimension_numbers = #tpu.dot_dimension_numbers<[2], [1], [1], [2], [0, 0, 0, 1, 1, 2], [0], [0]>} : vector<2x17x17xf32>, vector<2x17x8xf32>, vector<2x17x8xf32> -> vector<2x17x8xf32>
    "tpu.trace_stop"() : () -> ()
    %280 = tpu.concatenate %228, %245, %262, %279 in 2 : vector<2x17x8xf32>, vector<2x17x8xf32>, vector<2x17x8xf32>, vector<2x17x8xf32> -> vector<2x17x32xf32>
    %281 = vector.extract_strided_slice %280 {offsets = [0, 0, 0], sizes = [1, 17, 32], strides = [1, 1, 1]} : vector<2x17x32xf32> to vector<1x17x32xf32>
    %282 = vector.shape_cast %281 : vector<1x17x32xf32> to vector<17x32xf32>
    %283 = vector.extract_strided_slice %280 {offsets = [1, 0, 0], sizes = [1, 17, 32], strides = [1, 1, 1]} : vector<2x17x32xf32> to vector<1x17x32xf32>
    %284 = vector.shape_cast %283 : vector<1x17x32xf32> to vector<17x32xf32>
    %285 = tpu.concatenate %282, %284 in 0 : vector<17x32xf32>, vector<17x32xf32> -> vector<34x32xf32>
    %286 = vector.extract_strided_slice %8 {offsets = [2, 0, 0], sizes = [1, 32, 32], strides = [1, 1, 1]} : vector<3x32x32xf32> to vector<1x32x32xf32>
    %287 = vector.shape_cast %286 : vector<1x32x32xf32> to vector<32x32xf32>
    %cst_90 = arith.constant dense<0.000000e+00> : vector<34x32xf32>
    %288 = tpu.matmul %285, %287, %cst_90 {dimension_numbers = #tpu.dot_dimension_numbers<[1], [0], [0], [1], [0, 0, 1, 1], [], []>} : vector<34x32xf32>, vector<32x32xf32>, vector<34x32xf32> -> vector<34x32xf32>
    %289 = vector.extract_strided_slice %5 {offsets = [8, 0], sizes = [1, 32], strides = [1, 1]} : vector<10x32xf32> to vector<1x32xf32>
    %290 = vector.broadcast %289 : vector<1x32xf32> to vector<34x32xf32>
    %291 = arith.addf %288, %290 : vector<34x32xf32>
    %292 = arith.addf %4, %291 : vector<34x32xf32>
    %293 = tpu.concatenate %130, %211, %292 in 0 : vector<34x32xf32>, vector<34x32xf32>, vector<34x32xf32> -> vector<102x32xf32>
    %cst_91 = arith.constant dense<0.000000e+00> : vector<102xf32>
    %294 = vector.multi_reduction <add>, %293, %cst_91 [1] : vector<102x32xf32> to vector<102xf32>
    %295 = vector.shape_cast %294 : vector<102xf32> to vector<102x1xf32>
    %cst_92 = arith.constant 3.200000e+01 : f32
    %296 = vector.broadcast %cst_92 : f32 to vector<102x1xf32>
    %297 = arith.divf %295, %296 : vector<102x1xf32>
    %298 = vector.broadcast %297 : vector<102x1xf32> to vector<102x32xf32>
    %299 = arith.subf %293, %298 : vector<102x32xf32>
    %300 = arith.mulf %299, %299 : vector<102x32xf32>
    %cst_93 = arith.constant dense<0.000000e+00> : vector<102xf32>
    %301 = vector.multi_reduction <add>, %300, %cst_93 [1] : vector<102x32xf32> to vector<102xf32>
    %302 = vector.shape_cast %301 : vector<102xf32> to vector<102x1xf32>
    %cst_94 = arith.constant 3.200000e+01 : f32
    %303 = vector.broadcast %cst_94 : f32 to vector<102x1xf32>
    %304 = arith.divf %302, %303 : vector<102x1xf32>
    %305 = vector.broadcast %297 : vector<102x1xf32> to vector<102x32xf32>
    %306 = arith.subf %293, %305 : vector<102x32xf32>
    %cst_95 = arith.constant 9.99999974E-6 : f32
    %307 = vector.broadcast %cst_95 : f32 to vector<102x1xf32>
    %308 = arith.addf %304, %307 : vector<102x1xf32>
    %309 = math.rsqrt %308 : vector<102x1xf32>
    %310 = vector.broadcast %309 : vector<102x1xf32> to vector<102x32xf32>
    %311 = arith.mulf %306, %310 : vector<102x32xf32>
    %312 = vector.broadcast %15 : vector<1x32xf32> to vector<102x32xf32>
    %313 = arith.mulf %311, %312 : vector<102x32xf32>
    %314 = vector.broadcast %16 : vector<1x32xf32> to vector<102x32xf32>
    %315 = arith.addf %313, %314 : vector<102x32xf32>
    %cst_96 = arith.constant dense<0.000000e+00> : vector<102x128xf32>
    %316 = tpu.matmul %315, %9, %cst_96 {dimension_numbers = #tpu.dot_dimension_numbers<[1], [0], [0], [1], [0, 0, 1, 1], [], []>} : vector<102x32xf32>, vector<32x128xf32>, vector<102x128xf32> -> vector<102x128xf32>
    %317 = vector.broadcast %10 : vector<1x128xf32> to vector<102x128xf32>
    %318 = arith.addf %316, %317 : vector<102x128xf32>
    %cst_97 = arith.constant -1.702000e+00 : f32
    %319 = vector.broadcast %cst_97 : f32 to vector<102x128xf32>
    %320 = arith.mulf %319, %318 : vector<102x128xf32>
    %321 = math.exp %320 : vector<102x128xf32>
    %cst_98 = arith.constant 1.000000e+00 : f32
    %322 = vector.broadcast %cst_98 : f32 to vector<102x128xf32>
    %323 = arith.addf %322, %321 : vector<102x128xf32>
    %324 = tpu.reciprocal %323 {approx = true} : vector<102x128xf32> -> vector<102x128xf32>
    %325 = arith.mulf %318, %324 : vector<102x128xf32>
    %cst_99 = arith.constant dense<0.000000e+00> : vector<102x32xf32>
    %326 = tpu.matmul %325, %11, %cst_99 {dimension_numbers = #tpu.dot_dimension_numbers<[1], [0], [0], [1], [0, 0, 1, 1], [], []>} : vector<102x128xf32>, vector<128x32xf32>, vector<102x32xf32> -> vector<102x32xf32>
    %327 = arith.addf %293, %326 : vector<102x32xf32>
    %328 = vector.broadcast %19 : vector<1x32xf32> to vector<102x32xf32>
    %329 = arith.addf %327, %328 : vector<102x32xf32>
    %330 = vector.extract_strided_slice %329 {offsets = [0, 0], sizes = [1, 32], strides = [1, 1]} : vector<102x32xf32> to vector<1x32xf32>
    %331 = vector.extract_strided_slice %329 {offsets = [17, 0], sizes = [1, 32], strides = [1, 1]} : vector<102x32xf32> to vector<1x32xf32>
    %332 = vector.extract_strided_slice %329 {offsets = [34, 0], sizes = [1, 32], strides = [1, 1]} : vector<102x32xf32> to vector<1x32xf32>
    %333 = vector.extract_strided_slice %329 {offsets = [51, 0], sizes = [1, 32], strides = [1, 1]} : vector<102x32xf32> to vector<1x32xf32>
    %334 = vector.extract_strided_slice %329 {offsets = [68, 0], sizes = [1, 32], strides = [1, 1]} : vector<102x32xf32> to vector<1x32xf32>
    %335 = vector.extract_strided_slice %329 {offsets = [85, 0], sizes = [1, 32], strides = [1, 1]} : vector<102x32xf32> to vector<1x32xf32>
    %336 = tpu.concatenate %330, %331, %332, %333, %334, %335 in 0 : vector<1x32xf32>, vector<1x32xf32>, vector<1x32xf32>, vector<1x32xf32>, vector<1x32xf32>, vector<1x32xf32> -> vector<6x32xf32>
    %cst_100 = arith.constant dense<0.000000e+00> : vector<6xf32>
    %337 = vector.multi_reduction <add>, %336, %cst_100 [1] : vector<6x32xf32> to vector<6xf32>
    %338 = vector.shape_cast %337 : vector<6xf32> to vector<6x1xf32>
    %cst_101 = arith.constant 3.200000e+01 : f32
    %339 = vector.broadcast %cst_101 : f32 to vector<6x1xf32>
    %340 = arith.divf %338, %339 : vector<6x1xf32>
    %341 = vector.broadcast %340 : vector<6x1xf32> to vector<6x32xf32>
    %342 = arith.subf %336, %341 : vector<6x32xf32>
    %343 = arith.mulf %342, %342 : vector<6x32xf32>
    %cst_102 = arith.constant dense<0.000000e+00> : vector<6xf32>
    %344 = vector.multi_reduction <add>, %343, %cst_102 [1] : vector<6x32xf32> to vector<6xf32>
    %345 = vector.shape_cast %344 : vector<6xf32> to vector<6x1xf32>
    %cst_103 = arith.constant 3.200000e+01 : f32
    %346 = vector.broadcast %cst_103 : f32 to vector<6x1xf32>
    %347 = arith.divf %345, %346 : vector<6x1xf32>
    %348 = vector.broadcast %340 : vector<6x1xf32> to vector<6x32xf32>
    %349 = arith.subf %336, %348 : vector<6x32xf32>
    %cst_104 = arith.constant 9.99999974E-6 : f32
    %350 = vector.broadcast %cst_104 : f32 to vector<6x1xf32>
    %351 = arith.addf %347, %350 : vector<6x1xf32>
    %352 = math.rsqrt %351 : vector<6x1xf32>
    %353 = vector.broadcast %352 : vector<6x1xf32> to vector<6x32xf32>
    %354 = arith.mulf %349, %353 : vector<6x32xf32>
    %355 = vector.broadcast %17 : vector<1x32xf32> to vector<6x32xf32>
    %356 = arith.mulf %354, %355 : vector<6x32xf32>
    %357 = vector.broadcast %18 : vector<1x32xf32> to vector<6x32xf32>
    %358 = arith.addf %356, %357 : vector<6x32xf32>
    %cst_105 = arith.constant dense<0.000000e+00> : vector<6x32xf32>
    %359 = tpu.matmul %358, %12, %cst_105 {dimension_numbers = #tpu.dot_dimension_numbers<[1], [0], [0], [1], [0, 0, 1, 1], [], []>} : vector<6x32xf32>, vector<32x32xf32>, vector<6x32xf32> -> vector<6x32xf32>
    %c0_106 = arith.constant 0 : index
    %c0_107 = arith.constant 0 : index
    %360 = vector.load %arg21[%c0_106, %c0_107] : memref<6x32xf32, #tpu.memory_space<vmem>>, vector<6x32xf32>
    tpu.vector_store %arg21[%c0_106, %c0_107], %359 {strides = array<i32>} : memref<6x32xf32, #tpu.memory_space<vmem>>, vector<6x32xf32>,
    %c0_108 = arith.constant 0 : index
    %c0_109 = arith.constant 0 : index
    %361 = vector.load %arg12[%c0_108, %c0_109] : memref<16x32xf32, #tpu.memory_space<vmem>>, vector<16x32xf32>
    %c0_110 = arith.constant 0 : index
    %c0_111 = arith.constant 0 : index
    %362 = vector.load %arg13[%c0_110, %c0_111] : memref<8x32xf32, #tpu.memory_space<vmem>>, vector<8x32xf32>
    %c0_112 = arith.constant 0 : index
    %c0_113 = arith.constant 0 : index
    %363 = vector.load %arg14[%c0_112, %c0_113] : memref<32x96xf32, #tpu.memory_space<vmem>>, vector<32x96xf32>
    %c0_114 = arith.constant 0 : index
    %c0_115 = arith.constant 0 : index
    %364 = vector.load %arg15[%c0_114, %c0_115] : memref<1x96xf32, #tpu.memory_space<vmem>>, vector<1x96xf32>
    %c0_116 = arith.constant 0 : index
    %c0_117 = arith.constant 0 : index
    %c0_118 = arith.constant 0 : index
    %365 = vector.load %arg16[%c0_116, %c0_117, %c0_118] : memref<1x32x32xf32, #tpu.memory_space<vmem>>, vector<1x32x32xf32>
    %c0_119 = arith.constant 0 : index
    %c0_120 = arith.constant 0 : index
    %366 = vector.load %arg17[%c0_119, %c0_120] : memref<32x128xf32, #tpu.memory_space<vmem>>, vector<32x128xf32>
    %c0_121 = arith.constant 0 : index
    %c0_122 = arith.constant 0 : index
    %367 = vector.load %arg18[%c0_121, %c0_122] : memref<1x128xf32, #tpu.memory_space<vmem>>, vector<1x128xf32>
    %c0_123 = arith.constant 0 : index
    %c0_124 = arith.constant 0 : index
    %368 = vector.load %arg19[%c0_123, %c0_124] : memref<128x32xf32, #tpu.memory_space<vmem>>, vector<128x32xf32>
    %c0_125 = arith.constant 0 : index
    %c0_126 = arith.constant 0 : index
    %369 = vector.load %arg20[%c0_125, %c0_126] : memref<32x32xf32, #tpu.memory_space<vmem>>, vector<32x32xf32>
    %370 = vector.extract_strided_slice %362 {offsets = [0, 0], sizes = [1, 32], strides = [1, 1]} : vector<8x32xf32> to vector<1x32xf32>
    %371 = vector.extract_strided_slice %362 {offsets = [1, 0], sizes = [1, 32], strides = [1, 1]} : vector<8x32xf32> to vector<1x32xf32>
    %372 = vector.extract_strided_slice %362 {offsets = [2, 0], sizes = [1, 32], strides = [1, 1]} : vector<8x32xf32> to vector<1x32xf32>
    %373 = vector.extract_strided_slice %362 {offsets = [3, 0], sizes = [1, 32], strides = [1, 1]} : vector<8x32xf32> to vector<1x32xf32>
    %374 = vector.extract_strided_slice %362 {offsets = [4, 0], sizes = [1, 32], strides = [1, 1]} : vector<8x32xf32> to vector<1x32xf32>
    %375 = vector.extract_strided_slice %362 {offsets = [5, 0], sizes = [1, 32], strides = [1, 1]} : vector<8x32xf32> to vector<1x32xf32>
    %376 = vector.extract_strided_slice %362 {offsets = [7, 0], sizes = [1, 32], strides = [1, 1]} : vector<8x32xf32> to vector<1x32xf32>
    %cst_127 = arith.constant dense<0.000000e+00> : vector<16xf32>
    %377 = vector.multi_reduction <add>, %361, %cst_127 [1] : vector<16x32xf32> to vector<16xf32>
    %378 = vector.shape_cast %377 : vector<16xf32> to vector<16x1xf32>
    %cst_128 = arith.constant 3.200000e+01 : f32
    %379 = vector.broadcast %cst_128 : f32 to vector<16x1xf32>
    %380 = arith.divf %378, %379 : vector<16x1xf32>
    %381 = vector.broadcast %380 : vector<16x1xf32> to vector<16x32xf32>
    %382 = arith.subf %361, %381 : vector<16x32xf32>
    %383 = arith.mulf %382, %382 : vector<16x32xf32>
    %cst_129 = arith.constant dense<0.000000e+00> : vector<16xf32>
    %384 = vector.multi_reduction <add>, %383, %cst_129 [1] : vector<16x32xf32> to vector<16xf32>
    %385 = vector.shape_cast %384 : vector<16xf32> to vector<16x1xf32>
    %cst_130 = arith.constant 3.200000e+01 : f32
    %386 = vector.broadcast %cst_130 : f32 to vector<16x1xf32>
    %387 = arith.divf %385, %386 : vector<16x1xf32>
    %388 = vector.broadcast %380 : vector<16x1xf32> to vector<16x32xf32>
    %389 = arith.subf %361, %388 : vector<16x32xf32>
    %cst_131 = arith.constant 9.99999974E-6 : f32
    %390 = vector.broadcast %cst_131 : f32 to vector<16x1xf32>
    %391 = arith.addf %387, %390 : vector<16x1xf32>
    %392 = math.rsqrt %391 : vector<16x1xf32>
    %393 = vector.broadcast %392 : vector<16x1xf32> to vector<16x32xf32>
    %394 = arith.mulf %389, %393 : vector<16x32xf32>
    %395 = vector.broadcast %370 : vector<1x32xf32> to vector<16x32xf32>
    %396 = arith.mulf %394, %395 : vector<16x32xf32>
    %397 = vector.broadcast %371 : vector<1x32xf32> to vector<16x32xf32>
    %398 = arith.addf %396, %397 : vector<16x32xf32>
    %cst_132 = arith.constant dense<0.000000e+00> : vector<16x96xf32>
    %399 = tpu.matmul %398, %363, %cst_132 {dimension_numbers = #tpu.dot_dimension_numbers<[1], [0], [0], [1], [0, 0, 1, 1], [], []>} : vector<16x32xf32>, vector<32x96xf32>, vector<16x96xf32> -> vector<16x96xf32>
    %400 = vector.broadcast %364 : vector<1x96xf32> to vector<16x96xf32>
    %401 = arith.addf %399, %400 : vector<16x96xf32>
    %402 = vector.extract_strided_slice %401 {offsets = [0, 0], sizes = [8, 96], strides = [1, 1]} : vector<16x96xf32> to vector<8x96xf32>
    %403 = vector.extract_strided_slice %401 {offsets = [8, 0], sizes = [8, 96], strides = [1, 1]} : vector<16x96xf32> to vector<8x96xf32>
    %404 = vector.shape_cast %402 : vector<8x96xf32> to vector<1x8x96xf32>
    %405 = vector.shape_cast %403 : vector<8x96xf32> to vector<1x8x96xf32>
    %406 = tpu.concatenate %404, %405 in 0 : vector<1x8x96xf32>, vector<1x8x96xf32> -> vector<2x8x96xf32>
    %407 = vector.extract_strided_slice %406 {offsets = [0, 0, 0], sizes = [2, 8, 8], strides = [1, 1, 1]} : vector<2x8x96xf32> to vector<2x8x8xf32>
    %cst_133 = arith.constant 0.353553385 : f32
    %408 = vector.broadcast %cst_133 : f32 to vector<2x8x8xf32>
    %409 = arith.mulf %407, %408 : vector<2x8x8xf32>
    %410 = vector.extract_strided_slice %406 {offsets = [0, 0, 32], sizes = [2, 8, 8], strides = [1, 1, 1]} : vector<2x8x96xf32> to vector<2x8x8xf32>
    %411 = vector.extract_strided_slice %406 {offsets = [0, 0, 64], sizes = [2, 8, 8], strides = [1, 1, 1]} : vector<2x8x96xf32> to vector<2x8x8xf32>
    "tpu.trace_start"() <{level = 10 : i32, message = "bqd,bkd->bqk"}> : () -> ()
    %cst_134 = arith.constant dense<0.000000e+00> : vector<2x8x8xf32>
    %412 = tpu.matmul %409, %410, %cst_134 {dimension_numbers = #tpu.dot_dimension_numbers<[2], [2], [1], [1], [0, 0, 0, 1, 1, 1], [0], [0]>} : vector<2x8x8xf32>, vector<2x8x8xf32>, vector<2x8x8xf32> -> vector<2x8x8xf32>
    "tpu.trace_stop"() : () -> ()
    %cst_135 = arith.constant dense<0xFF800000> : vector<2x8xf32>
    %413 = vector.multi_reduction <maximumf>, %412, %cst_135 [2] : vector<2x8x8xf32> to vector<2x8xf32>
    %414 = vector.shape_cast %413 : vector<2x8xf32> to vector<2x8x1xf32>
    %415 = vector.broadcast %414 : vector<2x8x1xf32> to vector<2x8x8xf32>
    %416 = arith.subf %412, %415 : vector<2x8x8xf32>
    %417 = math.exp %416 : vector<2x8x8xf32>
    %cst_136 = arith.constant dense<0.000000e+00> : vector<2x8xf32>
    %418 = vector.multi_reduction <add>, %417, %cst_136 [2] : vector<2x8x8xf32> to vector<2x8xf32>
    %419 = vector.shape_cast %418 : vector<2x8xf32> to vector<2x8x1xf32>
    %420 = tpu.reciprocal %419 {approx = true} : vector<2x8x1xf32> -> vector<2x8x1xf32>
    %421 = vector.broadcast %420 : vector<2x8x1xf32> to vector<2x8x8xf32>
    %422 = arith.mulf %417, %421 : vector<2x8x8xf32>
    "tpu.trace_start"() <{level = 10 : i32, message = "bqk,bkd->bqd"}> : () -> ()
    %cst_137 = arith.constant dense<0.000000e+00> : vector<2x8x8xf32>
    %423 = tpu.matmul %422, %411, %cst_137 {dimension_numbers = #tpu.dot_dimension_numbers<[2], [1], [1], [2], [0, 0, 0, 1, 1, 2], [0], [0]>} : vector<2x8x8xf32>, vector<2x8x8xf32>, vector<2x8x8xf32> -> vector<2x8x8xf32>
    "tpu.trace_stop"() : () -> ()
    %424 = vector.extract_strided_slice %406 {offsets = [0, 0, 8], sizes = [2, 8, 8], strides = [1, 1, 1]} : vector<2x8x96xf32> to vector<2x8x8xf32>
    %cst_138 = arith.constant 0.353553385 : f32
    %425 = vector.broadcast %cst_138 : f32 to vector<2x8x8xf32>
    %426 = arith.mulf %424, %425 : vector<2x8x8xf32>
    %427 = vector.extract_strided_slice %406 {offsets = [0, 0, 40], sizes = [2, 8, 8], strides = [1, 1, 1]} : vector<2x8x96xf32> to vector<2x8x8xf32>
    %428 = vector.extract_strided_slice %406 {offsets = [0, 0, 72], sizes = [2, 8, 8], strides = [1, 1, 1]} : vector<2x8x96xf32> to vector<2x8x8xf32>
    "tpu.trace_start"() <{level = 10 : i32, message = "bqd,bkd->bqk"}> : () -> ()
    %cst_139 = arith.constant dense<0.000000e+00> : vector<2x8x8xf32>
    %429 = tpu.matmul %426, %427, %cst_139 {dimension_numbers = #tpu.dot_dimension_numbers<[2], [2], [1], [1], [0, 0, 0, 1, 1, 1], [0], [0]>} : vector<2x8x8xf32>, vector<2x8x8xf32>, vector<2x8x8xf32> -> vector<2x8x8xf32>
    "tpu.trace_stop"() : () -> ()
    %cst_140 = arith.constant dense<0xFF800000> : vector<2x8xf32>
    %430 = vector.multi_reduction <maximumf>, %429, %cst_140 [2] : vector<2x8x8xf32> to vector<2x8xf32>
    %431 = vector.shape_cast %430 : vector<2x8xf32> to vector<2x8x1xf32>
    %432 = vector.broadcast %431 : vector<2x8x1xf32> to vector<2x8x8xf32>
    %433 = arith.subf %429, %432 : vector<2x8x8xf32>
    %434 = math.exp %433 : vector<2x8x8xf32>
    %cst_141 = arith.constant dense<0.000000e+00> : vector<2x8xf32>
    %435 = vector.multi_reduction <add>, %434, %cst_141 [2] : vector<2x8x8xf32> to vector<2x8xf32>
    %436 = vector.shape_cast %435 : vector<2x8xf32> to vector<2x8x1xf32>
    %437 = tpu.reciprocal %436 {approx = true} : vector<2x8x1xf32> -> vector<2x8x1xf32>
    %438 = vector.broadcast %437 : vector<2x8x1xf32> to vector<2x8x8xf32>
    %439 = arith.mulf %434, %438 : vector<2x8x8xf32>
    "tpu.trace_start"() <{level = 10 : i32, message = "bqk,bkd->bqd"}> : () -> ()
    %cst_142 = arith.constant dense<0.000000e+00> : vector<2x8x8xf32>
    %440 = tpu.matmul %439, %428, %cst_142 {dimension_numbers = #tpu.dot_dimension_numbers<[2], [1], [1], [2], [0, 0, 0, 1, 1, 2], [0], [0]>} : vector<2x8x8xf32>, vector<2x8x8xf32>, vector<2x8x8xf32> -> vector<2x8x8xf32>
    "tpu.trace_stop"() : () -> ()
    %441 = vector.extract_strided_slice %406 {offsets = [0, 0, 16], sizes = [2, 8, 8], strides = [1, 1, 1]} : vector<2x8x96xf32> to vector<2x8x8xf32>
    %cst_143 = arith.constant 0.353553385 : f32
    %442 = vector.broadcast %cst_143 : f32 to vector<2x8x8xf32>
    %443 = arith.mulf %441, %442 : vector<2x8x8xf32>
    %444 = vector.extract_strided_slice %406 {offsets = [0, 0, 48], sizes = [2, 8, 8], strides = [1, 1, 1]} : vector<2x8x96xf32> to vector<2x8x8xf32>
    %445 = vector.extract_strided_slice %406 {offsets = [0, 0, 80], sizes = [2, 8, 8], strides = [1, 1, 1]} : vector<2x8x96xf32> to vector<2x8x8xf32>
    "tpu.trace_start"() <{level = 10 : i32, message = "bqd,bkd->bqk"}> : () -> ()
    %cst_144 = arith.constant dense<0.000000e+00> : vector<2x8x8xf32>
    %446 = tpu.matmul %443, %444, %cst_144 {dimension_numbers = #tpu.dot_dimension_numbers<[2], [2], [1], [1], [0, 0, 0, 1, 1, 1], [0], [0]>} : vector<2x8x8xf32>, vector<2x8x8xf32>, vector<2x8x8xf32> -> vector<2x8x8xf32>
    "tpu.trace_stop"() : () -> ()
    %cst_145 = arith.constant dense<0xFF800000> : vector<2x8xf32>
    %447 = vector.multi_reduction <maximumf>, %446, %cst_145 [2] : vector<2x8x8xf32> to vector<2x8xf32>
    %448 = vector.shape_cast %447 : vector<2x8xf32> to vector<2x8x1xf32>
    %449 = vector.broadcast %448 : vector<2x8x1xf32> to vector<2x8x8xf32>
    %450 = arith.subf %446, %449 : vector<2x8x8xf32>
    %451 = math.exp %450 : vector<2x8x8xf32>
    %cst_146 = arith.constant dense<0.000000e+00> : vector<2x8xf32>
    %452 = vector.multi_reduction <add>, %451, %cst_146 [2] : vector<2x8x8xf32> to vector<2x8xf32>
    %453 = vector.shape_cast %452 : vector<2x8xf32> to vector<2x8x1xf32>
    %454 = tpu.reciprocal %453 {approx = true} : vector<2x8x1xf32> -> vector<2x8x1xf32>
    %455 = vector.broadcast %454 : vector<2x8x1xf32> to vector<2x8x8xf32>
    %456 = arith.mulf %451, %455 : vector<2x8x8xf32>
    "tpu.trace_start"() <{level = 10 : i32, message = "bqk,bkd->bqd"}> : () -> ()
    %cst_147 = arith.constant dense<0.000000e+00> : vector<2x8x8xf32>
    %457 = tpu.matmul %456, %445, %cst_147 {dimension_numbers = #tpu.dot_dimension_numbers<[2], [1], [1], [2], [0, 0, 0, 1, 1, 2], [0], [0]>} : vector<2x8x8xf32>, vector<2x8x8xf32>, vector<2x8x8xf32> -> vector<2x8x8xf32>
    "tpu.trace_stop"() : () -> ()
    %458 = vector.extract_strided_slice %406 {offsets = [0, 0, 24], sizes = [2, 8, 8], strides = [1, 1, 1]} : vector<2x8x96xf32> to vector<2x8x8xf32>
    %cst_148 = arith.constant 0.353553385 : f32
    %459 = vector.broadcast %cst_148 : f32 to vector<2x8x8xf32>
    %460 = arith.mulf %458, %459 : vector<2x8x8xf32>
    %461 = vector.extract_strided_slice %406 {offsets = [0, 0, 56], sizes = [2, 8, 8], strides = [1, 1, 1]} : vector<2x8x96xf32> to vector<2x8x8xf32>
    %462 = vector.extract_strided_slice %406 {offsets = [0, 0, 88], sizes = [2, 8, 8], strides = [1, 1, 1]} : vector<2x8x96xf32> to vector<2x8x8xf32>
    "tpu.trace_start"() <{level = 10 : i32, message = "bqd,bkd->bqk"}> : () -> ()
    %cst_149 = arith.constant dense<0.000000e+00> : vector<2x8x8xf32>
    %463 = tpu.matmul %460, %461, %cst_149 {dimension_numbers = #tpu.dot_dimension_numbers<[2], [2], [1], [1], [0, 0, 0, 1, 1, 1], [0], [0]>} : vector<2x8x8xf32>, vector<2x8x8xf32>, vector<2x8x8xf32> -> vector<2x8x8xf32>
    "tpu.trace_stop"() : () -> ()
    %cst_150 = arith.constant dense<0xFF800000> : vector<2x8xf32>
    %464 = vector.multi_reduction <maximumf>, %463, %cst_150 [2] : vector<2x8x8xf32> to vector<2x8xf32>
    %465 = vector.shape_cast %464 : vector<2x8xf32> to vector<2x8x1xf32>
    %466 = vector.broadcast %465 : vector<2x8x1xf32> to vector<2x8x8xf32>
    %467 = arith.subf %463, %466 : vector<2x8x8xf32>
    %468 = math.exp %467 : vector<2x8x8xf32>
    %cst_151 = arith.constant dense<0.000000e+00> : vector<2x8xf32>
    %469 = vector.multi_reduction <add>, %468, %cst_151 [2] : vector<2x8x8xf32> to vector<2x8xf32>
    %470 = vector.shape_cast %469 : vector<2x8xf32> to vector<2x8x1xf32>
    %471 = tpu.reciprocal %470 {approx = true} : vector<2x8x1xf32> -> vector<2x8x1xf32>
    %472 = vector.broadcast %471 : vector<2x8x1xf32> to vector<2x8x8xf32>
    %473 = arith.mulf %468, %472 : vector<2x8x8xf32>
    "tpu.trace_start"() <{level = 10 : i32, message = "bqk,bkd->bqd"}> : () -> ()
    %cst_152 = arith.constant dense<0.000000e+00> : vector<2x8x8xf32>
    %474 = tpu.matmul %473, %462, %cst_152 {dimension_numbers = #tpu.dot_dimension_numbers<[2], [1], [1], [2], [0, 0, 0, 1, 1, 2], [0], [0]>} : vector<2x8x8xf32>, vector<2x8x8xf32>, vector<2x8x8xf32> -> vector<2x8x8xf32>
    "tpu.trace_stop"() : () -> ()
    %475 = tpu.concatenate %423, %440, %457, %474 in 2 : vector<2x8x8xf32>, vector<2x8x8xf32>, vector<2x8x8xf32>, vector<2x8x8xf32> -> vector<2x8x32xf32>
    %476 = vector.extract_strided_slice %475 {offsets = [0, 0, 0], sizes = [1, 8, 32], strides = [1, 1, 1]} : vector<2x8x32xf32> to vector<1x8x32xf32>
    %477 = vector.shape_cast %476 : vector<1x8x32xf32> to vector<8x32xf32>
    %478 = vector.extract_strided_slice %475 {offsets = [1, 0, 0], sizes = [1, 8, 32], strides = [1, 1, 1]} : vector<2x8x32xf32> to vector<1x8x32xf32>
    %479 = vector.shape_cast %478 : vector<1x8x32xf32> to vector<8x32xf32>
    %480 = tpu.concatenate %477, %479 in 0 : vector<8x32xf32>, vector<8x32xf32> -> vector<16x32xf32>
    %481 = vector.shape_cast %365 : vector<1x32x32xf32> to vector<32x32xf32>
    %cst_153 = arith.constant dense<0.000000e+00> : vector<16x32xf32>
    %482 = tpu.matmul %480, %481, %cst_153 {dimension_numbers = #tpu.dot_dimension_numbers<[1], [0], [0], [1], [0, 0, 1, 1], [], []>} : vector<16x32xf32>, vector<32x32xf32>, vector<16x32xf32> -> vector<16x32xf32>
    %483 = vector.extract_strided_slice %362 {offsets = [6, 0], sizes = [1, 32], strides = [1, 1]} : vector<8x32xf32> to vector<1x32xf32>
    %484 = vector.broadcast %483 : vector<1x32xf32> to vector<16x32xf32>
    %485 = arith.addf %482, %484 : vector<16x32xf32>
    %486 = arith.addf %361, %485 : vector<16x32xf32>
    %cst_154 = arith.constant dense<0.000000e+00> : vector<16xf32>
    %487 = vector.multi_reduction <add>, %486, %cst_154 [1] : vector<16x32xf32> to vector<16xf32>
    %488 = vector.shape_cast %487 : vector<16xf32> to vector<16x1xf32>
    %cst_155 = arith.constant 3.200000e+01 : f32
    %489 = vector.broadcast %cst_155 : f32 to vector<16x1xf32>
    %490 = arith.divf %488, %489 : vector<16x1xf32>
    %491 = vector.broadcast %490 : vector<16x1xf32> to vector<16x32xf32>
    %492 = arith.subf %486, %491 : vector<16x32xf32>
    %493 = arith.mulf %492, %492 : vector<16x32xf32>
    %cst_156 = arith.constant dense<0.000000e+00> : vector<16xf32>
    %494 = vector.multi_reduction <add>, %493, %cst_156 [1] : vector<16x32xf32> to vector<16xf32>
    %495 = vector.shape_cast %494 : vector<16xf32> to vector<16x1xf32>
    %cst_157 = arith.constant 3.200000e+01 : f32
    %496 = vector.broadcast %cst_157 : f32 to vector<16x1xf32>
    %497 = arith.divf %495, %496 : vector<16x1xf32>
    %498 = vector.broadcast %490 : vector<16x1xf32> to vector<16x32xf32>
    %499 = arith.subf %486, %498 : vector<16x32xf32>
    %cst_158 = arith.constant 9.99999974E-6 : f32
    %500 = vector.broadcast %cst_158 : f32 to vector<16x1xf32>
    %501 = arith.addf %497, %500 : vector<16x1xf32>
    %502 = math.rsqrt %501 : vector<16x1xf32>
    %503 = vector.broadcast %502 : vector<16x1xf32> to vector<16x32xf32>
    %504 = arith.mulf %499, %503 : vector<16x32xf32>
    %505 = vector.broadcast %372 : vector<1x32xf32> to vector<16x32xf32>
    %506 = arith.mulf %504, %505 : vector<16x32xf32>
    %507 = vector.broadcast %373 : vector<1x32xf32> to vector<16x32xf32>
    %508 = arith.addf %506, %507 : vector<16x32xf32>
    %cst_159 = arith.constant dense<0.000000e+00> : vector<16x128xf32>
    %509 = tpu.matmul %508, %366, %cst_159 {dimension_numbers = #tpu.dot_dimension_numbers<[1], [0], [0], [1], [0, 0, 1, 1], [], []>} : vector<16x32xf32>, vector<32x128xf32>, vector<16x128xf32> -> vector<16x128xf32>
    %510 = vector.broadcast %367 : vector<1x128xf32> to vector<16x128xf32>
    %511 = arith.addf %509, %510 : vector<16x128xf32>
    %cst_160 = arith.constant -1.702000e+00 : f32
    %512 = vector.broadcast %cst_160 : f32 to vector<16x128xf32>
    %513 = arith.mulf %512, %511 : vector<16x128xf32>
    %514 = math.exp %513 : vector<16x128xf32>
    %cst_161 = arith.constant 1.000000e+00 : f32
    %515 = vector.broadcast %cst_161 : f32 to vector<16x128xf32>
    %516 = arith.addf %515, %514 : vector<16x128xf32>
    %517 = tpu.reciprocal %516 {approx = true} : vector<16x128xf32> -> vector<16x128xf32>
    %518 = arith.mulf %511, %517 : vector<16x128xf32>
    %cst_162 = arith.constant dense<0.000000e+00> : vector<16x32xf32>
    %519 = tpu.matmul %518, %368, %cst_162 {dimension_numbers = #tpu.dot_dimension_numbers<[1], [0], [0], [1], [0, 0, 1, 1], [], []>} : vector<16x128xf32>, vector<128x32xf32>, vector<16x32xf32> -> vector<16x32xf32>
    %520 = arith.addf %486, %519 : vector<16x32xf32>
    %521 = vector.broadcast %376 : vector<1x32xf32> to vector<16x32xf32>
    %522 = arith.addf %520, %521 : vector<16x32xf32>
    %523 = vector.extract_strided_slice %522 {offsets = [7, 0], sizes = [1, 32], strides = [1, 1]} : vector<16x32xf32> to vector<1x32xf32>
    %524 = vector.extract_strided_slice %522 {offsets = [15, 0], sizes = [1, 32], strides = [1, 1]} : vector<16x32xf32> to vector<1x32xf32>
    %525 = tpu.concatenate %523, %524 in 0 : vector<1x32xf32>, vector<1x32xf32> -> vector<2x32xf32>
    %cst_163 = arith.constant dense<0.000000e+00> : vector<2xf32>
    %526 = vector.multi_reduction <add>, %525, %cst_163 [1] : vector<2x32xf32> to vector<2xf32>
    %527 = vector.shape_cast %526 : vector<2xf32> to vector<2x1xf32>
    %cst_164 = arith.constant 3.200000e+01 : f32
    %528 = vector.broadcast %cst_164 : f32 to vector<2x1xf32>
    %529 = arith.divf %527, %528 : vector<2x1xf32>
    %530 = vector.broadcast %529 : vector<2x1xf32> to vector<2x32xf32>
    %531 = arith.subf %525, %530 : vector<2x32xf32>
    %532 = arith.mulf %531, %531 : vector<2x32xf32>
    %cst_165 = arith.constant dense<0.000000e+00> : vector<2xf32>
    %533 = vector.multi_reduction <add>, %532, %cst_165 [1] : vector<2x32xf32> to vector<2xf32>
    %534 = vector.shape_cast %533 : vector<2xf32> to vector<2x1xf32>
    %cst_166 = arith.constant 3.200000e+01 : f32
    %535 = vector.broadcast %cst_166 : f32 to vector<2x1xf32>
    %536 = arith.divf %534, %535 : vector<2x1xf32>
    %537 = vector.broadcast %529 : vector<2x1xf32> to vector<2x32xf32>
    %538 = arith.subf %525, %537 : vector<2x32xf32>
    %cst_167 = arith.constant 9.99999974E-6 : f32
    %539 = vector.broadcast %cst_167 : f32 to vector<2x1xf32>
    %540 = arith.addf %536, %539 : vector<2x1xf32>
    %541 = math.rsqrt %540 : vector<2x1xf32>
    %542 = vector.broadcast %541 : vector<2x1xf32> to vector<2x32xf32>
    %543 = arith.mulf %538, %542 : vector<2x32xf32>
    %544 = vector.broadcast %374 : vector<1x32xf32> to vector<2x32xf32>
    %545 = arith.mulf %543, %544 : vector<2x32xf32>
    %546 = vector.broadcast %375 : vector<1x32xf32> to vector<2x32xf32>
    %547 = arith.addf %545, %546 : vector<2x32xf32>
    %cst_168 = arith.constant dense<0.000000e+00> : vector<2x32xf32>
    %548 = tpu.matmul %547, %369, %cst_168 {dimension_numbers = #tpu.dot_dimension_numbers<[1], [0], [0], [1], [0, 0, 1, 1], [], []>} : vector<2x32xf32>, vector<32x32xf32>, vector<2x32xf32> -> vector<2x32xf32>
    %c0_169 = arith.constant 0 : index
    %c0_170 = arith.constant 0 : index
    %549 = vector.load %arg22[%c0_169, %c0_170] : memref<2x32xf32, #tpu.memory_space<vmem>>, vector<2x32xf32>
    tpu.vector_store %arg22[%c0_169, %c0_170], %548 {strides = array<i32>} : memref<2x32xf32, #tpu.memory_space<vmem>>, vector<2x32xf32>,
    return
  }
  func.func @transform_0(%arg0: i32) -> (i32, i32) {
    %c0_i32 = arith.constant 0 : i32
    %c0_i32_0 = arith.constant 0 : i32
    %c0_i32_1 = arith.constant 0 : i32
    return %c0_i32, %c0_i32_0 : i32, i32
  }
  func.func @transform_1(%arg0: i32) -> (i32, i32) {
    %c0_i32 = arith.constant 0 : i32
    %c0_i32_0 = arith.constant 0 : i32
    %c0_i32_1 = arith.constant 0 : i32
    return %c0_i32, %c0_i32_0 : i32, i32
  }
  func.func @transform_2(%arg0: i32) -> (i32, i32) {
    %c0_i32 = arith.constant 0 : i32
    %c0_i32_0 = arith.constant 0 : i32
    %c0_i32_1 = arith.constant 0 : i32
    return %c0_i32, %c0_i32_0 : i32, i32
  }
  func.func @transform_3(%arg0: i32) -> (i32, i32) {
    %c0_i32 = arith.constant 0 : i32
    %c0_i32_0 = arith.constant 0 : i32
    %c0_i32_1 = arith.constant 0 : i32
    return %c0_i32, %c0_i32_0 : i32, i32
  }
  func.func @transform_4(%arg0: i32) -> (i32, i32) {
    %c0_i32 = arith.constant 0 : i32
    %c0_i32_0 = arith.constant 0 : i32
    %c0_i32_1 = arith.constant 0 : i32
    return %c0_i32, %c0_i32_0 : i32, i32
  }
  func.func @transform_5(%arg0: i32) -> (i32, i32) {
    %c0_i32 = arith.constant 0 : i32
    %c0_i32_0 = arith.constant 0 : i32
    %c0_i32_1 = arith.constant 0 : i32
    return %c0_i32, %c0_i32_0 : i32, i32
  }
  func.func @transform_6(%arg0: i32) -> (i32, i32, i32) {
    %c0_i32 = arith.constant 0 : i32
    %c0_i32_0 = arith.constant 0 : i32
    %c0_i32_1 = arith.constant 0 : i32
    %c0_i32_2 = arith.constant 0 : i32
    return %c0_i32, %c0_i32_0, %c0_i32_1 : i32, i32, i32
  }
  func.func @transform_7(%arg0: i32) -> (i32, i32) {
    %c0_i32 = arith.constant 0 : i32
    %c0_i32_0 = arith.constant 0 : i32
    %c0_i32_1 = arith.constant 0 : i32
    return %c0_i32, %c0_i32_0 : i32, i32
  }
  func.func @transform_8(%arg0: i32) -> (i32, i32) {
    %c0_i32 = arith.constant 0 : i32
    %c0_i32_0 = arith.constant 0 : i32
    %c0_i32_1 = arith.constant 0 : i32
    return %c0_i32, %c0_i32_0 : i32, i32
  }
  func.func @transform_9(%arg0: i32) -> (i32, i32) {
    %c0_i32 = arith.constant 0 : i32
    %c0_i32_0 = arith.constant 0 : i32
    %c0_i32_1 = arith.constant 0 : i32
    return %c0_i32, %c0_i32_0 : i32, i32
  }
  func.func @transform_10(%arg0: i32) -> (i32, i32) {
    %c0_i32 = arith.constant 0 : i32
    %c0_i32_0 = arith.constant 0 : i32
    %c0_i32_1 = arith.constant 0 : i32
    return %c0_i32, %c0_i32_0 : i32, i32
  }
  func.func @transform_11(%arg0: i32) -> (i32, i32) {
    %c0_i32 = arith.constant 0 : i32
    %c0_i32_0 = arith.constant 0 : i32
    %c0_i32_1 = arith.constant 0 : i32
    return %c0_i32, %c0_i32_0 : i32, i32
  }
  func.func @transform_12(%arg0: i32) -> (i32, i32) {
    %c0_i32 = arith.constant 0 : i32
    %c0_i32_0 = arith.constant 0 : i32
    %c0_i32_1 = arith.constant 0 : i32
    return %c0_i32, %c0_i32_0 : i32, i32
  }
  func.func @transform_13(%arg0: i32) -> (i32, i32) {
    %c0_i32 = arith.constant 0 : i32
    %c0_i32_0 = arith.constant 0 : i32
    %c0_i32_1 = arith.constant 0 : i32
    return %c0_i32, %c0_i32_0 : i32, i32
  }
  func.func @transform_14(%arg0: i32) -> (i32, i32) {
    %c0_i32 = arith.constant 0 : i32
    %c0_i32_0 = arith.constant 0 : i32
    %c0_i32_1 = arith.constant 0 : i32
    return %c0_i32, %c0_i32_0 : i32, i32
  }
  func.func @transform_15(%arg0: i32) -> (i32, i32, i32) {
    %c0_i32 = arith.constant 0 : i32
    %c0_i32_0 = arith.constant 0 : i32
    %c0_i32_1 = arith.constant 0 : i32
    %c0_i32_2 = arith.constant 0 : i32
    return %c0_i32, %c0_i32_0, %c0_i32_1 : i32, i32, i32
  }
  func.func @transform_16(%arg0: i32) -> (i32, i32) {
    %c0_i32 = arith.constant 0 : i32
    %c0_i32_0 = arith.constant 0 : i32
    %c0_i32_1 = arith.constant 0 : i32
    return %c0_i32, %c0_i32_0 : i32, i32
  }
  func.func @transform_17(%arg0: i32) -> (i32, i32) {
    %c0_i32 = arith.constant 0 : i32
    %c0_i32_0 = arith.constant 0 : i32
    %c0_i32_1 = arith.constant 0 : i32
    return %c0_i32, %c0_i32_0 : i32, i32
  }
  func.func @transform_18(%arg0: i32) -> (i32, i32) {
    %c0_i32 = arith.constant 0 : i32
    %c0_i32_0 = arith.constant 0 : i32
    %c0_i32_1 = arith.constant 0 : i32
    return %c0_i32, %c0_i32_0 : i32, i32
  }
  func.func @transform_19(%arg0: i32) -> (i32, i32) {
    %c0_i32 = arith.constant 0 : i32
    %c0_i32_0 = arith.constant 0 : i32
    %c0_i32_1 = arith.constant 0 : i32
    return %c0_i32, %c0_i32_0 : i32, i32
  }
  func.func @transform_20(%arg0: i32) -> (i32, i32) {
    %c0_i32 = arith.constant 0 : i32
    %c0_i32_0 = arith.constant 0 : i32
    %c0_i32_1 = arith.constant 0 : i32
    return %c0_i32, %c0_i32_0 : i32, i32
  }
  func.func @transform_21(%arg0: i32) -> (i32, i32) {
    %c0_i32 = arith.constant 0 : i32
    %c0_i32_0 = arith.constant 0 : i32
    %c0_i32_1 = arith.constant 0 : i32
    return %c0_i32, %c0_i32_0 : i32, i32
  }
}

</mosaic_0001>

<bundles_post_ra>
// kernel: tile.9
= control target key start
LH: loop header
LB: loop body
LE: loop exit
PB: predicated region body
PF: predicated region fallthrough
CT: control target
= control target key end

     0   :  { %vm3_vm0 = vcmask 261120   ;;  %s11_s6 = smov 3  ;;  %s74_s0 = inlined_call_operand.vmem [shape: f32[2,17,32], index: 0, kind: input, shape index: {}]   ;;  %s75_s1 = inlined_call_operand.vmem [shape: f32[34,32], index: 1, kind: output, shape index: {}]  }
   0x1   :  { %v2_v0 = vld [vmem:[%s74_s0] sm:$0xff]   ;;  %v26_v1 = vld [vmem:[%s74_s0 + $0x8] sm:$0xff]  }
   0x2   :  { %v28_v2 = vld [vmem:[%s74_s0 + $0x10] ss:$8 sm:%s11_s6]   ;;  %4 = vst.msk [vmem:[%s75_s1] sm:$0xff] %vm3_vm0, %v2_v0   ;;  %27 = vst.msk [vmem:[%s75_s1 + $0x8] sm:$0xff] %vm3_vm0, %v26_v1  }
   0x3   :  { %29 = vst.msk [vmem:[%s75_s1 + $0x10] sm:$0x3] %vm3_vm0, %v28_v2   ;;  %v30_v3 = vld [vmem:[%s74_s0 + $0x19] sm:$0xff]   ;;  %v32_v4 = vld [vmem:[%s74_s0 + $0x21] sm:$0xff]  }
   0x4   :  { %31 = vst.msk [vmem:[%s75_s1 + $0x12] sm:$0xff] %vm3_vm0, %v30_v3   ;;  %33 = vst.msk [vmem:[%s75_s1 + $0x1a] sm:$0xff] %vm3_vm0, %v32_v4  }

// kernel: multi_expert_clip_forward.1
= control target key start
LH: loop header
LB: loop body
LE: loop exit
PB: predicated region body
PF: predicated region fallthrough
CT: control target
= control target key end

     0   :  { %v15139_v0 = vmov 0.0   ;;  %vm11909_vm0 = vmmov 0   ;;  %vm83_vm1 = vcmask 392192   ;;  %vm241_vm2 = vcmask 261120   ;;  %s15167_s29 = smov 96   ;;  %s15165_s30 = smov 88   ;;  %s15111_s1 = inlined_call_operand.vmem [shape: f32[48,32], index: 1, kind: input, shape index: {}]   ;;  %s15112_s0 = inlined_call_operand.vmem [shape: f32[34,48], index: 0, kind: input, shape index: {}]   ;;  %s15113_s2 = inlined_call_operand.vmem [shape: f32[34,32], index: 2, kind: input, shape index: {}]   ;;  %s15114_s4 = inlined_call_operand.vmem [shape: f32[32,288], index: 4, kind: input, shape index: {}]   ;;  %s15115_s3 = inlined_call_operand.vmem [shape: f32[10,32], index: 3, kind: input, shape index: {}]   ;;  %s15116_s5 = inlined_call_operand.vmem [shape: f32[1,288], index: 5, kind: input, shape index: {}]   ;;  %s15117_s6 = inlined_call_operand.vmem [shape: f32[3,32,32], index: 6, kind: input, shape index: {}]   ;;  %s15118_s7 = inlined_call_operand.vmem [shape: f32[32,128], index: 7, kind: input, shape index: {}]   ;;  %s15119_s9 = inlined_call_operand.vmem [shape: f32[128,32], index: 9, kind: input, shape index: {}]   ;;  %s15120_s8 = inlined_call_operand.vmem [shape: f32[1,128], index: 8, kind: input, shape index: {}]   ;;  %s15121_s11 = inlined_call_operand.vmem [shape: f32[16,32], index: 11, kind: input, shape index: {}]   ;;  %s15122_s10 = inlined_call_operand.vmem [shape: f32[32,32], index: 10, kind: input, shape index: {}]   ;;  %s15123_s13 = inlined_call_operand.vmem [shape: f32[32,96], index: 13, kind: input, shape index: {}]   ;;  %s15124_s12 = inlined_call_operand.vmem [shape: f32[8,32], index: 12, kind: input, shape index: {}]   ;;  %s15125_s20 = inlined_call_operand.vmem [shape: f32[6,32], index: 20, kind: output, shape index: {0}]   ;;  %s15126_s14 = inlined_call_operand.vmem [shape: f32[1,96], index: 14, kind: input, shape index: {}]   ;;  %s15127_s15 = inlined_call_operand.vmem [shape: f32[1,32,32], index: 15, kind: input, shape index: {}]   ;;  %s15128_s16 = inlined_call_operand.vmem [shape: f32[32,128], index: 16, kind: input, shape index: {}]   ;;  %s15129_s18 = inlined_call_operand.vmem [shape: f32[128,32], index: 18, kind: input, shape index: {}]   ;;  %s15130_s17 = inlined_call_operand.vmem [shape: f32[1,128], index: 17, kind: input, shape index: {}]   ;;  %s15131_s19 = inlined_call_operand.vmem [shape: f32[32,32], index: 19, kind: input, shape index: {}]   ;;  %s15132_s21 = inlined_call_operand.vmem [shape: f32[2,32], index: 21, kind: output, shape index: {1}]  }
   0x1   :  { %15182 = sst [smem:[#allocation6_spill]] %s15111_s1  ;;  %10324 = vmatprep.subr.mxu0 %v15139_v0  ;;  %10336 = vmatprep.mubr.msk.f32.mxu0 %vm11909_vm0, %v15139_v0  ;;  %vm254_vm3 = vcmask 254976   ;;  %vm552_vm4 = vcmask 1046528   ;;  %vm590_vm5 = vcmask 64512   ;;  %vm787_vm6 = vcmask 138240   ;;  %s15149_s23 = smov 56  }
   0x2   :  { %15183 = sst [smem:[#allocation7_spill]] %s15112_s0  ;;  %440 = vmatprep.mubr.f32.mxu1 %v15139_v0  ;;  %vm794_vm7 = vcmask 131072   ;;  %vm872_vm8 = vcmask 1040384   ;;  %s15161_s0 = smov 80   ;;  %vm2548_vm9 = vcmask 130048   ;;  %vm2555_vm10 = vcmask 195584  }
   0x3   :  { %15184 = sst [smem:[#allocation8_spill]] %s15113_s2  ;;  %s15169_s24 = smov 112   ;;  %vm6877_vm11 = vcmask 1041408   ;;  %vm6897_vm12 = vcmask 1043456   ;;  %vm6950_vm13 = vcmask 259072   ;;  %vm7512_vm14 = vcmask 1042432  }
   0x4   :  { %15185 = sst [smem:[#allocation9_spill]] %s15114_s4  ;;  %s15155_s25 = smov 72   ;;  %vm7515_vm15 = vcmask 1044480  }
   0x5   :  { %15186 = sst [smem:[#allocation10_spill]] %s15115_s3  ;;  %s15151_s3 = smov 64  }
   0x6   :  { %15187 = sst [smem:[#allocation11_spill]] %s15116_s5  ;;  %s15159_s27 = smov 104  }
   0x7   :  { %15188 = sst [smem:[#allocation12_spill]] %s15129_s18  ;;  %s15178_s4 = smov 24  }
   0x8   :  { %15189 = sst [smem:[#allocation13_spill]] %s15130_s17 }
   0x9   :  { %15190 = sst [smem:[#allocation14_spill]] %s15131_s19 }
   0xa   :  { %15191 = sst [smem:[#allocation15_spill]] %s15132_s21  ;;  %s15215_s21 = smov 24  }
   0xb   :  { %s15192_s26 = sld [smem:[#allocation6_spill]] }
   0xc   :  { %s15193_s2 = sld [smem:[#allocation7_spill]] }
   0xd   :  { %s15194_s22 = sld [smem:[#allocation8_spill]] }
   0xe   :  { %s15196_s1 = sld [smem:[#allocation9_spill]] }
   0xf   :  { %s15198_s5 = sld [smem:[#allocation10_spill]] }
  0x10   :  { %s15200_s28 = sld [smem:[#allocation11_spill]] }
  0x11   :  { %v77_v1 = vld [vmem:[%s15192_s26 + $0x28] sm:$0xff]  ;;  %v76_v2 = vld [vmem:[%s15192_s26 + $0x20] sm:$0xff]  ;;  %v75_v3 = vld [vmem:[%s15192_s26 + $0x18] sm:$0xff]  ;;  %s15223_s19 = sld [smem:[#allocation12_spill]] }
  0x12   :  { %10325 = vmatpush3.msra.mxu0 %v77_v1  ;;  %v74_v4 = vld [vmem:[%s15192_s26 + $0x10] sm:$0xff]  ;;  %v73_v5 = vld [vmem:[%s15192_s26 + $0x8] sm:$0xff]  ;;  %v72_v6 = vld [vmem:[%s15192_s26] sm:$0xff]  ;;  %s15147_s26 = smov 40  }
  0x13   :  { %10326 = vmatprep.subr.mxu0 %v15139_v0  ;;  %v67_v7 = vld [vmem:[%s15193_s2] sm:$0xff]  ;;  %v68_v8 = vld [vmem:[%s15193_s2 + $0x8] sm:$0xff]  ;;  %v69_v9 = vld [vmem:[%s15193_s2 + $0x10] sm:$0xff] }
  0x14   :  { %10327 = vmatpush3.msra.mxu0 %v76_v2  ;;  %v70_v10 = vld [vmem:[%s15193_s2 + $0x18] sm:$0xff]  ;;  %v71_v11 = vld [vmem:[%s15193_s2 + $0x20] sm:$0x3]  ;;  %v79_v16 = vld [vmem:[%s15194_s22 + $0x8] sm:$0xff]  ;;  %s15145_s2 = smov 48  }
  0x15   :  { %10328 = vmatprep.subr.mxu0 %v15139_v0  ;;  %v78_v12 = vld [vmem:[%s15194_s22] sm:$0xff]  ;;  %v80_v21 = vld [vmem:[%s15194_s22 + $0x10] sm:$0xff]  ;;  %v81_v26 = vld [vmem:[%s15194_s22 + $0x18] sm:$0xff] }
  0x16   :  { %10329 = vmatpush3.msra.mxu0 %v75_v3  ;;  %v82_v31 = vld [vmem:[%s15194_s22 + $0x20] sm:$0x3]  ;;  %v201_v62 = vld [vmem:[%s15196_s1 + $0x50] sm:$0xff]  ;;  %v200_v63 = vld [vmem:[%s15196_s1 + $0x48] sm:$0xff]  ;;  %s15173_s22 = smov 120  }
  0x17   :  { %10330 = vmatprep.subr.mxu0 %v15139_v0  ;;  %11451 = vmatprep.subr.mxu1 %v201_v62  ;;  %v198_v1 = vld [vmem:[%s15196_s1 + $0x38] sm:$0xff]  ;;  %v197_v2 = vld [vmem:[%s15196_s1 + $0x30] sm:$0xff]  ;;  %v195_v3 = vld [vmem:[%s15196_s1 + $0x20] sm:$0xff] }
  0x18   :  { %10331 = vmatpush3.msra.mxu0 %v74_v4  ;;  %11455 = vmatpush1.msra.mxu1 %v200_v63  ;;  %v194_v4 = vld [vmem:[%s15196_s1 + $0x18] sm:$0xff] }
  0x19   :  { %10332 = vmatprep.subr.mxu0 %v15139_v0  ;;  %11452 = vmatprep.subr.mxu1 %v198_v1 }
  0x1a   :  { %10333 = vmatpush3.msra.mxu0 %v73_v5  ;;  %11456 = vmatpush1.msra.mxu1 %v197_v2  ;;  %v192_v5 = vld [vmem:[%s15196_s1 + $0x8] sm:$0xff] }
  0x1b   :  { %10334 = vmatprep.subr.mxu0 %v15139_v0  ;;  %11453 = vmatprep.subr.mxu1 %v195_v3 }
  0x1c   :  { %10335 = vmatpush3.msra.mxu0 %v72_v6  ;;  %v191_v6 = vld [vmem:[%s15196_s1] sm:$0xff]  ;;  %11457 = vmatpush1.msra.mxu1 %v194_v4 }
  0x1d   :  { %10337 = vmatmul.mubr.msk.f32.vlgmr.msra.gmra.mxu0 %vm83_vm1, %v67_v7  ;;  %382 = vmatprep.subr.mxu0 %v201_v62 }
  0x1e   :  { %10339 = vmatprep.mubr.msk.f32.mxu0 %vm11909_vm0, %v15139_v0  ;;  %383 = vmatpush1.msra.mxu0 %v200_v63 }
  0x1f   :  { %384 = vmatprep.subr.mxu0 %v198_v1  ;;  %11454 = vmatprep.subr.mxu1 %v192_v5 }
  0x20   :  { %385 = vmatpush1.msra.mxu0 %v197_v2  ;;  %11458 = vmatpush1.msra.mxu1 %v191_v6 }
  0x21   :  { %10340 = vmatmul.mubr.msk.f32.gmra.mxu0 %vm83_vm1, %v68_v8  ;;  %386 = vmatprep.subr.mxu0 %v195_v3 }
  0x22   :  { %10342 = vmatprep.mubr.msk.f32.mxu0 %vm11909_vm0, %v15139_v0  ;;  %387 = vmatpush1.msra.mxu0 %v194_v4 }
  0x23   :  { %388 = vmatprep.subr.mxu0 %v192_v5  ;;  %10351 = vmatprep.subr.mxu1 %v15139_v0 }
  0x24   :  { %389 = vmatpush1.msra.mxu0 %v191_v6 }
  0x25   :  { %10343 = vmatmul.mubr.msk.f32.gmra.mxu0 %vm83_vm1, %v69_v9  ;;  %10374 = vmatprep.subr.mxu0 %v15139_v0 }
  0x26   :  { %10345 = vmatprep.mubr.msk.f32.mxu0 %vm11909_vm0, %v15139_v0 }
  0x29   :  { %10346 = vmatmul.mubr.msk.f32.gmra.mxu0 %vm83_vm1, %v70_v10 }
  0x2a   :  { %10348 = vmatprep.mubr.msk.f32.mxu0 %vm11909_vm0, %v15139_v0 }
  0x2d   :  { %10349 = vmatmul.mubr.msk.f32.gmra.mxu0 %vm83_vm1, %v71_v11  ;;  %v309_v11 = vlaneseq }
  0x2e   :  { %422 = vmatprep.mubr.f32.mxu0 %v15139_v0 }
  0xdd   :  { %v165_v13 = vpop.f32.mrf.mxu0 }
  0xde   :  { %v12089_v14 = vadd.f32 %v165_v13, %v78_v12 }
  0xdf   :  { %v10338_v15 = vpop.f32.mrf.mxu0 }
  0xe0   :  { %v242_v17 = vsel %vm241_vm2, %v12089_v14, 0.0 }
  0xe1   :  { %243 = vadd.xlane.f32.xlu0 %v242_v17  ;;  %v170_v18 = vpop.f32.mrf.mxu0 }
  0xe2   :  { %v12096_v19 = vadd.f32 %v170_v18, %v79_v16  ;;  %v12177_v16 = vshrl.u32 %v309_v11, 7 }
  0xe3   :  { %v10341_v20 = vpop.f32.mrf.mxu0 }
  0xe4   :  { %v245_v22 = vsel %vm241_vm2, %v12096_v19, 0.0 }
  0xe5   :  { %246 = vadd.xlane.f32.xlu0 %v245_v22  ;;  %v175_v23 = vpop.f32.mrf.mxu0 }
  0xe6   :  { %v12103_v24 = vadd.f32 %v175_v23, %v80_v21  ;;  %v12180_v21 = vsub.s32 0, %v12177_v16  ;;  %v189_v23 = vld [vmem:[%s15198_s5] sm:$0xff] }
  0xe7   :  { %v10344_v25 = vpop.f32.mrf.mxu0 }
  0xe8   :  { %v248_v27 = vsel %vm241_vm2, %v12103_v24, 0.0  ;;  %15197 = vst [vmem:[#allocation3_spill] sm:$0xff] %v12180_v21 }
  0xe9   :  { %249 = vadd.xlane.f32.xlu1 %v248_v27  ;;  %v180_v28 = vpop.f32.mrf.mxu0 }
  0xea   :  { %v12110_v29 = vadd.f32 %v180_v28, %v81_v26  ;;  %v12186_v26 = vsub.s32 1, %v12177_v16  ;;  %v312_v28 = vrot.slane %v189_v23, %v12180_v21 }
  0xeb   :  { %v10347_v30 = vpop.f32.mrf.mxu0 }
  0xec   :  { %v251_v32 = vsel %vm241_vm2, %v12110_v29, 0.0  ;;  %15199 = vst [vmem:[#allocation4_spill] sm:$0xff] %v12186_v26 }
  0xed   :  { %252 = vadd.xlane.f32.xlu1 %v251_v32  ;;  %v185_v33 = vpop.f32.mrf.mxu0 }
  0xee   :  { %v12117_v34 = vadd.f32 %v185_v33, %v82_v31 }
  0xef   :  { %v10350_v35 = vpop.f32.mrf.mxu0 }
  0xf0   :  { %15195 = vst [vmem:[#allocation2_spill] sm:$0xff] %v12117_v34  ;;  %v255_v36 = vsel %vm254_vm3, %v12117_v34, 0.0  ;;  %v321_v35 = vrot.slane %v189_v23, %v12186_v26  ;;  %v12281_v23 = vsub.s32 2, %v12177_v16 }
  0xf1   :  { %256 = vadd.xlane.f32.xlu0 %v255_v36 }
  0xf2   :  { %15201 = vst [vmem:[#allocation5_spill] sm:$0xff] %v12281_v23 }
 0x16a   :  { %v244_v37 = vpop.xlane.xlu0 %243 }
 0x16b   :  { %v259_v38 = vmul.f32 0.03125, %v244_v37 }
 0x16d   :  { %v12122_v39 = vsub.f32 %v12089_v14, %v259_v38 }
 0x16e   :  { %v247_v40 = vpop.xlane.xlu0 %246 }
 0x16f   :  { %v260_v41 = vmul.f32 0.03125, %v247_v40  ;;  %v269_v42 = vmul.f32 %v12122_v39, %v12122_v39 }
 0x171   :  { %v12127_v43 = vsub.f32 %v12096_v19, %v260_v41  ;;  %v274_v44 = vsel %vm241_vm2, %v269_v42, 0.0 }
 0x172   :  { %v250_v45 = vpop.xlane.xlu1 %249  ;;  %275 = vadd.xlane.f32.xlu1 %v274_v44 }
 0x173   :  { %v261_v46 = vmul.f32 0.03125, %v250_v45  ;;  %v270_v47 = vmul.f32 %v12127_v43, %v12127_v43 }
 0x175   :  { %v12133_v48 = vsub.f32 %v12103_v24, %v261_v46  ;;  %v277_v49 = vsel %vm241_vm2, %v270_v47, 0.0 }
 0x176   :  { %v253_v50 = vpop.xlane.xlu1 %252  ;;  %278 = vadd.xlane.f32.xlu0 %v277_v49 }
 0x177   :  { %v262_v51 = vmul.f32 0.03125, %v253_v50  ;;  %v271_v52 = vmul.f32 %v12133_v48, %v12133_v48 }
 0x179   :  { %v12139_v53 = vsub.f32 %v12110_v29, %v262_v51  ;;  %v280_v54 = vsel %vm241_vm2, %v271_v52, 0.0 }
 0x17a   :  { %281 = vadd.xlane.f32.xlu1 %v280_v54  ;;  %v257_v55 = vpop.xlane.xlu0 %256 }
 0x17b   :  { %v263_v56 = vmul.f32 0.03125, %v257_v55  ;;  %v272_v57 = vmul.f32 %v12139_v53, %v12139_v53 }
 0x17d   :  { %v12145_v58 = vsub.f32 %v12117_v34, %v263_v56  ;;  %v283_v59 = vsel %vm241_vm2, %v272_v57, 0.0  ;;  %v196_v56 = vld [vmem:[%s15196_s1 + $0x28] sm:$0xff]  ;;  %v193_v57 = vld [vmem:[%s15196_s1 + $0x10] sm:$0xff] }
 0x17e   :  { %284 = vadd.xlane.f32.xlu0 %v283_v59 }
 0x17f   :  { %v273_v60 = vmul.f32 %v12145_v58, %v12145_v58 }
 0x181   :  { %v286_v61 = vsel %vm254_vm3, %v273_v60, 0.0 }
 0x182   :  { %287 = vadd.xlane.f32.xlu1 %v286_v61 }
 0x1fb   :  { %v276_v7 = vpop.xlane.xlu1 %275 }
 0x1fc   :  { %v289_v8 = vmul.f32 0.03125, %v276_v7 }
 0x1fe   :  { %v294_v9 = vadd.f32 1e-05, %v289_v8 }
 0x1ff   :  { %v279_v10 = vpop.xlane.xlu0 %278 }
 0x200   :  { %11476 = vrsqrt.f32 %v294_v9  ;;  %v290_v12 = vmul.f32 0.03125, %v279_v10 }
 0x202   :  { %v295_v13 = vadd.f32 1e-05, %v290_v12 }
 0x203   :  { %v282_v15 = vpop.xlane.xlu1 %281 }
 0x204   :  { %11478 = vrsqrt.f32 %v295_v13  ;;  %v291_v17 = vmul.f32 0.03125, %v282_v15 }
 0x206   :  { %v296_v18 = vadd.f32 1e-05, %v291_v17 }
 0x207   :  { %v285_v20 = vpop.xlane.xlu0 %284 }
 0x208   :  { %11480 = vrsqrt.f32 %v296_v18  ;;  %v292_v22 = vmul.f32 0.03125, %v285_v20 }
 0x20a   :  { %v297_v25 = vadd.f32 1e-05, %v292_v22 }
 0x20b   :  { %v288_v27 = vpop.xlane.xlu1 %287 }
 0x20c   :  { %11482 = vrsqrt.f32 %v297_v25  ;;  %v293_v30 = vmul.f32 0.03125, %v288_v27 }
 0x20d   :  { %v11477_v31 = vpop.eup %11476 }
 0x20e   :  { %v304_v32 = vmul.f32 %v11477_v31, %v12122_v39  ;;  %v298_v33 = vadd.f32 1e-05, %v293_v30 }
 0x210   :  { %v313_v36 = vmul.f32 %v312_v28, %v304_v32  ;;  %11484 = vrsqrt.f32 %v298_v33 }
 0x211   :  { %v11479_v37 = vpop.eup %11478 }
 0x212   :  { %v322_v38 = vadd.f32 %v321_v35, %v313_v36  ;;  %v305_v40 = vmul.f32 %v11479_v37, %v12127_v43 }
 0x214   :  { %9552 = vmatmul.mubr.msk.f32.vlgmr.msra.gmra.mxu0 %vm241_vm2, %v322_v38  ;;  %v314_v41 = vmul.f32 %v312_v28, %v305_v40 }
 0x215   :  { %v11481_v42 = vpop.eup %11480  ;;  %428 = vmatprep.mubr.f32.mxu0 %v15139_v0 }
 0x216   :  { %v323_v44 = vadd.f32 %v321_v35, %v314_v41  ;;  %v306_v45 = vmul.f32 %v11481_v42, %v12133_v48  ;;  %v202_v48 = vld [vmem:[%s15196_s1 + $0x58] sm:$0xff] }
 0x218   :  { %9553 = vmatmul.mubr.msk.f32.gmra.mxu0 %vm241_vm2, %v323_v44  ;;  %v315_v39 = vmul.f32 %v312_v28, %v306_v45 }
 0x219   :  { %v11483_v46 = vpop.eup %11482  ;;  %434 = vmatprep.mubr.f32.mxu0 %v15139_v0 }
 0x21a   :  { %v324_v47 = vadd.f32 %v321_v35, %v315_v39  ;;  %v307_v49 = vmul.f32 %v11483_v46, %v12139_v53  ;;  %v199_v53 = vld [vmem:[%s15196_s1 + $0x40] sm:$0xff]  ;;  %s15153_s1 = smov 32  }
 0x21c   :  { %9554 = vmatmul.mubr.msk.f32.gmra.mxu0 %vm241_vm2, %v324_v47  ;;  %v316_v43 = vmul.f32 %v312_v28, %v307_v49 }
 0x21d   :  { %v11485_v50 = vpop.eup %11484  ;;  %10380 = vmatprep.mubr.msk.f32.mxu0 %vm11909_vm0, %v15139_v0 }
 0x21e   :  { %v325_v51 = vadd.f32 %v321_v35, %v316_v43  ;;  %v308_v52 = vmul.f32 %v11485_v50, %v12145_v58  ;;  %v203_v58 = vld [vmem:[%s15200_s28] sm:$0x7] }
 0x21f   :  { %v331_v61 = vrot.slane %v203_v58, %v12180_v21 }
 0x220   :  { %9555 = vmatmul.mubr.msk.f32.vlgmr.msra.gmra.mxu1 %vm241_vm2, %v325_v51  ;;  %v317_v54 = vmul.f32 %v312_v28, %v308_v52  ;;  %v12286_v28 = vrot.slane %v203_v58, %v12281_v23 }
 0x221   :  { %10352 = vmatpush3.msra.mxu1 %v202_v48  ;;  %446 = vmatprep.mubr.f32.mxu1 %v15139_v0 }
 0x222   :  { %10353 = vmatprep.subr.mxu1 %v15139_v0  ;;  %v326_v55 = vadd.f32 %v321_v35, %v317_v54 }
 0x223   :  { %10354 = vmatpush3.msra.mxu1 %v199_v53 }
 0x224   :  { %9556 = vmatmul.mubr.msk.f32.gmra.mxu1 %vm241_vm2, %v326_v55  ;;  %10355 = vmatprep.subr.mxu1 %v15139_v0 }
 0x225   :  { %10356 = vmatpush3.msra.mxu1 %v196_v56  ;;  %10359 = vmatprep.mubr.msk.f32.mxu1 %vm11909_vm0, %v15139_v0 }
 0x226   :  { %10357 = vmatprep.subr.mxu1 %v15139_v0 }
 0x227   :  { %10358 = vmatpush3.msra.mxu1 %v193_v57 }
 0x228   :  { %10360 = vmatmul.mubr.msk.f32.vlgmr.msra.gmra.mxu1 %vm241_vm2, %v322_v38  ;;  %10404 = vmatprep.subr.mxu1 %v15139_v0 }
 0x229   :  { %10362 = vmatprep.mubr.msk.f32.mxu1 %vm11909_vm0, %v15139_v0 }
 0x22c   :  { %10363 = vmatmul.mubr.msk.f32.gmra.mxu1 %vm241_vm2, %v323_v44 }
 0x22d   :  { %10365 = vmatprep.mubr.msk.f32.mxu1 %vm11909_vm0, %v15139_v0 }
 0x230   :  { %10366 = vmatmul.mubr.msk.f32.gmra.mxu1 %vm241_vm2, %v324_v47 }
 0x231   :  { %10368 = vmatprep.mubr.msk.f32.mxu1 %vm11909_vm0, %v15139_v0 }
 0x234   :  { %10369 = vmatmul.mubr.msk.f32.gmra.mxu1 %vm241_vm2, %v325_v51 }
 0x235   :  { %10371 = vmatprep.mubr.msk.f32.mxu1 %vm11909_vm0, %v15139_v0 }
 0x238   :  { %10372 = vmatmul.mubr.msk.f32.gmra.mxu1 %vm241_vm2, %v326_v55 }
 0x239   :  { %10410 = vmatprep.mubr.msk.f32.mxu1 %vm11909_vm0, %v15139_v0 }
 0x2d4   :  { %v424_v59 = vpop.f32.mrf.mxu0 }
 0x2d5   :  { %v12250_v3 = vadd.f32 %v424_v59, %v331_v61 }
 0x2d6   :  { %v12241_v60 = vpop.f32.mrf.mxu0 }
 0x2d7   :  { %v12309_v49 = vmul.f32 0.35355338, %v12250_v3 }
 0x2d8   :  { %v430_v62 = vpop.f32.mrf.mxu0 }
 0x2d9   :  { %v12244_v63 = vadd.f32 %v430_v62, %v331_v61 }
 0x2da   :  { %v12246_v1 = vpop.f32.mrf.mxu0 }
 0x2db   :  { %586 = vrot.lane.b32.xlu1 %v12244_v63, %s15167_s29  ;;  %v12318_v50 = vmul.f32 0.35355338, %v12244_v63 }
 0x2dc   :  { %v436_v2 = vpop.f32.mrf.mxu0 }
 0x2dd   :  { %v12252_v4 = vadd.f32 %v436_v2, %v331_v61 }
 0x2de   :  { %v12357_v56 = vpop.f32.mrf.mxu0 }
 0x2df   :  { %588 = vrot.lane.b32.xlu0 %v12252_v4, %s15167_s29  ;;  %584 = vrot.lane.b32.xlu1 %v12250_v3, %s15167_s29  ;;  %v553_v17 = vrot.slane %v12252_v4, 1  ;;  %v12327_v48 = vmul.f32 0.35355338, %v12252_v4 }
 0x2e0   :  { %v442_v5 = vpop.f32.mrf.mxu1 }
 0x2e1   :  { %v443_v7 = vadd.f32 %v442_v5, %v331_v61 }
 0x2e2   :  { %v12258_v6 = vpop.f32.mrf.mxu1 }
 0x2e3   :  { %v554_v11 = vrot.slane %v443_v7, 1 }
 0x2e4   :  { %v448_v8 = vpop.f32.mrf.mxu1 }
 0x2e5   :  { %v449_v9 = vadd.f32 %v448_v8, %v331_v61  ;;  %v12276_v20 = vsel %vm552_vm4, %v553_v17, %v554_v11 }
 0x2e6   :  { %v12260_v10 = vpop.f32.mrf.mxu1  ;;  %v12336_v53 = vmul.f32 0.35355338, %v12276_v20 }
 0x2e7   :  { %v12262_v12 = vrot.slane %v449_v9, 1 }
 0x2e8   :  { %v12264_v13 = vpop.f32.mrf.mxu1 }
 0x2e9   :  { %690 = vrot.lane.b32.xlu1 %v12262_v12, %s15167_s29  ;;  %v12270_v15 = vsel %vm552_vm4, %v554_v11, %v12262_v12  ;;  %v12351_v55 = vmul.f32 0.35355338, %v12262_v12 }
 0x2ea   :  { %v10361_v18 = vpop.f32.mrf.mxu1  ;;  %688 = vrot.lane.b32.xlu0 %v12270_v15, %s15167_s29  ;;  %v12344_v54 = vmul.f32 0.35355338, %v12270_v15 }
 0x2ec   :  { %v12278_v22 = vpop.f32.mrf.mxu1 }
 0x2ed   :  { %686 = vrot.lane.b32.xlu1 %v12276_v20, %s15167_s29 }
 0x2ee   :  { %v10364_v25 = vpop.f32.mrf.mxu1 }
 0x2f0   :  { %v529_v27 = vpop.f32.mrf.mxu1 }
 0x2f1   :  { %v12289_v31 = vadd.f32 %v529_v27, %v12286_v28 }
 0x2f2   :  { %v10367_v30 = vpop.f32.mrf.mxu1 }
 0x2f3   :  { %v559_v37 = vrot.slane %v12289_v31, 1 }
 0x2f4   :  { %v534_v32 = vpop.f32.mrf.mxu1 }
 0x2f5   :  { %v535_v33 = vadd.f32 %v534_v32, %v12286_v28 }
 0x2f6   :  { %v10370_v35 = vpop.f32.mrf.mxu1 }
 0x2f7   :  { %v560_v36 = vrot.slane %v535_v33, 1 }
 0x2f8   :  { %v539_v38 = vpop.f32.mrf.mxu1 }
 0x2f9   :  { %v540_v40 = vadd.f32 %v539_v38, %v12286_v28  ;;  %v12295_v41 = vsel %vm552_vm4, %v559_v37, %v560_v36 }
 0x2fa   :  { %v10373_v42 = vpop.f32.mrf.mxu1 }
 0x2fb   :  { %v12297_v44 = vrot.slane %v540_v40, 1 }
 0x2fd   :  { %v12301_v45 = vsel %vm552_vm4, %v560_v36, %v12297_v44 }
 0x34d   :  { %v587_v46 = vpop.permute.xlu1 %586 }
 0x351   :  { %v589_v39 = vpop.permute.xlu0 %588  ;;  %v585_v47 = vpop.permute.xlu1 %584 }
 0x352   :  { %10375 = vmatpush3.xpose.msk.msra.mxu0 %vm590_vm5, %v589_v39 }
 0x353   :  { %10376 = vmatprep.subr.mxu0 %v15139_v0 }
 0x356   :  { %10377 = vmatpush3.xpose.msk.msra.mxu0 %vm590_vm5, %v587_v46 }
 0x357   :  { %10378 = vmatprep.subr.mxu0 %v15139_v0 }
 0x35a   :  { %10379 = vmatpush3.xpose.msk.msra.mxu0 %vm590_vm5, %v585_v47 }
 0x35b   :  { %10389 = vmatprep.subr.mxu0 %v15139_v0  ;;  %v691_v43 = vpop.permute.xlu1 %690 }
 0x35c   :  { %v689_v51 = vpop.permute.xlu0 %688 }
 0x35d   :  { %10381 = vmatmul.mubr.msk.f32.vlgmr.msra.gmra.mxu0 %vm590_vm5, %v12309_v49 }
 0x35e   :  { %10390 = vmatpush3.xpose.msk.msra.mxu0 %vm590_vm5, %v691_v43  ;;  %10383 = vmatprep.mubr.msk.f32.mxu0 %vm11909_vm0, %v15139_v0 }
 0x35f   :  { %10391 = vmatprep.subr.mxu0 %v15139_v0  ;;  %v687_v52 = vpop.permute.xlu1 %686 }
 0x361   :  { %10384 = vmatmul.mubr.msk.f32.gmra.mxu0 %vm590_vm5, %v12318_v50 }
 0x362   :  { %10392 = vmatpush3.xpose.msk.msra.mxu0 %vm590_vm5, %v689_v51  ;;  %10386 = vmatprep.mubr.msk.f32.mxu0 %vm11909_vm0, %v15139_v0 }
 0x363   :  { %10393 = vmatprep.subr.mxu0 %v15139_v0 }
 0x365   :  { %10387 = vmatmul.mubr.msk.f32.gmra.mxu0 %vm590_vm5, %v12327_v48 }
 0x366   :  { %10394 = vmatpush3.xpose.msk.msra.mxu0 %vm590_vm5, %v687_v52  ;;  %10395 = vmatprep.mubr.msk.f32.mxu0 %vm11909_vm0, %v15139_v0 }
 0x367   :  { %10419 = vmatprep.subr.mxu0 %v15139_v0 }
 0x369   :  { %10396 = vmatmul.mubr.msk.f32.vlgmr.msra.gmra.mxu0 %vm590_vm5, %v12336_v53 }
 0x36a   :  { %10398 = vmatprep.mubr.msk.f32.mxu0 %vm11909_vm0, %v15139_v0 }
 0x36d   :  { %10399 = vmatmul.mubr.msk.f32.gmra.mxu0 %vm590_vm5, %v12344_v54 }
 0x36e   :  { %10401 = vmatprep.mubr.msk.f32.mxu0 %vm11909_vm0, %v15139_v0 }
 0x371   :  { %10402 = vmatmul.mubr.msk.f32.gmra.mxu0 %vm590_vm5, %v12351_v55 }
 0x372   :  { %10425 = vmatprep.mubr.msk.f32.mxu0 %vm11909_vm0, %v15139_v0 }
 0x41d   :  { %v12359_v57 = vpop.f32.mrf.mxu0 }
 0x41e   :  { %v788_v25 = vsel %vm787_vm6, %v12359_v57, -inf }
 0x41f   :  { %v10382_v58 = vpop.f32.mrf.mxu0 }
 0x421   :  { %v12361_v59 = vpop.f32.mrf.mxu0 }
 0x422   :  { %v791_v32 = vsel %vm787_vm6, %v12361_v59, -inf }
 0x423   :  { %v10385_v61 = vpop.f32.mrf.mxu0 }
 0x425   :  { %v12363_v62 = vpop.f32.mrf.mxu0 }
 0x426   :  { %v795_v33 = vsel %vm794_vm7, %v12363_v62, -inf }
 0x427   :  { %v10388_v2 = vpop.f32.mrf.mxu0 }
 0x429   :  { %v773_v5 = vpop.f32.mrf.mxu0 }
 0x42a   :  { %v798_v7 = vsel %vm787_vm6, %v773_v5, -inf }
 0x42b   :  { %799 = vmax.xlane.f32.xlu0 %v798_v7  ;;  %v10397_v8 = vpop.f32.mrf.mxu0 }
 0x42d   :  { %v778_v9 = vpop.f32.mrf.mxu0 }
 0x42e   :  { %v801_v11 = vsel %vm787_vm6, %v778_v9, -inf }
 0x42f   :  { %802 = vmax.xlane.f32.xlu1 %v801_v11  ;;  %v10400_v17 = vpop.f32.mrf.mxu0 }
 0x431   :  { %v783_v18 = vpop.f32.mrf.mxu0 }
 0x432   :  { %v804_v27 = vsel %vm794_vm7, %v783_v18, -inf }
 0x433   :  { %789 = vmax.xlane.f32.xlu1 %v788_v25  ;;  %805 = vmax.xlane.f32.xlu0 %v804_v27  ;;  %v10403_v30 = vpop.f32.mrf.mxu0 }
 0x444   :  { %957 = vrot.lane.b32.xlu1 %v12270_v15, %s15151_s3 }
 0x448   :  { %955 = vrot.lane.b32.xlu1 %v12276_v20, %s15151_s3 }
 0x449   :  { %959 = vrot.lane.b32.xlu0 %v12262_v12, %s15151_s3 }
 0x44c   :  { %1168 = vrot.lane.b32.xlu1 %v12262_v12, %s15165_s30 }
 0x468   :  { %792 = vmax.xlane.f32.xlu0 %v791_v32 }
 0x470   :  { %796 = vmax.xlane.f32.xlu1 %v795_v33 }
 0x4b4   :  { %v800_v35 = vpop.xlane.xlu0 %799 }
 0x4b5   :  { %v810_v36 = vsub.f32 %v773_v5, %v800_v35 }
 0x4b7   :  { %v819_v37 = vmul.f32 1.442695, %v810_v36 }
 0x4b8   :  { %v803_v38 = vpop.xlane.xlu1 %802 }
 0x4b9   :  { %11486 = vpow2.f32 %v819_v37  ;;  %v811_v40 = vsub.f32 %v778_v9, %v803_v38 }
 0x4bb   :  { %v821_v42 = vmul.f32 1.442695, %v811_v40 }
 0x4bc   :  { %v790_v39 = vpop.xlane.xlu1 %789  ;;  %v806_v46 = vpop.xlane.xlu0 %805 }
 0x4bd   :  { %11488 = vpow2.f32 %v821_v42  ;;  %v812_v47 = vsub.f32 %v783_v18, %v806_v46  ;;  %v807_v11 = vsub.f32 %v12359_v57, %v790_v39 }
 0x4bf   :  { %v823_v43 = vmul.f32 1.442695, %v812_v47  ;;  %v813_v25 = vmul.f32 1.442695, %v807_v11 }
 0x4c0   :  { %v958_v51 = vpop.permute.xlu1 %957  ;;  %v960_v52 = vpop.permute.xlu0 %959 }
 0x4c1   :  { %10420 = vmatpush3.msk.msra.mxu0 %vm872_vm8, %v960_v52  ;;  %11490 = vpow2.f32 %v823_v43 }
 0x4c2   :  { %10421 = vmatprep.subr.mxu0 %v15139_v0  ;;  %11492 = vpow2.f32 %v813_v25 }
 0x4c3   :  { %10422 = vmatpush3.msra.mxu0 %v958_v51 }
 0x4c4   :  { %v956_v58 = vpop.permute.xlu1 %955  ;;  %10423 = vmatprep.subr.mxu0 %v15139_v0 }
 0x4c5   :  { %10424 = vmatpush3.msra.mxu0 %v956_v58 }
 0x4c6   :  { %v11487_v61 = vpop.eup %11486  ;;  %10449 = vmatprep.subr.mxu0 %v15139_v0 }
 0x4c7   :  { %v834_v2 = vsel %vm787_vm6, %v11487_v61, 0.0 }
 0x4c8   :  { %835 = vadd.xlane.f32.xlu0 %v834_v2  ;;  %v1169_v27 = vpop.permute.xlu1 %1168 }
 0x4ca   :  { %v11489_v5 = vpop.eup %11488 }
 0x4cb   :  { %v837_v7 = vsel %vm787_vm6, %v11489_v5, 0.0 }
 0x4cc   :  { %838 = vadd.xlane.f32.xlu0 %v837_v7 }
 0x4ce   :  { %v11491_v8 = vpop.eup %11490 }
 0x4cf   :  { %v840_v9 = vsel %vm794_vm7, %v11491_v8, 0.0  ;;  %v12402_v36 = vpop.eup %11492 }
 0x4d0   :  { %841 = vadd.xlane.f32.xlu1 %v840_v9  ;;  %v825_v57 = vsel %vm787_vm6, %v12402_v36, 0.0 }
 0x4e1   :  { %1164 = vrot.lane.b32.xlu1 %v12276_v20, %s15165_s30 }
 0x4e2   :  { %1166 = vrot.lane.b32.xlu0 %v12270_v15, %s15165_s30 }
 0x4e5   :  { %1162 = vrot.lane.b32.xlu1 %v12351_v55, %s15173_s22 }
 0x4e6   :  { %1158 = vrot.lane.b32.xlu0 %v12336_v53, %s15173_s22 }
 0x4ea   :  { %1160 = vrot.lane.b32.xlu0 %v12344_v54, %s15173_s22 }
 0x4f1   :  { %v793_v17 = vpop.xlane.xlu0 %792 }
 0x4f2   :  { %v808_v18 = vsub.f32 %v12361_v59, %v793_v17 }
 0x4f4   :  { %v815_v30 = vmul.f32 1.442695, %v808_v18 }
 0x4f6   :  { %11494 = vpow2.f32 %v815_v30 }
 0x4f9   :  { %v797_v32 = vpop.xlane.xlu1 %796 }
 0x4fa   :  { %v809_v33 = vsub.f32 %v12363_v62, %v797_v32 }
 0x4fc   :  { %v817_v35 = vmul.f32 1.442695, %v809_v33 }
 0x4fe   :  { %11496 = vpow2.f32 %v817_v35 }
 0x503   :  { %v12404_v37 = vpop.eup %11494 }
 0x504   :  { %v828_v59 = vsel %vm787_vm6, %v12404_v37, 0.0 }
 0x509   :  { %826 = vadd.xlane.f32.xlu0 %v825_v57  ;;  %829 = vadd.xlane.f32.xlu1 %v828_v59 }
 0x50b   :  { %v12410_v38 = vpop.eup %11496 }
 0x50c   :  { %v831_v40 = vsel %vm794_vm7, %v12410_v38, 0.0 }
 0x50d   :  { %832 = vadd.xlane.f32.xlu0 %v831_v40 }
 0x51a   :  { %857 = vrot.lane.b32.xlu1 %v12244_v63, %s15151_s3 }
 0x51e   :  { %855 = vrot.lane.b32.xlu1 %v12250_v3, %s15151_s3 }
 0x522   :  { %1062 = vrot.lane.b32.xlu1 %v12244_v63, %s15165_s30 }
 0x523   :  { %859 = vrot.lane.b32.xlu0 %v12252_v4, %s15151_s3  ;;  %s15203_s3 = smov 80  }
 0x526   :  { %1054 = vrot.lane.b32.xlu1 %v12309_v49, %s15173_s22 }
 0x527   :  { %1064 = vrot.lane.b32.xlu0 %v12252_v4, %s15165_s30 }
 0x52a   :  { %1058 = vrot.lane.b32.xlu1 %v12327_v48, %s15173_s22 }
 0x52b   :  { %1060 = vrot.lane.b32.xlu0 %v12250_v3, %s15165_s30 }
 0x52f   :  { %1056 = vrot.lane.b32.xlu0 %v12318_v50, %s15173_s22 }
 0x551   :  { %v836_v62 = vpop.xlane.xlu0 %835 }
 0x552   :  { %11498 = vrcp.f32 %v836_v62 }
 0x555   :  { %v839_v42 = vpop.xlane.xlu0 %838 }
 0x556   :  { %11500 = vrcp.f32 %v839_v42 }
 0x559   :  { %v842_v39 = vpop.xlane.xlu1 %841  ;;  %v1167_v52 = vpop.permute.xlu0 %1166 }
 0x55a   :  { %11502 = vrcp.f32 %v842_v39 }
 0x55d   :  { %v1165_v2 = vpop.permute.xlu1 %1164  ;;  %v1159_v7 = vpop.permute.xlu0 %1158 }
 0x55f   :  { %v11499_v46 = vpop.eup %11498 }
 0x560   :  { %v852_v47 = vmul.f32 %v11499_v46, %v11487_v61 }
 0x562   :  { %10426 = vmatmul.mubr.msk.f32.vlgmr.msra.gmra.mxu0 %vm787_vm6, %v852_v47 }
 0x563   :  { %v11501_v43 = vpop.eup %11500  ;;  %10450 = vmatpush3.xpose.msk.msra.mxu0 %vm590_vm5, %v1169_v27  ;;  %10428 = vmatprep.mubr.msk.f32.mxu0 %vm11909_vm0, %v15139_v0 }
 0x564   :  { %10451 = vmatprep.subr.mxu0 %v15139_v0  ;;  %v853_v51 = vmul.f32 %v11501_v43, %v11489_v5  ;;  %v1161_v5 = vpop.permute.xlu0 %1160 }
 0x566   :  { %10429 = vmatmul.mubr.msk.f32.gmra.mxu0 %vm787_vm6, %v853_v51 }
 0x567   :  { %10452 = vmatpush3.xpose.msk.msra.mxu0 %vm590_vm5, %v1167_v52  ;;  %10431 = vmatprep.mubr.msk.f32.mxu0 %vm11909_vm0, %v15139_v0  ;;  %v11503_v58 = vpop.eup %11502 }
 0x568   :  { %10453 = vmatprep.subr.mxu0 %v15139_v0  ;;  %v854_v61 = vmul.f32 %v11503_v58, %v11491_v8  ;;  %v1163_v8 = vpop.permute.xlu1 %1162 }
 0x56a   :  { %10432 = vmatmul.mubr.msk.f32.gmra.mxu0 %vm787_vm6, %v854_v61 }
 0x56b   :  { %10454 = vmatpush3.xpose.msk.msra.mxu0 %vm590_vm5, %v1165_v2  ;;  %10455 = vmatprep.mubr.msk.f32.mxu0 %vm11909_vm0, %v15139_v0 }
 0x56c   :  { %10479 = vmatprep.subr.mxu0 %v15139_v0 }
 0x56e   :  { %10456 = vmatmul.mubr.msk.f32.vlgmr.msra.gmra.mxu0 %vm590_vm5, %v1159_v7 }
 0x56f   :  { %10458 = vmatprep.mubr.msk.f32.mxu0 %vm11909_vm0, %v15139_v0 }
 0x572   :  { %10459 = vmatmul.mubr.msk.f32.gmra.mxu0 %vm590_vm5, %v1161_v5 }
 0x573   :  { %10461 = vmatprep.mubr.msk.f32.mxu0 %vm11909_vm0, %v15139_v0 }
 0x576   :  { %10462 = vmatmul.mubr.msk.f32.gmra.mxu0 %vm590_vm5, %v1163_v8 }
 0x577   :  { %10485 = vmatprep.mubr.msk.f32.mxu0 %vm11909_vm0, %v15139_v0 }
 0x592   :  { %v827_v9 = vpop.xlane.xlu0 %826  ;;  %v830_v11 = vpop.xlane.xlu1 %829 }
 0x593   :  { %11504 = vrcp.f32 %v827_v9 }
 0x594   :  { %11506 = vrcp.f32 %v830_v11 }
 0x596   :  { %v833_v17 = vpop.xlane.xlu0 %832  ;;  %v858_v18 = vpop.permute.xlu1 %857 }
 0x597   :  { %11508 = vrcp.f32 %v833_v17 }
 0x59a   :  { %v860_v25 = vpop.permute.xlu0 %859  ;;  %v856_v27 = vpop.permute.xlu1 %855 }
 0x59b   :  { %10405 = vmatpush3.msk.msra.mxu1 %vm872_vm8, %v860_v25 }
 0x59c   :  { %10406 = vmatprep.subr.mxu1 %v15139_v0 }
 0x59d   :  { %10407 = vmatpush3.msra.mxu1 %v858_v18 }
 0x59e   :  { %10408 = vmatprep.subr.mxu1 %v15139_v0  ;;  %v1065_v35 = vpop.permute.xlu0 %1064  ;;  %v1063_v40 = vpop.permute.xlu1 %1062 }
 0x59f   :  { %10409 = vmatpush3.msra.mxu1 %v856_v27 }
 0x5a0   :  { %v11505_v30 = vpop.eup %11504  ;;  %10434 = vmatprep.subr.mxu1 %v15139_v0 }
 0x5a1   :  { %v849_v32 = vmul.f32 %v11505_v30, %v12402_v36  ;;  %v11507_v33 = vpop.eup %11506 }
 0x5a2   :  { %v850_v57 = vmul.f32 %v11507_v33, %v12404_v37  ;;  %v1061_v62 = vpop.permute.xlu0 %1060  ;;  %v1055_v37 = vpop.permute.xlu1 %1054 }
 0x5a3   :  { %10411 = vmatmul.mubr.msk.f32.vlgmr.msra.gmra.mxu1 %vm787_vm6, %v849_v32 }
 0x5a4   :  { %10435 = vmatpush3.xpose.msk.msra.mxu1 %vm590_vm5, %v1065_v35  ;;  %10413 = vmatprep.mubr.msk.f32.mxu1 %vm11909_vm0, %v15139_v0  ;;  %v11509_v59 = vpop.eup %11508 }
 0x5a5   :  { %10436 = vmatprep.subr.mxu1 %v15139_v0  ;;  %v851_v36 = vmul.f32 %v11509_v59, %v12410_v38 }
 0x5a6   :  { %v1057_v42 = vpop.permute.xlu0 %1056  ;;  %v1059_v38 = vpop.permute.xlu1 %1058 }
 0x5a7   :  { %10414 = vmatmul.mubr.msk.f32.gmra.mxu1 %vm787_vm6, %v850_v57 }
 0x5a8   :  { %10437 = vmatpush3.xpose.msk.msra.mxu1 %vm590_vm5, %v1063_v40  ;;  %10416 = vmatprep.mubr.msk.f32.mxu1 %vm11909_vm0, %v15139_v0 }
 0x5a9   :  { %10438 = vmatprep.subr.mxu1 %v15139_v0 }
 0x5ab   :  { %10417 = vmatmul.mubr.msk.f32.gmra.mxu1 %vm787_vm6, %v851_v36 }
 0x5ac   :  { %10439 = vmatpush3.xpose.msk.msra.mxu1 %vm590_vm5, %v1061_v62  ;;  %10440 = vmatprep.mubr.msk.f32.mxu1 %vm11909_vm0, %v15139_v0 }
 0x5ad   :  { %10464 = vmatprep.subr.mxu1 %v15139_v0 }
 0x5af   :  { %10441 = vmatmul.mubr.msk.f32.vlgmr.msra.gmra.mxu1 %vm590_vm5, %v1055_v37 }
 0x5b0   :  { %10443 = vmatprep.mubr.msk.f32.mxu1 %vm11909_vm0, %v15139_v0 }
 0x5b3   :  { %10444 = vmatmul.mubr.msk.f32.gmra.mxu1 %vm590_vm5, %v1057_v42 }
 0x5b4   :  { %10446 = vmatprep.mubr.msk.f32.mxu1 %vm11909_vm0, %v15139_v0 }
 0x5b7   :  { %10447 = vmatmul.mubr.msk.f32.gmra.mxu1 %vm590_vm5, %v1059_v38 }
 0x5b8   :  { %10470 = vmatprep.mubr.msk.f32.mxu1 %vm11909_vm0, %v15139_v0 }
 0x622   :  { %v12487_v39 = vpop.f32.mrf.mxu0 }
 0x624   :  { %v10427_v46 = vpop.f32.mrf.mxu0 }
 0x626   :  { %v12489_v47 = vpop.f32.mrf.mxu0 }
 0x628   :  { %v10430_v43 = vpop.f32.mrf.mxu0 }
 0x62a   :  { %v12491_v51 = vpop.f32.mrf.mxu0 }
 0x62c   :  { %v10433_v52 = vpop.f32.mrf.mxu0 }
 0x62e   :  { %v1248_v58 = vpop.f32.mrf.mxu0 }
 0x62f   :  { %v1271_v61 = vsel %vm787_vm6, %v1248_v58, -inf }
 0x630   :  { %1272 = vmax.xlane.f32.xlu0 %v1271_v61  ;;  %v10457_v2 = vpop.f32.mrf.mxu0 }
 0x632   :  { %v1253_v7 = vpop.f32.mrf.mxu0 }
 0x633   :  { %v1274_v5 = vsel %vm787_vm6, %v1253_v7, -inf }
 0x634   :  { %1275 = vmax.xlane.f32.xlu1 %v1274_v5  ;;  %v10460_v8 = vpop.f32.mrf.mxu0 }
 0x636   :  { %v1258_v9 = vpop.f32.mrf.mxu0 }
 0x637   :  { %v1277_v11 = vsel %vm794_vm7, %v1258_v9, -inf }
 0x638   :  { %1278 = vmax.xlane.f32.xlu0 %v1277_v11  ;;  %v10463_v17 = vpop.f32.mrf.mxu0 }
 0x64e   :  { %1431 = vrot.lane.b32.xlu0 %v12262_v12, %s15149_s23 }
 0x663   :  { %v12498_v18 = vpop.f32.mrf.mxu1 }
 0x665   :  { %v10412_v25 = vpop.f32.mrf.mxu1 }
 0x667   :  { %v12500_v27 = vpop.f32.mrf.mxu1 }
 0x669   :  { %v10415_v30 = vpop.f32.mrf.mxu1 }
 0x66b   :  { %v12502_v32 = vpop.f32.mrf.mxu1 }
 0x66d   :  { %v10418_v33 = vpop.f32.mrf.mxu1 }
 0x66f   :  { %v1144_v35 = vpop.f32.mrf.mxu1 }
 0x670   :  { %v1262_v57 = vsel %vm787_vm6, %v1144_v35, -inf }
 0x671   :  { %v10442_v59 = vpop.f32.mrf.mxu1  ;;  %1263 = vmax.xlane.f32.xlu1 %v1262_v57 }
 0x673   :  { %v1149_v40 = vpop.f32.mrf.mxu1 }
 0x674   :  { %v1265_v36 = vsel %vm787_vm6, %v1149_v40, -inf }
 0x675   :  { %v10445_v62 = vpop.f32.mrf.mxu1  ;;  %1266 = vmax.xlane.f32.xlu0 %v1265_v36 }
 0x677   :  { %v12506_v37 = vpop.f32.mrf.mxu1 }
 0x678   :  { %v1268_v38 = vsel %vm794_vm7, %v12506_v37, -inf }
 0x679   :  { %v10448_v42 = vpop.f32.mrf.mxu1 }
 0x682   :  { %1429 = vrot.lane.b32.xlu1 %v12270_v15, %s15149_s23 }
 0x686   :  { %1427 = vrot.lane.b32.xlu1 %v12276_v20, %s15149_s23 }
 0x68a   :  { %1640 = vrot.lane.b32.xlu1 %v12262_v12, %s15161_s0 }
 0x6ae   :  { %1269 = vmax.xlane.f32.xlu1 %v1268_v38 }
 0x6b9   :  { %v1273_v46 = vpop.xlane.xlu0 %1272 }
 0x6ba   :  { %v1283_v43 = vsub.f32 %v1248_v58, %v1273_v46 }
 0x6bc   :  { %v1292_v52 = vmul.f32 1.442695, %v1283_v43 }
 0x6bd   :  { %v1276_v61 = vpop.xlane.xlu1 %1275 }
 0x6be   :  { %11510 = vpow2.f32 %v1292_v52  ;;  %v1284_v2 = vsub.f32 %v1253_v7, %v1276_v61 }
 0x6c0   :  { %v1294_v5 = vmul.f32 1.442695, %v1284_v2 }
 0x6c1   :  { %v1279_v8 = vpop.xlane.xlu0 %1278 }
 0x6c2   :  { %11512 = vpow2.f32 %v1294_v5  ;;  %v1285_v11 = vsub.f32 %v1258_v9, %v1279_v8 }
 0x6c4   :  { %v1296_v17 = vmul.f32 1.442695, %v1285_v11 }
 0x6c5   :  { %v1432_v25 = vpop.permute.xlu0 %1431 }
 0x6c6   :  { %11514 = vpow2.f32 %v1296_v17  ;;  %10480 = vmatpush3.msk.msra.mxu0 %vm872_vm8, %v1432_v25 }
 0x6c7   :  { %10481 = vmatprep.subr.mxu0 %v15139_v0 }
 0x6cb   :  { %v11511_v30 = vpop.eup %11510 }
 0x6cc   :  { %v1307_v33 = vsel %vm787_vm6, %v11511_v30, 0.0 }
 0x6cd   :  { %1308 = vadd.xlane.f32.xlu0 %v1307_v33 }
 0x6cf   :  { %v11513_v58 = vpop.eup %11512 }
 0x6d0   :  { %v1310_v57 = vsel %vm787_vm6, %v11513_v58, 0.0 }
 0x6d1   :  { %1311 = vadd.xlane.f32.xlu0 %v1310_v57 }
 0x6d3   :  { %v12520_v7 = vpop.eup %11514 }
 0x6d4   :  { %v1313_v9 = vsel %vm794_vm7, %v12520_v7, 0.0 }
 0x6d5   :  { %1314 = vadd.xlane.f32.xlu1 %v1313_v9 }
 0x6e6   :  { %1636 = vrot.lane.b32.xlu1 %v12276_v20, %s15161_s0 }
 0x6e7   :  { %1638 = vrot.lane.b32.xlu0 %v12270_v15, %s15161_s0 }
 0x6ea   :  { %1634 = vrot.lane.b32.xlu1 %v12351_v55, %s15169_s24 }
 0x6eb   :  { %1630 = vrot.lane.b32.xlu0 %v12336_v53, %s15169_s24 }
 0x6ef   :  { %1632 = vrot.lane.b32.xlu0 %v12344_v54, %s15169_s24 }
 0x6fa   :  { %v1264_v59 = vpop.xlane.xlu1 %1263 }
 0x6fb   :  { %v1280_v36 = vsub.f32 %v1144_v35, %v1264_v59 }
 0x6fd   :  { %v1286_v62 = vmul.f32 1.442695, %v1280_v36 }
 0x6fe   :  { %v1430_v42 = vpop.permute.xlu1 %1429  ;;  %v1267_v38 = vpop.xlane.xlu0 %1266 }
 0x6ff   :  { %11516 = vpow2.f32 %v1286_v62  ;;  %v1281_v46 = vsub.f32 %v1149_v40, %v1267_v38  ;;  %10482 = vmatpush3.msra.mxu0 %v1430_v42 }
 0x700   :  { %10483 = vmatprep.subr.mxu0 %v15139_v0 }
 0x701   :  { %v1288_v43 = vmul.f32 1.442695, %v1281_v46 }
 0x702   :  { %v1428_v52 = vpop.permute.xlu1 %1427 }
 0x703   :  { %11518 = vpow2.f32 %v1288_v43  ;;  %10484 = vmatpush3.msra.mxu0 %v1428_v52 }
 0x704   :  { %10509 = vmatprep.subr.mxu0 %v15139_v0 }
 0x706   :  { %v1641_v5 = vpop.permute.xlu1 %1640 }
 0x70c   :  { %v12536_v61 = vpop.eup %11516 }
 0x70d   :  { %v1298_v2 = vsel %vm787_vm6, %v12536_v61, 0.0 }
 0x70e   :  { %1299 = vadd.xlane.f32.xlu0 %v1298_v2 }
 0x710   :  { %v12540_v35 = vpop.eup %11518 }
 0x711   :  { %v1301_v40 = vsel %vm787_vm6, %v12540_v35, 0.0 }
 0x712   :  { %1302 = vadd.xlane.f32.xlu1 %v1301_v40 }
 0x723   :  { %1330 = vrot.lane.b32.xlu1 %v12244_v63, %s15149_s23 }
 0x727   :  { %1328 = vrot.lane.b32.xlu1 %v12250_v3, %s15149_s23 }
 0x72b   :  { %1534 = vrot.lane.b32.xlu1 %v12244_v63, %s15161_s0 }
 0x72f   :  { %1526 = vrot.lane.b32.xlu1 %v12309_v49, %s15169_s24 }
 0x733   :  { %1530 = vrot.lane.b32.xlu1 %v12327_v48, %s15169_s24 }
 0x737   :  { %v1270_v8 = vpop.xlane.xlu1 %1269 }
 0x738   :  { %v1282_v11 = vsub.f32 %v12506_v37, %v1270_v8 }
 0x73a   :  { %v1290_v17 = vmul.f32 1.442695, %v1282_v11 }
 0x73c   :  { %11520 = vpow2.f32 %v1290_v17 }
 0x749   :  { %v12555_v25 = vpop.eup %11520 }
 0x74a   :  { %v1304_v33 = vsel %vm794_vm7, %v12555_v25, 0.0 }
 0x74b   :  { %1305 = vadd.xlane.f32.xlu0 %v1304_v33 }
 0x756   :  { %v1309_v57 = vpop.xlane.xlu0 %1308 }
 0x757   :  { %11522 = vrcp.f32 %v1309_v57 }
 0x75a   :  { %v1312_v9 = vpop.xlane.xlu0 %1311 }
 0x75b   :  { %11524 = vrcp.f32 %v1312_v9 }
 0x75e   :  { %v1315_v59 = vpop.xlane.xlu1 %1314  ;;  %v1639_v38 = vpop.permute.xlu0 %1638 }
 0x75f   :  { %11526 = vrcp.f32 %v1315_v59 }
 0x761   :  { %1332 = vrot.lane.b32.xlu0 %v12252_v4, %s15149_s23  ;;  %s15204_s23 = smov 104  }
 0x762   :  { %v1637_v43 = vpop.permute.xlu1 %1636 }
 0x764   :  { %v11523_v36 = vpop.eup %11522 }
 0x765   :  { %1536 = vrot.lane.b32.xlu0 %v12252_v4, %s15161_s0  ;;  %v1325_v37 = vmul.f32 %v11523_v36, %v11511_v30 }
 0x767   :  { %10486 = vmatmul.mubr.msk.f32.vlgmr.msra.gmra.mxu0 %vm787_vm6, %v1325_v37 }
 0x768   :  { %v11525_v62 = vpop.eup %11524  ;;  %10510 = vmatpush3.xpose.msk.msra.mxu0 %vm590_vm5, %v1641_v5  ;;  %10488 = vmatprep.mubr.msk.f32.mxu0 %vm11909_vm0, %v15139_v0 }
 0x769   :  { %1532 = vrot.lane.b32.xlu0 %v12250_v3, %s15161_s0  ;;  %10511 = vmatprep.subr.mxu0 %v15139_v0  ;;  %v1326_v42 = vmul.f32 %v11525_v62, %v11513_v58  ;;  %v1631_v58 = vpop.permute.xlu0 %1630  ;;  %s15205_s0 = smov 8  }
 0x76b   :  { %10489 = vmatmul.mubr.msk.f32.gmra.mxu0 %vm787_vm6, %v1326_v42 }
 0x76c   :  { %v11527_v46 = vpop.eup %11526  ;;  %10512 = vmatpush3.xpose.msk.msra.mxu0 %vm590_vm5, %v1639_v38  ;;  %10491 = vmatprep.mubr.msk.f32.mxu0 %vm11909_vm0, %v15139_v0 }
 0x76d   :  { %1528 = vrot.lane.b32.xlu0 %v12318_v50, %s15169_s24  ;;  %10513 = vmatprep.subr.mxu0 %v15139_v0  ;;  %v1327_v30 = vmul.f32 %v11527_v46, %v12520_v7  ;;  %v1633_v52 = vpop.permute.xlu0 %1632  ;;  %v1635_v7 = vpop.permute.xlu1 %1634 }
 0x76f   :  { %10492 = vmatmul.mubr.msk.f32.gmra.mxu0 %vm787_vm6, %v1327_v30 }
 0x770   :  { %10514 = vmatpush3.xpose.msk.msra.mxu0 %vm590_vm5, %v1637_v43  ;;  %10515 = vmatprep.mubr.msk.f32.mxu0 %vm11909_vm0, %v15139_v0 }
 0x771   :  { %10539 = vmatprep.subr.mxu0 %v15139_v0 }
 0x773   :  { %10516 = vmatmul.mubr.msk.f32.vlgmr.msra.gmra.mxu0 %vm590_vm5, %v1631_v58 }
 0x774   :  { %10518 = vmatprep.mubr.msk.f32.mxu0 %vm11909_vm0, %v15139_v0 }
 0x777   :  { %10519 = vmatmul.mubr.msk.f32.gmra.mxu0 %vm590_vm5, %v1633_v52 }
 0x778   :  { %10521 = vmatprep.mubr.msk.f32.mxu0 %vm11909_vm0, %v15139_v0 }
 0x77b   :  { %10522 = vmatmul.mubr.msk.f32.gmra.mxu0 %vm590_vm5, %v1635_v7 }
 0x77c   :  { %10545 = vmatprep.mubr.msk.f32.mxu0 %vm11909_vm0, %v15139_v0 }
 0x797   :  { %v1300_v2 = vpop.xlane.xlu0 %1299 }
 0x798   :  { %11528 = vrcp.f32 %v1300_v2 }
 0x79b   :  { %v1303_v40 = vpop.xlane.xlu1 %1302 }
 0x79c   :  { %11530 = vrcp.f32 %v1303_v40 }
 0x79f   :  { %v1331_v8 = vpop.permute.xlu1 %1330 }
 0x7a3   :  { %v1329_v57 = vpop.permute.xlu1 %1328 }
 0x7a5   :  { %v11529_v17 = vpop.eup %11528 }
 0x7a6   :  { %v1322_v33 = vmul.f32 %v11529_v17, %v12536_v61 }
 0x7a7   :  { %v1535_v37 = vpop.permute.xlu1 %1534 }
 0x7a9   :  { %v11531_v9 = vpop.eup %11530 }
 0x7aa   :  { %v1323_v36 = vmul.f32 %v11531_v9, %v12540_v35 }
 0x7ab   :  { %v1527_v35 = vpop.permute.xlu1 %1526 }
 0x7d4   :  { %v1306_v5 = vpop.xlane.xlu0 %1305 }
 0x7d5   :  { %11532 = vrcp.f32 %v1306_v5 }
 0x7d8   :  { %v1333_v11 = vpop.permute.xlu0 %1332 }
 0x7d9   :  { %10465 = vmatpush3.msk.msra.mxu1 %vm872_vm8, %v1333_v11 }
 0x7da   :  { %10466 = vmatprep.subr.mxu1 %v15139_v0 }
 0x7db   :  { %10467 = vmatpush3.msra.mxu1 %v1331_v8 }
 0x7dc   :  { %10468 = vmatprep.subr.mxu1 %v15139_v0  ;;  %v1537_v59 = vpop.permute.xlu0 %1536 }
 0x7dd   :  { %10469 = vmatpush3.msra.mxu1 %v1329_v57 }
 0x7de   :  { %10471 = vmatmul.mubr.msk.f32.vlgmr.msra.gmra.mxu1 %vm787_vm6, %v1322_v33  ;;  %10494 = vmatprep.subr.mxu1 %v15139_v0 }
 0x7df   :  { %10495 = vmatpush3.xpose.msk.msra.mxu1 %vm590_vm5, %v1537_v59  ;;  %10473 = vmatprep.mubr.msk.f32.mxu1 %vm11909_vm0, %v15139_v0 }
 0x7e0   :  { %10496 = vmatprep.subr.mxu1 %v15139_v0  ;;  %v1533_v42 = vpop.permute.xlu0 %1532 }
 0x7e2   :  { %v11533_v61 = vpop.eup %11532  ;;  %10474 = vmatmul.mubr.msk.f32.gmra.mxu1 %vm787_vm6, %v1323_v36 }
 0x7e3   :  { %10497 = vmatpush3.xpose.msk.msra.mxu1 %vm590_vm5, %v1535_v37  ;;  %10476 = vmatprep.mubr.msk.f32.mxu1 %vm11909_vm0, %v15139_v0  ;;  %v1324_v62 = vmul.f32 %v11533_v61, %v12555_v25  ;;  %v1531_v25 = vpop.permute.xlu1 %1530 }
 0x7e4   :  { %10498 = vmatprep.subr.mxu1 %v15139_v0  ;;  %v1529_v38 = vpop.permute.xlu0 %1528 }
 0x7e6   :  { %10477 = vmatmul.mubr.msk.f32.gmra.mxu1 %vm787_vm6, %v1324_v62 }
 0x7e7   :  { %10499 = vmatpush3.xpose.msk.msra.mxu1 %vm590_vm5, %v1533_v42  ;;  %10500 = vmatprep.mubr.msk.f32.mxu1 %vm11909_vm0, %v15139_v0 }
 0x7e8   :  { %10524 = vmatprep.subr.mxu1 %v15139_v0 }
 0x7ea   :  { %10501 = vmatmul.mubr.msk.f32.vlgmr.msra.gmra.mxu1 %vm590_vm5, %v1527_v35 }
 0x7eb   :  { %10503 = vmatprep.mubr.msk.f32.mxu1 %vm11909_vm0, %v15139_v0 }
 0x7ee   :  { %10504 = vmatmul.mubr.msk.f32.gmra.mxu1 %vm590_vm5, %v1529_v38 }
 0x7ef   :  { %10506 = vmatprep.mubr.msk.f32.mxu1 %vm11909_vm0, %v15139_v0 }
 0x7f2   :  { %10507 = vmatmul.mubr.msk.f32.gmra.mxu1 %vm590_vm5, %v1531_v25 }
 0x7f3   :  { %10530 = vmatprep.mubr.msk.f32.mxu1 %vm11909_vm0, %v15139_v0 }
 0x827   :  { %v12623_v46 = vpop.f32.mrf.mxu0 }
 0x829   :  { %v10487_v30 = vpop.f32.mrf.mxu0 }
 0x82b   :  { %v12625_v43 = vpop.f32.mrf.mxu0 }
 0x82d   :  { %v10490_v58 = vpop.f32.mrf.mxu0 }
 0x82f   :  { %v12627_v52 = vpop.f32.mrf.mxu0 }
 0x831   :  { %v10493_v7 = vpop.f32.mrf.mxu0 }
 0x833   :  { %v1720_v2 = vpop.f32.mrf.mxu0 }
 0x834   :  { %v1743_v40 = vsel %vm787_vm6, %v1720_v2, -inf }
 0x835   :  { %1744 = vmax.xlane.f32.xlu0 %v1743_v40  ;;  %v10517_v5 = vpop.f32.mrf.mxu0 }
 0x837   :  { %v1725_v8 = vpop.f32.mrf.mxu0 }
 0x838   :  { %v1746_v11 = vsel %vm787_vm6, %v1725_v8, -inf }
 0x839   :  { %1747 = vmax.xlane.f32.xlu1 %v1746_v11  ;;  %v10520_v17 = vpop.f32.mrf.mxu0 }
 0x83b   :  { %v1730_v33 = vpop.f32.mrf.mxu0 }
 0x83c   :  { %v1749_v57 = vsel %vm794_vm7, %v1730_v33, -inf }
 0x83d   :  { %1750 = vmax.xlane.f32.xlu0 %v1749_v57  ;;  %v10523_v9 = vpop.f32.mrf.mxu0 }
 0x853   :  { %1903 = vrot.lane.b32.xlu0 %v12262_v12, %s15145_s2 }
 0x89e   :  { %v12634_v59 = vpop.f32.mrf.mxu1 }
 0x8a0   :  { %v10472_v36 = vpop.f32.mrf.mxu1 }
 0x8a2   :  { %v12636_v61 = vpop.f32.mrf.mxu1 }
 0x8a4   :  { %v10475_v37 = vpop.f32.mrf.mxu1 }
 0x8a6   :  { %v12638_v62 = vpop.f32.mrf.mxu1 }
 0x8a8   :  { %v10478_v42 = vpop.f32.mrf.mxu1 }
 0x8aa   :  { %v1616_v35 = vpop.f32.mrf.mxu1 }
 0x8ab   :  { %v1734_v38 = vsel %vm787_vm6, %v1616_v35, -inf }
 0x8ac   :  { %v10502_v25 = vpop.f32.mrf.mxu1  ;;  %1735 = vmax.xlane.f32.xlu1 %v1734_v38 }
 0x8ae   :  { %v1621_v30 = vpop.f32.mrf.mxu1 }
 0x8af   :  { %v1737_v58 = vsel %vm787_vm6, %v1621_v30, -inf }
 0x8b0   :  { %v10505_v7 = vpop.f32.mrf.mxu1  ;;  %1738 = vmax.xlane.f32.xlu0 %v1737_v58 }
 0x8b2   :  { %v12642_v40 = vpop.f32.mrf.mxu1 }
 0x8b4   :  { %v10508_v5 = vpop.f32.mrf.mxu1 }
 0x8bd   :  { %1901 = vrot.lane.b32.xlu1 %v12270_v15, %s15145_s2 }
 0x8be   :  { %v1745_v11 = vpop.xlane.xlu0 %1744 }
 0x8bf   :  { %v1755_v17 = vsub.f32 %v1720_v2, %v1745_v11  ;;  %v1740_v11 = vsel %vm794_vm7, %v12642_v40, -inf }
 0x8c1   :  { %1899 = vrot.lane.b32.xlu1 %v12276_v20, %s15145_s2  ;;  %v1764_v57 = vmul.f32 1.442695, %v1755_v17 }
 0x8c2   :  { %v1748_v9 = vpop.xlane.xlu1 %1747 }
 0x8c3   :  { %11534 = vpow2.f32 %v1764_v57  ;;  %v1756_v36 = vsub.f32 %v1725_v8, %v1748_v9 }
 0x8c5   :  { %2112 = vrot.lane.b32.xlu1 %v12262_v12, %s15155_s25  ;;  %v1766_v37 = vmul.f32 1.442695, %v1756_v36 }
 0x8c6   :  { %v1751_v42 = vpop.xlane.xlu0 %1750 }
 0x8c7   :  { %11536 = vpow2.f32 %v1766_v37  ;;  %v1757_v58 = vsub.f32 %v1730_v33, %v1751_v42 }
 0x8c9   :  { %v1768_v5 = vmul.f32 1.442695, %v1757_v58 }
 0x8ca   :  { %v1904_v38 = vpop.permute.xlu0 %1903 }
 0x8cb   :  { %10540 = vmatpush3.msk.msra.mxu0 %vm872_vm8, %v1904_v38  ;;  %11538 = vpow2.f32 %v1768_v5 }
 0x8cc   :  { %10541 = vmatprep.subr.mxu0 %v15139_v0 }
 0x8d0   :  { %v11535_v2 = vpop.eup %11534 }
 0x8d1   :  { %v1779_v25 = vsel %vm787_vm6, %v11535_v2, 0.0 }
 0x8d2   :  { %1780 = vadd.xlane.f32.xlu0 %v1779_v25 }
 0x8d4   :  { %v11537_v7 = vpop.eup %11536 }
 0x8d5   :  { %v1782_v8 = vsel %vm787_vm6, %v11537_v7, 0.0 }
 0x8d6   :  { %1783 = vadd.xlane.f32.xlu0 %v1782_v8 }
 0x8d8   :  { %v12656_v17 = vpop.eup %11538 }
 0x8d9   :  { %v1785_v57 = vsel %vm794_vm7, %v12656_v17, 0.0 }
 0x8e9   :  { %1741 = vmax.xlane.f32.xlu1 %v1740_v11 }
 0x8ec   :  { %2110 = vrot.lane.b32.xlu0 %v12270_v15, %s15155_s25 }
 0x8ed   :  { %1786 = vadd.xlane.f32.xlu1 %v1785_v57 }
 0x8f0   :  { %2102 = vrot.lane.b32.xlu0 %v12336_v53, %s15159_s27 }
 0x8f4   :  { %2104 = vrot.lane.b32.xlu0 %v12344_v54, %s15159_s27 }
 0x8fe   :  { %2108 = vrot.lane.b32.xlu1 %v12276_v20, %s15155_s25 }
 0x902   :  { %2106 = vrot.lane.b32.xlu1 %v12351_v55, %s15159_s27 }
 0x935   :  { %v1736_v33 = vpop.xlane.xlu1 %1735 }
 0x936   :  { %v1752_v9 = vsub.f32 %v1616_v35, %v1736_v33 }
 0x938   :  { %v1758_v36 = vmul.f32 1.442695, %v1752_v9 }
 0x939   :  { %v1902_v37 = vpop.permute.xlu1 %1901  ;;  %v1739_v42 = vpop.xlane.xlu0 %1738 }
 0x93a   :  { %11540 = vpow2.f32 %v1758_v36  ;;  %v1753_v38 = vsub.f32 %v1621_v30, %v1739_v42  ;;  %10542 = vmatpush3.msra.mxu0 %v1902_v37 }
 0x93b   :  { %10543 = vmatprep.subr.mxu0 %v15139_v0 }
 0x93c   :  { %v1760_v25 = vmul.f32 1.442695, %v1753_v38 }
 0x93d   :  { %v1900_v58 = vpop.permute.xlu1 %1899 }
 0x93e   :  { %11542 = vpow2.f32 %v1760_v25  ;;  %10544 = vmatpush3.msra.mxu0 %v1900_v58 }
 0x93f   :  { %10569 = vmatprep.subr.mxu0 %v15139_v0 }
 0x941   :  { %v2113_v36 = vpop.permute.xlu1 %2112 }
 0x947   :  { %v12672_v8 = vpop.eup %11540 }
 0x948   :  { %v1770_v5 = vsel %vm787_vm6, %v12672_v8, 0.0 }
 0x949   :  { %1771 = vadd.xlane.f32.xlu0 %v1770_v5 }
 0x94b   :  { %v12676_v35 = vpop.eup %11542 }
 0x94c   :  { %v1773_v30 = vsel %vm787_vm6, %v12676_v35, 0.0 }
 0x94d   :  { %1774 = vadd.xlane.f32.xlu1 %v1773_v30 }
 0x95b   :  { %v1781_v11 = vpop.xlane.xlu0 %1780 }
 0x95c   :  { %11544 = vrcp.f32 %v1781_v11 }
 0x95e   :  { %1802 = vrot.lane.b32.xlu1 %v12244_v63, %s15145_s2 }
 0x95f   :  { %v1784_v57 = vpop.xlane.xlu0 %1783 }
 0x960   :  { %11546 = vrcp.f32 %v1784_v57 }
 0x962   :  { %1800 = vrot.lane.b32.xlu1 %v12250_v3, %s15145_s2 }
 0x963   :  { %v2111_v38 = vpop.permute.xlu0 %2110 }
 0x966   :  { %2006 = vrot.lane.b32.xlu1 %v12244_v63, %s15155_s25 }
 0x969   :  { %v11545_v33 = vpop.eup %11544 }
 0x96a   :  { %1998 = vrot.lane.b32.xlu1 %v12309_v49, %s15159_s27  ;;  %v1797_v9 = vmul.f32 %v11545_v33, %v11535_v2 }
 0x96c   :  { %10546 = vmatmul.mubr.msk.f32.vlgmr.msra.gmra.mxu0 %vm787_vm6, %v1797_v9 }
 0x96d   :  { %v11547_v37 = vpop.eup %11546  ;;  %10570 = vmatpush3.xpose.msk.msra.mxu0 %vm590_vm5, %v2113_v36  ;;  %10548 = vmatprep.mubr.msk.f32.mxu0 %vm11909_vm0, %v15139_v0 }
 0x96e   :  { %2002 = vrot.lane.b32.xlu1 %v12327_v48, %s15159_s27  ;;  %10571 = vmatprep.subr.mxu0 %v15139_v0  ;;  %v1798_v42 = vmul.f32 %v11547_v37, %v11537_v7 }
 0x970   :  { %10549 = vmatmul.mubr.msk.f32.gmra.mxu0 %vm787_vm6, %v1798_v42 }
 0x971   :  { %10572 = vmatpush3.xpose.msk.msra.mxu0 %vm590_vm5, %v2111_v38  ;;  %10551 = vmatprep.mubr.msk.f32.mxu0 %vm11909_vm0, %v15139_v0 }
 0x972   :  { %v1742_v2 = vpop.xlane.xlu1 %1741  ;;  %10573 = vmatprep.subr.mxu0 %v15139_v0 }
 0x973   :  { %v1754_v25 = vsub.f32 %v12642_v40, %v1742_v2  ;;  %v2103_v40 = vpop.permute.xlu0 %2102 }
 0x975   :  { %v1762_v58 = vmul.f32 1.442695, %v1754_v25 }
 0x976   :  { %v1787_v5 = vpop.xlane.xlu1 %1786 }
 0x977   :  { %11548 = vpow2.f32 %v1762_v58  ;;  %v2105_v9 = vpop.permute.xlu0 %2104 }
 0x978   :  { %11550 = vrcp.f32 %v1787_v5 }
 0x97a   :  { %v2109_v30 = vpop.permute.xlu1 %2108 }
 0x97b   :  { %10574 = vmatpush3.xpose.msk.msra.mxu0 %vm590_vm5, %v2109_v30 }
 0x97c   :  { %10599 = vmatprep.subr.mxu0 %v15139_v0 }
 0x97e   :  { %v2107_v36 = vpop.permute.xlu1 %2106 }
 0x984   :  { %v11549_v7 = vpop.eup %11548 }
 0x985   :  { %v11551_v11 = vpop.eup %11550  ;;  %v1776_v57 = vsel %vm794_vm7, %v11549_v7, 0.0 }
 0x986   :  { %1777 = vadd.xlane.f32.xlu0 %v1776_v57  ;;  %v1799_v33 = vmul.f32 %v11551_v11, %v12656_v17 }
 0x988   :  { %10552 = vmatmul.mubr.msk.f32.gmra.mxu0 %vm787_vm6, %v1799_v33 }
 0x989   :  { %10575 = vmatprep.mubr.msk.f32.mxu0 %vm11909_vm0, %v15139_v0 }
 0x98c   :  { %10576 = vmatmul.mubr.msk.f32.vlgmr.msra.gmra.mxu0 %vm590_vm5, %v2103_v40 }
 0x98d   :  { %10578 = vmatprep.mubr.msk.f32.mxu0 %vm11909_vm0, %v15139_v0 }
 0x990   :  { %10579 = vmatmul.mubr.msk.f32.gmra.mxu0 %vm590_vm5, %v2105_v9 }
 0x991   :  { %10581 = vmatprep.mubr.msk.f32.mxu0 %vm11909_vm0, %v15139_v0 }
 0x994   :  { %10582 = vmatmul.mubr.msk.f32.gmra.mxu0 %vm590_vm5, %v2107_v36 }
 0x995   :  { %10605 = vmatprep.mubr.msk.f32.mxu0 %vm11909_vm0, %v15139_v0 }
 0x99c   :  { %1804 = vrot.lane.b32.xlu0 %v12252_v4, %s15145_s2  ;;  %s15171_s2 = smov 16  }
 0x9a0   :  { %2008 = vrot.lane.b32.xlu0 %v12252_v4, %s15155_s25 }
 0x9a4   :  { %2004 = vrot.lane.b32.xlu0 %v12250_v3, %s15155_s25  ;;  %s15206_s25 = smov 72  }
 0x9a8   :  { %2000 = vrot.lane.b32.xlu0 %v12318_v50, %s15159_s27  ;;  %s15207_s27 = smov 32  }
 0x9d2   :  { %v1772_v17 = vpop.xlane.xlu0 %1771 }
 0x9d3   :  { %11552 = vrcp.f32 %v1772_v17 }
 0x9d6   :  { %v1775_v37 = vpop.xlane.xlu1 %1774 }
 0x9d7   :  { %11554 = vrcp.f32 %v1775_v37 }
 0x9da   :  { %v1803_v38 = vpop.permute.xlu1 %1802 }
 0x9de   :  { %v1801_v5 = vpop.permute.xlu1 %1800 }
 0x9e0   :  { %v11553_v25 = vpop.eup %11552 }
 0x9e1   :  { %v1794_v58 = vmul.f32 %v11553_v25, %v12672_v8 }
 0x9e2   :  { %v2007_v33 = vpop.permute.xlu1 %2006 }
 0x9e4   :  { %v11555_v30 = vpop.eup %11554 }
 0x9e5   :  { %v1795_v57 = vmul.f32 %v11555_v30, %v12676_v35 }
 0x9e6   :  { %v1999_v35 = vpop.permute.xlu1 %1998 }
 0xa0f   :  { %v1778_v42 = vpop.xlane.xlu0 %1777 }
 0xa10   :  { %11556 = vrcp.f32 %v1778_v42 }
 0xa13   :  { %v1805_v2 = vpop.permute.xlu0 %1804 }
 0xa14   :  { %10525 = vmatpush3.msk.msra.mxu1 %vm872_vm8, %v1805_v2 }
 0xa15   :  { %10526 = vmatprep.subr.mxu1 %v15139_v0 }
 0xa16   :  { %10527 = vmatpush3.msra.mxu1 %v1803_v38 }
 0xa17   :  { %10528 = vmatprep.subr.mxu1 %v15139_v0  ;;  %v2009_v11 = vpop.permute.xlu0 %2008 }
 0xa18   :  { %10529 = vmatpush3.msra.mxu1 %v1801_v5 }
 0xa19   :  { %10531 = vmatmul.mubr.msk.f32.vlgmr.msra.gmra.mxu1 %vm787_vm6, %v1794_v58  ;;  %10554 = vmatprep.subr.mxu1 %v15139_v0 }
 0xa1a   :  { %10555 = vmatpush3.xpose.msk.msra.mxu1 %vm590_vm5, %v2009_v11  ;;  %10533 = vmatprep.mubr.msk.f32.mxu1 %vm11909_vm0, %v15139_v0 }
 0xa1b   :  { %10556 = vmatprep.subr.mxu1 %v15139_v0  ;;  %v2005_v9 = vpop.permute.xlu0 %2004 }
 0xa1d   :  { %v11557_v8 = vpop.eup %11556  ;;  %10534 = vmatmul.mubr.msk.f32.gmra.mxu1 %vm787_vm6, %v1795_v57 }
 0xa1e   :  { %10557 = vmatpush3.xpose.msk.msra.mxu1 %vm590_vm5, %v2007_v33  ;;  %10536 = vmatprep.mubr.msk.f32.mxu1 %vm11909_vm0, %v15139_v0  ;;  %v1796_v40 = vmul.f32 %v11557_v8, %v11549_v7  ;;  %v2003_v7 = vpop.permute.xlu1 %2002 }
 0xa1f   :  { %10558 = vmatprep.subr.mxu1 %v15139_v0  ;;  %v2001_v36 = vpop.permute.xlu0 %2000 }
 0xa21   :  { %10537 = vmatmul.mubr.msk.f32.gmra.mxu1 %vm787_vm6, %v1796_v40 }
 0xa22   :  { %10559 = vmatpush3.xpose.msk.msra.mxu1 %vm590_vm5, %v2005_v9  ;;  %10560 = vmatprep.mubr.msk.f32.mxu1 %vm11909_vm0, %v15139_v0 }
 0xa23   :  { %10584 = vmatprep.subr.mxu1 %v15139_v0 }
 0xa25   :  { %10561 = vmatmul.mubr.msk.f32.vlgmr.msra.gmra.mxu1 %vm590_vm5, %v1999_v35 }
 0xa26   :  { %10563 = vmatprep.mubr.msk.f32.mxu1 %vm11909_vm0, %v15139_v0 }
 0xa29   :  { %10564 = vmatmul.mubr.msk.f32.gmra.mxu1 %vm590_vm5, %v2001_v36 }
 0xa2a   :  { %10566 = vmatprep.mubr.msk.f32.mxu1 %vm11909_vm0, %v15139_v0 }
 0xa2c   :  { %v12752_v17 = vpop.f32.mrf.mxu0 }
 0xa2d   :  { %10567 = vmatmul.mubr.msk.f32.gmra.mxu1 %vm590_vm5, %v2003_v7 }
 0xa2e   :  { %10590 = vmatprep.mubr.msk.f32.mxu1 %vm11909_vm0, %v15139_v0  ;;  %v10547_v37 = vpop.f32.mrf.mxu0 }
 0xa30   :  { %v12757_v42 = vpop.f32.mrf.mxu0 }
 0xa32   :  { %v10550_v38 = vpop.f32.mrf.mxu0 }
 0xa48   :  { %v12759_v2 = vpop.f32.mrf.mxu0 }
 0xa4a   :  { %v10553_v25 = vpop.f32.mrf.mxu0 }
 0xa4c   :  { %v2192_v58 = vpop.f32.mrf.mxu0 }
 0xa4d   :  { %v2215_v5 = vsel %vm787_vm6, %v2192_v58, -inf }
 0xa4e   :  { %2216 = vmax.xlane.f32.xlu0 %v2215_v5  ;;  %v10577_v30 = vpop.f32.mrf.mxu0 }
 0xa50   :  { %v2197_v11 = vpop.f32.mrf.mxu0 }
 0xa51   :  { %v2218_v57 = vsel %vm787_vm6, %v2197_v11, -inf }
 0xa52   :  { %2219 = vmax.xlane.f32.xlu1 %v2218_v57  ;;  %v10580_v8 = vpop.f32.mrf.mxu0 }
 0xa54   :  { %v2202_v33 = vpop.f32.mrf.mxu0 }
 0xa55   :  { %v2221_v40 = vsel %vm794_vm7, %v2202_v33, -inf }
 0xa56   :  { %2222 = vmax.xlane.f32.xlu0 %v2221_v40  ;;  %v10583_v9 = vpop.f32.mrf.mxu0 }
 0xad7   :  { %v2217_v35 = vpop.xlane.xlu0 %2216 }
 0xad8   :  { %v2227_v36 = vsub.f32 %v2192_v58, %v2217_v35 }
 0xad9   :  { %v12764_v7 = vpop.f32.mrf.mxu1 }
 0xada   :  { %v2236_v37 = vmul.f32 1.442695, %v2227_v36 }
 0xadb   :  { %v2220_v38 = vpop.xlane.xlu1 %2219  ;;  %v10532_v25 = vpop.f32.mrf.mxu1 }
 0xadc   :  { %11558 = vpow2.f32 %v2236_v37  ;;  %v2228_v5 = vsub.f32 %v2197_v11, %v2220_v38 }
 0xadd   :  { %v12766_v30 = vpop.f32.mrf.mxu1 }
 0xade   :  { %v2238_v0 = vmul.f32 1.442695, %v2228_v5 }
 0xadf   :  { %v10535_v23 = vpop.f32.mrf.mxu1  ;;  %v2223_v25 = vpop.xlane.xlu0 %2222 }
 0xae0   :  { %11560 = vpow2.f32 %v2238_v0  ;;  %v2229_v5 = vsub.f32 %v2202_v33, %v2223_v25 }
 0xae1   :  { %v12768_v57 = vpop.f32.mrf.mxu1 }
 0xae3   :  { %v10538_v8 = vpop.f32.mrf.mxu1 }
 0xae4   :  { %v2240_v8 = vmul.f32 1.442695, %v2229_v5  ;;  %v15202_v5 = vmov 0.0  }
 0xae5   :  { %v2088_v21 = vpop.f32.mrf.mxu1 }
 0xae6   :  { %v2206_v40 = vsel %vm787_vm6, %v2088_v21, -inf  ;;  %11562 = vpow2.f32 %v2240_v8 }
 0xae7   :  { %v10562_v9 = vpop.f32.mrf.mxu1  ;;  %2207 = vmax.xlane.f32.xlu1 %v2206_v40 }
 0xae9   :  { %v11559_v58 = vpop.eup %11558  ;;  %v12771_v35 = vpop.f32.mrf.mxu1 }
 0xaea   :  { %v2251_v36 = vsel %vm787_vm6, %v11559_v58, 0.0 }
 0xaeb   :  { %2252 = vadd.xlane.f32.xlu0 %v2251_v36  ;;  %v10565_v11 = vpop.f32.mrf.mxu1  ;;  %v2209_v36 = vsel %vm787_vm6, %v12771_v35, -inf }
 0xaed   :  { %v11561_v37 = vpop.eup %11560  ;;  %v12774_v38 = vpop.f32.mrf.mxu1 }
 0xaee   :  { %v2254_v0 = vsel %vm787_vm6, %v11561_v37, 0.0  ;;  %v2212_v40 = vsel %vm794_vm7, %v12774_v38, -inf }
 0xaef   :  { %2255 = vadd.xlane.f32.xlu0 %v2254_v0  ;;  %v10568_v23 = vpop.f32.mrf.mxu1 }
 0xaf3   :  { %v12785_v9 = vpop.eup %11562 }
 0xaf8   :  { %2373 = vrot.lane.b32.xlu1 %v12270_v15, %s15147_s26  ;;  %v2257_v15 = vsel %vm794_vm7, %v12785_v9, 0.0 }
 0xafc   :  { %2371 = vrot.lane.b32.xlu1 %v12276_v20, %s15147_s26 }
 0xb05   :  { %2375 = vrot.lane.b32.xlu0 %v12262_v12, %s15147_s26 }
 0xb20   :  { %2213 = vmax.xlane.f32.xlu1 %v2212_v40 }
 0xb24   :  { %2210 = vmax.xlane.f32.xlu0 %v2209_v36  ;;  %2258 = vadd.xlane.f32.xlu1 %v2257_v15  ;;  %v11904_v36 = vld [vmem:[%s15200_s28] sm:$0x7]  ;;  %s15157_s28 = smov 8  }
 0xb25   :  { %v335_v15 = vrot.slane %v11904_v36, %v12186_v26 }
 0xb35   :  { %2686 = vrot.lane.b32.xlu1 %v12318_v50, %s15153_s1 }
 0xb39   :  { %2784 = vrot.lane.b32.xlu1 %v12336_v53, %s15153_s1 }
 0xb3a   :  { %2684 = vrot.lane.b32.xlu0 %v12309_v49, %s15153_s1 }
 0xb3d   :  { %2788 = vrot.lane.b32.xlu1 %v12351_v55, %s15153_s1 }
 0xb3e   :  { %2688 = vrot.lane.b32.xlu0 %v12327_v48, %s15153_s1 }
 0xb42   :  { %2786 = vrot.lane.b32.xlu0 %v12344_v54, %s15153_s1  ;;  %s15213_s1 = smov 112  }
 0xb70   :  { %v2208_v12 = vpop.xlane.xlu1 %2207 }
 0xb71   :  { %v2224_v20 = vsub.f32 %v2088_v21, %v2208_v12 }
 0xb73   :  { %v2230_v33 = vmul.f32 1.442695, %v2224_v20 }
 0xb74   :  { %v2253_v11 = vpop.xlane.xlu0 %2252  ;;  %v2374_v23 = vpop.permute.xlu1 %2373 }
 0xb75   :  { %11564 = vpow2.f32 %v2230_v33  ;;  %v12816_v33 = vadd.f32 %v12357_v56, %v335_v15  ;;  %v12834_v56 = vadd.f32 %v12241_v60, %v335_v15 }
 0xb76   :  { %11566 = vrcp.f32 %v2253_v11 }
 0xb78   :  { %v2256_v0 = vpop.xlane.xlu0 %2255  ;;  %v2372_v8 = vpop.permute.xlu1 %2371 }
 0xb79   :  { %11568 = vrcp.f32 %v2256_v0 }
 0xb7c   :  { %v2376_v25 = vpop.permute.xlu0 %2375 }
 0xb7d   :  { %10600 = vmatpush3.msk.msra.mxu0 %vm872_vm8, %v2376_v25 }
 0xb7e   :  { %10601 = vmatprep.subr.mxu0 %v15202_v5 }
 0xb7f   :  { %10602 = vmatpush3.msra.mxu0 %v2374_v23  ;;  %v12825_v23 = vadd.f32 %v12246_v1, %v335_v15 }
 0xb80   :  { %10603 = vmatprep.subr.mxu0 %v15202_v5 }
 0xb81   :  { %10604 = vmatpush3.msra.mxu0 %v2372_v8 }
 0xb82   :  { %v12806_v40 = vpop.eup %11564  ;;  %10637 = vmatprep.subr.mxu0 %v15202_v5 }
 0xb83   :  { %v11567_v21 = vpop.eup %11566  ;;  %v2242_v12 = vsel %vm787_vm6, %v12806_v40, 0.0 }
 0xb84   :  { %v2269_v20 = vmul.f32 %v11567_v21, %v11559_v58  ;;  %2243 = vadd.xlane.f32.xlu0 %v2242_v12 }
 0xb86   :  { %v11569_v11 = vpop.eup %11568  ;;  %10606 = vmatmul.mubr.msk.f32.vlgmr.msra.gmra.mxu0 %vm787_vm6, %v2269_v20 }
 0xb87   :  { %10638 = vmatpush3.xpose.msk.msra.mxu0 %vm590_vm5, %v12816_v33  ;;  %10608 = vmatprep.mubr.msk.f32.mxu0 %vm11909_vm0, %v15202_v5  ;;  %v2270_v0 = vmul.f32 %v11569_v11, %v11561_v37 }
 0xb88   :  { %10639 = vmatprep.subr.mxu0 %v15202_v5 }
 0xb8a   :  { %10609 = vmatmul.mubr.msk.f32.gmra.mxu0 %vm787_vm6, %v2270_v0 }
 0xb8b   :  { %10640 = vmatpush3.xpose.msk.msra.mxu0 %vm590_vm5, %v12825_v23  ;;  %10611 = vmatprep.mubr.msk.f32.mxu0 %vm11909_vm0, %v15202_v5 }
 0xb8c   :  { %10641 = vmatprep.subr.mxu0 %v15202_v5 }
 0xb8f   :  { %10642 = vmatpush3.xpose.msk.msra.mxu0 %vm590_vm5, %v12834_v56 }
 0xb90   :  { %10652 = vmatprep.subr.mxu0 %v15202_v5 }
 0xba9   :  { %v2214_v1 = vpop.xlane.xlu1 %2213 }
 0xbaa   :  { %v2226_v58 = vsub.f32 %v12774_v38, %v2214_v1  ;;  %v451_v38 = vadd.f32 %v12260_v10, %v335_v15  ;;  %v445_v1 = vadd.f32 %v12258_v6, %v335_v15  ;;  %v556_v15 = vrot.slane %v12816_v33, 1 }
 0xbac   :  { %v2234_v37 = vmul.f32 1.442695, %v2226_v58  ;;  %v12855_v58 = vrot.slane %v451_v38, 1  ;;  %v557_v10 = vrot.slane %v445_v1, 1 }
 0xbad   :  { %v2211_v25 = vpop.xlane.xlu0 %2210  ;;  %v2259_v8 = vpop.xlane.xlu1 %2258 }
 0xbae   :  { %11570 = vpow2.f32 %v2234_v37  ;;  %v2225_v21 = vsub.f32 %v12771_v35, %v2211_v25  ;;  %v12866_v6 = vsel %vm552_vm4, %v557_v10, %v12855_v58 }
 0xbaf   :  { %11572 = vrcp.f32 %v2259_v8  ;;  %v12875_v8 = vsel %vm552_vm4, %v556_v15, %v557_v10 }
 0xbb0   :  { %v2232_v36 = vmul.f32 1.442695, %v2225_v21 }
 0xbb1   :  { %v2685_v37 = vpop.permute.xlu0 %2684 }
 0xbb2   :  { %11574 = vpow2.f32 %v2232_v36 }
 0xbb5   :  { %v2689_v25 = vpop.permute.xlu0 %2688 }
 0xbb9   :  { %v2787_v36 = vpop.permute.xlu0 %2786 }
 0xbbb   :  { %v12841_v12 = vpop.eup %11570 }
 0xbbc   :  { %v11573_v60 = vpop.eup %11572  ;;  %v2248_v20 = vsel %vm794_vm7, %v12841_v12, 0.0 }
 0xbbd   :  { %2249 = vadd.xlane.f32.xlu0 %v2248_v20  ;;  %v2271_v11 = vmul.f32 %v11573_v60, %v12785_v9  ;;  %v2687_v9 = vpop.permute.xlu1 %2686 }
 0xbbf   :  { %v12847_v0 = vpop.eup %11574  ;;  %10612 = vmatmul.mubr.msk.f32.gmra.mxu0 %vm787_vm6, %v2271_v11 }
 0xbc0   :  { %v2245_v35 = vsel %vm787_vm6, %v12847_v0, 0.0  ;;  %10643 = vmatprep.mubr.msk.f32.mxu0 %vm11909_vm0, %v15202_v5 }
 0xbc1   :  { %2246 = vadd.xlane.f32.xlu1 %v2245_v35  ;;  %v2785_v21 = vpop.permute.xlu1 %2784 }
 0xbc3   :  { %10644 = vmatmul.mubr.msk.f32.vlgmr.msra.gmra.mxu0 %vm590_vm5, %v2685_v37 }
 0xbc4   :  { %10653 = vmatpush3.xpose.msk.msra.mxu0 %vm590_vm5, %v12855_v58  ;;  %10646 = vmatprep.mubr.msk.f32.mxu0 %vm11909_vm0, %v15202_v5 }
 0xbc5   :  { %10654 = vmatprep.subr.mxu0 %v15202_v5  ;;  %v2789_v60 = vpop.permute.xlu1 %2788 }
 0xbc7   :  { %10647 = vmatmul.mubr.msk.f32.gmra.mxu0 %vm590_vm5, %v2687_v9 }
 0xbc8   :  { %10655 = vmatpush3.xpose.msk.msra.mxu0 %vm590_vm5, %v12866_v6  ;;  %10649 = vmatprep.mubr.msk.f32.mxu0 %vm11909_vm0, %v15202_v5 }
 0xbc9   :  { %10656 = vmatprep.subr.mxu0 %v15202_v5 }
 0xbcb   :  { %10650 = vmatmul.mubr.msk.f32.gmra.mxu0 %vm590_vm5, %v2689_v25 }
 0xbcc   :  { %10657 = vmatpush3.xpose.msk.msra.mxu0 %vm590_vm5, %v12875_v8  ;;  %10658 = vmatprep.mubr.msk.f32.mxu0 %vm11909_vm0, %v15202_v5 }
 0xbcd   :  { %10682 = vmatprep.subr.mxu0 %v15202_v5 }
 0xbcf   :  { %10659 = vmatmul.mubr.msk.f32.vlgmr.msra.gmra.mxu0 %vm590_vm5, %v2785_v21 }
 0xbd0   :  { %10661 = vmatprep.mubr.msk.f32.mxu0 %vm11909_vm0, %v15202_v5 }
 0xbd2   :  { %2274 = vrot.lane.b32.xlu1 %v12244_v63, %s15147_s26 }
 0xbd3   :  { %10662 = vmatmul.mubr.msk.f32.gmra.mxu0 %vm590_vm5, %v2787_v36  ;;  %2276 = vrot.lane.b32.xlu0 %v12252_v4, %s15147_s26 }
 0xbd4   :  { %10664 = vmatprep.mubr.msk.f32.mxu0 %vm11909_vm0, %v15202_v5 }
 0xbd6   :  { %2272 = vrot.lane.b32.xlu1 %v12250_v3, %s15147_s26  ;;  %s15212_s26 = smov 48  }
 0xbd7   :  { %10665 = vmatmul.mubr.msk.f32.gmra.mxu0 %vm590_vm5, %v2789_v60  ;;  %2476 = vrot.lane.b32.xlu0 %v12634_v59, %s15157_s28 }
 0xbd8   :  { %10688 = vmatprep.mubr.msk.f32.mxu0 %vm11909_vm0, %v15202_v5 }
 0xbda   :  { %2500 = vrot.lane.b32.xlu1 %v12764_v7, %s15171_s2 }
 0xbdb   :  { %2482 = vrot.lane.b32.xlu0 %v12623_v46, %s15157_s28 }
 0xbde   :  { %2478 = vrot.lane.b32.xlu1 %v12636_v61, %s15157_s28 }
 0xbdf   :  { %2506 = vrot.lane.b32.xlu0 %v12752_v17, %s15171_s2 }
 0xbe2   :  { %2502 = vrot.lane.b32.xlu1 %v12766_v30, %s15171_s2 }
 0xbe3   :  { %2480 = vrot.lane.b32.xlu0 %v12638_v62, %s15157_s28 }
 0xbe6   :  { %2508 = vrot.lane.b32.xlu1 %v12757_v42, %s15171_s2 }
 0xbe7   :  { %2504 = vrot.lane.b32.xlu0 %v12768_v57, %s15171_s2 }
 0xbea   :  { %2486 = vrot.lane.b32.xlu1 %v12627_v52, %s15157_s28 }
 0xbeb   :  { %2484 = vrot.lane.b32.xlu0 %v12625_v43, %s15157_s28  ;;  %s15214_s28 = smov 40  }
 0xbee   :  { %2510 = vrot.lane.b32.xlu1 %v12759_v2, %s15171_s2 }
 0xbf2   :  { %2952 = vrot.lane.b32.xlu1 %v12816_v33, %s15167_s29 }
 0xc0d   :  { %v2244_v63 = vpop.xlane.xlu0 %2243 }
 0xc0e   :  { %11576 = vrcp.f32 %v2244_v63 }
 0xc1b   :  { %v11577_v17 = vpop.eup %11576 }
 0xc1c   :  { %v2266_v42 = vmul.f32 %v11577_v17, %v12806_v40 }
 0xc46   :  { %v12924_v3 = vpop.f32.mrf.mxu0  ;;  %v2250_v4 = vpop.xlane.xlu0 %2249 }
 0xc48   :  { %v10607_v46 = vpop.f32.mrf.mxu0 }
 0xc4a   :  { %v2461_v59 = vpop.f32.mrf.mxu0  ;;  %v2247_v61 = vpop.xlane.xlu1 %2246 }
 0xc4b   :  { %11578 = vrcp.f32 %v2247_v61  ;;  %2532 = vrot.lane.b32.xlu1 %v2461_v59, %s15178_s4  ;;  %v2277_v52 = vpop.permute.xlu0 %2276  ;;  %v207_v59 = vld [vmem:[%s15117_s6 + $0x18] sm:$0xff]  ;;  %v206_v61 = vld [vmem:[%s15117_s6 + $0x10] sm:$0xff] }
 0xc4c   :  { %v10610_v43 = vpop.f32.mrf.mxu0  ;;  %10585 = vmatpush3.msk.msra.mxu1 %vm872_vm8, %v2277_v52  ;;  %11580 = vrcp.f32 %v2250_v4  ;;  %v205_v52 = vld [vmem:[%s15117_s6 + $0x8] sm:$0xff] }
 0xc4d   :  { %10586 = vmatprep.subr.mxu1 %v15202_v5 }
 0xc4e   :  { %v2275_v62 = vpop.permute.xlu1 %2274 }
 0xc4f   :  { %10587 = vmatpush3.msra.mxu1 %v2275_v62  ;;  %v204_v62 = vld [vmem:[%s15117_s6] sm:$0xff] }
 0xc50   :  { %10588 = vmatprep.subr.mxu1 %v15202_v5 }
 0xc52   :  { %v2273_v2 = vpop.permute.xlu1 %2272 }
 0xc53   :  { %10589 = vmatpush3.msra.mxu1 %v2273_v2 }
 0xc54   :  { %10591 = vmatmul.mubr.msk.f32.vlgmr.msra.gmra.mxu1 %vm787_vm6, %v2266_v42  ;;  %10614 = vmatprep.subr.mxu1 %v15202_v5 }
 0xc55   :  { %10593 = vmatprep.mubr.msk.f32.mxu1 %vm11909_vm0, %v15202_v5  ;;  %10615 = vmatpush3.msra.mxu1 %v207_v59 }
 0xc56   :  { %v12972_v4 = vpop.permute.xlu1 %2500  ;;  %10616 = vmatprep.subr.mxu1 %v15202_v5 }
 0xc57   :  { %10617 = vmatpush3.msra.mxu1 %v206_v61 }
 0xc58   :  { %v11579_v7 = vpop.eup %11578  ;;  %10618 = vmatprep.subr.mxu1 %v15202_v5 }
 0xc59   :  { %v2267_v30 = vmul.f32 %v11579_v7, %v12847_v0  ;;  %v11581_v57 = vpop.eup %11580  ;;  %10619 = vmatpush3.msra.mxu1 %v205_v52 }
 0xc5a   :  { %v2268_v40 = vmul.f32 %v11581_v57, %v12841_v12  ;;  %v12976_v46 = vpop.permute.xlu1 %2478  ;;  %10620 = vmatprep.subr.mxu1 %v15202_v5 }
 0xc5b   :  { %10594 = vmatmul.mubr.msk.f32.gmra.mxu1 %vm787_vm6, %v2267_v30 }
 0xc5c   :  { %10596 = vmatprep.mubr.msk.f32.mxu1 %vm11909_vm0, %v15202_v5  ;;  %10621 = vmatpush3.msra.mxu1 %v204_v62 }
 0xc5d   :  { %10667 = vmatprep.subr.mxu1 %v15202_v5 }
 0xc5e   :  { %v12988_v43 = vpop.permute.xlu1 %2502 }
 0xc5f   :  { %10597 = vmatmul.mubr.msk.f32.gmra.mxu1 %vm787_vm6, %v2268_v40 }
 0xc60   :  { %10622 = vmatprep.mubr.msk.f32.mxu1 %vm11909_vm0, %v15202_v5 }
 0xc62   :  { %v12996_v17 = vpop.permute.xlu1 %2508 }
 0xc66   :  { %v12998_v42 = vpop.permute.xlu1 %2486 }
 0xc6a   :  { %v13000_v2 = vpop.permute.xlu1 %2510 }
 0xc6e   :  { %v2953_v7 = vpop.permute.xlu1 %2952 }
 0xc7f   :  { %v12943_v20 = vpop.f32.mrf.mxu0 }
 0xc81   :  { %v10613_v11 = vpop.f32.mrf.mxu0 }
 0xc83   :  { %v12945_v38 = vpop.f32.mrf.mxu0 }
 0xc84   :  { %v2882_v59 = vsel %vm787_vm6, %v12945_v38, -inf }
 0xc85   :  { %v10645_v35 = vpop.f32.mrf.mxu0 }
 0xc87   :  { %v2775_v0 = vpop.f32.mrf.mxu0 }
 0xc88   :  { %v2885_v1 = vsel %vm787_vm6, %v2775_v0, -inf }
 0xc89   :  { %2886 = vmax.xlane.f32.xlu1 %v2885_v1  ;;  %v10648_v37 = vpop.f32.mrf.mxu0 }
 0xc8b   :  { %v12948_v10 = vpop.f32.mrf.mxu0 }
 0xc8c   :  { %v2888_v52 = vsel %vm794_vm7, %v12948_v10, -inf }
 0xc8d   :  { %v10651_v9 = vpop.f32.mrf.mxu0 }
 0xc8f   :  { %v12950_v12 = vpop.f32.mrf.mxu0 }
 0xc91   :  { %v10660_v15 = vpop.f32.mrf.mxu0 }
 0xc93   :  { %v12952_v25 = vpop.f32.mrf.mxu0 }
 0xc95   :  { %v10663_v21 = vpop.f32.mrf.mxu0 }
 0xc97   :  { %v12954_v36 = vpop.f32.mrf.mxu0 }
 0xc98   :  { %v2897_v63 = vsel %vm794_vm7, %v12954_v36, -inf }
 0xc99   :  { %v10666_v60 = vpop.f32.mrf.mxu0 }
 0xc9a   :  { %2950 = vrot.lane.b32.xlu1 %v12825_v23, %s15167_s29 }
 0xcbd   :  { %v13002_v30 = vpop.permute.xlu1 %2532 }
 0xcbe   :  { %2898 = vmax.xlane.f32.xlu1 %v2897_v63 }
 0xccf   :  { %2948 = vrot.lane.b32.xlu1 %v12834_v56, %s15167_s29 }
 0xcd3   :  { %3051 = vrot.lane.b32.xlu1 %v12855_v58, %s15167_s29 }
 0xcd7   :  { %3156 = vrot.lane.b32.xlu1 %v12816_v33, %s15173_s22 }
 0xcdb   :  { %3049 = vrot.lane.b32.xlu1 %v12866_v6, %s15167_s29 }
 0xcdf   :  { %3154 = vrot.lane.b32.xlu1 %v12825_v23, %s15173_s22 }
 0xce3   :  { %3152 = vrot.lane.b32.xlu1 %v12834_v56, %s15173_s22 }
 0xce7   :  { %3146 = vrot.lane.b32.xlu1 %v12309_v49, %s15178_s4 }
 0xd12   :  { %v2887_v57 = vpop.xlane.xlu1 %2886 }
 0xd13   :  { %v2901_v40 = vsub.f32 %v2775_v0, %v2887_v57 }
 0xd14   :  { %v2357_v11 = vpop.f32.mrf.mxu1 }
 0xd15   :  { %v2908_v35 = vmul.f32 1.442695, %v2901_v40  ;;  %2524 = vrot.lane.b32.xlu0 %v2357_v11, %s15178_s4 }
 0xd16   :  { %v10592_v1 = vpop.f32.mrf.mxu1  ;;  %v2951_v63 = vpop.permute.xlu1 %2950 }
 0xd17   :  { %11582 = vpow2.f32 %v2908_v35  ;;  %v2477_v35 = vpop.permute.xlu0 %2476 }
 0xd1b   :  { %v2362_v37 = vpop.f32.mrf.mxu1  ;;  %v2483_v1 = vpop.permute.xlu0 %2482 }
 0xd1c   :  { %2526 = vrot.lane.b32.xlu0 %v2362_v37, %s15178_s4 }
 0xd1d   :  { %v10595_v9 = vpop.f32.mrf.mxu1 }
 0xd1f   :  { %v2367_v15 = vpop.f32.mrf.mxu1  ;;  %v2507_v37 = vpop.permute.xlu0 %2506 }
 0xd20   :  { %2528 = vrot.lane.b32.xlu0 %v2367_v15, %s15178_s4 }
 0xd21   :  { %v10598_v21 = vpop.f32.mrf.mxu1 }
 0xd23   :  { %v2481_v9 = vpop.permute.xlu0 %2480 }
 0xd24   :  { %v13007_v60 = vpop.eup %11582  ;;  %2530 = vrot.lane.b32.xlu0 %v12924_v3, %s15178_s4  ;;  %v2891_v3 = vsel %vm787_vm6, %v12950_v12, -inf }
 0xd25   :  { %v2921_v0 = vsel %vm787_vm6, %v13007_v60, 0.0 }
 0xd26   :  { %2922 = vadd.xlane.f32.xlu1 %v2921_v0  ;;  %v2542_v0 = vsel %vm590_vm5, %v12498_v18, %v2477_v35  ;;  %v2543_v18 = vsel %vm590_vm5, %v12500_v27, %v12976_v46  ;;  %v2545_v27 = vsel %vm590_vm5, %v12487_v39, %v2483_v1  ;;  %v2547_v39 = vsel %vm590_vm5, %v12491_v51, %v12998_v42 }
 0xd27   :  { %v2505_v15 = vpop.permute.xlu0 %2504 }
 0xd28   :  { %2534 = vrot.lane.b32.xlu0 %v12943_v20, %s15178_s4  ;;  %v2894_v20 = vsel %vm787_vm6, %v12952_v25, -inf }
 0xd2b   :  { %v2485_v21 = vpop.permute.xlu0 %2484 }
 0xd2c   :  { %v2546_v46 = vsel %vm590_vm5, %v12489_v47, %v2485_v21 }
 0xd47   :  { %2883 = vmax.xlane.f32.xlu0 %v2882_v59  ;;  %v13017_v61 = vpop.xlane.xlu1 %2898  ;;  %v2549_v59 = vsel %vm2548_vm9, %v2542_v0, %v12972_v4  ;;  %v2550_v4 = vsel %vm2548_vm9, %v2543_v18, %v12988_v43  ;;  %v2552_v43 = vsel %vm2548_vm9, %v2545_v27, %v2507_v37  ;;  %v2553_v0 = vsel %vm2548_vm9, %v2546_v46, %v12996_v17 }
 0xd48   :  { %v2560_v47 = vsel %vm2555_vm10, %v2553_v0, %v13002_v30 }
 0xd49   :  { %v2566_v17 = vrot.slane %v2560_v47, 7 }
 0xd4b   :  { %2889 = vmax.xlane.f32.xlu0 %v2888_v52  ;;  %v2949_v62 = vpop.permute.xlu1 %2948 }
 0xd4f   :  { %2892 = vmax.xlane.f32.xlu0 %v2891_v3  ;;  %v3052_v57 = vpop.permute.xlu1 %3051 }
 0xd50   :  { %10683 = vmatpush3.msk.msra.mxu0 %vm872_vm8, %v3052_v57 }
 0xd51   :  { %10684 = vmatprep.subr.mxu0 %v15202_v5 }
 0xd53   :  { %2895 = vmax.xlane.f32.xlu0 %v2894_v20  ;;  %v13027_v40 = vpop.permute.xlu1 %3156 }
 0xd57   :  { %v3050_v11 = vpop.permute.xlu1 %3049 }
 0xd58   :  { %10685 = vmatpush3.msra.mxu0 %v3050_v11 }
 0xd59   :  { %10686 = vmatprep.subr.mxu0 %v15202_v5 }
 0xd69   :  { %3047 = vrot.lane.b32.xlu0 %v12875_v8, %s15167_s29  ;;  %s15208_s29 = smov 64  }
 0xd6d   :  { %3260 = vrot.lane.b32.xlu0 %v12855_v58, %s15173_s22 }
 0xd87   :  { %v2525_v52 = vpop.permute.xlu0 %2524 }
 0xd88   :  { %v2556_v3 = vsel %vm2555_vm10, %v2549_v59, %v2525_v52 }
 0xd89   :  { %10623 = vmatmul.mubr.msk.f32.vlgmr.msra.gmra.mxu1 %vm241_vm2, %v2556_v3 }
 0xd8a   :  { %10668 = vmatpush3.msk.msra.mxu1 %vm872_vm8, %v2953_v7  ;;  %10625 = vmatprep.mubr.msk.f32.mxu1 %vm11909_vm0, %v15202_v5 }
 0xd8b   :  { %10669 = vmatprep.subr.mxu1 %v15202_v5 }
 0xd8c   :  { %10670 = vmatpush3.msra.mxu1 %v2951_v63 }
 0xd8d   :  { %10671 = vmatprep.subr.mxu1 %v15202_v5 }
 0xd8e   :  { %10672 = vmatpush3.msra.mxu1 %v2949_v62  ;;  %v2527_v57 = vpop.permute.xlu0 %2526  ;;  %v2544_v62 = vsel %vm590_vm5, %v12502_v32, %v2481_v9  ;;  %v2554_v32 = vsel %vm2548_vm9, %v2547_v39, %v13000_v2 }
 0xd8f   :  { %v2557_v20 = vsel %vm2555_vm10, %v2550_v4, %v2527_v57  ;;  %10697 = vmatprep.subr.mxu1 %v15202_v5  ;;  %v2551_v35 = vsel %vm2548_vm9, %v2544_v62, %v2505_v15 }
 0xd90   :  { %10626 = vmatmul.mubr.msk.f32.gmra.mxu1 %vm241_vm2, %v2557_v20 }
 0xd91   :  { %10628 = vmatprep.mubr.msk.f32.mxu1 %vm11909_vm0, %v15202_v5 }
 0xd92   :  { %v2529_v7 = vpop.permute.xlu0 %2528 }
 0xd93   :  { %v2558_v1 = vsel %vm2555_vm10, %v2551_v35, %v2529_v7  ;;  %v2905_v35 = vsub.f32 %v12954_v36, %v13017_v61 }
 0xd96   :  { %v2531_v63 = vpop.permute.xlu0 %2530 }
 0xd97   :  { %v2559_v11 = vsel %vm2555_vm10, %v2552_v43, %v2531_v63 }
 0xd98   :  { %v2565_v59 = vrot.slane %v2559_v11, 7 }
 0xd9a   :  { %v2535_v37 = vpop.permute.xlu0 %2534  ;;  %v2571_v9 = vsel %vm872_vm8, %v2558_v1, %v2565_v59  ;;  %v2567_v42 = vsel %vm872_vm8, %v2565_v59, %v2566_v17  ;;  %v2916_v59 = vmul.f32 1.442695, %v2905_v35 }
 0xd9b   :  { %v2561_v15 = vsel %vm2555_vm10, %v2554_v32, %v2535_v37  ;;  %10629 = vmatmul.mubr.msk.f32.gmra.mxu1 %vm241_vm2, %v2571_v9 }
 0xd9c   :  { %10631 = vmatprep.mubr.msk.f32.mxu1 %vm11909_vm0, %v15202_v5  ;;  %v2568_v51 = vrot.slane %v2561_v15, 7  ;;  %v3155_v15 = vpop.permute.xlu1 %3154 }
 0xd9e   :  { %v2569_v2 = vsel %vm872_vm8, %v2566_v17, %v2568_v51 }
 0xd9f   :  { %10632 = vmatmul.mubr.msk.f32.gmra.mxu1 %vm241_vm2, %v2567_v42 }
 0xda0   :  { %10634 = vmatprep.mubr.msk.f32.mxu1 %vm11909_vm0, %v15202_v5 }
 0xda3   :  { %10635 = vmatmul.mubr.msk.f32.gmra.mxu1 %vm241_vm2, %v2569_v2  ;;  %v3153_v2 = vpop.permute.xlu1 %3152 }
 0xda4   :  { %10673 = vmatprep.mubr.msk.f32.mxu1 %vm11909_vm0, %v15202_v5 }
 0xdd0   :  { %v2884_v30 = vpop.xlane.xlu0 %2883 }
 0xdd1   :  { %v2900_v21 = vsub.f32 %v12945_v38, %v2884_v30 }
 0xdd3   :  { %v2906_v52 = vmul.f32 1.442695, %v2900_v21 }
 0xdd4   :  { %v2890_v3 = vpop.xlane.xlu0 %2889 }
 0xdd5   :  { %11584 = vpow2.f32 %v2906_v52  ;;  %v3147_v52 = vpop.permute.xlu1 %3146 }
 0xdd8   :  { %v2893_v18 = vpop.xlane.xlu0 %2892 }
 0xdd9   :  { %v2903_v4 = vsub.f32 %v12950_v12, %v2893_v18  ;;  %v2923_v18 = vpop.xlane.xlu1 %2922 }
 0xddb   :  { %v2912_v57 = vmul.f32 1.442695, %v2903_v4 }
 0xddc   :  { %v2896_v20 = vpop.xlane.xlu0 %2895 }
 0xddd   :  { %11586 = vpow2.f32 %v2912_v57  ;;  %v2904_v7 = vsub.f32 %v12952_v25, %v2896_v20  ;;  %v2902_v25 = vsub.f32 %v12948_v10, %v2890_v3 }
 0xddf   :  { %v2914_v27 = vmul.f32 1.442695, %v2904_v7  ;;  %v2910_v0 = vmul.f32 1.442695, %v2902_v25 }
 0xde0   :  { %v3048_v46 = vpop.permute.xlu0 %3047 }
 0xde1   :  { %11588 = vpow2.f32 %v2914_v27  ;;  %10687 = vmatpush3.msra.mxu0 %v3048_v46 }
 0xde2   :  { %v11585_v43 = vpop.eup %11584  ;;  %10712 = vmatprep.subr.mxu0 %v15202_v5  ;;  %11590 = vpow2.f32 %v2910_v0 }
 0xde3   :  { %v2918_v38 = vsel %vm787_vm6, %v11585_v43, 0.0  ;;  %11592 = vpow2.f32 %v2916_v59 }
 0xde4   :  { %2919 = vadd.xlane.f32.xlu0 %v2918_v38  ;;  %v3261_v3 = vpop.permute.xlu0 %3260 }
 0xdea   :  { %v11587_v63 = vpop.eup %11586 }
 0xdeb   :  { %v2927_v62 = vsel %vm787_vm6, %v11587_v63, 0.0 }
 0xdec   :  { %2928 = vadd.xlane.f32.xlu1 %v2927_v62 }
 0xdee   :  { %v13093_v12 = vpop.eup %11588 }
 0xdef   :  { %v2930_v11 = vsel %vm787_vm6, %v13093_v12, 0.0  ;;  %v13108_v39 = vpop.eup %11590 }
 0xdf0   :  { %2931 = vadd.xlane.f32.xlu1 %v2930_v11  ;;  %v2924_v10 = vsel %vm794_vm7, %v13108_v39, 0.0  ;;  %v13112_v47 = vpop.eup %11592 }
 0xdf1   :  { %v2933_v36 = vsel %vm794_vm7, %v13112_v47, 0.0 }
 0xdfa   :  { %3258 = vrot.lane.b32.xlu0 %v12866_v6, %s15173_s22 }
 0xe01   :  { %3148 = vrot.lane.b32.xlu1 %v12318_v50, %s15178_s4 }
 0xe05   :  { %3150 = vrot.lane.b32.xlu1 %v12327_v48, %s15178_s4 }
 0xe09   :  { %3254 = vrot.lane.b32.xlu1 %v12351_v55, %s15178_s4 }
 0xe19   :  { %2925 = vadd.xlane.f32.xlu0 %v2924_v10 }
 0xe1d   :  { %2934 = vadd.xlane.f32.xlu0 %v2933_v36 }
 0xe33   :  { %3256 = vrot.lane.b32.xlu0 %v12875_v8, %s15173_s22  ;;  %s15224_s22 = sld [smem:[#allocation13_spill]] }
 0xe37   :  { %3250 = vrot.lane.b32.xlu0 %v12336_v53, %s15178_s4 }
 0xe3b   :  { %3252 = vrot.lane.b32.xlu0 %v12344_v54, %s15178_s4 }
 0xe49   :  { %v13122_v61 = vpop.f32.mrf.mxu1 }
 0xe4b   :  { %v10624_v1 = vpop.f32.mrf.mxu1 }
 0xe50   :  { %v13124_v32 = vpop.f32.mrf.mxu1 }
 0xe52   :  { %v10627_v37 = vpop.f32.mrf.mxu1 }
 0xe5b   :  { %v13126_v9 = vpop.f32.mrf.mxu1 }
 0xe5d   :  { %v10630_v17 = vpop.f32.mrf.mxu1 }
 0xe5f   :  { %v13128_v51 = vpop.f32.mrf.mxu1 }
 0xe61   :  { %v10633_v42 = vpop.f32.mrf.mxu1 }
 0xe63   :  { %v13130_v30 = vpop.f32.mrf.mxu1 }
 0xe65   :  { %v10636_v21 = vpop.f32.mrf.mxu1 }
 0xe6d   :  { %v2920_v4 = vpop.xlane.xlu0 %2919 }
 0xe6e   :  { %11594 = vrcp.f32 %v2920_v4 }
 0xe6f   :  { %11596 = vrcp.f32 %v2923_v18 }
 0xe71   :  { %v3259_v11 = vpop.permute.xlu0 %3258 }
 0xe75   :  { %v2929_v57 = vpop.xlane.xlu1 %2928 }
 0xe76   :  { %11598 = vrcp.f32 %v2929_v57 }
 0xe79   :  { %v2932_v20 = vpop.xlane.xlu1 %2931 }
 0xe7a   :  { %11600 = vrcp.f32 %v2932_v20 }
 0xe7b   :  { %v11595_v7 = vpop.eup %11594 }
 0xe7c   :  { %v2942_v27 = vmul.f32 %v11595_v7, %v11585_v43  ;;  %v11597_v46 = vpop.eup %11596 }
 0xe7d   :  { %v2943_v38 = vmul.f32 %v11597_v46, %v13007_v60  ;;  %v3149_v36 = vpop.permute.xlu1 %3148 }
 0xe7e   :  { %10674 = vmatmul.mubr.msk.f32.vlgmr.msra.gmra.mxu1 %vm787_vm6, %v2942_v27 }
 0xe7f   :  { %10698 = vmatpush3.xpose.msk.msra.mxu1 %vm590_vm5, %v13027_v40  ;;  %10676 = vmatprep.mubr.msk.f32.mxu1 %vm11909_vm0, %v15202_v5 }
 0xe80   :  { %10699 = vmatprep.subr.mxu1 %v15202_v5 }
 0xe82   :  { %10677 = vmatmul.mubr.msk.f32.gmra.mxu1 %vm787_vm6, %v2943_v38 }
 0xe83   :  { %v11599_v62 = vpop.eup %11598  ;;  %10700 = vmatpush3.xpose.msk.msra.mxu1 %vm590_vm5, %v3155_v15  ;;  %10679 = vmatprep.mubr.msk.f32.mxu1 %vm11909_vm0, %v15202_v5 }
 0xe84   :  { %v2945_v43 = vmul.f32 %v11599_v62, %v11587_v63  ;;  %10701 = vmatprep.subr.mxu1 %v15202_v5 }
 0xe86   :  { %10689 = vmatmul.mubr.msk.f32.vlgmr.msra.gmra.mxu0 %vm787_vm6, %v2945_v43 }
 0xe87   :  { %v11601_v40 = vpop.eup %11600  ;;  %10702 = vmatpush3.xpose.msk.msra.mxu1 %vm590_vm5, %v3153_v2  ;;  %10713 = vmatpush3.xpose.msk.msra.mxu0 %vm590_vm5, %v3261_v3 }
 0xe88   :  { %10691 = vmatprep.mubr.msk.f32.mxu0 %vm11909_vm0, %v15202_v5  ;;  %10714 = vmatprep.subr.mxu0 %v15202_v5  ;;  %v2946_v60 = vmul.f32 %v11601_v40, %v13093_v12 }
 0xe89   :  { %10727 = vmatprep.subr.mxu1 %v15202_v5 }
 0xe8a   :  { %10692 = vmatmul.mubr.msk.f32.gmra.mxu0 %vm787_vm6, %v2946_v60 }
 0xe8b   :  { %10715 = vmatpush3.xpose.msk.msra.mxu0 %vm590_vm5, %v3259_v11  ;;  %10694 = vmatprep.mubr.msk.f32.mxu0 %vm11909_vm0, %v15202_v5 }
 0xe8c   :  { %10716 = vmatprep.subr.mxu0 %v15202_v5 }
 0xea2   :  { %v2926_v63 = vpop.xlane.xlu0 %2925 }
 0xea3   :  { %11602 = vrcp.f32 %v2926_v63 }
 0xea6   :  { %v2935_v25 = vpop.xlane.xlu0 %2934 }
 0xea7   :  { %11604 = vrcp.f32 %v2935_v25 }
 0xeaa   :  { %v3257_v35 = vpop.permute.xlu0 %3256 }
 0xeab   :  { %10717 = vmatpush3.xpose.msk.msra.mxu0 %vm590_vm5, %v3257_v35 }
 0xeac   :  { %10742 = vmatprep.subr.mxu0 %v15202_v5 }
 0xeae   :  { %v3251_v1 = vpop.permute.xlu0 %3250 }
 0xeb0   :  { %v11603_v12 = vpop.eup %11602 }
 0xeb1   :  { %v2944_v0 = vmul.f32 %v11603_v12, %v13108_v39  ;;  %v3151_v39 = vpop.permute.xlu1 %3150 }
 0xeb3   :  { %10680 = vmatmul.mubr.msk.f32.gmra.mxu1 %vm787_vm6, %v2944_v0 }
 0xeb4   :  { %v11605_v59 = vpop.eup %11604  ;;  %10703 = vmatprep.mubr.msk.f32.mxu1 %vm11909_vm0, %v15202_v5 }
 0xeb5   :  { %v2947_v10 = vmul.f32 %v11605_v59, %v13112_v47  ;;  %v3253_v47 = vpop.permute.xlu0 %3252  ;;  %v3255_v37 = vpop.permute.xlu1 %3254 }
 0xeb7   :  { %10695 = vmatmul.mubr.msk.f32.gmra.mxu0 %vm787_vm6, %v2947_v10  ;;  %10704 = vmatmul.mubr.msk.f32.vlgmr.msra.gmra.mxu1 %vm590_vm5, %v3147_v52 }
 0xeb8   :  { %10706 = vmatprep.mubr.msk.f32.mxu1 %vm11909_vm0, %v15202_v5  ;;  %10718 = vmatprep.mubr.msk.f32.mxu0 %vm11909_vm0, %v15202_v5 }
 0xebb   :  { %10707 = vmatmul.mubr.msk.f32.gmra.mxu1 %vm590_vm5, %v3149_v36  ;;  %10719 = vmatmul.mubr.msk.f32.vlgmr.msra.gmra.mxu0 %vm590_vm5, %v3251_v1 }
 0xebc   :  { %10709 = vmatprep.mubr.msk.f32.mxu1 %vm11909_vm0, %v15202_v5  ;;  %10721 = vmatprep.mubr.msk.f32.mxu0 %vm11909_vm0, %v15202_v5 }
 0xebf   :  { %10710 = vmatmul.mubr.msk.f32.gmra.mxu1 %vm590_vm5, %v3151_v39  ;;  %10722 = vmatmul.mubr.msk.f32.gmra.mxu0 %vm590_vm5, %v3253_v47 }
 0xec0   :  { %10724 = vmatprep.mubr.msk.f32.mxu0 %vm11909_vm0, %v15202_v5  ;;  %10733 = vmatprep.mubr.msk.f32.mxu1 %vm11909_vm0, %v15202_v5 }
 0xec3   :  { %10725 = vmatmul.mubr.msk.f32.gmra.mxu0 %vm590_vm5, %v3255_v37 }
 0xec4   :  { %10748 = vmatprep.mubr.msk.f32.mxu0 %vm11909_vm0, %v15202_v5 }
 0xf3e   :  { %v13185_v15 = vpop.f32.mrf.mxu1 }
 0xf40   :  { %v10675_v17 = vpop.f32.mrf.mxu1 }
 0xf42   :  { %v13187_v42 = vpop.f32.mrf.mxu1 }
 0xf44   :  { %v10678_v2 = vpop.f32.mrf.mxu1 }
 0xf46   :  { %v13189_v21 = vpop.f32.mrf.mxu0 }
 0xf48   :  { %v10690_v52 = vpop.f32.mrf.mxu0 }
 0xf4a   :  { %v13191_v3 = vpop.f32.mrf.mxu0 }
 0xf4c   :  { %v10693_v18 = vpop.f32.mrf.mxu0 }
 0xf73   :  { %v13193_v4 = vpop.f32.mrf.mxu1 }
 0xf75   :  { %v10681_v57 = vpop.f32.mrf.mxu1 }
 0xf77   :  { %v13195_v20 = vpop.f32.mrf.mxu0  ;;  %v3236_v7 = vpop.f32.mrf.mxu1 }
 0xf78   :  { %v3354_v27 = vsel %vm787_vm6, %v3236_v7, -inf }
 0xf79   :  { %3355 = vmax.xlane.f32.xlu0 %v3354_v27  ;;  %v10696_v46 = vpop.f32.mrf.mxu0  ;;  %v10705_v38 = vpop.f32.mrf.mxu1 }
 0xf7b   :  { %v3241_v62 = vpop.f32.mrf.mxu1  ;;  %v3340_v43 = vpop.f32.mrf.mxu0 }
 0xf7c   :  { %v3357_v40 = vsel %vm787_vm6, %v3241_v62, -inf  ;;  %v3363_v10 = vsel %vm787_vm6, %v3340_v43, -inf }
 0xf7d   :  { %3358 = vmax.xlane.f32.xlu1 %v3357_v40  ;;  %v10708_v60 = vpop.f32.mrf.mxu1  ;;  %v10720_v11 = vpop.f32.mrf.mxu0 }
 0xf7f   :  { %v3246_v63 = vpop.f32.mrf.mxu1  ;;  %v3345_v25 = vpop.f32.mrf.mxu0 }
 0xf80   :  { %v3360_v35 = vsel %vm794_vm7, %v3246_v63, -inf  ;;  %v3366_v1 = vsel %vm787_vm6, %v3345_v25, -inf }
 0xf81   :  { %3361 = vmax.xlane.f32.xlu0 %v3360_v35  ;;  %v10711_v12 = vpop.f32.mrf.mxu1  ;;  %v10723_v0 = vpop.f32.mrf.mxu0 }
 0xf83   :  { %v13200_v59 = vpop.f32.mrf.mxu0 }
 0xf84   :  { %v3369_v39 = vsel %vm794_vm7, %v13200_v59, -inf }
 0xf85   :  { %3364 = vmax.xlane.f32.xlu0 %v3363_v10  ;;  %v10726_v36 = vpop.f32.mrf.mxu0 }
 0xf89   :  { %3367 = vmax.xlane.f32.xlu0 %v3366_v1 }
 0xf8e   :  { %3422 = vrot.lane.b32.xlu1 %v12825_v23, %s15165_s30 }
 0xf92   :  { %3420 = vrot.lane.b32.xlu1 %v12834_v56, %s15165_s30 }
 0xf96   :  { %3523 = vrot.lane.b32.xlu1 %v12855_v58, %s15165_s30 }
 0xf9a   :  { %3521 = vrot.lane.b32.xlu1 %v12866_v6, %s15165_s30 }
 0xf9e   :  { %3626 = vrot.lane.b32.xlu1 %v12825_v23, %s15169_s24 }
 0xf9f   :  { %3424 = vrot.lane.b32.xlu0 %v12816_v33, %s15165_s30 }
 0xfa3   :  { %3628 = vrot.lane.b32.xlu0 %v12816_v33, %s15169_s24 }
 0xfa7   :  { %3519 = vrot.lane.b32.xlu0 %v12875_v8, %s15165_s30 }
 0xfab   :  { %3732 = vrot.lane.b32.xlu0 %v12855_v58, %s15169_s24 }
 0xfc2   :  { %3370 = vmax.xlane.f32.xlu1 %v3369_v39 }
 0xfd3   :  { %3624 = vrot.lane.b32.xlu1 %v12834_v56, %s15169_s24 }
0x1002   :  { %v3356_v47 = vpop.xlane.xlu0 %3355 }
0x1003   :  { %v3372_v37 = vsub.f32 %v3236_v7, %v3356_v47 }
0x1005   :  { %v3378_v17 = vmul.f32 1.442695, %v3372_v37 }
0x1006   :  { %v3359_v2 = vpop.xlane.xlu1 %3358 }
0x1007   :  { %11606 = vpow2.f32 %v3378_v17  ;;  %v3373_v52 = vsub.f32 %v3241_v62, %v3359_v2 }
0x1009   :  { %v3380_v18 = vmul.f32 1.442695, %v3373_v52 }
0x100a   :  { %v3362_v57 = vpop.xlane.xlu0 %3361  ;;  %v3423_v27 = vpop.permute.xlu1 %3422 }
0x100b   :  { %11608 = vpow2.f32 %v3380_v18  ;;  %v3374_v46 = vsub.f32 %v3246_v63, %v3362_v57 }
0x100d   :  { %v3382_v38 = vmul.f32 1.442695, %v3374_v46 }
0x100e   :  { %v3421_v40 = vpop.permute.xlu1 %3420  ;;  %v3365_v60 = vpop.xlane.xlu0 %3364 }
0x100f   :  { %11610 = vpow2.f32 %v3382_v38  ;;  %v3375_v11 = vsub.f32 %v3340_v43, %v3365_v60 }
0x1011   :  { %v3384_v35 = vmul.f32 1.442695, %v3375_v11 }
0x1012   :  { %v3524_v12 = vpop.permute.xlu1 %3523  ;;  %v3368_v0 = vpop.xlane.xlu0 %3367 }
0x1013   :  { %11612 = vpow2.f32 %v3384_v35  ;;  %v3376_v10 = vsub.f32 %v3345_v25, %v3368_v0  ;;  %10743 = vmatpush3.msk.msra.mxu0 %vm872_vm8, %v3524_v12 }
0x1014   :  { %v11607_v7 = vpop.eup %11606  ;;  %10744 = vmatprep.subr.mxu0 %v15202_v5 }
0x1015   :  { %v3386_v62 = vmul.f32 1.442695, %v3376_v10  ;;  %v3390_v36 = vsel %vm787_vm6, %v11607_v7, 0.0 }
0x1016   :  { %v3522_v1 = vpop.permute.xlu1 %3521  ;;  %3391 = vadd.xlane.f32.xlu0 %v3390_v36  ;;  %v3425_v63 = vpop.permute.xlu0 %3424 }
0x1017   :  { %11614 = vpow2.f32 %v3386_v62  ;;  %10728 = vmatpush3.msk.msra.mxu1 %vm872_vm8, %v3425_v63  ;;  %10745 = vmatpush3.msra.mxu0 %v3522_v1 }
0x1018   :  { %v11609_v43 = vpop.eup %11608  ;;  %10729 = vmatprep.subr.mxu1 %v15202_v5  ;;  %10746 = vmatprep.subr.mxu0 %v15202_v5 }
0x1019   :  { %10730 = vmatpush3.msra.mxu1 %v3423_v27  ;;  %v3393_v25 = vsel %vm787_vm6, %v11609_v43, 0.0 }
0x101a   :  { %10731 = vmatprep.subr.mxu1 %v15202_v5  ;;  %v3629_v39 = vpop.permute.xlu0 %3628  ;;  %3394 = vadd.xlane.f32.xlu1 %v3393_v25  ;;  %v3627_v27 = vpop.permute.xlu1 %3626 }
0x101b   :  { %10732 = vmatpush3.msra.mxu1 %v3421_v40 }
0x101c   :  { %v11611_v47 = vpop.eup %11610  ;;  %10757 = vmatprep.subr.mxu1 %v15202_v5 }
0x101d   :  { %v3396_v37 = vsel %vm794_vm7, %v11611_v47, 0.0 }
0x101e   :  { %v3520_v17 = vpop.permute.xlu0 %3519  ;;  %3397 = vadd.xlane.f32.xlu1 %v3396_v37 }
0x101f   :  { %10747 = vmatpush3.msra.mxu0 %v3520_v17 }
0x1020   :  { %v11613_v2 = vpop.eup %11612  ;;  %10772 = vmatprep.subr.mxu0 %v15202_v5 }
0x1021   :  { %v3399_v52 = vsel %vm787_vm6, %v11613_v2, 0.0 }
0x1022   :  { %3400 = vadd.xlane.f32.xlu0 %v3399_v52  ;;  %v3733_v35 = vpop.permute.xlu0 %3732 }
0x1024   :  { %v11615_v18 = vpop.eup %11614 }
0x1025   :  { %v3402_v57 = vsel %vm787_vm6, %v11615_v18, 0.0 }
0x1026   :  { %3403 = vadd.xlane.f32.xlu0 %v3402_v57 }
0x102f   :  { %3618 = vrot.lane.b32.xlu1 %v12309_v49, %s15171_s2 }
0x1033   :  { %3620 = vrot.lane.b32.xlu1 %v12318_v50, %s15171_s2 }
0x103c   :  { %3730 = vrot.lane.b32.xlu0 %v12866_v6, %s15169_s24 }
0x1040   :  { %3728 = vrot.lane.b32.xlu0 %v12875_v8, %s15169_s24  ;;  %s15209_s24 = smov 56  }
0x1044   :  { %3722 = vrot.lane.b32.xlu0 %v12336_v53, %s15171_s2 }
0x1048   :  { %3724 = vrot.lane.b32.xlu0 %v12344_v54, %s15171_s2 }
0x104b   :  { %v3371_v46 = vpop.xlane.xlu1 %3370 }
0x104c   :  { %v3377_v38 = vsub.f32 %v13200_v59, %v3371_v46 }
0x104e   :  { %v3388_v40 = vmul.f32 1.442695, %v3377_v38 }
0x104f   :  { %v3625_v12 = vpop.permute.xlu1 %3624 }
0x1050   :  { %11616 = vpow2.f32 %v3388_v40 }
0x105d   :  { %v13252_v60 = vpop.eup %11616 }
0x105e   :  { %v3405_v11 = vsel %vm794_vm7, %v13252_v60, 0.0 }
0x105f   :  { %3406 = vadd.xlane.f32.xlu1 %v3405_v11 }
0x1070   :  { %3622 = vrot.lane.b32.xlu1 %v12327_v48, %s15171_s2 }
0x1074   :  { %3726 = vrot.lane.b32.xlu1 %v12351_v55, %s15171_s2 }
0x109f   :  { %v3392_v0 = vpop.xlane.xlu0 %3391 }
0x10a0   :  { %11618 = vrcp.f32 %v3392_v0 }
0x10a3   :  { %v3395_v10 = vpop.xlane.xlu1 %3394 }
0x10a4   :  { %11620 = vrcp.f32 %v3395_v10 }
0x10a7   :  { %v3398_v59 = vpop.xlane.xlu1 %3397 }
0x10a8   :  { %11622 = vrcp.f32 %v3398_v59 }
0x10ab   :  { %v3401_v62 = vpop.xlane.xlu0 %3400  ;;  %v3619_v52 = vpop.permute.xlu1 %3618 }
0x10ac   :  { %11624 = vrcp.f32 %v3401_v62 }
0x10ad   :  { %v11619_v36 = vpop.eup %11618 }
0x10ae   :  { %v3414_v1 = vmul.f32 %v11619_v36, %v11607_v7 }
0x10af   :  { %v3404_v63 = vpop.xlane.xlu0 %3403 }
0x10b0   :  { %11626 = vrcp.f32 %v3404_v63  ;;  %10734 = vmatmul.mubr.msk.f32.vlgmr.msra.gmra.mxu1 %vm787_vm6, %v3414_v1 }
0x10b1   :  { %v11621_v25 = vpop.eup %11620  ;;  %10758 = vmatpush3.xpose.msk.msra.mxu1 %vm590_vm5, %v3629_v39  ;;  %10736 = vmatprep.mubr.msk.f32.mxu1 %vm11909_vm0, %v15202_v5 }
0x10b2   :  { %10759 = vmatprep.subr.mxu1 %v15202_v5  ;;  %v3415_v37 = vmul.f32 %v11621_v25, %v11609_v43 }
0x10b4   :  { %10737 = vmatmul.mubr.msk.f32.gmra.mxu1 %vm787_vm6, %v3415_v37 }
0x10b5   :  { %v11623_v17 = vpop.eup %11622  ;;  %10760 = vmatpush3.xpose.msk.msra.mxu1 %vm590_vm5, %v3627_v27  ;;  %10739 = vmatprep.mubr.msk.f32.mxu1 %vm11909_vm0, %v15202_v5 }
0x10b6   :  { %10761 = vmatprep.subr.mxu1 %v15202_v5  ;;  %v3416_v7 = vmul.f32 %v11623_v17, %v11611_v47  ;;  %v3731_v47 = vpop.permute.xlu0 %3730 }
0x10b8   :  { %10740 = vmatmul.mubr.msk.f32.gmra.mxu1 %vm787_vm6, %v3416_v7 }
0x10b9   :  { %v11625_v39 = vpop.eup %11624  ;;  %10762 = vmatpush3.xpose.msk.msra.mxu1 %vm590_vm5, %v3625_v12  ;;  %10763 = vmatprep.mubr.msk.f32.mxu1 %vm11909_vm0, %v15202_v5 }
0x10ba   :  { %v3417_v43 = vmul.f32 %v11625_v39, %v11613_v2  ;;  %10787 = vmatprep.subr.mxu1 %v15202_v5  ;;  %v3621_v2 = vpop.permute.xlu1 %3620  ;;  %v3729_v46 = vpop.permute.xlu0 %3728 }
0x10bc   :  { %10749 = vmatmul.mubr.msk.f32.vlgmr.msra.gmra.mxu0 %vm787_vm6, %v3417_v43  ;;  %10764 = vmatmul.mubr.msk.f32.vlgmr.msra.gmra.mxu1 %vm590_vm5, %v3619_v52 }
0x10bd   :  { %v11627_v57 = vpop.eup %11626  ;;  %10773 = vmatpush3.xpose.msk.msra.mxu0 %vm590_vm5, %v3733_v35  ;;  %10751 = vmatprep.mubr.msk.f32.mxu0 %vm11909_vm0, %v15202_v5 }
0x10be   :  { %10774 = vmatprep.subr.mxu0 %v15202_v5  ;;  %10766 = vmatprep.mubr.msk.f32.mxu1 %vm11909_vm0, %v15202_v5  ;;  %v3418_v27 = vmul.f32 %v11627_v57, %v11615_v18  ;;  %v3723_v35 = vpop.permute.xlu0 %3722 }
0x10c0   :  { %10752 = vmatmul.mubr.msk.f32.gmra.mxu0 %vm787_vm6, %v3418_v27  ;;  %10767 = vmatmul.mubr.msk.f32.gmra.mxu1 %vm590_vm5, %v3621_v2 }
0x10c1   :  { %10775 = vmatpush3.xpose.msk.msra.mxu0 %vm590_vm5, %v3731_v47  ;;  %10769 = vmatprep.mubr.msk.f32.mxu1 %vm11909_vm0, %v15202_v5 }
0x10c2   :  { %10776 = vmatprep.subr.mxu0 %v15202_v5  ;;  %10754 = vmatprep.mubr.msk.f32.mxu0 %vm11909_vm0, %v15202_v5  ;;  %v3725_v12 = vpop.permute.xlu0 %3724 }
0x10c5   :  { %10777 = vmatpush3.xpose.msk.msra.mxu0 %vm590_vm5, %v3729_v46 }
0x10c6   :  { %10802 = vmatprep.subr.mxu0 %v15202_v5 }
0x10e8   :  { %v3407_v18 = vpop.xlane.xlu1 %3406 }
0x10e9   :  { %11628 = vrcp.f32 %v3407_v18 }
0x10ec   :  { %v3623_v38 = vpop.permute.xlu1 %3622 }
0x10ed   :  { %10770 = vmatmul.mubr.msk.f32.gmra.mxu1 %vm590_vm5, %v3623_v38 }
0x10ee   :  { %10793 = vmatprep.mubr.msk.f32.mxu1 %vm11909_vm0, %v15202_v5 }
0x10f0   :  { %v3727_v0 = vpop.permute.xlu1 %3726 }
0x10f6   :  { %v11629_v40 = vpop.eup %11628 }
0x10f7   :  { %v3419_v11 = vmul.f32 %v11629_v40, %v13252_v60 }
0x10f9   :  { %10755 = vmatmul.mubr.msk.f32.gmra.mxu0 %vm787_vm6, %v3419_v11 }
0x10fa   :  { %10778 = vmatprep.mubr.msk.f32.mxu0 %vm11909_vm0, %v15202_v5 }
0x10fd   :  { %10779 = vmatmul.mubr.msk.f32.vlgmr.msra.gmra.mxu0 %vm590_vm5, %v3723_v35 }
0x10fe   :  { %10781 = vmatprep.mubr.msk.f32.mxu0 %vm11909_vm0, %v15202_v5 }
0x1101   :  { %10782 = vmatmul.mubr.msk.f32.gmra.mxu0 %vm590_vm5, %v3725_v12 }
0x1102   :  { %10784 = vmatprep.mubr.msk.f32.mxu0 %vm11909_vm0, %v15202_v5 }
0x1105   :  { %10785 = vmatmul.mubr.msk.f32.gmra.mxu0 %vm590_vm5, %v3727_v0 }
0x1106   :  { %10808 = vmatprep.mubr.msk.f32.mxu0 %vm11909_vm0, %v15202_v5 }
0x1170   :  { %v13309_v60 = vpop.f32.mrf.mxu1 }
0x1172   :  { %v10735_v10 = vpop.f32.mrf.mxu1 }
0x1174   :  { %v13311_v59 = vpop.f32.mrf.mxu1 }
0x1176   :  { %v10738_v62 = vpop.f32.mrf.mxu1 }
0x1178   :  { %v13313_v36 = vpop.f32.mrf.mxu1 }
0x117a   :  { %v10741_v1 = vpop.f32.mrf.mxu1 }
0x117c   :  { %v13315_v63 = vpop.f32.mrf.mxu0  ;;  %v3708_v25 = vpop.f32.mrf.mxu1 }
0x117d   :  { %v3826_v37 = vsel %vm787_vm6, %v3708_v25, -inf }
0x117e   :  { %3827 = vmax.xlane.f32.xlu0 %v3826_v37  ;;  %v10750_v17 = vpop.f32.mrf.mxu0  ;;  %v10765_v7 = vpop.f32.mrf.mxu1 }
0x1180   :  { %v13318_v39 = vpop.f32.mrf.mxu0  ;;  %v3713_v52 = vpop.f32.mrf.mxu1 }
0x1181   :  { %v3829_v43 = vsel %vm787_vm6, %v3713_v52, -inf }
0x1182   :  { %3830 = vmax.xlane.f32.xlu1 %v3829_v43  ;;  %v10753_v57 = vpop.f32.mrf.mxu0  ;;  %v10768_v47 = vpop.f32.mrf.mxu1 }
0x1193   :  { %3894 = vrot.lane.b32.xlu1 %v12825_v23, %s15203_s3 }
0x1197   :  { %3892 = vrot.lane.b32.xlu1 %v12834_v56, %s15203_s3 }
0x119b   :  { %3995 = vrot.lane.b32.xlu1 %v12855_v58, %s15203_s3 }
0x119f   :  { %3993 = vrot.lane.b32.xlu1 %v12866_v6, %s15203_s3 }
0x11a3   :  { %4098 = vrot.lane.b32.xlu1 %v12825_v23, %s15204_s23 }
0x11ad   :  { %v3718_v27 = vpop.f32.mrf.mxu1 }
0x11ae   :  { %v3832_v2 = vsel %vm794_vm7, %v3718_v27, -inf }
0x11af   :  { %3833 = vmax.xlane.f32.xlu0 %v3832_v2  ;;  %v10771_v46 = vpop.f32.mrf.mxu1 }
0x11b9   :  { %v13332_v18 = vpop.f32.mrf.mxu0 }
0x11bb   :  { %v10756_v38 = vpop.f32.mrf.mxu0 }
0x11bd   :  { %v3812_v40 = vpop.f32.mrf.mxu0 }
0x11be   :  { %v3835_v11 = vsel %vm787_vm6, %v3812_v40, -inf }
0x11bf   :  { %3836 = vmax.xlane.f32.xlu0 %v3835_v11  ;;  %v10780_v35 = vpop.f32.mrf.mxu0 }
0x11c1   :  { %v3817_v12 = vpop.f32.mrf.mxu0 }
0x11c2   :  { %v3838_v0 = vsel %vm787_vm6, %v3817_v12, -inf }
0x11c3   :  { %3839 = vmax.xlane.f32.xlu0 %v3838_v0  ;;  %v10783_v10 = vpop.f32.mrf.mxu0 }
0x11c5   :  { %v13336_v62 = vpop.f32.mrf.mxu0 }
0x11c6   :  { %v3841_v1 = vsel %vm794_vm7, %v13336_v62, -inf }
0x11c7   :  { %3842 = vmax.xlane.f32.xlu1 %v3841_v1  ;;  %v10786_v37 = vpop.f32.mrf.mxu0 }
0x11d8   :  { %4096 = vrot.lane.b32.xlu1 %v12834_v56, %s15204_s23 }
0x11d9   :  { %3896 = vrot.lane.b32.xlu0 %v12816_v33, %s15203_s3 }
0x11dd   :  { %4100 = vrot.lane.b32.xlu0 %v12816_v33, %s15204_s23 }
0x11e1   :  { %3991 = vrot.lane.b32.xlu0 %v12875_v8, %s15203_s3 }
0x11e5   :  { %4204 = vrot.lane.b32.xlu0 %v12855_v58, %s15204_s23 }
0x1207   :  { %v3828_v17 = vpop.xlane.xlu0 %3827 }
0x1208   :  { %v3844_v7 = vsub.f32 %v3708_v25, %v3828_v17 }
0x120a   :  { %v3850_v43 = vmul.f32 1.442695, %v3844_v7 }
0x120b   :  { %v3831_v57 = vpop.xlane.xlu1 %3830 }
0x120c   :  { %11630 = vpow2.f32 %v3850_v43  ;;  %v3845_v47 = vsub.f32 %v3713_v52, %v3831_v57 }
0x120e   :  { %v3852_v2 = vmul.f32 1.442695, %v3845_v47 }
0x120f   :  { %v3895_v46 = vpop.permute.xlu1 %3894 }
0x1210   :  { %11632 = vpow2.f32 %v3852_v2 }
0x1213   :  { %v3893_v38 = vpop.permute.xlu1 %3892 }
0x1217   :  { %v3996_v11 = vpop.permute.xlu1 %3995 }
0x1218   :  { %10803 = vmatpush3.msk.msra.mxu0 %vm872_vm8, %v3996_v11 }
0x1219   :  { %v13351_v35 = vpop.eup %11630  ;;  %10804 = vmatprep.subr.mxu0 %v15202_v5 }
0x121a   :  { %v3862_v0 = vsel %vm787_vm6, %v13351_v35, 0.0 }
0x121b   :  { %v3994_v10 = vpop.permute.xlu1 %3993  ;;  %3863 = vadd.xlane.f32.xlu0 %v3862_v0 }
0x121c   :  { %10805 = vmatpush3.msra.mxu0 %v3994_v10 }
0x121d   :  { %v13356_v25 = vpop.eup %11632  ;;  %10806 = vmatprep.subr.mxu0 %v15202_v5 }
0x121e   :  { %v3865_v52 = vsel %vm787_vm6, %v13356_v25, 0.0 }
0x121f   :  { %3866 = vadd.xlane.f32.xlu1 %v3865_v52 }
0x1238   :  { %v3834_v1 = vpop.xlane.xlu0 %3833 }
0x1239   :  { %v3846_v37 = vsub.f32 %v3718_v27, %v3834_v1 }
0x123b   :  { %v3854_v17 = vmul.f32 1.442695, %v3846_v37 }
0x123d   :  { %11634 = vpow2.f32 %v3854_v17 }
0x1248   :  { %v3837_v7 = vpop.xlane.xlu0 %3836 }
0x1249   :  { %v3847_v43 = vsub.f32 %v3812_v40, %v3837_v7 }
0x124a   :  { %v13361_v57 = vpop.eup %11634 }
0x124b   :  { %v3856_v47 = vmul.f32 1.442695, %v3847_v43  ;;  %v3868_v2 = vsel %vm794_vm7, %v13361_v57, 0.0 }
0x124c   :  { %v3840_v11 = vpop.xlane.xlu0 %3839  ;;  %3869 = vadd.xlane.f32.xlu1 %v3868_v2 }
0x124d   :  { %11636 = vpow2.f32 %v3856_v47  ;;  %v3848_v0 = vsub.f32 %v3817_v12, %v3840_v11 }
0x124f   :  { %v3858_v10 = vmul.f32 1.442695, %v3848_v0 }
0x1250   :  { %v3897_v26 = vpop.permute.xlu0 %3896 }
0x1251   :  { %11638 = vpow2.f32 %v3858_v10  ;;  %10788 = vmatpush3.msk.msra.mxu1 %vm872_vm8, %v3897_v26 }
0x1252   :  { %10789 = vmatprep.subr.mxu1 %v15202_v5 }
0x1253   :  { %10790 = vmatpush3.msra.mxu1 %v3895_v46 }
0x1254   :  { %10791 = vmatprep.subr.mxu1 %v15202_v5  ;;  %v4101_v27 = vpop.permute.xlu0 %4100 }
0x1255   :  { %10792 = vmatpush3.msra.mxu1 %v3893_v38  ;;  %v4099_v38 = vpop.permute.xlu1 %4098 }
0x1256   :  { %10817 = vmatprep.subr.mxu1 %v15202_v5 }
0x1258   :  { %v3992_v40 = vpop.permute.xlu0 %3991 }
0x1259   :  { %10807 = vmatpush3.msra.mxu0 %v3992_v40  ;;  %v3843_v1 = vpop.xlane.xlu1 %3842 }
0x125a   :  { %v11637_v52 = vpop.eup %11636  ;;  %10832 = vmatprep.subr.mxu0 %v15202_v5  ;;  %v3849_v37 = vsub.f32 %v13336_v62, %v3843_v1 }
0x125b   :  { %v3871_v12 = vsel %vm787_vm6, %v11637_v52, 0.0 }
0x125c   :  { %3872 = vadd.xlane.f32.xlu0 %v3871_v12  ;;  %v3860_v17 = vmul.f32 1.442695, %v3849_v37  ;;  %v4205_v62 = vpop.permute.xlu0 %4204 }
0x125d   :  { %4090 = vrot.lane.b32.xlu1 %v12309_v49, %s15205_s0  ;;  %v4097_v7 = vpop.permute.xlu1 %4096 }
0x125e   :  { %v11639_v26 = vpop.eup %11638  ;;  %11640 = vpow2.f32 %v3860_v17 }
0x125f   :  { %v3874_v46 = vsel %vm787_vm6, %v11639_v26, 0.0 }
0x1260   :  { %3875 = vadd.xlane.f32.xlu0 %v3874_v46 }
0x1261   :  { %4092 = vrot.lane.b32.xlu1 %v12318_v50, %s15205_s0 }
0x126b   :  { %v13383_v49 = vpop.eup %11640 }
0x126c   :  { %v3877_v50 = vsel %vm794_vm7, %v13383_v49, 0.0 }
0x1276   :  { %4202 = vrot.lane.b32.xlu0 %v12866_v6, %s15204_s23 }
0x127a   :  { %4200 = vrot.lane.b32.xlu0 %v12875_v8, %s15204_s23 }
0x127e   :  { %4194 = vrot.lane.b32.xlu0 %v12336_v53, %s15205_s0 }
0x1282   :  { %4196 = vrot.lane.b32.xlu0 %v12344_v54, %s15205_s0 }
0x1285   :  { %3878 = vadd.xlane.f32.xlu1 %v3877_v50 }
0x1296   :  { %4094 = vrot.lane.b32.xlu1 %v12327_v48, %s15205_s0 }
0x129a   :  { %4198 = vrot.lane.b32.xlu1 %v12351_v55, %s15205_s0 }
0x12a4   :  { %v3864_v43 = vpop.xlane.xlu0 %3863 }
0x12a5   :  { %11642 = vrcp.f32 %v3864_v43 }
0x12a8   :  { %v3867_v53 = vpop.xlane.xlu1 %3866 }
0x12a9   :  { %11644 = vrcp.f32 %v3867_v53 }
0x12b2   :  { %v11643_v47 = vpop.eup %11642 }
0x12b3   :  { %v3886_v2 = vmul.f32 %v11643_v47, %v13351_v35 }
0x12b5   :  { %10794 = vmatmul.mubr.msk.f32.vlgmr.msra.gmra.mxu1 %vm787_vm6, %v3886_v2 }
0x12b6   :  { %v11645_v54 = vpop.eup %11644  ;;  %10818 = vmatpush3.xpose.msk.msra.mxu1 %vm590_vm5, %v4101_v27  ;;  %10796 = vmatprep.mubr.msk.f32.mxu1 %vm11909_vm0, %v15202_v5 }
0x12b7   :  { %10819 = vmatprep.subr.mxu1 %v15202_v5  ;;  %v3887_v48 = vmul.f32 %v11645_v54, %v13356_v25 }
0x12b9   :  { %10797 = vmatmul.mubr.msk.f32.gmra.mxu1 %vm787_vm6, %v3887_v48 }
0x12ba   :  { %10820 = vmatpush3.xpose.msk.msra.mxu1 %vm590_vm5, %v4099_v38  ;;  %10799 = vmatprep.mubr.msk.f32.mxu1 %vm11909_vm0, %v15202_v5 }
0x12bb   :  { %10821 = vmatprep.subr.mxu1 %v15202_v5 }
0x12be   :  { %10822 = vmatpush3.xpose.msk.msra.mxu1 %vm590_vm5, %v4097_v7 }
0x12bf   :  { %10847 = vmatprep.subr.mxu1 %v15202_v5 }
0x12d5   :  { %v3870_v55 = vpop.xlane.xlu1 %3869 }
0x12d6   :  { %11646 = vrcp.f32 %v3870_v55 }
0x12d9   :  { %v4091_v25 = vpop.permute.xlu1 %4090 }
0x12dd   :  { %v4093_v27 = vpop.permute.xlu1 %4092 }
0x12e3   :  { %v11647_v35 = vpop.eup %11646 }
0x12e4   :  { %v3888_v11 = vmul.f32 %v11647_v35, %v13361_v57 }
0x12e5   :  { %v3873_v0 = vpop.xlane.xlu0 %3872 }
0x12e6   :  { %11648 = vrcp.f32 %v3873_v0  ;;  %10800 = vmatmul.mubr.msk.f32.gmra.mxu1 %vm787_vm6, %v3888_v11 }
0x12e7   :  { %10823 = vmatprep.mubr.msk.f32.mxu1 %vm11909_vm0, %v15202_v5 }
0x12e9   :  { %v3876_v10 = vpop.xlane.xlu0 %3875 }
0x12ea   :  { %11650 = vrcp.f32 %v3876_v10  ;;  %10824 = vmatmul.mubr.msk.f32.vlgmr.msra.gmra.mxu1 %vm590_vm5, %v4091_v25 }
0x12eb   :  { %10826 = vmatprep.mubr.msk.f32.mxu1 %vm11909_vm0, %v15202_v5 }
0x12ed   :  { %v4203_v46 = vpop.permute.xlu0 %4202 }
0x12ee   :  { %10827 = vmatmul.mubr.msk.f32.gmra.mxu1 %vm590_vm5, %v4093_v27 }
0x12ef   :  { %10829 = vmatprep.mubr.msk.f32.mxu1 %vm11909_vm0, %v15202_v5 }
0x12f3   :  { %v11649_v57 = vpop.eup %11648 }
0x12f4   :  { %v3889_v40 = vmul.f32 %v11649_v57, %v11637_v52  ;;  %v4201_v52 = vpop.permute.xlu0 %4200 }
0x12f6   :  { %10809 = vmatmul.mubr.msk.f32.vlgmr.msra.gmra.mxu0 %vm787_vm6, %v3889_v40 }
0x12f7   :  { %v11651_v12 = vpop.eup %11650  ;;  %10833 = vmatpush3.xpose.msk.msra.mxu0 %vm590_vm5, %v4205_v62  ;;  %10811 = vmatprep.mubr.msk.f32.mxu0 %vm11909_vm0, %v15202_v5 }
0x12f8   :  { %10834 = vmatprep.subr.mxu0 %v15202_v5  ;;  %v3890_v38 = vmul.f32 %v11651_v12, %v11639_v26  ;;  %v4195_v50 = vpop.permute.xlu0 %4194 }
0x12fa   :  { %10812 = vmatmul.mubr.msk.f32.gmra.mxu0 %vm787_vm6, %v3890_v38 }
0x12fb   :  { %10835 = vmatpush3.xpose.msk.msra.mxu0 %vm590_vm5, %v4203_v46  ;;  %10814 = vmatprep.mubr.msk.f32.mxu0 %vm11909_vm0, %v15202_v5 }
0x12fc   :  { %10836 = vmatprep.subr.mxu0 %v15202_v5  ;;  %v4197_v62 = vpop.permute.xlu0 %4196 }
0x12ff   :  { %10837 = vmatpush3.xpose.msk.msra.mxu0 %vm590_vm5, %v4201_v52 }
0x1300   :  { %10862 = vmatprep.subr.mxu0 %v15202_v5 }
0x130e   :  { %v3879_v1 = vpop.xlane.xlu1 %3878 }
0x130f   :  { %11652 = vrcp.f32 %v3879_v1 }
0x1312   :  { %v4095_v37 = vpop.permute.xlu1 %4094 }
0x1313   :  { %10830 = vmatmul.mubr.msk.f32.gmra.mxu1 %vm590_vm5, %v4095_v37 }
0x1314   :  { %10853 = vmatprep.mubr.msk.f32.mxu1 %vm11909_vm0, %v15202_v5 }
0x1316   :  { %v4199_v7 = vpop.permute.xlu1 %4198 }
0x131c   :  { %v11653_v26 = vpop.eup %11652 }
0x131d   :  { %v3891_v17 = vmul.f32 %v11653_v26, %v13383_v49 }
0x131f   :  { %10815 = vmatmul.mubr.msk.f32.gmra.mxu0 %vm787_vm6, %v3891_v17 }
0x1320   :  { %10838 = vmatprep.mubr.msk.f32.mxu0 %vm11909_vm0, %v15202_v5 }
0x1323   :  { %10839 = vmatmul.mubr.msk.f32.vlgmr.msra.gmra.mxu0 %vm590_vm5, %v4195_v50 }
0x1324   :  { %10841 = vmatprep.mubr.msk.f32.mxu0 %vm11909_vm0, %v15202_v5 }
0x1327   :  { %10842 = vmatmul.mubr.msk.f32.gmra.mxu0 %vm590_vm5, %v4197_v62 }
0x1328   :  { %10844 = vmatprep.mubr.msk.f32.mxu0 %vm11909_vm0, %v15202_v5 }
0x132b   :  { %10845 = vmatmul.mubr.msk.f32.gmra.mxu0 %vm590_vm5, %v4199_v7 }
0x132c   :  { %10868 = vmatprep.mubr.msk.f32.mxu0 %vm11909_vm0, %v15202_v5 }
0x1375   :  { %v13445_v49 = vpop.f32.mrf.mxu1 }
0x1377   :  { %v10795_v43 = vpop.f32.mrf.mxu1 }
0x1379   :  { %v13447_v53 = vpop.f32.mrf.mxu1 }
0x137b   :  { %v10798_v47 = vpop.f32.mrf.mxu1 }
0x13a6   :  { %v13449_v2 = vpop.f32.mrf.mxu1 }
0x13a8   :  { %v10801_v54 = vpop.f32.mrf.mxu1 }
0x13aa   :  { %v4180_v48 = vpop.f32.mrf.mxu1 }
0x13ab   :  { %v4298_v55 = vsel %vm787_vm6, %v4180_v48, -inf }
0x13ac   :  { %4299 = vmax.xlane.f32.xlu0 %v4298_v55  ;;  %v10825_v35 = vpop.f32.mrf.mxu1 }
0x13ae   :  { %v4185_v11 = vpop.f32.mrf.mxu1 }
0x13af   :  { %v4301_v0 = vsel %vm787_vm6, %v4185_v11, -inf }
0x13b0   :  { %4302 = vmax.xlane.f32.xlu1 %v4301_v0  ;;  %v10828_v25 = vpop.f32.mrf.mxu1 }
0x13b6   :  { %v13453_v10 = vpop.f32.mrf.mxu0 }
0x13b8   :  { %v10810_v27 = vpop.f32.mrf.mxu0 }
0x13ba   :  { %v13455_v57 = vpop.f32.mrf.mxu0 }
0x13bc   :  { %v10813_v40 = vpop.f32.mrf.mxu0 }
0x13d3   :  { %v4190_v12 = vpop.f32.mrf.mxu1 }
0x13d4   :  { %v4304_v46 = vsel %vm794_vm7, %v4190_v12, -inf }
0x13d5   :  { %4305 = vmax.xlane.f32.xlu0 %v4304_v46  ;;  %v10831_v38 = vpop.f32.mrf.mxu1 }
0x13df   :  { %v13458_v52 = vpop.f32.mrf.mxu0 }
0x13e1   :  { %v10816_v1 = vpop.f32.mrf.mxu0 }
0x13e3   :  { %v4284_v37 = vpop.f32.mrf.mxu0 }
0x13e4   :  { %v4307_v26 = vsel %vm787_vm6, %v4284_v37, -inf }
0x13e5   :  { %4308 = vmax.xlane.f32.xlu0 %v4307_v26  ;;  %v10840_v17 = vpop.f32.mrf.mxu0 }
0x13e7   :  { %v4289_v50 = vpop.f32.mrf.mxu0 }
0x13e8   :  { %v4310_v62 = vsel %vm787_vm6, %v4289_v50, -inf }
0x13e9   :  { %4311 = vmax.xlane.f32.xlu0 %v4310_v62  ;;  %v10843_v7 = vpop.f32.mrf.mxu0 }
0x13eb   :  { %v4294_v43 = vpop.f32.mrf.mxu0 }
0x13ec   :  { %v4313_v47 = vsel %vm794_vm7, %v4294_v43, -inf }
0x13ed   :  { %4314 = vmax.xlane.f32.xlu1 %v4313_v47  ;;  %v10846_v54 = vpop.f32.mrf.mxu0 }
0x13fe   :  { %4366 = vrot.lane.b32.xlu1 %v12825_v23, %s15206_s25 }
0x13ff   :  { %4368 = vrot.lane.b32.xlu0 %v12816_v33, %s15206_s25 }
0x1402   :  { %4364 = vrot.lane.b32.xlu1 %v12834_v56, %s15206_s25 }
0x1406   :  { %4467 = vrot.lane.b32.xlu1 %v12855_v58, %s15206_s25 }
0x1435   :  { %v4300_v55 = vpop.xlane.xlu0 %4299 }
0x1436   :  { %v4316_v35 = vsub.f32 %v4180_v48, %v4300_v55 }
0x1438   :  { %v4322_v0 = vmul.f32 1.442695, %v4316_v35 }
0x1439   :  { %v4303_v25 = vpop.xlane.xlu1 %4302 }
0x143a   :  { %11654 = vpow2.f32 %v4322_v0  ;;  %v4317_v27 = vsub.f32 %v4185_v11, %v4303_v25 }
0x143c   :  { %v4324_v40 = vmul.f32 1.442695, %v4317_v27 }
0x143e   :  { %11656 = vpow2.f32 %v4324_v40 }
0x1447   :  { %v13471_v46 = vpop.eup %11654 }
0x1448   :  { %v4334_v38 = vsel %vm787_vm6, %v13471_v46, 0.0 }
0x1449   :  { %4335 = vadd.xlane.f32.xlu0 %v4334_v38 }
0x144b   :  { %v13475_v1 = vpop.eup %11656 }
0x144c   :  { %v4337_v26 = vsel %vm787_vm6, %v13475_v1, 0.0 }
0x144d   :  { %4338 = vadd.xlane.f32.xlu1 %v4337_v26 }
0x145e   :  { %v4306_v17 = vpop.xlane.xlu0 %4305 }
0x145f   :  { %v4318_v48 = vsub.f32 %v4190_v12, %v4306_v17 }
0x1461   :  { %v4326_v62 = vmul.f32 1.442695, %v4318_v48 }
0x1463   :  { %11658 = vpow2.f32 %v4326_v62 }
0x146e   :  { %v4309_v7 = vpop.xlane.xlu0 %4308 }
0x146f   :  { %v4319_v11 = vsub.f32 %v4284_v37, %v4309_v7 }
0x1470   :  { %v13479_v47 = vpop.eup %11658 }
0x1471   :  { %v4328_v54 = vmul.f32 1.442695, %v4319_v11  ;;  %v4340_v55 = vsel %vm794_vm7, %v13479_v47, 0.0 }
0x1472   :  { %v4312_v35 = vpop.xlane.xlu0 %4311  ;;  %4341 = vadd.xlane.f32.xlu1 %v4340_v55 }
0x1473   :  { %11660 = vpow2.f32 %v4328_v54  ;;  %v4320_v0 = vsub.f32 %v4289_v50, %v4312_v35 }
0x1475   :  { %v4330_v25 = vmul.f32 1.442695, %v4320_v0 }
0x1476   :  { %v4369_v27 = vpop.permute.xlu0 %4368  ;;  %v4315_v40 = vpop.xlane.xlu1 %4314 }
0x1477   :  { %11662 = vpow2.f32 %v4330_v25  ;;  %v4321_v38 = vsub.f32 %v4294_v43, %v4315_v40  ;;  %10848 = vmatpush3.msk.msra.mxu1 %vm872_vm8, %v4369_v27 }
0x1478   :  { %10849 = vmatprep.subr.mxu1 %v15202_v5 }
0x1479   :  { %v4332_v12 = vmul.f32 1.442695, %v4321_v38 }
0x147a   :  { %v4367_v37 = vpop.permute.xlu1 %4366 }
0x147b   :  { %11664 = vpow2.f32 %v4332_v12  ;;  %10850 = vmatpush3.msra.mxu1 %v4367_v37 }
0x147c   :  { %10851 = vmatprep.subr.mxu1 %v15202_v5 }
0x147e   :  { %v4365_v26 = vpop.permute.xlu1 %4364 }
0x147f   :  { %10852 = vmatpush3.msra.mxu1 %v4365_v26 }
0x1480   :  { %v11661_v17 = vpop.eup %11660  ;;  %10877 = vmatprep.subr.mxu1 %v15202_v5 }
0x1481   :  { %v4343_v50 = vsel %vm787_vm6, %v11661_v17, 0.0 }
0x1482   :  { %4344 = vadd.xlane.f32.xlu0 %v4343_v50  ;;  %v4468_v48 = vpop.permute.xlu1 %4467 }
0x1483   :  { %10863 = vmatpush3.msk.msra.mxu0 %vm872_vm8, %v4468_v48 }
0x1484   :  { %v11663_v43 = vpop.eup %11662  ;;  %10864 = vmatprep.subr.mxu0 %v15202_v5 }
0x1485   :  { %v4346_v62 = vsel %vm787_vm6, %v11663_v43, 0.0 }
0x1486   :  { %4347 = vadd.xlane.f32.xlu0 %v4346_v62  ;;  %v211_v62 = vld [vmem:[%s15117_s6 + $0x38] sm:$0xff] }
0x1488   :  { %v13491_v7 = vpop.eup %11664 }
0x1489   :  { %v4349_v11 = vsel %vm794_vm7, %v13491_v7, 0.0 }
0x148a   :  { %4350 = vadd.xlane.f32.xlu1 %v4349_v11  ;;  %v209_v11 = vld [vmem:[%s15117_s6 + $0x28] sm:$0xff] }
0x149b   :  { %4463 = vrot.lane.b32.xlu1 %v12875_v8, %s15206_s25 }
0x149c   :  { %4465 = vrot.lane.b32.xlu0 %v12866_v6, %s15206_s25 }
0x149f   :  { %4592 = vrot.lane.b32.xlu1 %v13445_v49, %s15171_s2 }
0x14a0   :  { %4568 = vrot.lane.b32.xlu0 %v13309_v60, %s15205_s0 }
0x14a3   :  { %4570 = vrot.lane.b32.xlu1 %v13311_v59, %s15205_s0 }
0x14a4   :  { %4574 = vrot.lane.b32.xlu0 %v13315_v63, %s15205_s0 }
0x14a7   :  { %4594 = vrot.lane.b32.xlu1 %v13447_v53, %s15171_s2 }
0x14a8   :  { %4598 = vrot.lane.b32.xlu0 %v13453_v10, %s15171_s2 }
0x14ab   :  { %4572 = vrot.lane.b32.xlu1 %v13313_v36, %s15205_s0 }
0x14ac   :  { %4793 = vrot.lane.b32.xlu0 %v12816_v33, %s15207_s27 }
0x14af   :  { %4596 = vrot.lane.b32.xlu1 %v13449_v2, %s15171_s2 }
0x14b0   :  { %4576 = vrot.lane.b32.xlu0 %v13318_v39, %s15205_s0 }
0x14b3   :  { %4791 = vrot.lane.b32.xlu1 %v12825_v23, %s15207_s27 }
0x14b4   :  { %4600 = vrot.lane.b32.xlu0 %v13455_v57, %s15171_s2 }
0x14b7   :  { %4900 = vrot.lane.b32.xlu1 %v12855_v58, %s15207_s27 }
0x14b8   :  { %4578 = vrot.lane.b32.xlu0 %v13332_v18, %s15205_s0 }
0x14bb   :  { %4602 = vrot.lane.b32.xlu1 %v13458_v52, %s15171_s2  ;;  %s15210_s2 = smov 120  }
0x14d2   :  { %v4336_v60 = vpop.xlane.xlu0 %4335 }
0x14d3   :  { %11666 = vrcp.f32 %v4336_v60  ;;  %v208_v60 = vld [vmem:[%s15117_s6 + $0x20] sm:$0xff] }
0x14d6   :  { %v4339_v59 = vpop.xlane.xlu1 %4338 }
0x14d7   :  { %11668 = vrcp.f32 %v4339_v59 }
0x14e0   :  { %v11667_v36 = vpop.eup %11666 }
0x14e1   :  { %v4358_v63 = vmul.f32 %v11667_v36, %v13471_v46 }
0x14e3   :  { %10854 = vmatmul.mubr.msk.f32.vlgmr.msra.gmra.mxu1 %vm787_vm6, %v4358_v63 }
0x14e4   :  { %v11669_v39 = vpop.eup %11668  ;;  %10856 = vmatprep.mubr.msk.f32.mxu1 %vm11909_vm0, %v15202_v5  ;;  %10878 = vmatpush3.msra.mxu1 %v211_v62 }
0x14e5   :  { %v4359_v49 = vmul.f32 %v11669_v39, %v13475_v1  ;;  %10879 = vmatprep.subr.mxu1 %v15202_v5 }
0x14e7   :  { %10857 = vmatmul.mubr.msk.f32.gmra.mxu1 %vm787_vm6, %v4359_v49 }
0x14e8   :  { %10859 = vmatprep.mubr.msk.f32.mxu1 %vm11909_vm0, %v15202_v5 }
0x14fb   :  { %v4342_v18 = vpop.xlane.xlu1 %4341 }
0x14fc   :  { %11670 = vrcp.f32 %v4342_v18 }
0x1509   :  { %v11671_v53 = vpop.eup %11670 }
0x150a   :  { %v4360_v2 = vmul.f32 %v11671_v53, %v13479_v47 }
0x150b   :  { %v4345_v10 = vpop.xlane.xlu0 %4344 }
0x150c   :  { %11672 = vrcp.f32 %v4345_v10  ;;  %10860 = vmatmul.mubr.msk.f32.gmra.mxu1 %vm787_vm6, %v4360_v2 }
0x150d   :  { %10885 = vmatprep.mubr.msk.f32.mxu1 %vm11909_vm0, %v15202_v5 }
0x150f   :  { %v4348_v57 = vpop.xlane.xlu0 %4347 }
0x1510   :  { %11674 = vrcp.f32 %v4348_v57 }
0x1513   :  { %v4466_v52 = vpop.permute.xlu0 %4465  ;;  %v4351_v46 = vpop.xlane.xlu1 %4350 }
0x1514   :  { %11676 = vrcp.f32 %v4351_v46  ;;  %10865 = vmatpush3.msra.mxu0 %v4466_v52 }
0x1515   :  { %10866 = vmatprep.subr.mxu0 %v15202_v5 }
0x1517   :  { %v13542_v1 = vpop.permute.xlu0 %4568  ;;  %v4464_v54 = vpop.permute.xlu1 %4463 }
0x1518   :  { %10867 = vmatpush3.msra.mxu0 %v4464_v54  ;;  %v13600_v54 = vmul.f32 0.35355338, %v12834_v56 }
0x1519   :  { %v11673_v47 = vpop.eup %11672  ;;  %10900 = vmatprep.subr.mxu0 %v15202_v5 }
0x151a   :  { %v4361_v55 = vmul.f32 %v11673_v47, %v11661_v17  ;;  %v13607_v47 = vmul.f32 0.35355338, %v12875_v8 }
0x151b   :  { %v13545_v35 = vpop.permute.xlu0 %4574  ;;  %v13547_v0 = vpop.permute.xlu1 %4592 }
0x151c   :  { %10869 = vmatmul.mubr.msk.f32.vlgmr.msra.gmra.mxu0 %vm787_vm6, %v4361_v55  ;;  %v13610_v55 = vmul.f32 0.35355338, %v12825_v23 }
0x151d   :  { %v11675_v25 = vpop.eup %11674  ;;  %10871 = vmatprep.mubr.msk.f32.mxu0 %vm11909_vm0, %v15202_v5 }
0x151e   :  { %v4362_v27 = vmul.f32 %v11675_v25, %v11663_v43  ;;  %v13617_v25 = vmul.f32 0.35355338, %v12866_v6 }
0x151f   :  { %v13552_v40 = vpop.permute.xlu0 %4598  ;;  %v13554_v38 = vpop.permute.xlu1 %4570 }
0x1520   :  { %10872 = vmatmul.mubr.msk.f32.gmra.mxu0 %vm787_vm6, %v4362_v27  ;;  %v13620_v27 = vmul.f32 0.35355338, %v12816_v33 }
0x1521   :  { %v11677_v12 = vpop.eup %11676  ;;  %10874 = vmatprep.mubr.msk.f32.mxu0 %vm11909_vm0, %v15202_v5 }
0x1522   :  { %v4363_v37 = vmul.f32 %v11677_v12, %v13491_v7  ;;  %v210_v7 = vld [vmem:[%s15117_s6 + $0x30] sm:$0xff]  ;;  %v13627_v12 = vmul.f32 0.35355338, %v12855_v58 }
0x1523   :  { %v4794_v26 = vpop.permute.xlu0 %4793  ;;  %v13560_v17 = vpop.permute.xlu1 %4594  ;;  %10880 = vmatpush3.msra.mxu1 %v210_v7  ;;  %v4634_v7 = vsel %vm590_vm5, %v13185_v15, %v13542_v1 }
0x1524   :  { %10875 = vmatmul.mubr.msk.f32.gmra.mxu0 %vm787_vm6, %v4363_v37  ;;  %10881 = vmatprep.subr.mxu1 %v15202_v5 }
0x1525   :  { %10901 = vmatpush3.xpose.msk.msra.mxu0 %vm590_vm5, %v4794_v26  ;;  %10906 = vmatprep.mubr.msk.f32.mxu0 %vm11909_vm0, %v15202_v5 }
0x1526   :  { %10902 = vmatprep.subr.mxu0 %v15202_v5  ;;  %10882 = vmatpush3.msra.mxu1 %v209_v11  ;;  %v4640_v11 = vsel %vm2548_vm9, %v4634_v7, %v13547_v0 }
0x1527   :  { %v13567_v50 = vpop.permute.xlu1 %4572  ;;  %10883 = vmatprep.subr.mxu1 %v15202_v5  ;;  %v4577_v37 = vpop.permute.xlu0 %4576 }
0x1528   :  { %10884 = vmatpush3.msra.mxu1 %v208_v60 }
0x1529   :  { %10915 = vmatprep.subr.mxu1 %v15202_v5 }
0x152b   :  { %v13569_v48 = vpop.permute.xlu1 %4596  ;;  %v4601_v26 = vpop.permute.xlu0 %4600 }
0x152f   :  { %v4792_v43 = vpop.permute.xlu1 %4791  ;;  %v4579_v62 = vpop.permute.xlu0 %4578 }
0x1530   :  { %10903 = vmatpush3.xpose.msk.msra.mxu0 %vm590_vm5, %v4792_v43 }
0x1531   :  { %10904 = vmatprep.subr.mxu0 %v15202_v5 }
0x1533   :  { %v4901_v43 = vpop.permute.xlu1 %4900 }
0x1537   :  { %v4603_v60 = vpop.permute.xlu1 %4602 }
0x15a3   :  { %v4449_v59 = vpop.f32.mrf.mxu1 }
0x15a4   :  { %4616 = vrot.lane.b32.xlu0 %v4449_v59, %s15178_s4 }
0x15a5   :  { %v10855_v36 = vpop.f32.mrf.mxu1 }
0x15a7   :  { %v4454_v63 = vpop.f32.mrf.mxu1 }
0x15a8   :  { %4789 = vrot.lane.b32.xlu0 %v12834_v56, %s15207_s27  ;;  %4618 = vrot.lane.b32.xlu1 %v4454_v63, %s15178_s4  ;;  %v4635_v63 = vsel %vm590_vm5, %v13187_v42, %v13554_v38  ;;  %v4637_v42 = vsel %vm590_vm5, %v13189_v21, %v13545_v35 }
0x15a9   :  { %v10858_v39 = vpop.f32.mrf.mxu1  ;;  %v4641_v15 = vsel %vm2548_vm9, %v4635_v63, %v13560_v17  ;;  %v4643_v38 = vsel %vm2548_vm9, %v4637_v42, %v13552_v40 }
0x15cc   :  { %v4459_v49 = vpop.f32.mrf.mxu1 }
0x15cd   :  { %4620 = vrot.lane.b32.xlu1 %v4459_v49, %s15178_s4 }
0x15ce   :  { %v10861_v18 = vpop.f32.mrf.mxu1 }
0x15cf   :  { %v4636_v18 = vsel %vm590_vm5, %v13193_v4, %v13567_v50  ;;  %v4639_v50 = vsel %vm590_vm5, %v13195_v20, %v4579_v62 }
0x15dc   :  { %v4548_v53 = vpop.f32.mrf.mxu0 }
0x15dd   :  { %4622 = vrot.lane.b32.xlu0 %v4548_v53, %s15178_s4 }
0x15de   :  { %v10870_v2 = vpop.f32.mrf.mxu0 }
0x15df   :  { %v4642_v2 = vsel %vm2548_vm9, %v4636_v18, %v13569_v48 }
0x15e0   :  { %v4553_v10 = vpop.f32.mrf.mxu0 }
0x15e1   :  { %4624 = vrot.lane.b32.xlu0 %v4553_v10, %s15178_s4 }
0x15e2   :  { %v10873_v57 = vpop.f32.mrf.mxu0 }
0x15e3   :  { %v4638_v57 = vsel %vm590_vm5, %v13191_v3, %v4577_v37  ;;  %v4645_v3 = vsel %vm2548_vm9, %v4639_v50, %v4603_v60  ;;  %v13688_v60 = vadd.f32 %v12278_v22, %v12286_v28  ;;  %v13700_v22 = vadd.f32 %v12264_v13, %v12286_v28 }
0x15e4   :  { %v4558_v52 = vpop.f32.mrf.mxu0  ;;  %v4644_v35 = vsel %vm2548_vm9, %v4638_v57, %v4601_v26 }
0x15e5   :  { %4898 = vrot.lane.b32.xlu0 %v12866_v6, %s15207_s27  ;;  %4626 = vrot.lane.b32.xlu1 %v4558_v52, %s15178_s4 }
0x15e6   :  { %v10876_v46 = vpop.f32.mrf.mxu0 }
0x15e9   :  { %4896 = vrot.lane.b32.xlu0 %v12875_v8, %s15207_s27  ;;  %4783 = vrot.lane.b32.xlu1 %v13600_v54, %s15208_s29  ;;  %s15211_s27 = smov 16  }
0x15ed   :  { %4890 = vrot.lane.b32.xlu0 %v13607_v47, %s15208_s29  ;;  %4785 = vrot.lane.b32.xlu1 %v13610_v55, %s15208_s29 }
0x15f1   :  { %4892 = vrot.lane.b32.xlu0 %v13617_v25, %s15208_s29  ;;  %4787 = vrot.lane.b32.xlu1 %v13620_v27, %s15208_s29 }
0x15f5   :  { %4894 = vrot.lane.b32.xlu1 %v13627_v12, %s15208_s29 }
0x1616   :  { %v4617_v59 = vpop.permute.xlu0 %4616 }
0x1617   :  { %v4646_v36 = vsel %vm2555_vm10, %v4640_v11, %v4617_v59 }
0x1618   :  { %10886 = vmatmul.mubr.msk.f32.vlgmr.msra.gmra.mxu1 %vm241_vm2, %v4646_v36 }
0x1619   :  { %10916 = vmatpush3.xpose.msk.msra.mxu1 %vm590_vm5, %v4901_v43  ;;  %10888 = vmatprep.mubr.msk.f32.mxu1 %vm11909_vm0, %v15202_v5 }
0x161a   :  { %v4790_v1 = vpop.permute.xlu0 %4789  ;;  %v4619_v0 = vpop.permute.xlu1 %4618  ;;  %10917 = vmatprep.subr.mxu1 %v15202_v5 }
0x161b   :  { %v4647_v39 = vsel %vm2555_vm10, %v4641_v15, %v4619_v0  ;;  %10905 = vmatpush3.xpose.msk.msra.mxu0 %vm590_vm5, %v4790_v1  ;;  %v15175_v15 = vsub.s32 7, %v12177_v16  ;;  %v15176_v1 = vsub.s32 6, %v12177_v16  ;;  %v11905_v0 = vld [vmem:[%s15198_s5] sm:$0xff] }
0x161c   :  { %10889 = vmatmul.mubr.msk.f32.gmra.mxu1 %vm241_vm2, %v4647_v39  ;;  %10930 = vmatprep.subr.mxu0 %v15202_v5 }
0x161d   :  { %10891 = vmatprep.mubr.msk.f32.mxu1 %vm11909_vm0, %v15202_v5  ;;  %v4665_v39 = vrot.slane %v11905_v0, %v15175_v15  ;;  %v13738_v42 = vrot.slane %v11905_v0, %v15176_v1 }
0x163f   :  { %v4621_v17 = vpop.permute.xlu1 %4620 }
0x1640   :  { %v4648_v21 = vsel %vm2555_vm10, %v4642_v2, %v4621_v17  ;;  %v2676_v17 = vadd.f32 %v13130_v30, %v13738_v42 }
0x164f   :  { %v4623_v49 = vpop.permute.xlu0 %4622 }
0x1650   :  { %v4649_v53 = vsel %vm2555_vm10, %v4643_v38, %v4623_v49 }
0x1651   :  { %v4655_v10 = vrot.slane %v4649_v53, 7 }
0x1653   :  { %v4625_v40 = vpop.permute.xlu0 %4624  ;;  %v4661_v52 = vsel %vm872_vm8, %v4648_v21, %v4655_v10 }
0x1654   :  { %v4650_v46 = vsel %vm2555_vm10, %v4644_v35, %v4625_v40  ;;  %10892 = vmatmul.mubr.msk.f32.gmra.mxu1 %vm241_vm2, %v4661_v52 }
0x1655   :  { %v4656_v4 = vrot.slane %v4650_v46, 7  ;;  %10894 = vmatprep.mubr.msk.f32.mxu1 %vm11909_vm0, %v15202_v5 }
0x1657   :  { %v4899_v48 = vpop.permute.xlu0 %4898  ;;  %v4627_v37 = vpop.permute.xlu1 %4626  ;;  %v4657_v26 = vsel %vm872_vm8, %v4655_v10, %v4656_v4  ;;  %v2683_v10 = vadd.f32 %v2676_v17, %v12117_v34 }
0x1658   :  { %v4651_v43 = vsel %vm2555_vm10, %v4645_v3, %v4627_v37  ;;  %10895 = vmatmul.mubr.msk.f32.gmra.mxu1 %vm241_vm2, %v4657_v26 }
0x1659   :  { %v4658_v7 = vrot.slane %v4651_v43, 7  ;;  %10918 = vmatpush3.xpose.msk.msra.mxu1 %vm590_vm5, %v4899_v48  ;;  %10897 = vmatprep.mubr.msk.f32.mxu1 %vm11909_vm0, %v15202_v5 }
0x165a   :  { %10919 = vmatprep.subr.mxu1 %v15202_v5 }
0x165b   :  { %v4897_v11 = vpop.permute.xlu0 %4896  ;;  %v4784_v20 = vpop.permute.xlu1 %4783  ;;  %v4659_v62 = vsel %vm872_vm8, %v4656_v4, %v4658_v7 }
0x165c   :  { %10898 = vmatmul.mubr.msk.f32.gmra.mxu1 %vm241_vm2, %v4659_v62  ;;  %10907 = vmatmul.mubr.msk.f32.vlgmr.msra.gmra.mxu0 %vm590_vm5, %v4784_v20 }
0x165d   :  { %10920 = vmatpush3.xpose.msk.msra.mxu1 %vm590_vm5, %v4897_v11  ;;  %10931 = vmatpush3.msk.msra.mxu0 %vm872_vm8, %v12289_v31 }
0x165e   :  { %10932 = vmatprep.subr.mxu0 %v15202_v5  ;;  %10945 = vmatprep.subr.mxu1 %v15202_v5 }
0x165f   :  { %10933 = vmatpush3.msra.mxu0 %v13688_v60  ;;  %v4891_v59 = vpop.permute.xlu0 %4890  ;;  %10909 = vmatprep.mubr.msk.f32.mxu0 %vm11909_vm0, %v15202_v5  ;;  %v4786_v36 = vpop.permute.xlu1 %4785 }
0x1660   :  { %10921 = vmatprep.mubr.msk.f32.mxu1 %vm11909_vm0, %v15202_v5  ;;  %10934 = vmatprep.subr.mxu0 %v15202_v5 }
0x1661   :  { %10910 = vmatmul.mubr.msk.f32.gmra.mxu0 %vm590_vm5, %v4786_v36  ;;  %10922 = vmatmul.mubr.msk.f32.vlgmr.msra.gmra.mxu1 %vm590_vm5, %v4891_v59 }
0x1662   :  { %10935 = vmatpush3.msra.mxu0 %v13700_v22  ;;  %10946 = vmatpush3.msk.msra.mxu1 %vm872_vm8, %v12297_v44 }
0x1663   :  { %10947 = vmatprep.subr.mxu1 %v15202_v5  ;;  %v4893_v63 = vpop.permute.xlu0 %4892  ;;  %10912 = vmatprep.mubr.msk.f32.mxu0 %vm11909_vm0, %v15202_v5  ;;  %v4788_v13 = vpop.permute.xlu1 %4787 }
0x1664   :  { %10948 = vmatpush3.msra.mxu1 %v12301_v45  ;;  %10924 = vmatprep.mubr.msk.f32.mxu1 %vm11909_vm0, %v15202_v5 }
0x1665   :  { %10949 = vmatprep.subr.mxu1 %v15202_v5  ;;  %10913 = vmatmul.mubr.msk.f32.gmra.mxu0 %vm590_vm5, %v4788_v13 }
0x1666   :  { %10925 = vmatmul.mubr.msk.f32.gmra.mxu1 %vm590_vm5, %v4893_v63  ;;  %10936 = vmatprep.mubr.msk.f32.mxu0 %vm11909_vm0, %v15202_v5 }
0x1667   :  { %10950 = vmatpush3.msra.mxu1 %v12295_v41  ;;  %10927 = vmatprep.mubr.msk.f32.mxu1 %vm11909_vm0, %v15202_v5  ;;  %v4895_v28 = vpop.permute.xlu1 %4894 }
0x1668   :  { %10960 = vmatprep.subr.mxu0 %v15202_v5  ;;  %10975 = vmatprep.subr.mxu1 %v15202_v5 }
0x166a   :  { %10928 = vmatmul.mubr.msk.f32.gmra.mxu1 %vm590_vm5, %v4895_v28 }
0x166b   :  { %10951 = vmatprep.mubr.msk.f32.mxu1 %vm11909_vm0, %v15202_v5 }
0x16d8   :  { %v4745_v38 = vpop.f32.mrf.mxu1 }
0x16d9   :  { %v4746_v49 = vadd.f32 %v4745_v38, %v4665_v39 }
0x16da   :  { %v10887_v18 = vpop.f32.mrf.mxu1 }
0x16db   :  { %v4769_v53 = vadd.f32 %v4746_v49, %v12089_v14 }
0x16dc   :  { %v4750_v2 = vpop.f32.mrf.mxu1 }
0x16dd   :  { %v6878_v57 = vrot.slane %v4769_v53, 6  ;;  %v4751_v21 = vadd.f32 %v4750_v2, %v4665_v39 }
0x16de   :  { %v10890_v35 = vpop.f32.mrf.mxu1 }
0x16df   :  { %v4770_v40 = vadd.f32 %v4751_v21, %v12096_v19  ;;  %v13746_v52 = vsel %vm6877_vm11, %v2683_v10, %v6878_v57 }
0x16e1   :  { %v6879_v46 = vrot.slane %v4770_v40, 6 }
0x16e3   :  { %v13749_v4 = vsel %vm6877_vm11, %v6878_v57, %v6879_v46 }
0x1714   :  { %v4755_v30 = vpop.f32.mrf.mxu1 }
0x1715   :  { %v4756_v50 = vadd.f32 %v4755_v30, %v4665_v39 }
0x1716   :  { %v10893_v3 = vpop.f32.mrf.mxu1 }
0x1717   :  { %v4771_v48 = vadd.f32 %v4756_v50, %v12103_v24 }
0x1718   :  { %v4760_v37 = vpop.f32.mrf.mxu1 }
0x1719   :  { %v6881_v26 = vrot.slane %v4771_v48, 6  ;;  %v4761_v43 = vadd.f32 %v4760_v37, %v4665_v39 }
0x171a   :  { %v10896_v7 = vpop.f32.mrf.mxu1 }
0x171b   :  { %v4772_v11 = vadd.f32 %v4761_v43, %v12110_v29  ;;  %v13754_v20 = vsel %vm6877_vm11, %v6879_v46, %v6881_v26 }
0x171c   :  { %v4765_v62 = vpop.f32.mrf.mxu1  ;;  %v4873_v59 = vpop.f32.mrf.mxu0 }
0x171d   :  { %v6883_v36 = vrot.slane %v4772_v11, 6  ;;  %v4766_v63 = vadd.f32 %v4765_v62, %v4665_v39  ;;  %v4994_v13 = vsel %vm787_vm6, %v4873_v59, -inf }
0x171e   :  { %v10899_v28 = vpop.f32.mrf.mxu1  ;;  %4995 = vmax.xlane.f32.xlu0 %v4994_v13  ;;  %v10908_v0 = vpop.f32.mrf.mxu0 }
0x171f   :  { %v4773_v38 = vadd.f32 %v4766_v63, %v12117_v34  ;;  %v13759_v17 = vsel %vm6877_vm11, %v6881_v26, %v6883_v36 }
0x1721   :  { %v6885_v49 = vrot.slane %v4773_v38, 6  ;;  %v4878_v18 = vpop.f32.mrf.mxu0  ;;  %v4980_v53 = vpop.f32.mrf.mxu1 }
0x1722   :  { %v4997_v2 = vsel %vm787_vm6, %v4878_v18, -inf  ;;  %v5003_v3 = vsel %vm787_vm6, %v4980_v53, -inf }
0x1723   :  { %v10923_v10 = vpop.f32.mrf.mxu1  ;;  %4998 = vmax.xlane.f32.xlu1 %v4997_v2  ;;  %v10911_v57 = vpop.f32.mrf.mxu0  ;;  %v13763_v39 = vsel %vm6877_vm11, %v6883_v36, %v6885_v49 }
0x1725   :  { %v4883_v21 = vpop.f32.mrf.mxu0 }
0x1726   :  { %v4985_v35 = vpop.f32.mrf.mxu1  ;;  %v5000_v40 = vsel %vm794_vm7, %v4883_v21, -inf }
0x1727   :  { %5001 = vmax.xlane.f32.xlu0 %v5000_v40  ;;  %v10914_v46 = vpop.f32.mrf.mxu0  ;;  %v5006_v26 = vsel %vm787_vm6, %v4985_v35, -inf }
0x1728   :  { %v10926_v30 = vpop.f32.mrf.mxu1 }
0x172a   :  { %v4990_v50 = vpop.f32.mrf.mxu1 }
0x172b   :  { %v5009_v48 = vsel %vm794_vm7, %v4990_v50, -inf  ;;  %5004 = vmax.xlane.f32.xlu0 %v5003_v3 }
0x172c   :  { %v10929_v37 = vpop.f32.mrf.mxu1  ;;  %5010 = vmax.xlane.f32.xlu1 %v5009_v48 }
0x172f   :  { %5007 = vmax.xlane.f32.xlu0 %v5006_v26 }
0x17a7   :  { %v4996_v43 = vpop.xlane.xlu0 %4995 }
0x17a8   :  { %v5012_v7 = vsub.f32 %v4873_v59, %v4996_v43 }
0x17aa   :  { %v5018_v11 = vmul.f32 1.442695, %v5012_v7 }
0x17ac   :  { %11678 = vpow2.f32 %v5018_v11  ;;  %v4999_v62 = vpop.xlane.xlu1 %4998 }
0x17ad   :  { %v5013_v36 = vsub.f32 %v4878_v18, %v4999_v62 }
0x17af   :  { %v5020_v63 = vmul.f32 1.442695, %v5013_v36 }
0x17b0   :  { %v5002_v13 = vpop.xlane.xlu0 %5001 }
0x17b1   :  { %11680 = vpow2.f32 %v5020_v63  ;;  %v5014_v28 = vsub.f32 %v4883_v21, %v5002_v13 }
0x17b3   :  { %v5022_v0 = vmul.f32 1.442695, %v5014_v28 }
0x17b4   :  { %v5005_v18 = vpop.xlane.xlu0 %5004 }
0x17b5   :  { %11682 = vpow2.f32 %v5022_v0  ;;  %v5015_v21 = vsub.f32 %v4980_v53, %v5005_v18  ;;  %v5011_v53 = vpop.xlane.xlu1 %5010 }
0x17b6   :  { %v5017_v43 = vsub.f32 %v4990_v50, %v5011_v53 }
0x17b7   :  { %v5024_v46 = vmul.f32 1.442695, %v5015_v21 }
0x17b8   :  { %v5008_v40 = vpop.xlane.xlu0 %5007  ;;  %v5028_v7 = vmul.f32 1.442695, %v5017_v43 }
0x17b9   :  { %v11679_v38 = vpop.eup %11678  ;;  %v5016_v30 = vsub.f32 %v4985_v35, %v5008_v40  ;;  %11684 = vpow2.f32 %v5024_v46 }
0x17ba   :  { %v5030_v49 = vsel %vm787_vm6, %v11679_v38, 0.0 }
0x17bb   :  { %5031 = vadd.xlane.f32.xlu0 %v5030_v49  ;;  %v5026_v3 = vmul.f32 1.442695, %v5016_v30 }
0x17bd   :  { %11686 = vpow2.f32 %v5026_v3 }
0x17be   :  { %v11681_v2 = vpop.eup %11680  ;;  %11688 = vpow2.f32 %v5028_v7 }
0x17bf   :  { %v5033_v10 = vsel %vm787_vm6, %v11681_v2, 0.0 }
0x17c0   :  { %5034 = vadd.xlane.f32.xlu1 %v5033_v10 }
0x17c2   :  { %v11683_v57 = vpop.eup %11682 }
0x17c3   :  { %v5036_v59 = vsel %vm794_vm7, %v11683_v57, 0.0 }
0x17c4   :  { %5037 = vadd.xlane.f32.xlu1 %v5036_v59 }
0x17c6   :  { %v11685_v48 = vpop.eup %11684 }
0x17c7   :  { %v5039_v37 = vsel %vm787_vm6, %v11685_v48, 0.0 }
0x17ca   :  { %v11687_v26 = vpop.eup %11686 }
0x17cb   :  { %v5042_v35 = vsel %vm787_vm6, %v11687_v26, 0.0  ;;  %v13786_v11 = vpop.eup %11688 }
0x17cc   :  { %v5045_v62 = vsel %vm794_vm7, %v13786_v11, 0.0 }
0x17d1   :  { %5252 = vrot.lane.b32.xlu0 %v12816_v33, %s15178_s4 }
0x17d5   :  { %5250 = vrot.lane.b32.xlu1 %v12825_v23, %s15178_s4 }
0x17d9   :  { %5356 = vrot.lane.b32.xlu1 %v12855_v58, %s15178_s4 }
0x17dd   :  { %5248 = vrot.lane.b32.xlu1 %v12834_v56, %s15178_s4 }
0x17e1   :  { %5242 = vrot.lane.b32.xlu1 %v13600_v54, %s15209_s24 }
0x17e5   :  { %5244 = vrot.lane.b32.xlu1 %v13610_v55, %s15209_s24 }
0x17f0   :  { %5040 = vadd.xlane.f32.xlu0 %v5039_v37 }
0x17f4   :  { %5043 = vadd.xlane.f32.xlu0 %v5042_v35 }
0x1809   :  { %5046 = vadd.xlane.f32.xlu1 %v5045_v62 }
0x180a   :  { %5354 = vrot.lane.b32.xlu0 %v12866_v6, %s15178_s4 }
0x180e   :  { %5352 = vrot.lane.b32.xlu0 %v12875_v8, %s15178_s4 }
0x1812   :  { %5346 = vrot.lane.b32.xlu0 %v13607_v47, %s15209_s24 }
0x1816   :  { %5348 = vrot.lane.b32.xlu0 %v13617_v25, %s15209_s24 }
0x181a   :  { %5246 = vrot.lane.b32.xlu1 %v13620_v27, %s15209_s24 }
0x181e   :  { %5350 = vrot.lane.b32.xlu1 %v13627_v12, %s15209_s24 }
0x1844   :  { %v5032_v50 = vpop.xlane.xlu0 %5031 }
0x1845   :  { %11690 = vrcp.f32 %v5032_v50 }
0x1848   :  { %v5253_v49 = vpop.permute.xlu0 %5252 }
0x1849   :  { %v5035_v36 = vpop.xlane.xlu1 %5034 }
0x184a   :  { %11692 = vrcp.f32 %v5035_v36 }
0x184d   :  { %v5038_v63 = vpop.xlane.xlu1 %5037 }
0x184e   :  { %11694 = vrcp.f32 %v5038_v63 }
0x1851   :  { %v5251_v13 = vpop.permute.xlu1 %5250 }
0x1852   :  { %v11691_v28 = vpop.eup %11690 }
0x1853   :  { %v5054_v0 = vmul.f32 %v11691_v28, %v11679_v38 }
0x1855   :  { %v5357_v10 = vpop.permute.xlu1 %5356  ;;  %10937 = vmatmul.mubr.msk.f32.vlgmr.msra.gmra.mxu0 %vm787_vm6, %v5054_v0 }
0x1856   :  { %10961 = vmatpush3.xpose.msk.msra.mxu0 %vm590_vm5, %v5253_v49  ;;  %10939 = vmatprep.mubr.msk.f32.mxu0 %vm11909_vm0, %v15202_v5 }
0x1857   :  { %v11693_v59 = vpop.eup %11692  ;;  %10962 = vmatprep.subr.mxu0 %v15202_v5 }
0x1858   :  { %v5055_v18 = vmul.f32 %v11693_v59, %v11681_v2 }
0x1859   :  { %v5249_v21 = vpop.permute.xlu1 %5248 }
0x185a   :  { %10940 = vmatmul.mubr.msk.f32.gmra.mxu0 %vm787_vm6, %v5055_v18 }
0x185b   :  { %v11695_v40 = vpop.eup %11694  ;;  %10963 = vmatpush3.xpose.msk.msra.mxu0 %vm590_vm5, %v5251_v13  ;;  %10942 = vmatprep.mubr.msk.f32.mxu0 %vm11909_vm0, %v15202_v5 }
0x185c   :  { %10964 = vmatprep.subr.mxu0 %v15202_v5  ;;  %v5056_v38 = vmul.f32 %v11695_v40, %v11683_v57 }
0x185d   :  { %v5243_v46 = vpop.permute.xlu1 %5242 }
0x185e   :  { %10943 = vmatmul.mubr.msk.f32.gmra.mxu0 %vm787_vm6, %v5056_v38 }
0x185f   :  { %10965 = vmatpush3.xpose.msk.msra.mxu0 %vm590_vm5, %v5249_v21  ;;  %10966 = vmatprep.mubr.msk.f32.mxu0 %vm11909_vm0, %v15202_v5 }
0x1860   :  { %10990 = vmatprep.subr.mxu0 %v15202_v5 }
0x1861   :  { %v5245_v2 = vpop.permute.xlu1 %5244 }
0x1862   :  { %10967 = vmatmul.mubr.msk.f32.vlgmr.msra.gmra.mxu0 %vm590_vm5, %v5243_v46 }
0x1863   :  { %10969 = vmatprep.mubr.msk.f32.mxu0 %vm11909_vm0, %v15202_v5 }
0x1866   :  { %10970 = vmatmul.mubr.msk.f32.gmra.mxu0 %vm590_vm5, %v5245_v2 }
0x1867   :  { %10972 = vmatprep.mubr.msk.f32.mxu0 %vm11909_vm0, %v15202_v5 }
0x1879   :  { %v5041_v57 = vpop.xlane.xlu0 %5040 }
0x187a   :  { %11696 = vrcp.f32 %v5041_v57 }
0x187d   :  { %v5044_v30 = vpop.xlane.xlu0 %5043 }
0x187e   :  { %11698 = vrcp.f32 %v5044_v30 }
0x1881   :  { %v5355_v43 = vpop.permute.xlu0 %5354 }
0x1887   :  { %v11697_v3 = vpop.eup %11696 }
0x1888   :  { %v5057_v53 = vmul.f32 %v11697_v3, %v11685_v48  ;;  %v5353_v48 = vpop.permute.xlu0 %5352 }
0x188a   :  { %10952 = vmatmul.mubr.msk.f32.vlgmr.msra.gmra.mxu1 %vm787_vm6, %v5057_v53 }
0x188b   :  { %v11699_v37 = vpop.eup %11698  ;;  %10976 = vmatpush3.xpose.msk.msra.mxu1 %vm590_vm5, %v5357_v10  ;;  %10954 = vmatprep.mubr.msk.f32.mxu1 %vm11909_vm0, %v15202_v5 }
0x188c   :  { %10977 = vmatprep.subr.mxu1 %v15202_v5  ;;  %v5058_v35 = vmul.f32 %v11699_v37, %v11687_v26  ;;  %v5347_v36 = vpop.permute.xlu0 %5346 }
0x188e   :  { %10955 = vmatmul.mubr.msk.f32.gmra.mxu1 %vm787_vm6, %v5058_v35 }
0x188f   :  { %10978 = vmatpush3.xpose.msk.msra.mxu1 %vm590_vm5, %v5355_v43  ;;  %10957 = vmatprep.mubr.msk.f32.mxu1 %vm11909_vm0, %v15202_v5 }
0x1890   :  { %10979 = vmatprep.subr.mxu1 %v15202_v5  ;;  %v5349_v63 = vpop.permute.xlu0 %5348 }
0x1892   :  { %v5047_v7 = vpop.xlane.xlu1 %5046 }
0x1893   :  { %11700 = vrcp.f32 %v5047_v7  ;;  %10980 = vmatpush3.xpose.msk.msra.mxu1 %vm590_vm5, %v5353_v48 }
0x1894   :  { %11005 = vmatprep.subr.mxu1 %v15202_v5 }
0x1896   :  { %v5247_v62 = vpop.permute.xlu1 %5246 }
0x1897   :  { %10973 = vmatmul.mubr.msk.f32.gmra.mxu0 %vm590_vm5, %v5247_v62 }
0x1898   :  { %10996 = vmatprep.mubr.msk.f32.mxu0 %vm11909_vm0, %v15202_v5 }
0x189a   :  { %v5351_v13 = vpop.permute.xlu1 %5350 }
0x18a0   :  { %v11701_v26 = vpop.eup %11700 }
0x18a1   :  { %v5059_v50 = vmul.f32 %v11701_v26, %v13786_v11 }
0x18a3   :  { %10958 = vmatmul.mubr.msk.f32.gmra.mxu1 %vm787_vm6, %v5059_v50 }
0x18a4   :  { %10981 = vmatprep.mubr.msk.f32.mxu1 %vm11909_vm0, %v15202_v5 }
0x18a7   :  { %10982 = vmatmul.mubr.msk.f32.vlgmr.msra.gmra.mxu1 %vm590_vm5, %v5347_v36 }
0x18a8   :  { %10984 = vmatprep.mubr.msk.f32.mxu1 %vm11909_vm0, %v15202_v5 }
0x18ab   :  { %10985 = vmatmul.mubr.msk.f32.gmra.mxu1 %vm590_vm5, %v5349_v63 }
0x18ac   :  { %10987 = vmatprep.mubr.msk.f32.mxu1 %vm11909_vm0, %v15202_v5 }
0x18af   :  { %10988 = vmatmul.mubr.msk.f32.gmra.mxu1 %vm590_vm5, %v5351_v13 }
0x18b0   :  { %11011 = vmatprep.mubr.msk.f32.mxu1 %vm11909_vm0, %v15202_v5 }
0x1915   :  { %v13851_v11 = vpop.f32.mrf.mxu0 }
0x1917   :  { %v10938_v28 = vpop.f32.mrf.mxu0 }
0x191a   :  { %v13853_v0 = vpop.f32.mrf.mxu0 }
0x191c   :  { %v10941_v49 = vpop.f32.mrf.mxu0 }
0x191e   :  { %v13855_v10 = vpop.f32.mrf.mxu0 }
0x1920   :  { %v10944_v59 = vpop.f32.mrf.mxu0 }
0x1922   :  { %v5332_v18 = vpop.f32.mrf.mxu0 }
0x1923   :  { %v5450_v21 = vsel %vm787_vm6, %v5332_v18, -inf }
0x1924   :  { %5451 = vmax.xlane.f32.xlu0 %v5450_v21  ;;  %v10968_v40 = vpop.f32.mrf.mxu0 }
0x1926   :  { %v5337_v38 = vpop.f32.mrf.mxu0 }
0x1927   :  { %v5453_v46 = vsel %vm787_vm6, %v5337_v38, -inf }
0x1928   :  { %5454 = vmax.xlane.f32.xlu1 %v5453_v46  ;;  %v10971_v2 = vpop.f32.mrf.mxu0 }
0x194a   :  { %v13859_v57 = vpop.f32.mrf.mxu1 }
0x194c   :  { %v10953_v30 = vpop.f32.mrf.mxu1 }
0x194e   :  { %v13861_v3 = vpop.f32.mrf.mxu1 }
0x1950   :  { %v10956_v53 = vpop.f32.mrf.mxu1 }
0x1957   :  { %v5342_v37 = vpop.f32.mrf.mxu0 }
0x1958   :  { %v5456_v43 = vsel %vm794_vm7, %v5342_v37, -inf }
0x1959   :  { %5457 = vmax.xlane.f32.xlu0 %v5456_v43  ;;  %v10974_v35 = vpop.f32.mrf.mxu0 }
0x1963   :  { %v13864_v48 = vpop.f32.mrf.mxu1 }
0x1965   :  { %v10959_v7 = vpop.f32.mrf.mxu1 }
0x1967   :  { %v5436_v62 = vpop.f32.mrf.mxu1 }
0x1968   :  { %v5459_v26 = vsel %vm787_vm6, %v5436_v62, -inf }
0x1969   :  { %v10983_v50 = vpop.f32.mrf.mxu1  ;;  %5460 = vmax.xlane.f32.xlu0 %v5459_v26 }
0x196b   :  { %v5441_v36 = vpop.f32.mrf.mxu1 }
0x196c   :  { %v5462_v63 = vsel %vm787_vm6, %v5441_v36, -inf }
0x196d   :  { %v10986_v13 = vpop.f32.mrf.mxu1  ;;  %5463 = vmax.xlane.f32.xlu0 %v5462_v63 }
0x196f   :  { %v5446_v28 = vpop.f32.mrf.mxu1 }
0x1970   :  { %v5465_v49 = vsel %vm794_vm7, %v5446_v28, -inf }
0x1971   :  { %v10989_v59 = vpop.f32.mrf.mxu1  ;;  %5466 = vmax.xlane.f32.xlu1 %v5465_v49 }
0x19ad   :  { %v5452_v21 = vpop.xlane.xlu0 %5451 }
0x19ae   :  { %v5468_v40 = vsub.f32 %v5332_v18, %v5452_v21 }
0x19b0   :  { %v5474_v46 = vmul.f32 1.442695, %v5468_v40 }
0x19b1   :  { %v5455_v2 = vpop.xlane.xlu1 %5454 }
0x19b2   :  { %11702 = vpow2.f32 %v5474_v46  ;;  %v5469_v30 = vsub.f32 %v5337_v38, %v5455_v2 }
0x19b4   :  { %v5476_v53 = vmul.f32 1.442695, %v5469_v30 }
0x19b6   :  { %11704 = vpow2.f32 %v5476_v53 }
0x19bf   :  { %v13869_v43 = vpop.eup %11702 }
0x19c0   :  { %v5486_v35 = vsel %vm787_vm6, %v13869_v43, 0.0 }
0x19c1   :  { %5487 = vadd.xlane.f32.xlu0 %v5486_v35 }
0x19c3   :  { %v13873_v7 = vpop.eup %11704 }
0x19c4   :  { %v5489_v26 = vsel %vm787_vm6, %v13873_v7, 0.0 }
0x19c5   :  { %5490 = vadd.xlane.f32.xlu1 %v5489_v26 }
0x19d7   :  { %5522 = vrot.lane.b32.xlu0 %v12289_v31, %s15210_s2 }
0x19db   :  { %5726 = vrot.lane.b32.xlu0 %v12816_v33, %s15211_s27 }
0x19df   :  { %5617 = vrot.lane.b32.xlu0 %v12295_v41, %s15210_s2 }
0x19e2   :  { %v5458_v18 = vpop.xlane.xlu0 %5457 }
0x19e3   :  { %v5470_v38 = vsub.f32 %v5342_v37, %v5458_v18  ;;  %5830 = vrot.lane.b32.xlu0 %v12855_v58, %s15211_s27 }
0x19e5   :  { %v5478_v50 = vmul.f32 1.442695, %v5470_v38 }
0x19e7   :  { %11706 = vpow2.f32 %v5478_v50 }
0x19f2   :  { %v5461_v63 = vpop.xlane.xlu0 %5460 }
0x19f3   :  { %v5471_v13 = vsub.f32 %v5436_v62, %v5461_v63 }
0x19f4   :  { %v13885_v49 = vpop.eup %11706 }
0x19f5   :  { %v5480_v59 = vmul.f32 1.442695, %v5471_v13  ;;  %v5492_v21 = vsel %vm794_vm7, %v13885_v49, 0.0 }
0x19f6   :  { %5493 = vadd.xlane.f32.xlu1 %v5492_v21  ;;  %v5464_v40 = vpop.xlane.xlu0 %5463 }
0x19f7   :  { %11708 = vpow2.f32 %v5480_v59  ;;  %v5472_v46 = vsub.f32 %v5441_v36, %v5464_v40 }
0x19f9   :  { %v5482_v2 = vmul.f32 1.442695, %v5472_v46 }
0x19fa   :  { %v5467_v36 = vpop.xlane.xlu1 %5466 }
0x19fb   :  { %11710 = vpow2.f32 %v5482_v2  ;;  %v5473_v35 = vsub.f32 %v5446_v28, %v5467_v36 }
0x19fd   :  { %v5484_v26 = vmul.f32 1.442695, %v5473_v35 }
0x19ff   :  { %11712 = vpow2.f32 %v5484_v26 }
0x1a04   :  { %v13889_v37 = vpop.eup %11708 }
0x1a05   :  { %v5495_v30 = vsel %vm787_vm6, %v13889_v37, 0.0 }
0x1a06   :  { %5496 = vadd.xlane.f32.xlu0 %v5495_v30 }
0x1a07   :  { %5520 = vrot.lane.b32.xlu1 %v13688_v60, %s15210_s2 }
0x1a08   :  { %v13895_v62 = vpop.eup %11710 }
0x1a09   :  { %v5498_v53 = vsel %vm787_vm6, %v13895_v62, 0.0 }
0x1a0a   :  { %5499 = vadd.xlane.f32.xlu0 %v5498_v53 }
0x1a0b   :  { %5518 = vrot.lane.b32.xlu1 %v13700_v22, %s15210_s2 }
0x1a0c   :  { %v13921_v18 = vpop.eup %11712 }
0x1a0d   :  { %v5501_v38 = vsel %vm794_vm7, %v13921_v18, 0.0 }
0x1a0f   :  { %5621 = vrot.lane.b32.xlu1 %v12297_v44, %s15210_s2 }
0x1a13   :  { %5619 = vrot.lane.b32.xlu1 %v12301_v45, %s15210_s2 }
0x1a17   :  { %5724 = vrot.lane.b32.xlu1 %v12825_v23, %s15211_s27 }
0x1a1b   :  { %5722 = vrot.lane.b32.xlu1 %v12834_v56, %s15211_s27 }
0x1a1f   :  { %5716 = vrot.lane.b32.xlu1 %v13600_v54, %s15212_s26 }
0x1a20   :  { %5828 = vrot.lane.b32.xlu0 %v12866_v6, %s15211_s27 }
0x1a23   :  { %5718 = vrot.lane.b32.xlu1 %v13610_v55, %s15212_s26 }
0x1a24   :  { %5826 = vrot.lane.b32.xlu0 %v12875_v8, %s15211_s27 }
0x1a28   :  { %5820 = vrot.lane.b32.xlu0 %v13607_v47, %s15212_s26 }
0x1a2c   :  { %5822 = vrot.lane.b32.xlu0 %v13617_v25, %s15212_s26 }
0x1a47   :  { %5502 = vadd.xlane.f32.xlu1 %v5501_v38 }
0x1a4a   :  { %v5488_v50 = vpop.xlane.xlu0 %5487 }
0x1a4b   :  { %11714 = vrcp.f32 %v5488_v50 }
0x1a4e   :  { %v5523_v63 = vpop.permute.xlu0 %5522  ;;  %v5491_v28 = vpop.xlane.xlu1 %5490 }
0x1a4f   :  { %10991 = vmatpush3.msk.msra.mxu0 %vm872_vm8, %v5523_v63  ;;  %11716 = vrcp.f32 %v5491_v28 }
0x1a50   :  { %10992 = vmatprep.subr.mxu0 %v15202_v5 }
0x1a52   :  { %v5727_v13 = vpop.permute.xlu0 %5726 }
0x1a56   :  { %v5618_v46 = vpop.permute.xlu0 %5617 }
0x1a58   :  { %5720 = vrot.lane.b32.xlu1 %v13620_v27, %s15212_s26  ;;  %v11715_v40 = vpop.eup %11714 }
0x1a59   :  { %v5510_v2 = vmul.f32 %v11715_v40, %v13869_v43 }
0x1a5a   :  { %v5831_v36 = vpop.permute.xlu0 %5830 }
0x1a5c   :  { %5824 = vrot.lane.b32.xlu1 %v13627_v12, %s15212_s26  ;;  %v11717_v53 = vpop.eup %11716 }
0x1a5d   :  { %v5511_v26 = vmul.f32 %v11717_v53, %v13873_v7 }
0x1a7f   :  { %v5494_v59 = vpop.xlane.xlu1 %5493 }
0x1a80   :  { %11718 = vrcp.f32 %v5494_v59 }
0x1a83   :  { %v5521_v21 = vpop.permute.xlu1 %5520 }
0x1a84   :  { %10993 = vmatpush3.msra.mxu0 %v5521_v21 }
0x1a85   :  { %10994 = vmatprep.subr.mxu0 %v15202_v5 }
0x1a87   :  { %v5519_v30 = vpop.permute.xlu1 %5518 }
0x1a88   :  { %10995 = vmatpush3.msra.mxu0 %v5519_v30 }
0x1a89   :  { %10997 = vmatmul.mubr.msk.f32.vlgmr.msra.gmra.mxu0 %vm787_vm6, %v5510_v2  ;;  %11020 = vmatprep.subr.mxu0 %v15202_v5 }
0x1a8a   :  { %11021 = vmatpush3.xpose.msk.msra.mxu0 %vm590_vm5, %v5727_v13  ;;  %10999 = vmatprep.mubr.msk.f32.mxu0 %vm11909_vm0, %v15202_v5 }
0x1a8b   :  { %v5622_v35 = vpop.permute.xlu1 %5621  ;;  %11022 = vmatprep.subr.mxu0 %v15202_v5 }
0x1a8c   :  { %11006 = vmatpush3.msk.msra.mxu1 %vm872_vm8, %v5622_v35 }
0x1a8d   :  { %v11719_v43 = vpop.eup %11718  ;;  %11000 = vmatmul.mubr.msk.f32.gmra.mxu0 %vm787_vm6, %v5511_v26  ;;  %11007 = vmatprep.subr.mxu1 %v15202_v5 }
0x1a8e   :  { %11002 = vmatprep.mubr.msk.f32.mxu0 %vm11909_vm0, %v15202_v5  ;;  %v5512_v38 = vmul.f32 %v11719_v43, %v13885_v49 }
0x1a8f   :  { %v5620_v50 = vpop.permute.xlu1 %5619  ;;  %v5497_v63 = vpop.xlane.xlu0 %5496 }
0x1a90   :  { %11720 = vrcp.f32 %v5497_v63  ;;  %11008 = vmatpush3.msra.mxu1 %v5620_v50 }
0x1a91   :  { %11003 = vmatmul.mubr.msk.f32.gmra.mxu0 %vm787_vm6, %v5512_v38  ;;  %11009 = vmatprep.subr.mxu1 %v15202_v5 }
0x1a92   :  { %11010 = vmatpush3.msra.mxu1 %v5618_v46  ;;  %11026 = vmatprep.mubr.msk.f32.mxu0 %vm11909_vm0, %v15202_v5 }
0x1a93   :  { %v5725_v7 = vpop.permute.xlu1 %5724  ;;  %v5500_v28 = vpop.xlane.xlu0 %5499  ;;  %11035 = vmatprep.subr.mxu1 %v15202_v5 }
0x1a94   :  { %11722 = vrcp.f32 %v5500_v28  ;;  %11023 = vmatpush3.xpose.msk.msra.mxu0 %vm590_vm5, %v5725_v7 }
0x1a95   :  { %11024 = vmatprep.subr.mxu0 %v15202_v5 }
0x1a97   :  { %v5723_v49 = vpop.permute.xlu1 %5722  ;;  %v5829_v2 = vpop.permute.xlu0 %5828 }
0x1a98   :  { %11025 = vmatpush3.xpose.msk.msra.mxu0 %vm590_vm5, %v5723_v49 }
0x1a99   :  { %11050 = vmatprep.subr.mxu0 %v15202_v5 }
0x1a9b   :  { %v5717_v13 = vpop.permute.xlu1 %5716 }
0x1a9c   :  { %11027 = vmatmul.mubr.msk.f32.vlgmr.msra.gmra.mxu0 %vm590_vm5, %v5717_v13 }
0x1a9d   :  { %v11721_v59 = vpop.eup %11720  ;;  %11029 = vmatprep.mubr.msk.f32.mxu0 %vm11909_vm0, %v15202_v5 }
0x1a9e   :  { %v5513_v21 = vmul.f32 %v11721_v59, %v13889_v37  ;;  %v5827_v37 = vpop.permute.xlu0 %5826 }
0x1a9f   :  { %v5719_v40 = vpop.permute.xlu1 %5718 }
0x1aa0   :  { %11012 = vmatmul.mubr.msk.f32.vlgmr.msra.gmra.mxu1 %vm787_vm6, %v5513_v21  ;;  %11030 = vmatmul.mubr.msk.f32.gmra.mxu0 %vm590_vm5, %v5719_v40 }
0x1aa1   :  { %v11723_v46 = vpop.eup %11722  ;;  %11036 = vmatpush3.xpose.msk.msra.mxu1 %vm590_vm5, %v5831_v36  ;;  %11014 = vmatprep.mubr.msk.f32.mxu1 %vm11909_vm0, %v15202_v5 }
0x1aa2   :  { %11037 = vmatprep.subr.mxu1 %v15202_v5  ;;  %v5514_v30 = vmul.f32 %v11723_v46, %v13895_v62  ;;  %11032 = vmatprep.mubr.msk.f32.mxu0 %vm11909_vm0, %v15202_v5  ;;  %v5821_v26 = vpop.permute.xlu0 %5820 }
0x1aa4   :  { %11015 = vmatmul.mubr.msk.f32.gmra.mxu1 %vm787_vm6, %v5514_v30 }
0x1aa5   :  { %11038 = vmatpush3.xpose.msk.msra.mxu1 %vm590_vm5, %v5829_v2  ;;  %11017 = vmatprep.mubr.msk.f32.mxu1 %vm11909_vm0, %v15202_v5 }
0x1aa6   :  { %11039 = vmatprep.subr.mxu1 %v15202_v5  ;;  %v5823_v43 = vpop.permute.xlu0 %5822 }
0x1aa9   :  { %11040 = vmatpush3.xpose.msk.msra.mxu1 %vm590_vm5, %v5827_v37 }
0x1aaa   :  { %11065 = vmatprep.subr.mxu1 %v15202_v5 }
0x1ad0   :  { %v5503_v53 = vpop.xlane.xlu1 %5502 }
0x1ad1   :  { %11724 = vrcp.f32 %v5503_v53 }
0x1ad4   :  { %v5721_v62 = vpop.permute.xlu1 %5720 }
0x1ad5   :  { %11033 = vmatmul.mubr.msk.f32.gmra.mxu0 %vm590_vm5, %v5721_v62 }
0x1ad6   :  { %11056 = vmatprep.mubr.msk.f32.mxu0 %vm11909_vm0, %v15202_v5 }
0x1ad8   :  { %v5825_v38 = vpop.permute.xlu1 %5824 }
0x1ade   :  { %v11725_v36 = vpop.eup %11724 }
0x1adf   :  { %v5515_v35 = vmul.f32 %v11725_v36, %v13921_v18 }
0x1ae1   :  { %11018 = vmatmul.mubr.msk.f32.gmra.mxu1 %vm787_vm6, %v5515_v35 }
0x1ae2   :  { %11041 = vmatprep.mubr.msk.f32.mxu1 %vm11909_vm0, %v15202_v5 }
0x1ae5   :  { %11042 = vmatmul.mubr.msk.f32.vlgmr.msra.gmra.mxu1 %vm590_vm5, %v5821_v26 }
0x1ae6   :  { %11044 = vmatprep.mubr.msk.f32.mxu1 %vm11909_vm0, %v15202_v5 }
0x1ae9   :  { %11045 = vmatmul.mubr.msk.f32.gmra.mxu1 %vm590_vm5, %v5823_v43 }
0x1aea   :  { %11047 = vmatprep.mubr.msk.f32.mxu1 %vm11909_vm0, %v15202_v5 }
0x1aed   :  { %11048 = vmatmul.mubr.msk.f32.gmra.mxu1 %vm590_vm5, %v5825_v38 }
0x1aee   :  { %11071 = vmatprep.mubr.msk.f32.mxu1 %vm11909_vm0, %v15202_v5 }
0x1b49   :  { %v13991_v18 = vpop.f32.mrf.mxu0 }
0x1b4b   :  { %v10998_v50 = vpop.f32.mrf.mxu0 }
0x1b4d   :  { %v13993_v63 = vpop.f32.mrf.mxu0 }
0x1b4f   :  { %v11001_v7 = vpop.f32.mrf.mxu0 }
0x1b51   :  { %v13995_v28 = vpop.f32.mrf.mxu0 }
0x1b53   :  { %v11004_v49 = vpop.f32.mrf.mxu0 }
0x1b5c   :  { %v5806_v13 = vpop.f32.mrf.mxu0 }
0x1b5d   :  { %v5924_v59 = vsel %vm787_vm6, %v5806_v13, -inf }
0x1b5e   :  { %5925 = vmax.xlane.f32.xlu0 %v5924_v59  ;;  %v11028_v21 = vpop.f32.mrf.mxu0 }
0x1b60   :  { %v13998_v40 = vpop.f32.mrf.mxu1  ;;  %v5811_v46 = vpop.f32.mrf.mxu0 }
0x1b61   :  { %v5927_v2 = vsel %vm787_vm6, %v5811_v46, -inf }
0x1b62   :  { %v11013_v30 = vpop.f32.mrf.mxu1  ;;  %5928 = vmax.xlane.f32.xlu1 %v5927_v2  ;;  %v11031_v37 = vpop.f32.mrf.mxu0 }
0x1b64   :  { %v14001_v53 = vpop.f32.mrf.mxu1 }
0x1b66   :  { %v11016_v62 = vpop.f32.mrf.mxu1 }
0x1b95   :  { %v5816_v36 = vpop.f32.mrf.mxu0 }
0x1b96   :  { %v5930_v35 = vsel %vm794_vm7, %v5816_v36, -inf }
0x1b97   :  { %5931 = vmax.xlane.f32.xlu0 %v5930_v35  ;;  %v11034_v26 = vpop.f32.mrf.mxu0 }
0x1ba1   :  { %v14004_v43 = vpop.f32.mrf.mxu1 }
0x1ba3   :  { %v11019_v38 = vpop.f32.mrf.mxu1 }
0x1ba5   :  { %v5910_v50 = vpop.f32.mrf.mxu1 }
0x1ba6   :  { %v5933_v7 = vsel %vm787_vm6, %v5910_v50, -inf }
0x1ba7   :  { %v11043_v49 = vpop.f32.mrf.mxu1  ;;  %5934 = vmax.xlane.f32.xlu0 %v5933_v7 }
0x1ba9   :  { %v5915_v59 = vpop.f32.mrf.mxu1 }
0x1baa   :  { %v5936_v21 = vsel %vm787_vm6, %v5915_v59, -inf }
0x1bab   :  { %v11046_v2 = vpop.f32.mrf.mxu1  ;;  %5937 = vmax.xlane.f32.xlu0 %v5936_v21 }
0x1bad   :  { %v5920_v30 = vpop.f32.mrf.mxu1 }
0x1bae   :  { %v5939_v37 = vsel %vm794_vm7, %v5920_v30, -inf }
0x1baf   :  { %v11049_v62 = vpop.f32.mrf.mxu1  ;;  %5940 = vmax.xlane.f32.xlu1 %v5939_v37 }
0x1be7   :  { %v5926_v35 = vpop.xlane.xlu0 %5925 }
0x1be8   :  { %v5942_v26 = vsub.f32 %v5806_v13, %v5926_v35 }
0x1bea   :  { %v5948_v15 = vmul.f32 1.442695, %v5942_v26 }
0x1beb   :  { %v5929_v1 = vpop.xlane.xlu1 %5928 }
0x1bec   :  { %11726 = vpow2.f32 %v5948_v15  ;;  %v5943_v38 = vsub.f32 %v5811_v46, %v5929_v1 }
0x1bee   :  { %v5950_v34 = vmul.f32 1.442695, %v5943_v38 }
0x1bf0   :  { %11728 = vpow2.f32 %v5950_v34 }
0x1bf9   :  { %v14009_v49 = vpop.eup %11726 }
0x1bfa   :  { %v5960_v7 = vsel %vm787_vm6, %v14009_v49, 0.0 }
0x1bfb   :  { %5961 = vadd.xlane.f32.xlu0 %v5960_v7 }
0x1bfd   :  { %v14013_v21 = vpop.eup %11728 }
0x1bfe   :  { %v5963_v2 = vsel %vm787_vm6, %v14013_v21, 0.0 }
0x1bff   :  { %5964 = vadd.xlane.f32.xlu1 %v5963_v2 }
0x1c11   :  { %5994 = vrot.lane.b32.xlu0 %v12289_v31, %s15213_s1 }
0x1c15   :  { %6198 = vrot.lane.b32.xlu0 %v12816_v33, %s15205_s0 }
0x1c19   :  { %6089 = vrot.lane.b32.xlu0 %v12295_v41, %s15213_s1 }
0x1c1d   :  { %6302 = vrot.lane.b32.xlu0 %v12855_v58, %s15205_s0 }
0x1c20   :  { %v5932_v34 = vpop.xlane.xlu0 %5931 }
0x1c21   :  { %v5944_v15 = vsub.f32 %v5816_v36, %v5932_v34 }
0x1c23   :  { %v5952_v1 = vmul.f32 1.442695, %v5944_v15 }
0x1c25   :  { %11730 = vpow2.f32 %v5952_v1 }
0x1c30   :  { %v5935_v13 = vpop.xlane.xlu0 %5934 }
0x1c31   :  { %v5945_v46 = vsub.f32 %v5910_v50, %v5935_v13 }
0x1c32   :  { %v14025_v37 = vpop.eup %11730 }
0x1c33   :  { %v5954_v62 = vmul.f32 1.442695, %v5945_v46  ;;  %v5966_v35 = vsel %vm794_vm7, %v14025_v37, 0.0 }
0x1c34   :  { %5967 = vadd.xlane.f32.xlu1 %v5966_v35  ;;  %v5938_v33 = vpop.xlane.xlu0 %5937 }
0x1c35   :  { %11732 = vpow2.f32 %v5954_v62  ;;  %v5946_v26 = vsub.f32 %v5915_v59, %v5938_v33 }
0x1c37   :  { %v5956_v38 = vmul.f32 1.442695, %v5946_v26 }
0x1c38   :  { %v5941_v59 = vpop.xlane.xlu1 %5940 }
0x1c39   :  { %11734 = vpow2.f32 %v5956_v38 }
0x1c42   :  { %v14029_v7 = vpop.eup %11732 }
0x1c43   :  { %v5969_v58 = vsel %vm787_vm6, %v14029_v7, 0.0 }
0x1c44   :  { %5970 = vadd.xlane.f32.xlu0 %v5969_v58 }
0x1c45   :  { %5992 = vrot.lane.b32.xlu1 %v13688_v60, %s15213_s1 }
0x1c46   :  { %v14035_v36 = vpop.eup %11734 }
0x1c47   :  { %v5972_v50 = vsel %vm787_vm6, %v14035_v36, 0.0 }
0x1c48   :  { %5973 = vadd.xlane.f32.xlu0 %v5972_v50 }
0x1c49   :  { %5990 = vrot.lane.b32.xlu1 %v13700_v22, %s15213_s1 }
0x1c4d   :  { %6093 = vrot.lane.b32.xlu1 %v12297_v44, %s15213_s1 }
0x1c51   :  { %6091 = vrot.lane.b32.xlu1 %v12301_v45, %s15213_s1 }
0x1c55   :  { %6196 = vrot.lane.b32.xlu1 %v12825_v23, %s15205_s0  ;;  %v5947_v23 = vsub.f32 %v5920_v30, %v5941_v59 }
0x1c57   :  { %v5958_v2 = vmul.f32 1.442695, %v5947_v23 }
0x1c59   :  { %6194 = vrot.lane.b32.xlu1 %v12834_v56, %s15205_s0  ;;  %11736 = vpow2.f32 %v5958_v2 }
0x1c5d   :  { %6188 = vrot.lane.b32.xlu1 %v13600_v54, %s15214_s28 }
0x1c5e   :  { %6300 = vrot.lane.b32.xlu0 %v12866_v6, %s15205_s0 }
0x1c61   :  { %6190 = vrot.lane.b32.xlu1 %v13610_v55, %s15214_s28 }
0x1c62   :  { %6298 = vrot.lane.b32.xlu0 %v12875_v8, %s15205_s0 }
0x1c66   :  { %6292 = vrot.lane.b32.xlu0 %v13607_v47, %s15214_s28  ;;  %v14059_v56 = vpop.eup %11736 }
0x1c67   :  { %v5975_v54 = vsel %vm794_vm7, %v14059_v56, 0.0 }
0x1c84   :  { %v5962_v34 = vpop.xlane.xlu0 %5961 }
0x1c85   :  { %5976 = vadd.xlane.f32.xlu1 %v5975_v54  ;;  %11738 = vrcp.f32 %v5962_v34 }
0x1c88   :  { %v5995_v6 = vpop.permute.xlu0 %5994  ;;  %v5965_v8 = vpop.xlane.xlu1 %5964 }
0x1c89   :  { %11051 = vmatpush3.msk.msra.mxu0 %vm872_vm8, %v5995_v6  ;;  %11740 = vrcp.f32 %v5965_v8 }
0x1c8a   :  { %11052 = vmatprep.subr.mxu0 %v15202_v5 }
0x1c8c   :  { %v6199_v47 = vpop.permute.xlu0 %6198 }
0x1c90   :  { %v6090_v1 = vpop.permute.xlu0 %6089 }
0x1c92   :  { %v11739_v15 = vpop.eup %11738 }
0x1c93   :  { %v5984_v13 = vmul.f32 %v11739_v15, %v14009_v49 }
0x1c96   :  { %6192 = vrot.lane.b32.xlu1 %v13620_v27, %s15214_s28  ;;  %v11741_v62 = vpop.eup %11740  ;;  %v6303_v27 = vpop.permute.xlu0 %6302 }
0x1c97   :  { %v5985_v33 = vmul.f32 %v11741_v62, %v14013_v21 }
0x1cbd   :  { %v5968_v55 = vpop.xlane.xlu1 %5967 }
0x1cbe   :  { %11742 = vrcp.f32 %v5968_v55 }
0x1cc1   :  { %v5993_v30 = vpop.permute.xlu1 %5992 }
0x1cc2   :  { %11053 = vmatpush3.msra.mxu0 %v5993_v30 }
0x1cc3   :  { %11054 = vmatprep.subr.mxu0 %v15202_v5 }
0x1cc5   :  { %v5991_v46 = vpop.permute.xlu1 %5990 }
0x1cc6   :  { %11055 = vmatpush3.msra.mxu0 %v5991_v46 }
0x1cc7   :  { %11057 = vmatmul.mubr.msk.f32.vlgmr.msra.gmra.mxu0 %vm787_vm6, %v5984_v13  ;;  %11080 = vmatprep.subr.mxu0 %v15202_v5 }
0x1cc8   :  { %11081 = vmatpush3.xpose.msk.msra.mxu0 %vm590_vm5, %v6199_v47  ;;  %11059 = vmatprep.mubr.msk.f32.mxu0 %vm11909_vm0, %v15202_v5 }
0x1cc9   :  { %v6094_v35 = vpop.permute.xlu1 %6093  ;;  %11082 = vmatprep.subr.mxu0 %v15202_v5 }
0x1cca   :  { %11066 = vmatpush3.msk.msra.mxu1 %vm872_vm8, %v6094_v35 }
0x1ccb   :  { %v11743_v49 = vpop.eup %11742  ;;  %11060 = vmatmul.mubr.msk.f32.gmra.mxu0 %vm787_vm6, %v5985_v33  ;;  %11067 = vmatprep.subr.mxu1 %v15202_v5 }
0x1ccc   :  { %11062 = vmatprep.mubr.msk.f32.mxu0 %vm11909_vm0, %v15202_v5  ;;  %v5986_v26 = vmul.f32 %v11743_v49, %v14025_v37 }
0x1ccd   :  { %v6092_v38 = vpop.permute.xlu1 %6091  ;;  %v5971_v58 = vpop.xlane.xlu0 %5970 }
0x1cce   :  { %11744 = vrcp.f32 %v5971_v58  ;;  %11068 = vmatpush3.msra.mxu1 %v6092_v38 }
0x1ccf   :  { %11063 = vmatmul.mubr.msk.f32.gmra.mxu0 %vm787_vm6, %v5986_v26  ;;  %11069 = vmatprep.subr.mxu1 %v15202_v5 }
0x1cd0   :  { %11070 = vmatpush3.msra.mxu1 %v6090_v1  ;;  %11086 = vmatprep.mubr.msk.f32.mxu0 %vm11909_vm0, %v15202_v5 }
0x1cd1   :  { %v6197_v21 = vpop.permute.xlu1 %6196  ;;  %v5974_v50 = vpop.xlane.xlu0 %5973  ;;  %11095 = vmatprep.subr.mxu1 %v15202_v5 }
0x1cd2   :  { %11746 = vrcp.f32 %v5974_v50  ;;  %11083 = vmatpush3.xpose.msk.msra.mxu0 %vm590_vm5, %v6197_v21 }
0x1cd3   :  { %11084 = vmatprep.subr.mxu0 %v15202_v5 }
0x1cd5   :  { %v6195_v37 = vpop.permute.xlu1 %6194  ;;  %v6301_v6 = vpop.permute.xlu0 %6300 }
0x1cd6   :  { %11085 = vmatpush3.xpose.msk.msra.mxu0 %vm590_vm5, %v6195_v37 }
0x1cd7   :  { %11110 = vmatprep.subr.mxu0 %v15202_v5 }
0x1cd9   :  { %v6189_v59 = vpop.permute.xlu1 %6188 }
0x1cda   :  { %11087 = vmatmul.mubr.msk.f32.vlgmr.msra.gmra.mxu0 %vm590_vm5, %v6189_v59 }
0x1cdb   :  { %v11745_v23 = vpop.eup %11744  ;;  %11089 = vmatprep.mubr.msk.f32.mxu0 %vm11909_vm0, %v15202_v5 }
0x1cdc   :  { %v5987_v2 = vmul.f32 %v11745_v23, %v14029_v7  ;;  %v6299_v7 = vpop.permute.xlu0 %6298 }
0x1cdd   :  { %v6191_v34 = vpop.permute.xlu1 %6190 }
0x1cde   :  { %11072 = vmatmul.mubr.msk.f32.vlgmr.msra.gmra.mxu1 %vm787_vm6, %v5987_v2  ;;  %11090 = vmatmul.mubr.msk.f32.gmra.mxu0 %vm590_vm5, %v6191_v34 }
0x1cdf   :  { %v11747_v54 = vpop.eup %11746  ;;  %11096 = vmatpush3.xpose.msk.msra.mxu1 %vm590_vm5, %v6303_v27  ;;  %11074 = vmatprep.mubr.msk.f32.mxu1 %vm11909_vm0, %v15202_v5 }
0x1ce0   :  { %11097 = vmatprep.subr.mxu1 %v15202_v5  ;;  %v5988_v8 = vmul.f32 %v11747_v54, %v14035_v36  ;;  %11092 = vmatprep.mubr.msk.f32.mxu0 %vm11909_vm0, %v15202_v5  ;;  %v6293_v15 = vpop.permute.xlu0 %6292 }
0x1ce2   :  { %11075 = vmatmul.mubr.msk.f32.gmra.mxu1 %vm787_vm6, %v5988_v8 }
0x1ce3   :  { %11098 = vmatpush3.xpose.msk.msra.mxu1 %vm590_vm5, %v6301_v6  ;;  %11077 = vmatprep.mubr.msk.f32.mxu1 %vm11909_vm0, %v15202_v5 }
0x1ce4   :  { %11099 = vmatprep.subr.mxu1 %v15202_v5 }
0x1ce7   :  { %11100 = vmatpush3.xpose.msk.msra.mxu1 %vm590_vm5, %v6299_v7 }
0x1ce8   :  { %11125 = vmatprep.subr.mxu1 %v15202_v5 }
0x1d0e   :  { %v5977_v47 = vpop.xlane.xlu1 %5976 }
0x1d0f   :  { %11748 = vrcp.f32 %v5977_v47 }
0x1d12   :  { %v6193_v36 = vpop.permute.xlu1 %6192 }
0x1d13   :  { %11093 = vmatmul.mubr.msk.f32.gmra.mxu0 %vm590_vm5, %v6193_v36 }
0x1d14   :  { %11116 = vmatprep.mubr.msk.f32.mxu0 %vm11909_vm0, %v15202_v5 }
0x1d1c   :  { %v11749_v55 = vpop.eup %11748 }
0x1d1d   :  { %v5989_v30 = vmul.f32 %v11749_v55, %v14059_v56 }
0x1d1f   :  { %11078 = vmatmul.mubr.msk.f32.gmra.mxu1 %vm787_vm6, %v5989_v30 }
0x1d20   :  { %11101 = vmatprep.mubr.msk.f32.mxu1 %vm11909_vm0, %v15202_v5 }
0x1d23   :  { %11102 = vmatmul.mubr.msk.f32.vlgmr.msra.gmra.mxu1 %vm590_vm5, %v6293_v15 }
0x1d24   :  { %11104 = vmatprep.mubr.msk.f32.mxu1 %vm11909_vm0, %v15202_v5 }
0x1d87   :  { %v14121_v1 = vpop.f32.mrf.mxu0 }
0x1d89   :  { %v11058_v13 = vpop.f32.mrf.mxu0 }
0x1d8b   :  { %v14123_v46 = vpop.f32.mrf.mxu0 }
0x1d8d   :  { %v11061_v62 = vpop.f32.mrf.mxu0 }
0x1d8f   :  { %v14125_v27 = vpop.f32.mrf.mxu0 }
0x1d91   :  { %v11064_v56 = vpop.f32.mrf.mxu0 }
0x1d9a   :  { %v6278_v35 = vpop.f32.mrf.mxu0 }
0x1d9b   :  { %v6396_v33 = vsel %vm787_vm6, %v6278_v35, -inf }
0x1d9c   :  { %6397 = vmax.xlane.f32.xlu0 %v6396_v33  ;;  %v11088_v49 = vpop.f32.mrf.mxu0 }
0x1d9e   :  { %v6174_v26 = vpop.f32.mrf.mxu1  ;;  %v6283_v38 = vpop.f32.mrf.mxu0 }
0x1d9f   :  { %v6399_v58 = vsel %vm787_vm6, %v6283_v38, -inf }
0x1da0   :  { %v11073_v21 = vpop.f32.mrf.mxu1  ;;  %6400 = vmax.xlane.f32.xlu1 %v6399_v58  ;;  %v11091_v50 = vpop.f32.mrf.mxu0 }
0x1da2   :  { %v14129_v37 = vpop.f32.mrf.mxu1 }
0x1da4   :  { %v11076_v59 = vpop.f32.mrf.mxu1 }
0x1dd3   :  { %v6288_v23 = vpop.f32.mrf.mxu0 }
0x1dd4   :  { %v6402_v47 = vsel %vm794_vm7, %v6288_v23, -inf }
0x1dd5   :  { %v11094_v2 = vpop.f32.mrf.mxu0 }
0x1ddf   :  { %v14131_v34 = vpop.f32.mrf.mxu1 }
0x1de1   :  { %v11079_v54 = vpop.f32.mrf.mxu1 }
0x1de3   :  { %v6382_v6 = vpop.f32.mrf.mxu1 }
0x1de4   :  { %v6405_v8 = vsel %vm787_vm6, %v6382_v6, -inf }
0x1de5   :  { %v11103_v7 = vpop.f32.mrf.mxu1  ;;  %6406 = vmax.xlane.f32.xlu0 %v6405_v8 }
0x1de9   :  { %6403 = vmax.xlane.f32.xlu0 %v6402_v47 }
0x1e25   :  { %v6398_v36 = vpop.xlane.xlu0 %6397 }
0x1e26   :  { %v6414_v55 = vsub.f32 %v6278_v35, %v6398_v36 }
0x1e28   :  { %v6420_v30 = vmul.f32 1.442695, %v6414_v55 }
0x1e29   :  { %v6401_v15 = vpop.xlane.xlu1 %6400 }
0x1e2a   :  { %11750 = vpow2.f32 %v6420_v30  ;;  %v6415_v13 = vsub.f32 %v6283_v38, %v6401_v15 }
0x1e2c   :  { %v6422_v62 = vmul.f32 1.442695, %v6415_v13  ;;  %v215_v13 = vld [vmem:[%s15117_s6 + $0x58] sm:$0xff] }
0x1e2e   :  { %11752 = vpow2.f32 %v6422_v62  ;;  %v214_v62 = vld [vmem:[%s15117_s6 + $0x50] sm:$0xff] }
0x1e37   :  { %v11751_v56 = vpop.eup %11750 }
0x1e38   :  { %v6432_v33 = vsel %vm787_vm6, %v11751_v56, 0.0 }
0x1e39   :  { %6433 = vadd.xlane.f32.xlu0 %v6432_v33  ;;  %v212_v33 = vld [vmem:[%s15117_s6 + $0x40] sm:$0xff] }
0x1e3b   :  { %v14136_v49 = vpop.eup %11752 }
0x1e3c   :  { %v6435_v58 = vsel %vm787_vm6, %v14136_v49, 0.0 }
0x1e3d   :  { %6436 = vadd.xlane.f32.xlu1 %v6435_v58 }
0x1e4f   :  { %6466 = vrot.lane.b32.xlu0 %v12289_v31, %s15204_s23 }
0x1e53   :  { %6565 = vrot.lane.b32.xlu0 %v12297_v44, %s15204_s23 }
0x1e6e   :  { %v6407_v35 = vpop.xlane.xlu0 %6406 }
0x1e6f   :  { %v6417_v38 = vsub.f32 %v6382_v6, %v6407_v35 }
0x1e71   :  { %v6426_v21 = vmul.f32 1.442695, %v6417_v38 }
0x1e72   :  { %v6404_v50 = vpop.xlane.xlu0 %6403 }
0x1e73   :  { %11754 = vpow2.f32 %v6426_v21  ;;  %v6416_v59 = vsub.f32 %v6288_v23, %v6404_v50 }
0x1e75   :  { %v6424_v2 = vmul.f32 1.442695, %v6416_v59 }
0x1e77   :  { %11756 = vpow2.f32 %v6424_v2 }
0x1e80   :  { %v11755_v54 = vpop.eup %11754 }
0x1e81   :  { %v6441_v8 = vsel %vm787_vm6, %v11755_v54, 0.0 }
0x1e82   :  { %6442 = vadd.xlane.f32.xlu0 %v6441_v8 }
0x1e84   :  { %v11757_v7 = vpop.eup %11756 }
0x1e85   :  { %v6438_v47 = vsel %vm794_vm7, %v11757_v7, 0.0 }
0x1e86   :  { %6439 = vadd.xlane.f32.xlu1 %v6438_v47 }
0x1e97   :  { %6464 = vrot.lane.b32.xlu1 %v13688_v60, %s15204_s23 }
0x1e98   :  { %6563 = vrot.lane.b32.xlu0 %v12301_v45, %s15204_s23 }
0x1e9b   :  { %6294 = vrot.lane.b32.xlu1 %v13617_v25, %s15214_s28 }
0x1e9c   :  { %6666 = vrot.lane.b32.xlu0 %v13991_v18, %s15205_s0 }
0x1e9f   :  { %6462 = vrot.lane.b32.xlu1 %v13700_v22, %s15204_s23 }
0x1ea0   :  { %6672 = vrot.lane.b32.xlu0 %v13998_v40, %s15205_s0 }
0x1ea3   :  { %6296 = vrot.lane.b32.xlu1 %v13627_v12, %s15214_s28 }
0x1ea4   :  { %6696 = vrot.lane.b32.xlu0 %v6174_v26, %s15211_s27 }
0x1ea7   :  { %6561 = vrot.lane.b32.xlu1 %v12295_v41, %s15204_s23 }
0x1eab   :  { %6690 = vrot.lane.b32.xlu1 %v14121_v1, %s15211_s27 }
0x1eaf   :  { %6668 = vrot.lane.b32.xlu1 %v13993_v63, %s15205_s0 }
0x1eb3   :  { %6692 = vrot.lane.b32.xlu1 %v14123_v46, %s15211_s27 }
0x1ec2   :  { %v6434_v31 = vpop.xlane.xlu0 %6433 }
0x1ec3   :  { %11758 = vrcp.f32 %v6434_v31  ;;  %v2656_v31 = vadd.f32 %v13122_v61, %v13738_v42  ;;  %v2671_v61 = vadd.f32 %v13128_v51, %v13738_v42 }
0x1ec6   :  { %v6467_v44 = vpop.permute.xlu0 %6466  ;;  %v6437_v41 = vpop.xlane.xlu1 %6436 }
0x1ec7   :  { %11111 = vmatpush3.msk.msra.mxu0 %vm872_vm8, %v6467_v44  ;;  %11760 = vrcp.f32 %v6437_v41  ;;  %v14227_v44 = vadd.f32 %v2656_v31, %v12089_v14  ;;  %v2666_v41 = vadd.f32 %v13126_v9, %v13738_v42 }
0x1ec8   :  { %11112 = vmatprep.subr.mxu0 %v15202_v5 }
0x1eca   :  { %v6566_v45 = vpop.permute.xlu0 %6565 }
0x1ecb   :  { %11126 = vmatpush3.msk.msra.mxu1 %vm872_vm8, %v6566_v45 }
0x1ecc   :  { %11127 = vmatprep.subr.mxu1 %v15202_v5 }
0x1ed0   :  { %v11759_v63 = vpop.eup %11758 }
0x1ed1   :  { %v6456_v40 = vmul.f32 %v11759_v63, %v11751_v56  ;;  %v213_v56 = vld [vmem:[%s15117_s6 + $0x48] sm:$0xff]  ;;  %v6932_v63 = vsel %vm241_vm2, %v13754_v20, 0.0 }
0x1ed4   :  { %v11761_v46 = vpop.eup %11760 }
0x1ed5   :  { %v6457_v6 = vmul.f32 %v11761_v46, %v14136_v49 }
0x1f0b   :  { %v6443_v25 = vpop.xlane.xlu0 %6442 }
0x1f0c   :  { %11762 = vrcp.f32 %v6443_v25  ;;  %v6914_v25 = vsel %vm241_vm2, %v14227_v44, 0.0 }
0x1f0f   :  { %v6440_v12 = vpop.xlane.xlu1 %6439  ;;  %v6564_v60 = vpop.permute.xlu0 %6563 }
0x1f10   :  { %11128 = vmatpush3.msra.mxu1 %v6564_v60  ;;  %11764 = vrcp.f32 %v6440_v12  ;;  %v14243_v12 = vadd.f32 %v2666_v41, %v12103_v24  ;;  %v14248_v60 = vadd.f32 %v2671_v61, %v12110_v29 }
0x1f11   :  { %11129 = vmatprep.subr.mxu1 %v15202_v5 }
0x1f12   :  { %v6923_v51 = vsel %vm241_vm2, %v14248_v60, 0.0 }
0x1f13   :  { %v6465_v22 = vpop.permute.xlu1 %6464 }
0x1f14   :  { %11113 = vmatpush3.msra.mxu0 %v6465_v22  ;;  %v6920_v22 = vsel %vm241_vm2, %v14243_v12, 0.0 }
0x1f15   :  { %11114 = vmatprep.subr.mxu0 %v15202_v5 }
0x1f17   :  { %v6295_v18 = vpop.permute.xlu1 %6294 }
0x1f18   :  { %11105 = vmatmul.mubr.msk.f32.gmra.mxu1 %vm590_vm5, %v6295_v18  ;;  %v6929_v18 = vsel %vm241_vm2, %v13749_v4, 0.0 }
0x1f19   :  { %11107 = vmatprep.mubr.msk.f32.mxu1 %vm11909_vm0, %v15202_v5  ;;  %v11763_v26 = vpop.eup %11762 }
0x1f1a   :  { %v6459_v55 = vmul.f32 %v11763_v26, %v11755_v54 }
0x1f1b   :  { %v6463_v1 = vpop.permute.xlu1 %6462 }
0x1f1c   :  { %11115 = vmatpush3.msra.mxu0 %v6463_v1  ;;  %v6667_v1 = vpop.permute.xlu0 %6666 }
0x1f1d   :  { %11117 = vmatmul.mubr.msk.f32.vlgmr.msra.gmra.mxu0 %vm787_vm6, %v6456_v40  ;;  %11140 = vmatprep.subr.mxu0 %v15202_v5  ;;  %v11765_v36 = vpop.eup %11764  ;;  %v6935_v40 = vsel %vm241_vm2, %v13759_v17, 0.0 }
0x1f1e   :  { %11119 = vmatprep.mubr.msk.f32.mxu0 %vm11909_vm0, %v15202_v5  ;;  %v6458_v15 = vmul.f32 %v11765_v36, %v11757_v7  ;;  %11141 = vmatpush3.msra.mxu0 %v215_v13  ;;  %v6732_v36 = vsel %vm590_vm5, %v13851_v11, %v6667_v1 }
0x1f1f   :  { %v6297_v23 = vpop.permute.xlu1 %6296  ;;  %11142 = vmatprep.subr.mxu0 %v15202_v5 }
0x1f20   :  { %11108 = vmatmul.mubr.msk.f32.gmra.mxu1 %vm590_vm5, %v6297_v23  ;;  %11143 = vmatpush3.msra.mxu0 %v214_v62  ;;  %v6673_v26 = vpop.permute.xlu0 %6672 }
0x1f21   :  { %11120 = vmatmul.mubr.msk.f32.gmra.mxu0 %vm787_vm6, %v6457_v6  ;;  %11131 = vmatprep.mubr.msk.f32.mxu1 %vm11909_vm0, %v15202_v5 }
0x1f22   :  { %11122 = vmatprep.mubr.msk.f32.mxu0 %vm11909_vm0, %v15202_v5  ;;  %11144 = vmatprep.subr.mxu0 %v15202_v5 }
0x1f23   :  { %v6562_v30 = vpop.permute.xlu1 %6561  ;;  %11145 = vmatpush3.msra.mxu0 %v213_v56 }
0x1f24   :  { %11130 = vmatpush3.msra.mxu1 %v6562_v30  ;;  %11146 = vmatprep.subr.mxu0 %v15202_v5  ;;  %v6697_v6 = vpop.permute.xlu0 %6696 }
0x1f25   :  { %11123 = vmatmul.mubr.msk.f32.gmra.mxu0 %vm787_vm6, %v6458_v15  ;;  %11132 = vmatmul.mubr.msk.f32.vlgmr.msra.gmra.mxu1 %vm787_vm6, %v6459_v55 }
0x1f26   :  { %11148 = vmatprep.mubr.msk.f32.mxu0 %vm11909_vm0, %v15202_v5  ;;  %11134 = vmatprep.mubr.msk.f32.mxu1 %vm11909_vm0, %v15202_v5 }
0x1f27   :  { %11163 = vmatprep.subr.mxu1 %v15202_v5  ;;  %11147 = vmatpush3.msra.mxu0 %v212_v33  ;;  %v6691_v46 = vpop.permute.xlu1 %6690 }
0x1f28   :  { %11210 = vmatprep.subr.mxu0 %v15202_v5  ;;  %v6738_v55 = vsel %vm2548_vm9, %v6732_v36, %v6691_v46 }
0x1f2b   :  { %v6669_v23 = vpop.permute.xlu1 %6668 }
0x1f2c   :  { %v6733_v62 = vsel %vm590_vm5, %v13853_v0, %v6669_v23 }
0x1f2f   :  { %v6693_v30 = vpop.permute.xlu1 %6692 }
0x1f30   :  { %v6739_v56 = vsel %vm2548_vm9, %v6733_v62, %v6693_v30 }
0x1fd8   :  { %v14212_v49 = vpop.f32.mrf.mxu1 }
0x1fd9   :  { %v6408_v45 = vsel %vm787_vm6, %v14212_v49, -inf }
0x1fda   :  { %v11106_v58 = vpop.f32.mrf.mxu1 }
0x1fdd   :  { %v6547_v35 = vpop.f32.mrf.mxu0 }
0x1fde   :  { %6714 = vrot.lane.b32.xlu0 %v6547_v35, %s15215_s21  ;;  %v6735_v35 = vsel %vm590_vm5, %v13859_v57, %v6673_v26 }
0x1fdf   :  { %v11118_v38 = vpop.f32.mrf.mxu0 }
0x1fe0   :  { %v14215_v21 = vpop.f32.mrf.mxu1  ;;  %v6741_v38 = vsel %vm2548_vm9, %v6735_v35, %v6697_v6 }
0x1fe1   :  { %v6552_v50 = vpop.f32.mrf.mxu0  ;;  %v6411_v9 = vsel %vm794_vm7, %v14215_v21, -inf }
0x1fe2   :  { %v11109_v59 = vpop.f32.mrf.mxu1  ;;  %6670 = vrot.lane.b32.xlu0 %v13995_v28, %s15205_s0  ;;  %6716 = vrot.lane.b32.xlu1 %v6552_v50, %s15215_s21  ;;  %v2661_v28 = vadd.f32 %v13124_v32, %v13738_v42  ;;  %v6926_v42 = vsel %vm241_vm2, %v13746_v52, 0.0 }
0x1fe3   :  { %v11121_v2 = vpop.f32.mrf.mxu0 }
0x1fe5   :  { %v6557_v54 = vpop.f32.mrf.mxu0  ;;  %v6646_v8 = vpop.f32.mrf.mxu1 }
0x1fe6   :  { %6694 = vrot.lane.b32.xlu0 %v14125_v27, %s15211_s27  ;;  %6720 = vrot.lane.b32.xlu1 %v6646_v8, %s15215_s21  ;;  %v14234_v27 = vadd.f32 %v2661_v28, %v12096_v19 }
0x1fe7   :  { %v11124_v7 = vpop.f32.mrf.mxu0  ;;  %v11133_v47 = vpop.f32.mrf.mxu1 }
0x1fe8   :  { %v6917_v32 = vsel %vm241_vm2, %v14234_v27, 0.0 }
0x1fea   :  { %6718 = vrot.lane.b32.xlu1 %v6557_v54, %s15215_s21 }
0x2005   :  { %6409 = vmax.xlane.f32.xlu0 %v6408_v45  ;;  %v14299_v45 = vld [vmem:[%s15198_s5 + $0x8] sm:$0x3] }
0x2009   :  { %6915 = vadd.xlane.f32.xlu0 %v6914_v25  ;;  %v15216_v25 = vld [vmem:[#allocation3_spill] sm:$0xff] }
0x200a   :  { %v14303_v61 = vrot.slane %v14299_v45, %v15216_v25 }
0x200d   :  { %6918 = vadd.xlane.f32.xlu0 %v6917_v32 }
0x200e   :  { %6412 = vmax.xlane.f32.xlu1 %v6411_v9 }
0x2011   :  { %6921 = vadd.xlane.f32.xlu0 %v6920_v22 }
0x2012   :  { %6924 = vadd.xlane.f32.xlu1 %v6923_v51 }
0x2015   :  { %6927 = vadd.xlane.f32.xlu0 %v6926_v42 }
0x2016   :  { %6930 = vadd.xlane.f32.xlu1 %v6929_v18 }
0x2019   :  { %6933 = vadd.xlane.f32.xlu0 %v6932_v63 }
0x201a   :  { %6936 = vadd.xlane.f32.xlu1 %v6935_v40 }
0x2050   :  { %v6715_v15 = vpop.permute.xlu0 %6714 }
0x2051   :  { %v6744_v13 = vsel %vm2555_vm10, %v6738_v55, %v6715_v15 }
0x2052   :  { %11149 = vmatmul.mubr.msk.f32.vlgmr.msra.gmra.mxu0 %vm241_vm2, %v6744_v13 }
0x2053   :  { %11151 = vmatprep.mubr.msk.f32.mxu0 %vm11909_vm0, %v15202_v5 }
0x2054   :  { %v6671_v33 = vpop.permute.xlu0 %6670  ;;  %v6717_v58 = vpop.permute.xlu1 %6716 }
0x2055   :  { %v6745_v11 = vsel %vm2555_vm10, %v6739_v56, %v6717_v58  ;;  %v6734_v2 = vsel %vm590_vm5, %v13855_v10, %v6671_v33 }
0x2056   :  { %11152 = vmatmul.mubr.msk.f32.gmra.mxu0 %vm241_vm2, %v6745_v11 }
0x2057   :  { %11154 = vmatprep.mubr.msk.f32.mxu0 %vm11909_vm0, %v15202_v5 }
0x2058   :  { %v6721_v0 = vpop.permute.xlu1 %6720  ;;  %v6695_v50 = vpop.permute.xlu0 %6694 }
0x2059   :  { %v14282_v59 = vsel %vm2555_vm10, %v6741_v38, %v6721_v0  ;;  %v6740_v54 = vsel %vm2548_vm9, %v6734_v2, %v6695_v50 }
0x205a   :  { %v6753_v8 = vrot.slane %v14282_v59, 7 }
0x205c   :  { %v6719_v7 = vpop.permute.xlu1 %6718 }
0x205d   :  { %v6746_v57 = vsel %vm2555_vm10, %v6740_v54, %v6719_v7 }
0x205e   :  { %v6759_v47 = vsel %vm872_vm8, %v6746_v57, %v6753_v8 }
0x205f   :  { %11155 = vmatmul.mubr.msk.f32.gmra.mxu0 %vm241_vm2, %v6759_v47 }
0x2060   :  { %11157 = vmatprep.mubr.msk.f32.mxu0 %vm11909_vm0, %v15202_v5 }
0x208e   :  { %v6410_v31 = vpop.xlane.xlu0 %6409 }
0x208f   :  { %v6418_v28 = vsub.f32 %v14212_v49, %v6410_v31 }
0x2091   :  { %v6428_v41 = vmul.f32 1.442695, %v6418_v28 }
0x2092   :  { %v6916_v10 = vpop.xlane.xlu0 %6915 }
0x2093   :  { %11766 = vpow2.f32 %v6428_v41  ;;  %v6954_v6 = vmul.f32 0.03125, %v6916_v10 }
0x2095   :  { %v14317_v30 = vsub.f32 %v14227_v44, %v6954_v6 }
0x2096   :  { %v6919_v9 = vpop.xlane.xlu0 %6918 }
0x2097   :  { %v6413_v32 = vpop.xlane.xlu1 %6412  ;;  %v6980_v35 = vmul.f32 %v14317_v30, %v14317_v30  ;;  %v6955_v54 = vmul.f32 0.03125, %v6919_v9 }
0x2098   :  { %v6419_v51 = vsub.f32 %v14215_v21, %v6413_v32 }
0x2099   :  { %v6993_v47 = vsel %vm241_vm2, %v6980_v35, 0.0  ;;  %v14350_v32 = vsub.f32 %v14234_v27, %v6955_v54  ;;  %v216_v35 = vld [vmem:[%s15118_s7] sm:$0xff] }
0x209a   :  { %v6430_v40 = vmul.f32 1.442695, %v6419_v51  ;;  %v6922_v1 = vpop.xlane.xlu0 %6921 }
0x209b   :  { %v6956_v62 = vmul.f32 0.03125, %v6922_v1  ;;  %v6925_v33 = vpop.xlane.xlu1 %6924  ;;  %v6981_v1 = vmul.f32 %v14350_v32, %v14350_v32 }
0x209c   :  { %11768 = vpow2.f32 %v6430_v40  ;;  %v6957_v9 = vmul.f32 0.03125, %v6925_v33 }
0x209d   :  { %v14330_v38 = vsub.f32 %v14243_v12, %v6956_v62 }
0x209e   :  { %v6928_v15 = vpop.xlane.xlu0 %6927 }
0x209f   :  { %v6958_v0 = vmul.f32 0.03125, %v6928_v15  ;;  %v6931_v28 = vpop.xlane.xlu1 %6930  ;;  %v6982_v41 = vmul.f32 %v14330_v38, %v14330_v38 }
0x20a0   :  { %v14324_v56 = vpop.eup %11766  ;;  %v6959_v27 = vmul.f32 0.03125, %v6931_v28 }
0x20a1   :  { %v6444_v2 = vsel %vm787_vm6, %v14324_v56, 0.0  ;;  %v14340_v31 = vsub.f32 %v13746_v52, %v6958_v0 }
0x20a2   :  { %v6934_v7 = vpop.xlane.xlu0 %6933  ;;  %v14373_v6 = vsub.f32 %v13749_v4, %v6959_v27 }
0x20a3   :  { %v6960_v10 = vmul.f32 0.03125, %v6934_v7 }
0x20a4   :  { %v6985_v4 = vmul.f32 %v14373_v6, %v14373_v6 }
0x20a9   :  { %v14354_v51 = vpop.eup %11768 }
0x20aa   :  { %v6447_v40 = vsel %vm794_vm7, %v14354_v51, 0.0 }
0x2112   :  { %v6843_v22 = vpop.f32.mrf.mxu0 }
0x2113   :  { %v6844_v42 = vadd.f32 %v6843_v22, %v14303_v61 }
0x2114   :  { %v11150_v49 = vpop.f32.mrf.mxu0 }
0x2115   :  { %v6867_v18 = vadd.f32 %v6844_v42, %v12089_v14  ;;  %v14357_v42 = vsub.f32 %v13754_v20, %v6960_v10  ;;  %v6999_v49 = vsel %vm241_vm2, %v6982_v41, 0.0 }
0x2116   :  { %v6848_v63 = vpop.f32.mrf.mxu0 }
0x2117   :  { %v6898_v46 = vrot.slane %v6867_v18, 4  ;;  %v6849_v26 = vadd.f32 %v6848_v63, %v14303_v61  ;;  %v6984_v18 = vmul.f32 %v14340_v31, %v14340_v31  ;;  %v14363_v63 = vsub.f32 %v14248_v60, %v6957_v9 }
0x2118   :  { %v11153_v23 = vpop.f32.mrf.mxu0 }
0x2119   :  { %v6868_v36 = vadd.f32 %v6849_v26, %v12096_v19  ;;  %v14312_v55 = vsel %vm6897_vm12, %v13763_v39, %v6898_v46  ;;  %v7005_v26 = vsel %vm241_vm2, %v6984_v18, 0.0  ;;  %v6986_v23 = vmul.f32 %v14357_v42, %v14357_v42 }
0x211a   :  { %v6938_v21 = vsel %vm241_vm2, %v14312_v55, 0.0 }
0x211b   :  { %v6899_v14 = vrot.slane %v6868_v36, 4  ;;  %6939 = vadd.xlane.f32.xlu0 %v6938_v21  ;;  %v6996_v36 = vsel %vm241_vm2, %v6981_v1, 0.0  ;;  %v6983_v21 = vmul.f32 %v14363_v63, %v14363_v63 }
0x211d   :  { %v14320_v13 = vsel %vm6897_vm12, %v6898_v46, %v6899_v14  ;;  %v6937_v46 = vpop.xlane.xlu1 %6936  ;;  %v7002_v62 = vsel %vm241_vm2, %v6983_v21, 0.0 }
0x211e   :  { %v6941_v19 = vsel %vm241_vm2, %v14320_v13, 0.0  ;;  %v6961_v60 = vmul.f32 0.03125, %v6937_v46 }
0x211f   :  { %6942 = vadd.xlane.f32.xlu1 %v6941_v19  ;;  %v6853_v39 = vpop.f32.mrf.mxu0  ;;  %v7008_v19 = vsel %vm241_vm2, %v6985_v4, 0.0 }
0x2120   :  { %v6854_v58 = vadd.f32 %v6853_v39, %v14303_v61  ;;  %v14380_v15 = vsub.f32 %v13759_v17, %v6961_v60  ;;  %v219_v17 = vld [vmem:[%s15118_s7 + $0x18] sm:$0xff] }
0x2121   :  { %v11156_v11 = vpop.f32.mrf.mxu0  ;;  %11164 = vmatpush3.msra.mxu1 %v219_v17 }
0x2122   :  { %v14333_v50 = vadd.f32 %v6854_v58, %v12103_v24  ;;  %v6987_v39 = vmul.f32 %v14380_v15, %v14380_v15  ;;  %11165 = vmatprep.subr.mxu1 %v15202_v5  ;;  %v218_v58 = vld [vmem:[%s15118_s7 + $0x10] sm:$0xff]  ;;  %v217_v11 = vld [vmem:[%s15118_s7 + $0x8] sm:$0xff] }
0x2123   :  { %6445 = vadd.xlane.f32.xlu1 %v6444_v2  ;;  %11166 = vmatpush3.msra.mxu1 %v218_v58 }
0x2124   :  { %v6901_v57 = vrot.slane %v14333_v50, 4  ;;  %v7014_v33 = vsel %vm241_vm2, %v6987_v39, 0.0  ;;  %11167 = vmatprep.subr.mxu1 %v15202_v5 }
0x2125   :  { %11168 = vmatpush3.msra.mxu1 %v217_v11 }
0x2126   :  { %v14345_v24 = vsel %vm6897_vm12, %v6899_v14, %v6901_v57  ;;  %v7011_v14 = vsel %vm241_vm2, %v6986_v23, 0.0  ;;  %11169 = vmatprep.subr.mxu1 %v15202_v5 }
0x2127   :  { %6994 = vadd.xlane.f32.xlu1 %v6993_v47  ;;  %v6944_v22 = vsel %vm241_vm2, %v14345_v24, 0.0  ;;  %11170 = vmatpush3.msra.mxu1 %v216_v35 }
0x2128   :  { %6945 = vadd.xlane.f32.xlu0 %v6944_v22  ;;  %11281 = vmatprep.subr.mxu1 %v15202_v5 }
0x212b   :  { %7000 = vadd.xlane.f32.xlu1 %v6999_v49 }
0x212c   :  { %6448 = vadd.xlane.f32.xlu0 %v6447_v40 }
0x212f   :  { %7006 = vadd.xlane.f32.xlu1 %v7005_v26 }
0x2130   :  { %6997 = vadd.xlane.f32.xlu0 %v6996_v36 }
0x2133   :  { %7012 = vadd.xlane.f32.xlu1 %v7011_v14 }
0x2134   :  { %7003 = vadd.xlane.f32.xlu0 %v7002_v62 }
0x2138   :  { %7009 = vadd.xlane.f32.xlu0 %v7008_v19 }
0x213c   :  { %7015 = vadd.xlane.f32.xlu0 %v7014_v33 }
0x21a4   :  { %v6940_v0 = vpop.xlane.xlu0 %6939 }
0x21a5   :  { %v6962_v2 = vmul.f32 0.03125, %v6940_v0  ;;  %v7103_v0 = vsub.s32 3, %v12177_v16 }
0x21a7   :  { %v14406_v54 = vsub.f32 %v14312_v55, %v6962_v2 }
0x21a8   :  { %v6943_v7 = vpop.xlane.xlu1 %6942 }
0x21a9   :  { %v6963_v47 = vmul.f32 0.03125, %v6943_v7  ;;  %v6988_v28 = vmul.f32 %v14406_v54, %v14406_v54 }
0x21ab   :  { %v14411_v10 = vsub.f32 %v14320_v13, %v6963_v47  ;;  %v7017_v41 = vsel %vm241_vm2, %v6988_v28, 0.0  ;;  %v14431_v47 = vld [vmem:[%s15198_s5] sm:$0xff] }
0x21ac   :  { %7018 = vadd.xlane.f32.xlu1 %v7017_v41  ;;  %v6446_v9 = vpop.xlane.xlu1 %6445 }
0x21ad   :  { %11770 = vrcp.f32 %v6446_v9  ;;  %v6989_v22 = vmul.f32 %v14411_v10, %v14411_v10 }
0x21af   :  { %v7020_v49 = vsel %vm241_vm2, %v6989_v22, 0.0 }
0x21b0   :  { %v6995_v18 = vpop.xlane.xlu1 %6994  ;;  %7021 = vadd.xlane.f32.xlu0 %v7020_v49 }
0x21b1   :  { %v7032_v27 = vmul.f32 0.03125, %v6995_v18  ;;  %v6946_v40 = vpop.xlane.xlu0 %6945 }
0x21b2   :  { %v6964_v1 = vmul.f32 0.03125, %v6946_v40 }
0x21b3   :  { %v7045_v46 = vadd.f32 1e-05, %v7032_v27  ;;  %v14440_v27 = vrot.slane %v14431_v47, %v7103_v0 }
0x21b4   :  { %v14418_v26 = vsub.f32 %v14345_v24, %v6964_v1  ;;  %v7001_v13 = vpop.xlane.xlu1 %7000 }
0x21b5   :  { %11772 = vrsqrt.f32 %v7045_v46  ;;  %v7034_v23 = vmul.f32 0.03125, %v7001_v13  ;;  %v6449_v60 = vpop.xlane.xlu0 %6448 }
0x21b6   :  { %11774 = vrcp.f32 %v6449_v60  ;;  %v6990_v36 = vmul.f32 %v14418_v26, %v14418_v26 }
0x21b7   :  { %v7047_v21 = vadd.f32 1e-05, %v7034_v23 }
0x21b8   :  { %v7023_v14 = vsel %vm241_vm2, %v6990_v36, 0.0  ;;  %v7007_v62 = vpop.xlane.xlu1 %7006 }
0x21b9   :  { %7024 = vadd.xlane.f32.xlu1 %v7023_v14  ;;  %v6998_v4 = vpop.xlane.xlu0 %6997  ;;  %11776 = vrsqrt.f32 %v7047_v21  ;;  %v7036_v17 = vmul.f32 0.03125, %v7007_v62 }
0x21ba   :  { %v11771_v19 = vpop.eup %11770  ;;  %v7033_v39 = vmul.f32 0.03125, %v6998_v4 }
0x21bb   :  { %v6460_v33 = vmul.f32 %v11771_v19, %v14324_v56  ;;  %v7049_v2 = vadd.f32 1e-05, %v7036_v17  ;;  %v15217_v56 = vld [vmem:[#allocation5_spill] sm:$0xff] }
0x21bc   :  { %v7046_v58 = vadd.f32 1e-05, %v7033_v39  ;;  %v14435_v28 = vrot.slane %v14431_v47, %v15217_v56  ;;  %v7013_v41 = vpop.xlane.xlu1 %7012 }
0x21bd   :  { %11135 = vmatmul.mubr.msk.f32.gmra.mxu1 %vm787_vm6, %v6460_v33  ;;  %v7004_v11 = vpop.xlane.xlu0 %7003  ;;  %v7038_v1 = vmul.f32 0.03125, %v7013_v41 }
0x21be   :  { %11778 = vrsqrt.f32 %v7046_v58  ;;  %v7035_v35 = vmul.f32 0.03125, %v7004_v11  ;;  %11137 = vmatprep.mubr.msk.f32.mxu1 %vm11909_vm0, %v15202_v5 }
0x21bf   :  { %v7051_v21 = vadd.f32 1e-05, %v7038_v1 }
0x21c0   :  { %v7048_v7 = vadd.f32 1e-05, %v7035_v35 }
0x21c1   :  { %v7010_v9 = vpop.xlane.xlu0 %7009 }
0x21c2   :  { %v11773_v22 = vpop.eup %11772  ;;  %11780 = vrsqrt.f32 %v7048_v7  ;;  %v7037_v49 = vmul.f32 0.03125, %v7010_v9 }
0x21c3   :  { %v11775_v18 = vpop.eup %11774  ;;  %v7071_v40 = vmul.f32 %v11773_v22, %v14317_v30  ;;  %11782 = vrsqrt.f32 %v7049_v2 }
0x21c4   :  { %v7050_v46 = vadd.f32 1e-05, %v7037_v49  ;;  %v6461_v13 = vmul.f32 %v11775_v18, %v14354_v51 }
0x21c5   :  { %v7088_v23 = vmul.f32 %v14435_v28, %v7071_v40  ;;  %v7016_v60 = vpop.xlane.xlu0 %7015 }
0x21c6   :  { %6674 = vrot.lane.b32.xlu0 %v14001_v53, %s15205_s0  ;;  %11138 = vmatmul.mubr.msk.f32.gmra.mxu1 %vm787_vm6, %v6461_v13  ;;  %11784 = vrsqrt.f32 %v7050_v46  ;;  %v7039_v30 = vmul.f32 0.03125, %v7016_v60  ;;  %v11777_v14 = vpop.eup %11776 }
0x21c7   :  { %v7105_v36 = vadd.f32 %v14440_v27, %v7088_v23  ;;  %11171 = vmatprep.mubr.msk.f32.mxu1 %vm11909_vm0, %v15202_v5  ;;  %v7073_v53 = vmul.f32 %v11777_v14, %v14330_v38  ;;  %11786 = vrsqrt.f32 %v7051_v21 }
0x21c8   :  { %v7052_v4 = vadd.f32 1e-05, %v7039_v30 }
0x21c9   :  { %v7090_v33 = vmul.f32 %v14435_v28, %v7073_v53 }
0x21ca   :  { %6700 = vrot.lane.b32.xlu0 %v14131_v34, %s15211_s27  ;;  %6698 = vrot.lane.b32.xlu1 %v14129_v37, %s15211_s27  ;;  %11788 = vrsqrt.f32 %v7052_v4 }
0x21cb   :  { %v11779_v51 = vpop.eup %11778  ;;  %11172 = vmatmul.mubr.msk.f32.vlgmr.msra.gmra.mxu1 %vm241_vm2, %v7105_v36 }
0x21cc   :  { %v7072_v62 = vmul.f32 %v11779_v51, %v14350_v32  ;;  %11174 = vmatprep.mubr.msk.f32.mxu1 %vm11909_vm0, %v15202_v5  ;;  %v7107_v32 = vadd.f32 %v14440_v27, %v7090_v33  ;;  %v235_v33 = vld [vmem:[%s15119_s9 + $0x70] sm:$0xff] }
0x21ce   :  { %v7089_v19 = vmul.f32 %v14435_v28, %v7072_v62 }
0x21cf   :  { %v11781_v39 = vpop.eup %11780 }
0x21d0   :  { %v7074_v34 = vmul.f32 %v11781_v39, %v14363_v63  ;;  %v7106_v37 = vadd.f32 %v14440_v27, %v7089_v19  ;;  %v11783_v17 = vpop.eup %11782 }
0x21d1   :  { %v7075_v38 = vmul.f32 %v11783_v17, %v14340_v31 }
0x21d2   :  { %11175 = vmatmul.mubr.msk.f32.gmra.mxu1 %vm241_vm2, %v7106_v37  ;;  %v7091_v58 = vmul.f32 %v14435_v28, %v7074_v34 }
0x21d3   :  { %11177 = vmatprep.mubr.msk.f32.mxu1 %vm11909_vm0, %v15202_v5  ;;  %v11785_v11 = vpop.eup %11784  ;;  %v7092_v2 = vmul.f32 %v14435_v28, %v7075_v38 }
0x21d4   :  { %v7076_v63 = vmul.f32 %v11785_v11, %v14373_v6  ;;  %v7108_v35 = vadd.f32 %v14440_v27, %v7091_v58  ;;  %v11787_v7 = vpop.eup %11786  ;;  %v232_v11 = vld [vmem:[%s15119_s9 + $0x58] sm:$0xff] }
0x21d5   :  { %v7077_v31 = vmul.f32 %v11787_v7, %v14357_v42  ;;  %v7109_v41 = vadd.f32 %v14440_v27, %v7092_v2  ;;  %v229_v2 = vld [vmem:[%s15119_s9 + $0x40] sm:$0xff]  ;;  %v228_v7 = vld [vmem:[%s15119_s9 + $0x38] sm:$0xff] }
0x21d6   :  { %11178 = vmatmul.mubr.msk.f32.gmra.mxu1 %vm241_vm2, %v7107_v32  ;;  %v7093_v9 = vmul.f32 %v14435_v28, %v7076_v63  ;;  %v233_v32 = vld [vmem:[%s15119_s9 + $0x60] sm:$0xff] }
0x21d7   :  { %11180 = vmatprep.mubr.msk.f32.mxu1 %vm11909_vm0, %v15202_v5  ;;  %v11789_v22 = vpop.eup %11788  ;;  %v7094_v18 = vmul.f32 %v14435_v28, %v7077_v31  ;;  %v227_v31 = vld [vmem:[%s15119_s9 + $0x30] sm:$0xff] }
0x21d8   :  { %v7078_v6 = vmul.f32 %v11789_v22, %v14380_v15  ;;  %v7110_v49 = vadd.f32 %v14440_v27, %v7093_v9  ;;  %v225_v9 = vld [vmem:[%s15119_s9 + $0x20] sm:$0xff]  ;;  %v224_v22 = vld [vmem:[%s15119_s9 + $0x18] sm:$0xff] }
0x21d9   :  { %v7111_v42 = vadd.f32 %v14440_v27, %v7094_v18  ;;  %v222_v18 = vld [vmem:[%s15119_s9 + $0x8] sm:$0xff] }
0x21da   :  { %11181 = vmatmul.mubr.msk.f32.gmra.mxu1 %vm241_vm2, %v7108_v35  ;;  %v7095_v40 = vmul.f32 %v14435_v28, %v7078_v6  ;;  %v230_v35 = vld [vmem:[%s15119_s9 + $0x48] sm:$0xff]  ;;  %v223_v6 = vld [vmem:[%s15119_s9 + $0x10] sm:$0xff] }
0x21db   :  { %11183 = vmatprep.mubr.msk.f32.mxu1 %vm11909_vm0, %v15202_v5 }
0x21dc   :  { %v7112_v15 = vadd.f32 %v14440_v27, %v7095_v40  ;;  %v221_v40 = vld [vmem:[%s15119_s9] sm:$0xff] }
0x21de   :  { %11184 = vmatmul.mubr.msk.f32.gmra.mxu1 %vm241_vm2, %v7109_v41  ;;  %v226_v41 = vld [vmem:[%s15119_s9 + $0x28] sm:$0xff] }
0x21df   :  { %11186 = vmatprep.mubr.msk.f32.mxu1 %vm11909_vm0, %v15202_v5 }
0x21e2   :  { %11187 = vmatmul.mubr.msk.f32.gmra.mxu1 %vm241_vm2, %v7110_v49 }
0x21e3   :  { %11189 = vmatprep.mubr.msk.f32.mxu1 %vm11909_vm0, %v15202_v5 }
0x21e6   :  { %11190 = vmatmul.mubr.msk.f32.gmra.mxu1 %vm241_vm2, %v7111_v42 }
0x21e7   :  { %11192 = vmatprep.mubr.msk.f32.mxu1 %vm11909_vm0, %v15202_v5 }
0x21ea   :  { %11193 = vmatmul.mubr.msk.f32.gmra.mxu1 %vm241_vm2, %v7112_v15 }
0x21eb   :  { %11195 = vmatprep.mubr.msk.f32.mxu1 %vm11909_vm0, %v15202_v5 }
0x2235   :  { %v7019_v1 = vpop.xlane.xlu1 %7018 }
0x2236   :  { %v7040_v46 = vmul.f32 0.03125, %v7019_v1 }
0x2238   :  { %v7053_v13 = vadd.f32 1e-05, %v7040_v46 }
0x2239   :  { %v7022_v23 = vpop.xlane.xlu0 %7021 }
0x223a   :  { %11790 = vrsqrt.f32 %v7053_v13  ;;  %v7041_v60 = vmul.f32 0.03125, %v7022_v23 }
0x223c   :  { %v7054_v36 = vadd.f32 1e-05, %v7041_v60 }
0x223e   :  { %11792 = vrsqrt.f32 %v7054_v36 }
0x2242   :  { %v7025_v21 = vpop.xlane.xlu1 %7024 }
0x2243   :  { %v7042_v30 = vmul.f32 0.03125, %v7025_v21 }
0x2245   :  { %v7055_v14 = vadd.f32 1e-05, %v7042_v30 }
0x2247   :  { %v11791_v51 = vpop.eup %11790  ;;  %11794 = vrsqrt.f32 %v7055_v14 }
0x2248   :  { %v7079_v53 = vmul.f32 %v11791_v51, %v14406_v54  ;;  %v236_v54 = vld [vmem:[%s15119_s9 + $0x78] sm:$0xff] }
0x2249   :  { %11211 = vmatpush3.msra.mxu0 %v236_v54 }
0x224a   :  { %v7096_v62 = vmul.f32 %v14435_v28, %v7079_v53  ;;  %11212 = vmatprep.subr.mxu0 %v15202_v5 }
0x224b   :  { %v11793_v4 = vpop.eup %11792  ;;  %11213 = vmatpush3.msra.mxu0 %v235_v33 }
0x224c   :  { %v7080_v19 = vmul.f32 %v11793_v4, %v14411_v10  ;;  %v7113_v39 = vadd.f32 %v14440_v27, %v7096_v62  ;;  %v234_v10 = vld [vmem:[%s15119_s9 + $0x68] sm:$0xff]  ;;  %11214 = vmatprep.subr.mxu0 %v15202_v5 }
0x224d   :  { %11215 = vmatpush3.msra.mxu0 %v234_v10 }
0x224e   :  { %11196 = vmatmul.mubr.msk.f32.gmra.mxu1 %vm241_vm2, %v7113_v39  ;;  %v7097_v34 = vmul.f32 %v14435_v28, %v7080_v19  ;;  %11216 = vmatprep.subr.mxu0 %v15202_v5 }
0x224f   :  { %11198 = vmatprep.mubr.msk.f32.mxu1 %vm11909_vm0, %v15202_v5  ;;  %11217 = vmatpush3.msra.mxu0 %v233_v32 }
0x2250   :  { %v7114_v37 = vadd.f32 %v14440_v27, %v7097_v34  ;;  %11218 = vmatprep.subr.mxu0 %v15202_v5 }
0x2251   :  { %11219 = vmatpush3.msra.mxu0 %v232_v11 }
0x2252   :  { %11199 = vmatmul.mubr.msk.f32.gmra.mxu1 %vm241_vm2, %v7114_v37  ;;  %11220 = vmatprep.subr.mxu0 %v15202_v5  ;;  %v14589_v37 = vld [vmem:[%s15120_s8] ss:$0 sm:$0xff]  ;;  %s15220_s8 = smov 96  }
0x2253   :  { %11201 = vmatprep.mubr.msk.f32.mxu1 %vm11909_vm0, %v15202_v5 }
0x2254   :  { %v11795_v17 = vpop.eup %11794 }
0x2255   :  { %v7081_v38 = vmul.f32 %v11795_v17, %v14418_v26  ;;  %v231_v26 = vld [vmem:[%s15119_s9 + $0x50] sm:$0xff] }
0x2256   :  { %11221 = vmatpush3.msra.mxu0 %v231_v26 }
0x2257   :  { %v7098_v58 = vmul.f32 %v14435_v28, %v7081_v38  ;;  %11222 = vmatprep.subr.mxu0 %v15202_v5 }
0x2258   :  { %11223 = vmatpush3.msra.mxu0 %v230_v35 }
0x2259   :  { %v7115_v63 = vadd.f32 %v14440_v27, %v7098_v58  ;;  %11224 = vmatprep.subr.mxu0 %v15202_v5 }
0x225a   :  { %11225 = vmatpush3.msra.mxu0 %v229_v2 }
0x225b   :  { %11202 = vmatmul.mubr.msk.f32.gmra.mxu1 %vm241_vm2, %v7115_v63  ;;  %11226 = vmatprep.subr.mxu0 %v15202_v5 }
0x225c   :  { %11204 = vmatprep.mubr.msk.f32.mxu1 %vm11909_vm0, %v15202_v5  ;;  %11227 = vmatpush3.msra.mxu0 %v228_v7 }
0x225d   :  { %11228 = vmatprep.subr.mxu0 %v15202_v5 }
0x225e   :  { %11229 = vmatpush3.msra.mxu0 %v227_v31 }
0x225f   :  { %11230 = vmatprep.subr.mxu0 %v15202_v5 }
0x2260   :  { %11231 = vmatpush3.msra.mxu0 %v226_v41 }
0x2261   :  { %11232 = vmatprep.subr.mxu0 %v15202_v5 }
0x2262   :  { %11233 = vmatpush3.msra.mxu0 %v225_v9 }
0x2263   :  { %11234 = vmatprep.subr.mxu0 %v15202_v5 }
0x2264   :  { %11235 = vmatpush3.msra.mxu0 %v224_v22 }
0x2265   :  { %11236 = vmatprep.subr.mxu0 %v15202_v5 }
0x2266   :  { %11237 = vmatpush3.msra.mxu0 %v223_v6 }
0x2267   :  { %11238 = vmatprep.subr.mxu0 %v15202_v5 }
0x2268   :  { %11239 = vmatpush3.msra.mxu0 %v222_v18 }
0x2269   :  { %11240 = vmatprep.subr.mxu0 %v15202_v5 }
0x226a   :  { %11241 = vmatpush3.msra.mxu0 %v221_v40  ;;  %v6675_v40 = vpop.permute.xlu0 %6674 }
0x226b   :  { %11318 = vmatprep.subr.mxu0 %v15202_v5 }
0x227d   :  { %v6651_v49 = vpop.f32.mrf.mxu1 }
0x227e   :  { %6722 = vrot.lane.b32.xlu1 %v6651_v49, %s15215_s21 }
0x227f   :  { %v11136_v42 = vpop.f32.mrf.mxu1 }
0x2282   :  { %6676 = vrot.lane.b32.xlu1 %v14004_v43, %s15205_s0 }
0x2286   :  { %v6656_v15 = vpop.f32.mrf.mxu1 }
0x2287   :  { %6724 = vrot.lane.b32.xlu1 %v6656_v15, %s15215_s21  ;;  %v6699_v15 = vpop.permute.xlu1 %6698 }
0x2288   :  { %v11139_v1 = vpop.f32.mrf.mxu1 }
0x228b   :  { %v7229_v46 = vpop.f32.mrf.mxu1 }
0x228c   :  { %v14592_v54 = vadd.f32 %v14589_v37, %v7229_v46 }
0x228d   :  { %v11173_v13 = vpop.f32.mrf.mxu1 }
0x228e   :  { %v7293_v33 = vmul.f32 -1.702, %v14592_v54 }
0x2290   :  { %v7306_v17 = vmul.f32 1.442695, %v7293_v33  ;;  %v6701_v33 = vpop.permute.xlu0 %6700 }
0x2292   :  { %v7234_v23 = vpop.f32.mrf.mxu1  ;;  %11796 = vpow2.f32 %v7306_v17 }
0x2293   :  { %v14596_v10 = vadd.f32 %v14589_v37, %v7234_v23  ;;  %v6736_v23 = vsel %vm590_vm5, %v13861_v3, %v6675_v40 }
0x2294   :  { %v11176_v60 = vpop.f32.mrf.mxu1 }
0x2295   :  { %v7294_v38 = vmul.f32 -1.702, %v14596_v10 }
0x2296   :  { %v7239_v36 = vpop.f32.mrf.mxu1 }
0x2297   :  { %v14600_v32 = vadd.f32 %v14589_v37, %v7239_v36  ;;  %v7308_v58 = vmul.f32 1.442695, %v7294_v38 }
0x2298   :  { %v11179_v21 = vpop.f32.mrf.mxu1 }
0x2299   :  { %v7295_v11 = vmul.f32 -1.702, %v14600_v32  ;;  %11798 = vpow2.f32 %v7308_v58  ;;  %v6742_v21 = vsel %vm2548_vm9, %v6736_v23, %v6699_v15 }
0x229a   :  { %v7244_v30 = vpop.f32.mrf.mxu1 }
0x229b   :  { %v14604_v63 = vadd.f32 %v14589_v37, %v7244_v30  ;;  %v7310_v26 = vmul.f32 1.442695, %v7295_v11 }
0x229c   :  { %v11182_v14 = vpop.f32.mrf.mxu1 }
0x229d   :  { %v7296_v35 = vmul.f32 -1.702, %v14604_v63  ;;  %11800 = vpow2.f32 %v7310_v26 }
0x229e   :  { %v7249_v51 = vpop.f32.mrf.mxu1 }
0x229f   :  { %v14608_v2 = vadd.f32 %v14589_v37, %v7249_v51  ;;  %v7312_v7 = vmul.f32 1.442695, %v7296_v35  ;;  %v11797_v9 = vpop.eup %11796 }
0x22a0   :  { %v11185_v53 = vpop.f32.mrf.mxu1  ;;  %v7332_v18 = vadd.f32 1.0, %v11797_v9 }
0x22a1   :  { %v7297_v31 = vmul.f32 -1.702, %v14608_v2  ;;  %11802 = vpow2.f32 %v7312_v7 }
0x22a2   :  { %v7254_v43 = vpop.f32.mrf.mxu1 }
0x22a3   :  { %v14612_v41 = vadd.f32 %v14589_v37, %v7254_v43  ;;  %v7314_v22 = vmul.f32 1.442695, %v7297_v31 }
0x22a4   :  { %v11188_v62 = vpop.f32.mrf.mxu1 }
0x22a5   :  { %v7298_v6 = vmul.f32 -1.702, %v14612_v41  ;;  %11804 = vpow2.f32 %v7314_v22 }
0x22a6   :  { %v7259_v4 = vpop.f32.mrf.mxu1  ;;  %v11799_v42 = vpop.eup %11798  ;;  %11806 = vrcp.f32 %v7332_v18 }
0x22a7   :  { %v14616_v49 = vadd.f32 %v14589_v37, %v7259_v4  ;;  %v7316_v1 = vmul.f32 1.442695, %v7298_v6  ;;  %v7333_v60 = vadd.f32 1.0, %v11799_v42 }
0x22a8   :  { %v11191_v19 = vpop.f32.mrf.mxu1 }
0x22a9   :  { %v7299_v46 = vmul.f32 -1.702, %v14616_v49  ;;  %11808 = vpow2.f32 %v7316_v1 }
0x22aa   :  { %v7264_v39 = vpop.f32.mrf.mxu1  ;;  %v11801_v36 = vpop.eup %11800  ;;  %11810 = vrcp.f32 %v7333_v60 }
0x22ab   :  { %v14620_v13 = vadd.f32 %v14589_v37, %v7264_v39  ;;  %v7318_v30 = vmul.f32 1.442695, %v7299_v46  ;;  %v7334_v62 = vadd.f32 1.0, %v11801_v36 }
0x22ac   :  { %v11194_v34 = vpop.f32.mrf.mxu1 }
0x22ad   :  { %v7300_v14 = vmul.f32 -1.702, %v14620_v13  ;;  %11812 = vpow2.f32 %v7318_v30 }
0x22ae   :  { %v11803_v39 = vpop.eup %11802  ;;  %11814 = vrcp.f32 %v7334_v62 }
0x22af   :  { %v7320_v4 = vmul.f32 1.442695, %v7300_v14  ;;  %v7335_v17 = vadd.f32 1.0, %v11803_v39 }
0x22b1   :  { %11816 = vpow2.f32 %v7320_v4 }
0x22b2   :  { %v11805_v38 = vpop.eup %11804  ;;  %11818 = vrcp.f32 %v7335_v17 }
0x22b3   :  { %v11807_v26 = vpop.eup %11806  ;;  %v7336_v35 = vadd.f32 1.0, %v11805_v38 }
0x22b4   :  { %v7358_v9 = vmul.f32 %v11807_v26, %v14592_v54 }
0x22b5   :  { %11820 = vrcp.f32 %v7336_v35 }
0x22b6   :  { %v11809_v7 = vpop.eup %11808 }
0x22b7   :  { %v11811_v31 = vpop.eup %11810  ;;  %v7337_v22 = vadd.f32 1.0, %v11809_v7 }
0x22b8   :  { %v7359_v42 = vmul.f32 %v11811_v31, %v14596_v10 }
0x22b9   :  { %11822 = vrcp.f32 %v7337_v22 }
0x22ba   :  { %v11813_v6 = vpop.eup %11812 }
0x22bb   :  { %v11815_v18 = vpop.eup %11814  ;;  %v7338_v40 = vadd.f32 1.0, %v11813_v6 }
0x22bc   :  { %v7360_v1 = vmul.f32 %v11815_v18, %v14600_v32 }
0x22bd   :  { %11824 = vrcp.f32 %v7338_v40 }
0x22be   :  { %v11817_v15 = vpop.eup %11816 }
0x22bf   :  { %v7339_v54 = vadd.f32 1.0, %v11817_v15  ;;  %v11819_v46 = vpop.eup %11818 }
0x22c0   :  { %v7361_v23 = vmul.f32 %v11819_v46, %v14604_v63 }
0x22c1   :  { %11826 = vrcp.f32 %v7339_v54 }
0x22c2   :  { %v11821_v10 = vpop.eup %11820 }
0x22c3   :  { %v7362_v32 = vmul.f32 %v11821_v10, %v14608_v2 }
0x22c6   :  { %v11823_v30 = vpop.eup %11822 }
0x22c7   :  { %v7363_v63 = vmul.f32 %v11823_v30, %v14612_v41 }
0x22ca   :  { %v11825_v4 = vpop.eup %11824 }
0x22cb   :  { %v7364_v2 = vmul.f32 %v11825_v4, %v14616_v49 }
0x22ce   :  { %v11827_v39 = vpop.eup %11826 }
0x22cf   :  { %v7365_v41 = vmul.f32 %v11827_v39, %v14620_v13 }
0x22f0   :  { %v6723_v51 = vpop.permute.xlu1 %6722 }
0x22f1   :  { %v6748_v53 = vsel %vm2555_vm10, %v6742_v21, %v6723_v51 }
0x22f2   :  { %v6754_v43 = vrot.slane %v6748_v53, 7 }
0x22f4   :  { %v6677_v19 = vpop.permute.xlu1 %6676  ;;  %v6755_v3 = vsel %vm872_vm8, %v6753_v8, %v6754_v43 }
0x22f5   :  { %11158 = vmatmul.mubr.msk.f32.gmra.mxu0 %vm241_vm2, %v6755_v3  ;;  %v6737_v34 = vsel %vm590_vm5, %v13864_v48, %v6677_v19 }
0x22f6   :  { %11160 = vmatprep.mubr.msk.f32.mxu0 %vm11909_vm0, %v15202_v5  ;;  %v6743_v11 = vsel %vm2548_vm9, %v6737_v34, %v6701_v33 }
0x22f9   :  { %v6725_v58 = vpop.permute.xlu1 %6724 }
0x22fa   :  { %v6749_v59 = vsel %vm2555_vm10, %v6743_v11, %v6725_v58 }
0x22fb   :  { %v6756_v8 = vrot.slane %v6749_v59, 7 }
0x22fd   :  { %v6757_v48 = vsel %vm872_vm8, %v6754_v43, %v6756_v8 }
0x22fe   :  { %11161 = vmatmul.mubr.msk.f32.gmra.mxu0 %vm241_vm2, %v6757_v48 }
0x22ff   :  { %11242 = vmatprep.mubr.msk.f32.mxu0 %vm11909_vm0, %v15202_v5 }
0x2302   :  { %11243 = vmatmul.mubr.f32.vlgmr.msra.gmra.mxu0 %v7358_v9 }
0x2303   :  { %11245 = vmatprep.mubr.msk.f32.mxu0 %vm11909_vm0, %v15202_v5 }
0x2306   :  { %11246 = vmatmul.mubr.f32.gmra.mxu0 %v7359_v42 }
0x2307   :  { %11248 = vmatprep.mubr.msk.f32.mxu0 %vm11909_vm0, %v15202_v5 }
0x230a   :  { %11249 = vmatmul.mubr.f32.gmra.mxu0 %v7360_v1 }
0x230b   :  { %11251 = vmatprep.mubr.msk.f32.mxu0 %vm11909_vm0, %v15202_v5 }
0x230e   :  { %v7269_v60 = vpop.f32.mrf.mxu1  ;;  %11252 = vmatmul.mubr.f32.gmra.mxu0 %v7361_v23 }
0x230f   :  { %v7270_v36 = vadd.f32 %v14589_v37, %v7269_v60  ;;  %11254 = vmatprep.mubr.msk.f32.mxu0 %vm11909_vm0, %v15202_v5  ;;  %v15218_v60 = vld [vmem:[#allocation2_spill] sm:$0xff] }
0x2310   :  { %v11197_v21 = vpop.f32.mrf.mxu1 }
0x2311   :  { %v7301_v14 = vmul.f32 -1.702, %v7270_v36 }
0x2312   :  { %v7274_v51 = vpop.f32.mrf.mxu1  ;;  %11255 = vmatmul.mubr.f32.gmra.mxu0 %v7362_v32 }
0x2313   :  { %v7322_v53 = vmul.f32 1.442695, %v7301_v14  ;;  %v7275_v43 = vadd.f32 %v14589_v37, %v7274_v51  ;;  %11257 = vmatprep.mubr.msk.f32.mxu0 %vm11909_vm0, %v15202_v5 }
0x2314   :  { %v11200_v62 = vpop.f32.mrf.mxu1 }
0x2315   :  { %11828 = vpow2.f32 %v7322_v53  ;;  %v7302_v19 = vmul.f32 -1.702, %v7275_v43 }
0x2316   :  { %11258 = vmatmul.mubr.f32.gmra.mxu0 %v7363_v63 }
0x2317   :  { %v7324_v3 = vmul.f32 1.442695, %v7302_v19  ;;  %11260 = vmatprep.mubr.msk.f32.mxu0 %vm11909_vm0, %v15202_v5 }
0x2319   :  { %11830 = vpow2.f32 %v7324_v3 }
0x231a   :  { %11261 = vmatmul.mubr.f32.gmra.mxu0 %v7364_v2 }
0x231b   :  { %v7279_v34 = vpop.f32.mrf.mxu1  ;;  %11263 = vmatprep.mubr.msk.f32.mxu0 %vm11909_vm0, %v15202_v5 }
0x231c   :  { %v7280_v33 = vadd.f32 %v14589_v37, %v7279_v34 }
0x231d   :  { %v11203_v17 = vpop.f32.mrf.mxu1 }
0x231e   :  { %v7303_v38 = vmul.f32 -1.702, %v7280_v33  ;;  %11264 = vmatmul.mubr.f32.gmra.mxu0 %v7365_v41 }
0x231f   :  { %11266 = vmatprep.mubr.msk.f32.mxu0 %vm11909_vm0, %v15202_v5 }
0x2320   :  { %v7326_v58 = vmul.f32 1.442695, %v7303_v38 }
0x2322   :  { %v11829_v11 = vpop.eup %11828  ;;  %11832 = vpow2.f32 %v7326_v58 }
0x2323   :  { %v7340_v49 = vadd.f32 1.0, %v11829_v11 }
0x2325   :  { %11834 = vrcp.f32 %v7340_v49  ;;  %v15219_v49 = vld [vmem:[#allocation4_spill] sm:$0xff] }
0x2326   :  { %v11831_v59 = vpop.eup %11830 }
0x2327   :  { %v7341_v8 = vadd.f32 1.0, %v11831_v59  ;;  %v7503_v59 = vrot.slane %v14299_v45, %v15219_v49 }
0x2329   :  { %11836 = vrcp.f32 %v7341_v8 }
0x232f   :  { %v11833_v26 = vpop.eup %11832 }
0x2330   :  { %v7342_v35 = vadd.f32 1.0, %v11833_v26 }
0x2332   :  { %v11835_v7 = vpop.eup %11834  ;;  %11838 = vrcp.f32 %v7342_v35 }
0x2333   :  { %v7366_v13 = vmul.f32 %v11835_v7, %v7270_v36 }
0x2335   :  { %11267 = vmatmul.mubr.f32.gmra.mxu0 %v7366_v13 }
0x2336   :  { %v11837_v48 = vpop.eup %11836  ;;  %11269 = vmatprep.mubr.msk.f32.mxu0 %vm11909_vm0, %v15202_v5 }
0x2337   :  { %v7367_v31 = vmul.f32 %v11837_v48, %v7275_v43 }
0x2339   :  { %11270 = vmatmul.mubr.f32.gmra.mxu0 %v7367_v31 }
0x233a   :  { %11272 = vmatprep.mubr.msk.f32.mxu0 %vm11909_vm0, %v15202_v5 }
0x233f   :  { %v11839_v9 = vpop.eup %11838 }
0x2340   :  { %v7368_v22 = vmul.f32 %v11839_v9, %v7280_v33 }
0x2342   :  { %11273 = vmatmul.mubr.f32.gmra.mxu0 %v7368_v22 }
0x2343   :  { %11275 = vmatprep.mubr.msk.f32.mxu0 %vm11909_vm0, %v15202_v5 }
0x23b5   :  { %v6858_v6 = vpop.f32.mrf.mxu0 }
0x23b6   :  { %v6859_v18 = vadd.f32 %v6858_v6, %v14303_v61 }
0x23b7   :  { %v11159_v42 = vpop.f32.mrf.mxu0 }
0x23b8   :  { %v6870_v40 = vadd.f32 %v6859_v18, %v12110_v29  ;;  %v14701_v42 = vld [vmem:[%s15121_s11] sm:$0xff] }
0x23ba   :  { %v6903_v15 = vrot.slane %v6870_v40, 4 }
0x23bc   :  { %v14679_v1 = vsel %vm6897_vm12, %v6901_v57, %v6903_v15 }
0x23bd   :  { %v6947_v54 = vsel %vm241_vm2, %v14679_v1, 0.0 }
0x23be   :  { %6948 = vadd.xlane.f32.xlu0 %v6947_v54  ;;  %v6863_v46 = vpop.f32.mrf.mxu0 }
0x23bf   :  { %v6864_v23 = vadd.f32 %v6863_v46, %v14303_v61 }
0x23c0   :  { %v11162_v10 = vpop.f32.mrf.mxu0 }
0x23c1   :  { %v6871_v36 = vadd.f32 %v6864_v23, %v15218_v60 }
0x23c2   :  { %v7437_v32 = vpop.f32.mrf.mxu0 }
0x23c3   :  { %v6905_v21 = vrot.slane %v6871_v36, 4  ;;  %v7494_v8 = vadd.f32 %v7437_v32, %v14227_v44 }
0x23c4   :  { %v11244_v29 = vpop.f32.mrf.mxu0 }
0x23c5   :  { %v6906_v30 = vsel %vm6897_vm12, %v6903_v15, %v6905_v21  ;;  %v7504_v48 = vadd.f32 %v7503_v59, %v7494_v8  ;;  %v14709_v15 = vld [vmem:[%s15121_s11 + $0x8] sm:$0xff] }
0x23c6   :  { %v7442_v50 = vpop.f32.mrf.mxu0  ;;  %v6951_v57 = vsel %vm6950_vm13, %v6906_v30, 0.0  ;;  %v7654_v54 = vsel %vm241_vm2, %v14709_v15, 0.0 }
0x23c7   :  { %6952 = vadd.xlane.f32.xlu1 %v6951_v57 }
0x23c8   :  { %v11247_v14 = vpop.f32.mrf.mxu0 }
0x23c9   :  { %v240_v14 = vld [vmem:[%s15122_s10 + $0x18] sm:$0xff] }
0x23ca   :  { %v7446_v51 = vpop.f32.mrf.mxu0  ;;  %11282 = vmatpush3.msra.mxu1 %v240_v14 }
0x23cb   :  { %v7495_v38 = vadd.f32 %v7446_v51, %v14243_v12  ;;  %v239_v51 = vld [vmem:[%s15122_s10 + $0x10] sm:$0xff]  ;;  %11283 = vmatprep.subr.mxu1 %v15202_v5 }
0x23cc   :  { %v11250_v53 = vpop.f32.mrf.mxu0  ;;  %11284 = vmatpush3.msra.mxu1 %v239_v51 }
0x23cd   :  { %v7505_v7 = vadd.f32 %v7503_v59, %v7495_v38  ;;  %11285 = vmatprep.subr.mxu1 %v15202_v5  ;;  %v237_v38 = vld [vmem:[%s15122_s10] sm:$0xff] }
0x23ce   :  { %v7451_v43 = vpop.f32.mrf.mxu0 }
0x23cf   :  { %v7510_v12 = vsel %vm872_vm8, %v7504_v48, %v7505_v7 }
0x23d0   :  { %v11253_v63 = vpop.f32.mrf.mxu0 }
0x23d2   :  { %v7455_v62 = vpop.f32.mrf.mxu0 }
0x23d3   :  { %v7496_v11 = vadd.f32 %v7455_v62, %v13746_v52 }
0x23d4   :  { %v11256_v61 = vpop.f32.mrf.mxu0 }
0x23d5   :  { %v7506_v13 = vadd.f32 %v7503_v59, %v7496_v11 }
0x23d6   :  { %v7460_v4 = vpop.f32.mrf.mxu0 }
0x23d7   :  { %v7511_v6 = vsel %vm6877_vm11, %v7510_v12, %v7506_v13 }
0x23d8   :  { %v11259_v19 = vpop.f32.mrf.mxu0 }
0x23da   :  { %v7464_v3 = vpop.f32.mrf.mxu0 }
0x23db   :  { %v7497_v26 = vadd.f32 %v7464_v3, %v13754_v20 }
0x23dc   :  { %v11262_v2 = vpop.f32.mrf.mxu0 }
0x23dd   :  { %v7507_v31 = vadd.f32 %v7503_v59, %v7497_v26 }
0x23de   :  { %v7469_v39 = vpop.f32.mrf.mxu0 }
0x23df   :  { %v7513_v44 = vsel %vm7512_vm14, %v7511_v6, %v7507_v31 }
0x23e0   :  { %v11265_v34 = vpop.f32.mrf.mxu0 }
0x23f5   :  { %v7473_v41 = vpop.f32.mrf.mxu0 }
0x23f6   :  { %v7498_v35 = vadd.f32 %v7473_v41, %v14312_v55 }
0x23f7   :  { %v11268_v33 = vpop.f32.mrf.mxu0 }
0x23f8   :  { %v7508_v9 = vadd.f32 %v7503_v59, %v7498_v35 }
0x23f9   :  { %v7478_v17 = vpop.f32.mrf.mxu0 }
0x23fa   :  { %v7514_v20 = vsel %vm6897_vm12, %v7513_v44, %v7508_v9  ;;  %v238_v17 = vld [vmem:[%s15122_s10 + $0x8] sm:$0xff] }
0x23fb   :  { %v11271_v58 = vpop.f32.mrf.mxu0  ;;  %11286 = vmatpush3.msra.mxu1 %v238_v17 }
0x23fc   :  { %11287 = vmatprep.subr.mxu1 %v15202_v5  ;;  %v7620_v58 = vld [vmem:[%s15123_s13 + $0x18] sm:$0xff] }
0x23fd   :  { %11288 = vmatpush3.msra.mxu1 %v237_v38 }
0x23fe   :  { %11292 = vmatprep.subr.mxu1 %v7620_v58 }
0x2402   :  { %v7482_v22 = vpop.f32.mrf.mxu0 }
0x2403   :  { %v7499_v52 = vadd.f32 %v7482_v22, %v14345_v24  ;;  %v7651_v24 = vsel %vm241_vm2, %v14701_v42, 0.0 }
0x2404   :  { %v11274_v45 = vpop.f32.mrf.mxu0 }
0x2405   :  { %v7509_v18 = vadd.f32 %v7503_v59, %v7499_v52 }
0x2407   :  { %v7516_v55 = vsel %vm7515_vm15, %v7514_v20, %v7509_v18 }
0x2408   :  { %v7517_v40 = vsel %vm6950_vm13, %v7516_v55, 0.0 }
0x2409   :  { %7518 = vadd.xlane.f32.xlu0 %v7517_v40 }
0x240d   :  { %7652 = vadd.xlane.f32.xlu0 %v7651_v24 }
0x2411   :  { %7655 = vadd.xlane.f32.xlu0 %v7654_v54 }
0x2447   :  { %v6949_v46 = vpop.xlane.xlu0 %6948 }
0x2448   :  { %v6965_v23 = vmul.f32 0.03125, %v6949_v46 }
0x244a   :  { %v6978_v10 = vsub.f32 %v14679_v1, %v6965_v23 }
0x244c   :  { %v6991_v60 = vmul.f32 %v6978_v10, %v6978_v10 }
0x244e   :  { %v7026_v36 = vsel %vm241_vm2, %v6991_v60, 0.0  ;;  %v14769_v60 = vld [vmem:[%s15124_s12] sm:$0xff] }
0x244f   :  { %7027 = vadd.xlane.f32.xlu1 %v7026_v36  ;;  %v7686_v51 = vrot.slane %v14769_v60, %v15219_v49  ;;  %v7617_v49 = vld [vmem:[%s15123_s13] sm:$0xff] }
0x2450   :  { %v6953_v32 = vpop.xlane.xlu1 %6952 }
0x2451   :  { %v6966_v21 = vmul.f32 0.03125, %v6953_v32 }
0x2453   :  { %v6979_v29 = vsub.f32 %v6906_v30, %v6966_v21 }
0x2455   :  { %v6992_v50 = vmul.f32 %v6979_v29, %v6979_v29 }
0x2457   :  { %v7029_v57 = vsel %vm6950_vm13, %v6992_v50, 0.0 }
0x2458   :  { %7030 = vadd.xlane.f32.xlu0 %v7029_v57 }
0x2492   :  { %v7519_v1 = vpop.xlane.xlu0 %7518 }
0x2493   :  { %v7520_v30 = vmul.f32 0.03125, %v7519_v1  ;;  %v7619_v1 = vld [vmem:[%s15123_s13 + $0x10] sm:$0xff] }
0x2495   :  { %v14724_v53 = vsub.f32 %v7516_v55, %v7520_v30 }
0x2496   :  { %v7653_v43 = vpop.xlane.xlu0 %7652 }
0x2497   :  { %v7657_v63 = vmul.f32 0.03125, %v7653_v43  ;;  %v7522_v62 = vmul.f32 %v14724_v53, %v14724_v53 }
0x2499   :  { %v14729_v61 = vsub.f32 %v14701_v42, %v7657_v63  ;;  %v7523_v4 = vsel %vm6950_vm13, %v7522_v62, 0.0 }
0x249a   :  { %7524 = vadd.xlane.f32.xlu1 %v7523_v4  ;;  %v7656_v19 = vpop.xlane.xlu0 %7655 }
0x249b   :  { %v7658_v3 = vmul.f32 0.03125, %v7656_v19  ;;  %v7661_v2 = vmul.f32 %v14729_v61, %v14729_v61 }
0x249d   :  { %v14735_v39 = vsub.f32 %v14709_v15, %v7658_v3  ;;  %v7663_v34 = vsel %vm241_vm2, %v7661_v2, 0.0 }
0x249e   :  { %7664 = vadd.xlane.f32.xlu0 %v7663_v34 }
0x249f   :  { %v7662_v41 = vmul.f32 %v14735_v39, %v14735_v39 }
0x24a1   :  { %v7666_v33 = vsel %vm241_vm2, %v7662_v41, 0.0 }
0x24a2   :  { %7667 = vadd.xlane.f32.xlu1 %v7666_v33 }
0x24d8   :  { %v7028_v11 = vpop.xlane.xlu1 %7027 }
0x24d9   :  { %v7043_v59 = vmul.f32 0.03125, %v7028_v11 }
0x24db   :  { %v7056_v8 = vadd.f32 1e-05, %v7043_v59 }
0x24dd   :  { %11840 = vrsqrt.f32 %v7056_v8 }
0x24e1   :  { %v7031_v26 = vpop.xlane.xlu0 %7030 }
0x24e2   :  { %v7044_v35 = vmul.f32 0.03125, %v7031_v26 }
0x24e4   :  { %v7057_v7 = vadd.f32 1e-05, %v7044_v35 }
0x24e6   :  { %11842 = vrsqrt.f32 %v7057_v7 }
0x24ea   :  { %v11841_v13 = vpop.eup %11840 }
0x24eb   :  { %v7082_v48 = vmul.f32 %v11841_v13, %v6978_v10 }
0x24ed   :  { %v7099_v31 = vmul.f32 %v14435_v28, %v7082_v48  ;;  %v9832_v48 = vld [vmem:[%s15126_s14] ss:$0 sm:$0xff]  ;;  %s15221_s14 = smov 88  }
0x24ef   :  { %v7116_v9 = vadd.f32 %v14440_v27, %v7099_v31 }
0x24f1   :  { %11205 = vmatmul.mubr.msk.f32.gmra.mxu1 %vm241_vm2, %v7116_v9 }
0x24f2   :  { %11207 = vmatprep.mubr.msk.f32.mxu1 %vm11909_vm0, %v15202_v5 }
0x24f3   :  { %v11843_v22 = vpop.eup %11842 }
0x24f4   :  { %v7083_v12 = vmul.f32 %v11843_v22, %v6979_v29  ;;  %v7680_v29 = vrot.slane %v14769_v60, %v15216_v25  ;;  %v7618_v25 = vld [vmem:[%s15123_s13 + $0x8] sm:$0xff]  ;;  %s15226_s13 = sld [smem:[#allocation14_spill]] }
0x24f6   :  { %v7100_v52 = vmul.f32 %v14435_v28, %v7083_v12  ;;  %v7532_v28 = vsub.s32 4, %v12177_v16 }
0x24f8   :  { %v7117_v6 = vadd.f32 %v14440_v27, %v7100_v52  ;;  %v7537_v27 = vsub.s32 5, %v12177_v16  ;;  %v7533_v23 = vrot.slane %v14431_v47, %v7532_v28 }
0x24fa   :  { %11208 = vmatmul.mubr.msk.f32.gmra.mxu1 %vm241_vm2, %v7117_v6  ;;  %v7538_v36 = vrot.slane %v14431_v47, %v7537_v27 }
0x24fb   :  { %11289 = vmatprep.mubr.msk.f32.mxu1 %vm11909_vm0, %v15202_v5 }
0x2523   :  { %v7525_v45 = vpop.xlane.xlu1 %7524 }
0x2524   :  { %v7526_v44 = vmul.f32 0.03125, %v7525_v45 }
0x2526   :  { %v7527_v18 = vadd.f32 1e-05, %v7526_v44 }
0x2527   :  { %v7665_v20 = vpop.xlane.xlu0 %7664 }
0x2528   :  { %11844 = vrsqrt.f32 %v7527_v18  ;;  %v7669_v55 = vmul.f32 0.03125, %v7665_v20 }
0x252a   :  { %v7671_v40 = vadd.f32 1e-05, %v7669_v55 }
0x252b   :  { %v7668_v24 = vpop.xlane.xlu1 %7667 }
0x252c   :  { %11846 = vrsqrt.f32 %v7671_v40  ;;  %v7670_v54 = vmul.f32 0.03125, %v7668_v24 }
0x252e   :  { %v7672_v46 = vadd.f32 1e-05, %v7670_v54 }
0x2530   :  { %11848 = vrsqrt.f32 %v7672_v46 }
0x2535   :  { %v11845_v10 = vpop.eup %11844 }
0x2536   :  { %v7529_v32 = vmul.f32 %v11845_v10, %v14724_v53 }
0x2538   :  { %v7534_v21 = vmul.f32 %v7533_v23, %v7529_v32 }
0x2539   :  { %v11847_v50 = vpop.eup %11846 }
0x253a   :  { %v7539_v57 = vadd.f32 %v7538_v36, %v7534_v21  ;;  %v7675_v14 = vmul.f32 %v11847_v50, %v14729_v61 }
0x253c   :  { %11290 = vmatmul.mubr.msk.f32.vlgmr.msra.gmra.mxu1 %vm241_vm2, %v7539_v57  ;;  %v7681_v47 = vmul.f32 %v7680_v29, %v7675_v14 }
0x253d   :  { %v11849_v30 = vpop.eup %11848  ;;  %11293 = vmatpush3.msra.mxu1 %v7620_v58 }
0x253e   :  { %11294 = vmatprep.subr.mxu1 %v7619_v1  ;;  %v7676_v53 = vmul.f32 %v11849_v30, %v14735_v39  ;;  %v7687_v43 = vadd.f32 %v7686_v51, %v7681_v47 }
0x253f   :  { %11295 = vmatpush3.msra.mxu1 %v7619_v1 }
0x2540   :  { %11296 = vmatprep.subr.mxu1 %v7618_v25  ;;  %v7682_v63 = vmul.f32 %v7680_v29, %v7676_v53  ;;  %11300 = vmatprep.mubr.msk.f32.mxu1 %vm241_vm2, %v7687_v43 }
0x2541   :  { %11297 = vmatpush3.msra.mxu1 %v7618_v25 }
0x2542   :  { %v7688_v62 = vadd.f32 %v7686_v51, %v7682_v63  ;;  %11298 = vmatprep.subr.mxu1 %v7617_v49 }
0x2543   :  { %11299 = vmatpush3.msra.mxu1 %v7617_v49 }
0x2544   :  { %11301 = vmatmul.mubr.msk.f32.vlgmr.msra.gmra.mxu1 %vm241_vm2, %v7688_v62  ;;  %11303 = vmatprep.subr.mxu1 %v15202_v5 }
0x2545   :  { %11305 = vmatprep.mubr.msk.f32.mxu1 %vm11909_vm0, %v15202_v5 }
0x25b1   :  { %v7284_v61 = vpop.f32.mrf.mxu1 }
0x25b2   :  { %v7285_v4 = vadd.f32 %v14589_v37, %v7284_v61 }
0x25b3   :  { %v11206_v19 = vpop.f32.mrf.mxu1 }
0x25b4   :  { %v7304_v3 = vmul.f32 -1.702, %v7285_v4 }
0x25b6   :  { %v7328_v2 = vmul.f32 1.442695, %v7304_v3 }
0x25b8   :  { %11850 = vpow2.f32 %v7328_v2 }
0x25ba   :  { %v7289_v39 = vpop.f32.mrf.mxu1 }
0x25bb   :  { %v7290_v34 = vadd.f32 %v14589_v37, %v7289_v39 }
0x25bc   :  { %v11209_v41 = vpop.f32.mrf.mxu1 }
0x25bd   :  { %v7305_v33 = vmul.f32 -1.702, %v7290_v34 }
0x25bf   :  { %v7330_v17 = vmul.f32 1.442695, %v7305_v33 }
0x25c1   :  { %11852 = vpow2.f32 %v7330_v17 }
0x25c5   :  { %v11851_v38 = vpop.eup %11850 }
0x25c6   :  { %v7343_v58 = vadd.f32 1.0, %v11851_v38 }
0x25c8   :  { %11854 = vrcp.f32 %v7343_v58 }
0x25ce   :  { %v11853_v11 = vpop.eup %11852 }
0x25cf   :  { %v7344_v59 = vadd.f32 1.0, %v11853_v11 }
0x25d1   :  { %11856 = vrcp.f32 %v7344_v59 }
0x25d5   :  { %v11855_v8 = vpop.eup %11854 }
0x25d6   :  { %v7369_v26 = vmul.f32 %v11855_v8, %v7285_v4 }
0x25d8   :  { %11276 = vmatmul.mubr.f32.gmra.mxu0 %v7369_v26 }
0x25d9   :  { %11278 = vmatprep.mubr.msk.f32.mxu0 %vm11909_vm0, %v15202_v5 }
0x25de   :  { %v11857_v35 = vpop.eup %11856 }
0x25df   :  { %v7370_v7 = vmul.f32 %v11857_v35, %v7290_v34 }
0x25e1   :  { %11279 = vmatmul.mubr.f32.gmra.mxu0 %v7370_v7 }
0x25e2   :  { %11320 = vmatprep.mubr.msk.f32.mxu0 %vm11909_vm0, %v15202_v5 }
0x25fc   :  { %v7609_v37 = vpop.f32.mrf.mxu1 }
0x25fd   :  { %7613 = vst.msk [vmem:[%s15125_s20] sm:$0x3f] %vm6950_vm13, %v7609_v37 }
0x25fe   :  { %v11291_v13 = vpop.f32.mrf.mxu1 }
0x2604   :  { %v11302_v31 = vpop.f32.mrf.mxu1 }
0x2605   :  { %v14809_v9 = vadd.f32 %v11302_v31, %v9832_v48 }
0x2606   :  { %v7767_v22 = vpop.f32.mrf.mxu1 }
0x2607   :  { %v14811_v12 = vadd.f32 %v9832_v48, %v7767_v22  ;;  %7857 = vrot.lane.b32.xlu1 %v14809_v9, %s15220_s8  ;;  %v14828_v44 = vmul.f32 0.35355338, %v14809_v9 }
0x2609   :  { %7779 = vrot.lane.b32.xlu0 %v14811_v12, %s15220_s8  ;;  %v14819_v6 = vmul.f32 0.35355338, %v14811_v12 }
0x2679   :  { %v7858_v45 = vpop.permute.xlu1 %7857 }
0x267b   :  { %v7780_v52 = vpop.permute.xlu0 %7779 }
0x267c   :  { %11304 = vmatpush3.xpose.msk.msra.mxu1 %vm590_vm5, %v7780_v52 }
0x267d   :  { %11308 = vmatprep.subr.mxu1 %v15202_v5 }
0x267f   :  { %11306 = vmatmul.mubr.msk.f32.vlgmr.msra.gmra.mxu1 %vm590_vm5, %v14819_v6 }
0x2680   :  { %11309 = vmatpush3.xpose.msk.msra.mxu1 %vm590_vm5, %v7858_v45  ;;  %11310 = vmatprep.mubr.msk.f32.mxu1 %vm11909_vm0, %v15202_v5 }
0x2681   :  { %11313 = vmatprep.subr.mxu1 %v15202_v5 }
0x2683   :  { %11311 = vmatmul.mubr.msk.f32.vlgmr.msra.gmra.mxu1 %vm590_vm5, %v14828_v44 }
0x2684   :  { %11315 = vmatprep.mubr.msk.f32.mxu1 %vm11909_vm0, %v15202_v5 }
0x2698   :  { %v7487_v18 = vpop.f32.mrf.mxu0 }
0x269a   :  { %v11277_v20 = vpop.f32.mrf.mxu0 }
0x26a1   :  { %v7491_v55 = vpop.f32.mrf.mxu0 }
0x26a3   :  { %v11280_v40 = vpop.f32.mrf.mxu0 }
0x273f   :  { %v7852_v24 = vpop.f32.mrf.mxu1 }
0x2740   :  { %v7934_v54 = vsel %vm590_vm5, %v7852_v24, -inf }
0x2741   :  { %7935 = vmax.xlane.f32.xlu1 %v7934_v54  ;;  %v11307_v46 = vpop.f32.mrf.mxu1 }
0x2743   :  { %v7930_v23 = vpop.f32.mrf.mxu1 }
0x2744   :  { %v7937_v10 = vsel %vm590_vm5, %v7930_v23, -inf }
0x2745   :  { %7938 = vmax.xlane.f32.xlu0 %v7937_v10  ;;  %v11312_v36 = vpop.f32.mrf.mxu1 }
0x2752   :  { %8032 = vrot.lane.b32.xlu1 %v14809_v9, %s15208_s29 }
0x2756   :  { %8110 = vrot.lane.b32.xlu1 %v14811_v12, %s15221_s14 }
0x275a   :  { %8188 = vrot.lane.b32.xlu1 %v14809_v9, %s15221_s14 }
0x27ca   :  { %v7936_v32 = vpop.xlane.xlu1 %7935 }
0x27cb   :  { %v7940_v21 = vsub.f32 %v7852_v24, %v7936_v32 }
0x27cd   :  { %v7942_v29 = vmul.f32 1.442695, %v7940_v21 }
0x27ce   :  { %v8033_v50 = vpop.permute.xlu1 %8032  ;;  %v7939_v57 = vpop.xlane.xlu0 %7938 }
0x27cf   :  { %11858 = vpow2.f32 %v7942_v29  ;;  %v7941_v14 = vsub.f32 %v7930_v23, %v7939_v57  ;;  %11319 = vmatpush3.msra.mxu0 %v8033_v50 }
0x27d0   :  { %11328 = vmatprep.subr.mxu0 %v15202_v5 }
0x27d1   :  { %v7944_v51 = vmul.f32 1.442695, %v7941_v14 }
0x27d2   :  { %v8111_v53 = vpop.permute.xlu1 %8110 }
0x27d3   :  { %11860 = vpow2.f32 %v7944_v51 }
0x27d6   :  { %v8189_v43 = vpop.permute.xlu1 %8188 }
0x27dc   :  { %v11859_v1 = vpop.eup %11858 }
0x27dd   :  { %v7946_v47 = vsel %vm590_vm5, %v11859_v1, 0.0 }
0x27de   :  { %7947 = vadd.xlane.f32.xlu0 %v7946_v47 }
0x27e0   :  { %v11861_v30 = vpop.eup %11860 }
0x27e1   :  { %v7949_v25 = vsel %vm590_vm5, %v11861_v30, 0.0 }
0x27e2   :  { %7950 = vadd.xlane.f32.xlu1 %v7949_v25 }
0x27f3   :  { %8186 = vrot.lane.b32.xlu1 %v14828_v44, %s15210_s2 }
0x27f4   :  { %7956 = vrot.lane.b32.xlu0 %v14811_v12, %s15208_s29  ;;  %s15227_s29 = sld [smem:[#allocation15_spill]] }
0x27f8   :  { %8108 = vrot.lane.b32.xlu0 %v14819_v6, %s15210_s2 }
0x2867   :  { %v7948_v49 = vpop.xlane.xlu0 %7947 }
0x2868   :  { %11862 = vrcp.f32 %v7948_v49 }
0x286b   :  { %v7951_v63 = vpop.xlane.xlu1 %7950  ;;  %v7957_v62 = vpop.permute.xlu0 %7956 }
0x286c   :  { %11864 = vrcp.f32 %v7951_v63  ;;  %11314 = vmatpush3.msra.mxu1 %v7957_v62 }
0x286d   :  { %11323 = vmatprep.subr.mxu1 %v15202_v5 }
0x286f   :  { %v8109_v2 = vpop.permute.xlu0 %8108  ;;  %v8187_v39 = vpop.permute.xlu1 %8186 }
0x2875   :  { %v11863_v61 = vpop.eup %11862 }
0x2876   :  { %v7954_v4 = vmul.f32 %v11863_v61, %v11859_v1 }
0x2878   :  { %11316 = vmatmul.mubr.msk.f32.vlgmr.msra.gmra.mxu1 %vm590_vm5, %v7954_v4 }
0x2879   :  { %v11865_v19 = vpop.eup %11864  ;;  %11324 = vmatpush3.xpose.msk.msra.mxu1 %vm590_vm5, %v8111_v53  ;;  %11325 = vmatprep.mubr.msk.f32.mxu1 %vm11909_vm0, %v15202_v5 }
0x287a   :  { %v7955_v3 = vmul.f32 %v11865_v19, %v11861_v30  ;;  %11333 = vmatprep.subr.mxu1 %v15202_v5 }
0x287c   :  { %11321 = vmatmul.mubr.msk.f32.vlgmr.msra.gmra.mxu0 %vm590_vm5, %v7955_v3  ;;  %11326 = vmatmul.mubr.msk.f32.vlgmr.msra.gmra.mxu1 %vm590_vm5, %v8109_v2 }
0x287d   :  { %11329 = vmatpush3.xpose.msk.msra.mxu0 %vm590_vm5, %v8189_v43  ;;  %11330 = vmatprep.mubr.msk.f32.mxu0 %vm11909_vm0, %v15202_v5 }
0x287e   :  { %11338 = vmatprep.subr.mxu0 %v15202_v5  ;;  %11335 = vmatprep.mubr.msk.f32.mxu1 %vm11909_vm0, %v15202_v5 }
0x2880   :  { %11331 = vmatmul.mubr.msk.f32.vlgmr.msra.gmra.mxu0 %vm590_vm5, %v8187_v39 }
0x2881   :  { %11340 = vmatprep.mubr.msk.f32.mxu0 %vm11909_vm0, %v15202_v5 }
0x2938   :  { %v14869_v34 = vpop.f32.mrf.mxu1 }
0x293a   :  { %v11317_v41 = vpop.f32.mrf.mxu1 }
0x293c   :  { %v14871_v33 = vpop.f32.mrf.mxu0  ;;  %v8182_v17 = vpop.f32.mrf.mxu1 }
0x293d   :  { %v8264_v38 = vsel %vm590_vm5, %v8182_v17, -inf }
0x293e   :  { %8265 = vmax.xlane.f32.xlu0 %v8264_v38  ;;  %v11322_v58 = vpop.f32.mrf.mxu0  ;;  %v11327_v11 = vpop.f32.mrf.mxu1 }
0x2940   :  { %v8260_v59 = vpop.f32.mrf.mxu0 }
0x2941   :  { %v8267_v8 = vsel %vm590_vm5, %v8260_v59, -inf }
0x2942   :  { %8268 = vmax.xlane.f32.xlu1 %v8267_v8  ;;  %v11332_v26 = vpop.f32.mrf.mxu0 }
0x2953   :  { %8362 = vrot.lane.b32.xlu1 %v14809_v9, %s15209_s24 }
0x2954   :  { %8286 = vrot.lane.b32.xlu0 %v14811_v12, %s15209_s24 }
0x2957   :  { %8440 = vrot.lane.b32.xlu1 %v14811_v12, %s15203_s3 }
0x295b   :  { %8518 = vrot.lane.b32.xlu1 %v14809_v9, %s15203_s3 }
0x295f   :  { %8516 = vrot.lane.b32.xlu1 %v14828_v44, %s15213_s1 }
0x29c7   :  { %v8266_v35 = vpop.xlane.xlu0 %8265 }
0x29c8   :  { %v8270_v7 = vsub.f32 %v8182_v17, %v8266_v35 }
0x29ca   :  { %v8272_v37 = vmul.f32 1.442695, %v8270_v7 }
0x29cb   :  { %v8287_v13 = vpop.permute.xlu0 %8286  ;;  %v8269_v48 = vpop.xlane.xlu1 %8268 }
0x29cc   :  { %11866 = vpow2.f32 %v8272_v37  ;;  %v8271_v31 = vsub.f32 %v8260_v59, %v8269_v48  ;;  %11334 = vmatpush3.msra.mxu1 %v8287_v13 }
0x29cd   :  { %11343 = vmatprep.subr.mxu1 %v15202_v5 }
0x29ce   :  { %v8274_v22 = vmul.f32 1.442695, %v8271_v31 }
0x29cf   :  { %v8363_v52 = vpop.permute.xlu1 %8362 }
0x29d0   :  { %11868 = vpow2.f32 %v8274_v22  ;;  %11339 = vmatpush3.msra.mxu0 %v8363_v52 }
0x29d1   :  { %11348 = vmatprep.subr.mxu0 %v15202_v5 }
0x29d3   :  { %v8441_v54 = vpop.permute.xlu1 %8440 }
0x29d7   :  { %v8519_v36 = vpop.permute.xlu1 %8518 }
0x29d9   :  { %v11867_v45 = vpop.eup %11866 }
0x29da   :  { %v8276_v18 = vsel %vm590_vm5, %v11867_v45, 0.0 }
0x29db   :  { %8277 = vadd.xlane.f32.xlu0 %v8276_v18  ;;  %v8517_v29 = vpop.permute.xlu1 %8516 }
0x29dd   :  { %v11869_v20 = vpop.eup %11868 }
0x29de   :  { %v8279_v55 = vsel %vm590_vm5, %v11869_v20, 0.0 }
0x29df   :  { %8280 = vadd.xlane.f32.xlu0 %v8279_v55 }
0x29f5   :  { %8438 = vrot.lane.b32.xlu0 %v14819_v6, %s15213_s1 }
0x2a64   :  { %v8278_v40 = vpop.xlane.xlu0 %8277 }
0x2a65   :  { %11870 = vrcp.f32 %v8278_v40 }
0x2a68   :  { %v8281_v24 = vpop.xlane.xlu0 %8280 }
0x2a69   :  { %11872 = vrcp.f32 %v8281_v24 }
0x2a6c   :  { %v8439_v21 = vpop.permute.xlu0 %8438 }
0x2a72   :  { %v11871_v46 = vpop.eup %11870 }
0x2a73   :  { %v8284_v23 = vmul.f32 %v11871_v46, %v11867_v45 }
0x2a75   :  { %11336 = vmatmul.mubr.msk.f32.vlgmr.msra.gmra.mxu1 %vm590_vm5, %v8284_v23 }
0x2a76   :  { %v11873_v10 = vpop.eup %11872  ;;  %11344 = vmatpush3.xpose.msk.msra.mxu1 %vm590_vm5, %v8441_v54  ;;  %11345 = vmatprep.mubr.msk.f32.mxu1 %vm11909_vm0, %v15202_v5 }
0x2a77   :  { %v8285_v32 = vmul.f32 %v11873_v10, %v11869_v20  ;;  %11353 = vmatprep.subr.mxu1 %v15202_v5 }
0x2a79   :  { %11341 = vmatmul.mubr.msk.f32.vlgmr.msra.gmra.mxu0 %vm590_vm5, %v8285_v32  ;;  %11346 = vmatmul.mubr.msk.f32.vlgmr.msra.gmra.mxu1 %vm590_vm5, %v8439_v21 }
0x2a7a   :  { %11349 = vmatpush3.xpose.msk.msra.mxu0 %vm590_vm5, %v8519_v36  ;;  %11350 = vmatprep.mubr.msk.f32.mxu0 %vm11909_vm0, %v15202_v5 }
0x2a7b   :  { %11358 = vmatprep.subr.mxu0 %v15202_v5  ;;  %11355 = vmatprep.mubr.msk.f32.mxu1 %vm11909_vm0, %v15202_v5 }
0x2a7d   :  { %11351 = vmatmul.mubr.msk.f32.vlgmr.msra.gmra.mxu0 %vm590_vm5, %v8517_v29 }
0x2a7e   :  { %11360 = vmatprep.mubr.msk.f32.mxu0 %vm11909_vm0, %v15202_v5 }
0x2b35   :  { %v14907_v50 = vpop.f32.mrf.mxu1 }
0x2b37   :  { %v11337_v57 = vpop.f32.mrf.mxu1 }
0x2b39   :  { %v14909_v14 = vpop.f32.mrf.mxu0  ;;  %v8512_v51 = vpop.f32.mrf.mxu1 }
0x2b3a   :  { %v8594_v1 = vsel %vm590_vm5, %v8512_v51, -inf }
0x2b3b   :  { %8595 = vmax.xlane.f32.xlu0 %v8594_v1  ;;  %v11342_v47 = vpop.f32.mrf.mxu0  ;;  %v11347_v30 = vpop.f32.mrf.mxu1 }
0x2b3d   :  { %v8590_v25 = vpop.f32.mrf.mxu0 }
0x2b3e   :  { %v8597_v53 = vsel %vm590_vm5, %v8590_v25, -inf }
0x2b3f   :  { %8598 = vmax.xlane.f32.xlu1 %v8597_v53  ;;  %v11352_v43 = vpop.f32.mrf.mxu0  ;;  %v7624_v53 = vld [vmem:[%s15127_s15 + $0x10] sm:$0xff] }
0x2b40   :  { %v7623_v43 = vld [vmem:[%s15127_s15 + $0x8] sm:$0xff] }
0x2b50   :  { %8692 = vrot.lane.b32.xlu1 %v14809_v9, %s15212_s26 }
0x2b51   :  { %8616 = vrot.lane.b32.xlu0 %v14811_v12, %s15212_s26 }
0x2b54   :  { %8770 = vrot.lane.b32.xlu1 %v14811_v12, %s15206_s25 }
0x2b58   :  { %8848 = vrot.lane.b32.xlu1 %v14809_v9, %s15206_s25 }
0x2b5c   :  { %8846 = vrot.lane.b32.xlu1 %v14828_v44, %s15204_s23 }
0x2bc4   :  { %v8596_v49 = vpop.xlane.xlu0 %8595 }
0x2bc5   :  { %v8600_v63 = vsub.f32 %v8512_v51, %v8596_v49  ;;  %v7622_v49 = vld [vmem:[%s15127_s15] sm:$0xff] }
0x2bc7   :  { %v8602_v62 = vmul.f32 1.442695, %v8600_v63 }
0x2bc8   :  { %v8617_v61 = vpop.permute.xlu0 %8616  ;;  %v8599_v4 = vpop.xlane.xlu1 %8598 }
0x2bc9   :  { %11874 = vpow2.f32 %v8602_v62  ;;  %v8601_v19 = vsub.f32 %v8590_v25, %v8599_v4  ;;  %11354 = vmatpush3.msra.mxu1 %v8617_v61 }
0x2bca   :  { %11363 = vmatprep.subr.mxu1 %v15202_v5 }
0x2bcb   :  { %v8604_v3 = vmul.f32 1.442695, %v8601_v19 }
0x2bcc   :  { %v8693_v2 = vpop.permute.xlu1 %8692 }
0x2bcd   :  { %11876 = vpow2.f32 %v8604_v3  ;;  %11359 = vmatpush3.msra.mxu0 %v8693_v2 }
0x2bce   :  { %11368 = vmatprep.subr.mxu0 %v15202_v5 }
0x2bd0   :  { %v8771_v11 = vpop.permute.xlu1 %8770 }
0x2bd4   :  { %v8849_v35 = vpop.permute.xlu1 %8848 }
0x2bd6   :  { %v11875_v39 = vpop.eup %11874 }
0x2bd7   :  { %v8606_v41 = vsel %vm590_vm5, %v11875_v39, 0.0 }
0x2bd8   :  { %8607 = vadd.xlane.f32.xlu0 %v8606_v41  ;;  %v8847_v37 = vpop.permute.xlu1 %8846 }
0x2bda   :  { %v11877_v44 = vpop.eup %11876 }
0x2bdb   :  { %v8609_v17 = vsel %vm590_vm5, %v11877_v44, 0.0 }
0x2bdc   :  { %8610 = vadd.xlane.f32.xlu0 %v8609_v17 }
0x2bf2   :  { %8768 = vrot.lane.b32.xlu0 %v14819_v6, %s15204_s23 }
0x2c61   :  { %v8608_v38 = vpop.xlane.xlu0 %8607 }
0x2c62   :  { %11878 = vrcp.f32 %v8608_v38 }
0x2c65   :  { %v8611_v58 = vpop.xlane.xlu0 %8610 }
0x2c66   :  { %11880 = vrcp.f32 %v8611_v58 }
0x2c69   :  { %v8769_v6 = vpop.permute.xlu0 %8768 }
0x2c6f   :  { %v11879_v59 = vpop.eup %11878 }
0x2c70   :  { %v8614_v8 = vmul.f32 %v11879_v59, %v11875_v39 }
0x2c72   :  { %11356 = vmatmul.mubr.msk.f32.vlgmr.msra.gmra.mxu1 %vm590_vm5, %v8614_v8 }
0x2c73   :  { %v11881_v26 = vpop.eup %11880  ;;  %11364 = vmatpush3.xpose.msk.msra.mxu1 %vm590_vm5, %v8771_v11  ;;  %11365 = vmatprep.mubr.msk.f32.mxu1 %vm11909_vm0, %v15202_v5 }
0x2c74   :  { %v8615_v7 = vmul.f32 %v11881_v26, %v11877_v44  ;;  %11373 = vmatprep.subr.mxu1 %v15202_v5 }
0x2c76   :  { %11361 = vmatmul.mubr.msk.f32.vlgmr.msra.gmra.mxu0 %vm590_vm5, %v8615_v7  ;;  %11366 = vmatmul.mubr.msk.f32.vlgmr.msra.gmra.mxu1 %vm590_vm5, %v8769_v6 }
0x2c77   :  { %11369 = vmatpush3.xpose.msk.msra.mxu0 %vm590_vm5, %v8849_v35  ;;  %11370 = vmatprep.mubr.msk.f32.mxu0 %vm11909_vm0, %v15202_v5 }
0x2c78   :  { %11378 = vmatprep.subr.mxu0 %v15202_v5  ;;  %11375 = vmatprep.mubr.msk.f32.mxu1 %vm11909_vm0, %v15202_v5 }
0x2c7a   :  { %11371 = vmatmul.mubr.msk.f32.vlgmr.msra.gmra.mxu0 %vm590_vm5, %v8847_v37 }
0x2c7b   :  { %11380 = vmatprep.mubr.msk.f32.mxu0 %vm11909_vm0, %v15202_v5 }
0x2d32   :  { %v8688_v13 = vpop.f32.mrf.mxu1 }
0x2d34   :  { %v11357_v48 = vpop.f32.mrf.mxu1 }
0x2d36   :  { %v8764_v31 = vpop.f32.mrf.mxu0  ;;  %v8842_v22 = vpop.f32.mrf.mxu1 }
0x2d37   :  { %v8924_v52 = vsel %vm590_vm5, %v8842_v22, -inf }
0x2d38   :  { %8925 = vmax.xlane.f32.xlu0 %v8924_v52  ;;  %v11362_v45 = vpop.f32.mrf.mxu0  ;;  %v11367_v18 = vpop.f32.mrf.mxu1 }
0x2d3a   :  { %v8920_v20 = vpop.f32.mrf.mxu0 }
0x2d3b   :  { %v8927_v55 = vsel %vm590_vm5, %v8920_v20, -inf }
0x2d3c   :  { %8928 = vmax.xlane.f32.xlu1 %v8927_v55  ;;  %v11372_v40 = vpop.f32.mrf.mxu0 }
0x2d4d   :  { %9022 = vrot.lane.b32.xlu1 %v14809_v9, %s15214_s28 }
0x2d51   :  { %9100 = vrot.lane.b32.xlu1 %v14907_v50, %s15205_s0 }
0x2d55   :  { %9102 = vrot.lane.b32.xlu1 %v14909_v14, %s15205_s0 }
0x2d59   :  { %9110 = vrot.lane.b32.xlu1 %v8764_v31, %s15211_s27 }
0x2dc1   :  { %v8926_v24 = vpop.xlane.xlu0 %8925 }
0x2dc2   :  { %v8930_v54 = vsub.f32 %v8842_v22, %v8926_v24 }
0x2dc4   :  { %v8932_v46 = vmul.f32 1.442695, %v8930_v54  ;;  %v7629_v54 = vld [vmem:[%s15128_s16 + $0x18] sm:$0xff] }
0x2dc5   :  { %v8929_v23 = vpop.xlane.xlu1 %8928 }
0x2dc6   :  { %11882 = vpow2.f32 %v8932_v46  ;;  %v8931_v10 = vsub.f32 %v8920_v20, %v8929_v23  ;;  %v7628_v46 = vld [vmem:[%s15128_s16 + $0x10] sm:$0xff]  ;;  %v7627_v23 = vld [vmem:[%s15128_s16 + $0x8] sm:$0xff] }
0x2dc8   :  { %v8934_v36 = vmul.f32 1.442695, %v8931_v10  ;;  %v7626_v10 = vld [vmem:[%s15128_s16] sm:$0xff] }
0x2dc9   :  { %v9023_v32 = vpop.permute.xlu1 %9022 }
0x2dca   :  { %11884 = vpow2.f32 %v8934_v36  ;;  %11379 = vmatpush3.msra.mxu0 %v9023_v32 }
0x2dcb   :  { %11394 = vmatprep.subr.mxu0 %v7629_v54 }
0x2dcd   :  { %v9101_v19 = vpop.permute.xlu1 %9100 }
0x2dce   :  { %v9122_v39 = vsel %vm590_vm5, %v14869_v34, %v9101_v19  ;;  %v15222_v34 = vsub.s32 6, %v12177_v16  ;;  %v7639_v19 = vld [vmem:[%s15223_s19 + $0x40] sm:$0xff] }
0x2dd0   :  { %v9131_v26 = vrot.slane %v14769_v60, %v15222_v34 }
0x2dd1   :  { %v9103_v3 = vpop.permute.xlu1 %9102 }
0x2dd2   :  { %v9123_v58 = vsel %vm590_vm5, %v14871_v33, %v9103_v3  ;;  %v7638_v3 = vld [vmem:[%s15223_s19 + $0x38] sm:$0xff] }
0x2dd3   :  { %v11883_v21 = vpop.eup %11882 }
0x2dd4   :  { %v8936_v9 = vsel %vm590_vm5, %v11883_v21, 0.0 }
0x2dd5   :  { %8937 = vadd.xlane.f32.xlu0 %v8936_v9  ;;  %v9111_v41 = vpop.permute.xlu1 %9110 }
0x2dd6   :  { %v9125_v11 = vsel %vm2548_vm9, %v9123_v58, %v9111_v41  ;;  %v7635_v41 = vld [vmem:[%s15223_s19 + $0x20] sm:$0xff] }
0x2dd7   :  { %v11885_v29 = vpop.eup %11884  ;;  %v7631_v58 = vld [vmem:[%s15223_s19] sm:$0xff] }
0x2dd8   :  { %v8939_v50 = vsel %vm590_vm5, %v11885_v29, 0.0 }
0x2dd9   :  { %8940 = vadd.xlane.f32.xlu0 %v8939_v50 }
0x2def   :  { %8946 = vrot.lane.b32.xlu0 %v14811_v12, %s15214_s28  ;;  %v7625_v12 = vld [vmem:[%s15127_s15 + $0x18] sm:$0xff] }
0x2df3   :  { %9108 = vrot.lane.b32.xlu0 %v8688_v13, %s15211_s27 }
0x2e5e   :  { %v8938_v57 = vpop.xlane.xlu0 %8937 }
0x2e5f   :  { %11886 = vrcp.f32 %v8938_v57  ;;  %v9244_v57 = vrot.slane %v14769_v60, %v15217_v56  ;;  %v7646_v56 = vld [vmem:[%s15223_s19 + $0x78] sm:$0xff] }
0x2e62   :  { %v8941_v14 = vpop.xlane.xlu0 %8940 }
0x2e63   :  { %11888 = vrcp.f32 %v8941_v14 }
0x2e66   :  { %v8947_v51 = vpop.permute.xlu0 %8946 }
0x2e67   :  { %11374 = vmatpush3.msra.mxu1 %v8947_v51 }
0x2e68   :  { %11383 = vmatprep.subr.mxu1 %v7625_v12 }
0x2e6a   :  { %v9109_v2 = vpop.permute.xlu0 %9108 }
0x2e6b   :  { %v9124_v44 = vsel %vm2548_vm9, %v9122_v39, %v9109_v2  ;;  %v7637_v2 = vld [vmem:[%s15223_s19 + $0x30] sm:$0xff]  ;;  %v7636_v39 = vld [vmem:[%s15223_s19 + $0x28] sm:$0xff] }
0x2e6c   :  { %v11887_v1 = vpop.eup %11886 }
0x2e6d   :  { %v8944_v47 = vmul.f32 %v11887_v1, %v11883_v21  ;;  %v9250_v1 = vrot.slane %v14769_v60, %v7103_v0  ;;  %v7645_v0 = vld [vmem:[%s15223_s19 + $0x70] sm:$0xff] }
0x2e6f   :  { %11376 = vmatmul.mubr.msk.f32.vlgmr.msra.gmra.mxu1 %vm590_vm5, %v8944_v47 }
0x2e70   :  { %v11889_v30 = vpop.eup %11888  ;;  %11384 = vmatpush3.msra.mxu1 %v7625_v12 }
0x2e71   :  { %v8945_v25 = vmul.f32 %v11889_v30, %v11885_v29  ;;  %11385 = vmatprep.subr.mxu1 %v7624_v53 }
0x2e72   :  { %11386 = vmatpush3.msra.mxu1 %v7624_v53 }
0x2e73   :  { %11381 = vmatmul.mubr.msk.f32.vlgmr.msra.gmra.mxu0 %vm590_vm5, %v8945_v25  ;;  %11387 = vmatprep.subr.mxu1 %v7623_v43 }
0x2e74   :  { %11388 = vmatpush3.msra.mxu1 %v7623_v43  ;;  %11395 = vmatpush3.msra.mxu0 %v7629_v54 }
0x2e75   :  { %11389 = vmatprep.subr.mxu1 %v7622_v49  ;;  %11396 = vmatprep.subr.mxu0 %v7628_v46 }
0x2e76   :  { %11390 = vmatpush3.msra.mxu1 %v7622_v49  ;;  %11397 = vmatpush3.msra.mxu0 %v7628_v46  ;;  %v7644_v49 = vld [vmem:[%s15223_s19 + $0x68] sm:$0xff] }
0x2e77   :  { %11398 = vmatprep.subr.mxu0 %v7627_v23  ;;  %11405 = vmatprep.subr.mxu1 %v7646_v56 }
0x2e78   :  { %11399 = vmatpush3.msra.mxu0 %v7627_v23 }
0x2e79   :  { %11400 = vmatprep.subr.mxu0 %v7626_v10 }
0x2e7a   :  { %11401 = vmatpush3.msra.mxu0 %v7626_v10 }
0x2e7b   :  { %11440 = vmatprep.subr.mxu0 %v15202_v5 }
0x2f2f   :  { %v9018_v63 = vpop.f32.mrf.mxu1 }
0x2f30   :  { %9116 = vrot.lane.b32.xlu0 %v9018_v63, %s15215_s21  ;;  %v7643_v63 = vld [vmem:[%s15223_s19 + $0x60] sm:$0xff] }
0x2f31   :  { %v11377_v62 = vpop.f32.mrf.mxu1 }
0x2f32   :  { %v7642_v62 = vld [vmem:[%s15223_s19 + $0x58] sm:$0xff] }
0x2f33   :  { %v9094_v61 = vpop.f32.mrf.mxu0 }
0x2f34   :  { %9118 = vrot.lane.b32.xlu1 %v9094_v61, %s15215_s21  ;;  %v7641_v61 = vld [vmem:[%s15223_s19 + $0x50] sm:$0xff] }
0x2f35   :  { %v11382_v4 = vpop.f32.mrf.mxu0 }
0x2f36   :  { %v7640_v4 = vld [vmem:[%s15223_s19 + $0x48] sm:$0xff] }
0x2fa2   :  { %v9117_v17 = vpop.permute.xlu0 %9116 }
0x2fa3   :  { %v9126_v38 = vsel %vm2555_vm10, %v9124_v44, %v9117_v17  ;;  %v7634_v44 = vld [vmem:[%s15223_s19 + $0x18] sm:$0xff]  ;;  %v7633_v17 = vld [vmem:[%s15223_s19 + $0x10] sm:$0xff] }
0x2fa4   :  { %11391 = vmatprep.mubr.msk.f32.mxu1 %vm241_vm2, %v9126_v38  ;;  %v7632_v38 = vld [vmem:[%s15223_s19 + $0x8] sm:$0xff] }
0x2fa6   :  { %v9119_v59 = vpop.permute.xlu1 %9118 }
0x2fa7   :  { %v9127_v8 = vsel %vm2555_vm10, %v9125_v11, %v9119_v59  ;;  %v9861_v11 = vld [vmem:[%s15224_s22] ss:$0 sm:$0xff] }
0x2fa8   :  { %11392 = vmatmul.mubr.msk.f32.vlgmr.msra.gmra.mxu1 %vm241_vm2, %v9127_v8 }
0x2fa9   :  { %11406 = vmatpush3.msra.mxu1 %v7646_v56 }
0x2faa   :  { %11407 = vmatprep.subr.mxu1 %v7645_v0 }
0x2fab   :  { %11408 = vmatpush3.msra.mxu1 %v7645_v0  ;;  %v11907_v0 = vld [vmem:[%s15124_s12] sm:$0xff] }
0x2fac   :  { %11409 = vmatprep.subr.mxu1 %v7644_v49 }
0x2fad   :  { %11410 = vmatpush3.msra.mxu1 %v7644_v49  ;;  %v9463_v49 = vrot.slane %v11907_v0, %v7537_v27 }
0x2fae   :  { %11411 = vmatprep.subr.mxu1 %v7643_v63 }
0x2faf   :  { %11412 = vmatpush3.msra.mxu1 %v7643_v63 }
0x2fb0   :  { %11413 = vmatprep.subr.mxu1 %v7642_v62 }
0x2fb1   :  { %11414 = vmatpush3.msra.mxu1 %v7642_v62 }
0x2fb2   :  { %11415 = vmatprep.subr.mxu1 %v7641_v61 }
0x2fb3   :  { %11416 = vmatpush3.msra.mxu1 %v7641_v61 }
0x2fb4   :  { %11417 = vmatprep.subr.mxu1 %v7640_v4 }
0x2fb5   :  { %11418 = vmatpush3.msra.mxu1 %v7640_v4 }
0x2fb6   :  { %11419 = vmatprep.subr.mxu1 %v7639_v19 }
0x2fb7   :  { %11420 = vmatpush3.msra.mxu1 %v7639_v19 }
0x2fb8   :  { %11421 = vmatprep.subr.mxu1 %v7638_v3 }
0x2fb9   :  { %11422 = vmatpush3.msra.mxu1 %v7638_v3 }
0x2fba   :  { %11423 = vmatprep.subr.mxu1 %v7637_v2 }
0x2fbb   :  { %11424 = vmatpush3.msra.mxu1 %v7637_v2 }
0x2fbc   :  { %11425 = vmatprep.subr.mxu1 %v7636_v39 }
0x2fbd   :  { %11426 = vmatpush3.msra.mxu1 %v7636_v39 }
0x2fbe   :  { %11427 = vmatprep.subr.mxu1 %v7635_v41 }
0x2fbf   :  { %11428 = vmatpush3.msra.mxu1 %v7635_v41 }
0x2fc0   :  { %11429 = vmatprep.subr.mxu1 %v7634_v44 }
0x2fc1   :  { %11430 = vmatpush3.msra.mxu1 %v7634_v44 }
0x2fc2   :  { %11431 = vmatprep.subr.mxu1 %v7633_v17 }
0x2fc3   :  { %11432 = vmatpush3.msra.mxu1 %v7633_v17 }
0x2fc4   :  { %11433 = vmatprep.subr.mxu1 %v7632_v38 }
0x2fc5   :  { %11434 = vmatpush3.msra.mxu1 %v7632_v38 }
0x2fc6   :  { %11435 = vmatprep.subr.mxu1 %v7631_v58 }
0x2fc7   :  { %11436 = vmatpush3.msra.mxu1 %v7631_v58 }
0x3068   :  { %v11393_v35 = vpop.f32.mrf.mxu1 }
0x3069   :  { %v9210_v7 = vadd.f32 %v11393_v35, %v9131_v26 }
0x306a   :  { %v9204_v6 = vpop.f32.mrf.mxu1 }
0x306b   :  { %v14989_v37 = vadd.f32 %v9210_v7, %v14709_v15  ;;  %v9205_v13 = vadd.f32 %v9204_v6, %v9131_v26 }
0x306d   :  { %v14992_v33 = vadd.f32 %v9205_v13, %v14701_v42  ;;  %v9218_v48 = vsel %vm241_vm2, %v14989_v37, 0.0 }
0x306e   :  { %9219 = vadd.xlane.f32.xlu1 %v9218_v48 }
0x306f   :  { %v9215_v31 = vsel %vm241_vm2, %v14992_v33, 0.0 }
0x3070   :  { %9216 = vadd.xlane.f32.xlu0 %v9215_v31 }
0x30f7   :  { %v9220_v22 = vpop.xlane.xlu1 %9219 }
0x30f8   :  { %v9222_v52 = vmul.f32 0.03125, %v9220_v22 }
0x30f9   :  { %v9217_v45 = vpop.xlane.xlu0 %9216 }
0x30fa   :  { %v9221_v18 = vmul.f32 0.03125, %v9217_v45  ;;  %v9224_v20 = vsub.f32 %v14989_v37, %v9222_v52 }
0x30fc   :  { %v9223_v15 = vsub.f32 %v14992_v33, %v9221_v18  ;;  %v9226_v40 = vmul.f32 %v9224_v20, %v9224_v20 }
0x30fe   :  { %v9225_v55 = vmul.f32 %v9223_v15, %v9223_v15  ;;  %v9230_v24 = vsel %vm241_vm2, %v9226_v40, 0.0 }
0x3100   :  { %v9227_v42 = vsel %vm241_vm2, %v9225_v55, 0.0  ;;  %v15225_v55 = vsub.s32 7, %v12177_v16 }
0x3101   :  { %9228 = vadd.xlane.f32.xlu0 %v9227_v42 }
0x3102   :  { %v9432_v42 = vrot.slane %v14769_v60, %v15225_v55 }
0x3105   :  { %9231 = vadd.xlane.f32.xlu0 %v9230_v24 }
0x318a   :  { %v9229_v36 = vpop.xlane.xlu0 %9228 }
0x318b   :  { %v9233_v32 = vmul.f32 0.03125, %v9229_v36 }
0x318d   :  { %v9235_v21 = vadd.f32 1e-05, %v9233_v32 }
0x318e   :  { %v9232_v9 = vpop.xlane.xlu0 %9231 }
0x318f   :  { %11890 = vrsqrt.f32 %v9235_v21  ;;  %v9234_v29 = vmul.f32 0.03125, %v9232_v9 }
0x3191   :  { %v9236_v50 = vadd.f32 1e-05, %v9234_v29 }
0x3193   :  { %11892 = vrsqrt.f32 %v9236_v50 }
0x319c   :  { %v11891_v14 = vpop.eup %11890 }
0x319d   :  { %v9239_v51 = vmul.f32 %v11891_v14, %v9223_v15 }
0x319f   :  { %v9245_v47 = vmul.f32 %v9244_v57, %v9239_v51 }
0x31a0   :  { %v11893_v30 = vpop.eup %11892 }
0x31a1   :  { %v9240_v25 = vmul.f32 %v11893_v30, %v9224_v20  ;;  %v9251_v12 = vadd.f32 %v9250_v1, %v9245_v47  ;;  %v7647_v47 = vld [vmem:[%s15226_s13] sm:$0xff] }
0x31a3   :  { %v9246_v53 = vmul.f32 %v9244_v57, %v9240_v25  ;;  %11402 = vmatprep.mubr.msk.f32.mxu0 %vm241_vm2, %v9251_v12 }
0x31a5   :  { %v9252_v43 = vadd.f32 %v9250_v1, %v9246_v53  ;;  %v7648_v1 = vld [vmem:[%s15226_s13 + $0x8] sm:$0xff]  ;;  %v9458_v53 = vrot.slane %v14769_v60, %v7532_v28 }
0x31a7   :  { %11403 = vmatmul.mubr.msk.f32.vlgmr.msra.gmra.mxu0 %vm241_vm2, %v9252_v43 }
0x31a8   :  { %11448 = vmatprep.mubr.msk.f32.mxu0 %vm11909_vm0, %v15202_v5 }
0x3267   :  { %v11404_v59 = vpop.f32.mrf.mxu0 }
0x3268   :  { %v9337_v8 = vadd.f32 %v11404_v59, %v9861_v11 }
0x3269   :  { %v9331_v34 = vpop.f32.mrf.mxu0 }
0x326a   :  { %v9341_v26 = vmul.f32 -1.702, %v9337_v8  ;;  %v9332_v35 = vadd.f32 %v9861_v11, %v9331_v34 }
0x326c   :  { %v9344_v7 = vmul.f32 1.442695, %v9341_v26  ;;  %v9340_v6 = vmul.f32 -1.702, %v9332_v35 }
0x326e   :  { %11894 = vpow2.f32 %v9344_v7  ;;  %v9342_v13 = vmul.f32 1.442695, %v9340_v6 }
0x3270   :  { %11896 = vpow2.f32 %v9342_v13 }
0x327b   :  { %v11895_v48 = vpop.eup %11894 }
0x327c   :  { %v9347_v31 = vadd.f32 1.0, %v11895_v48 }
0x327d   :  { %v11897_v22 = vpop.eup %11896 }
0x327e   :  { %v9346_v52 = vadd.f32 1.0, %v11897_v22  ;;  %11898 = vrcp.f32 %v9347_v31 }
0x3280   :  { %11900 = vrcp.f32 %v9346_v52 }
0x328b   :  { %v11899_v45 = vpop.eup %11898 }
0x328c   :  { %v9351_v15 = vmul.f32 %v11899_v45, %v9337_v8 }
0x328d   :  { %v11901_v18 = vpop.eup %11900 }
0x328e   :  { %v9350_v20 = vmul.f32 %v11901_v18, %v9332_v35 }
0x3290   :  { %11437 = vmatprep.mubr.f32.mxu1 %v9350_v20 }
0x3291   :  { %11438 = vmatmul.mubr.f32.vlgmr.msra.gmra.mxu1 %v9351_v15 }
0x3351   :  { %v11439_v40 = vpop.f32.mrf.mxu1 }
0x3352   :  { %v9428_v24 = vadd.f32 %v11439_v40, %v14989_v37  ;;  %v7650_v37 = vld [vmem:[%s15226_s13 + $0x18] sm:$0xff] }
0x3353   :  { %v9418_v54 = vpop.f32.mrf.mxu1  ;;  %11441 = vmatpush3.msra.mxu0 %v7650_v37 }
0x3354   :  { %v9434_v46 = vadd.f32 %v9432_v42, %v9428_v24  ;;  %v9427_v23 = vadd.f32 %v9418_v54, %v14992_v33  ;;  %11442 = vmatprep.subr.mxu0 %v15202_v5  ;;  %v7649_v33 = vld [vmem:[%s15226_s13 + $0x10] sm:$0xff] }
0x3355   :  { %11443 = vmatpush3.msra.mxu0 %v7649_v33 }
0x3356   :  { %v9433_v10 = vadd.f32 %v9432_v42, %v9427_v23  ;;  %v9439_v36 = vrot.slane %v9434_v46, 6  ;;  %11444 = vmatprep.subr.mxu0 %v15202_v5 }
0x3357   :  { %11445 = vmatpush3.msra.mxu0 %v7648_v1 }
0x3358   :  { %v9436_v32 = vrot.slane %v9433_v10, 7  ;;  %11446 = vmatprep.subr.mxu0 %v15202_v5 }
0x3359   :  { %11447 = vmatpush3.msra.mxu0 %v7647_v47 }
0x335a   :  { %v9441_v21 = vsel %vm872_vm8, %v9436_v32, %v9439_v36 }
0x335b   :  { %v9442_v9 = vsel %vm254_vm3, %v9441_v21, 0.0 }
0x335c   :  { %9443 = vadd.xlane.f32.xlu0 %v9442_v9 }
0x33e5   :  { %v9444_v29 = vpop.xlane.xlu0 %9443 }
0x33e6   :  { %v9445_v50 = vmul.f32 0.03125, %v9444_v29 }
0x33e8   :  { %v9446_v57 = vsub.f32 %v9441_v21, %v9445_v50 }
0x33ea   :  { %v9447_v14 = vmul.f32 %v9446_v57, %v9446_v57 }
0x33ec   :  { %v9448_v51 = vsel %vm254_vm3, %v9447_v14, 0.0 }
0x33ed   :  { %9449 = vadd.xlane.f32.xlu1 %v9448_v51 }
0x3476   :  { %v9450_v30 = vpop.xlane.xlu1 %9449 }
0x3477   :  { %v9451_v25 = vmul.f32 0.03125, %v9450_v30 }
0x3479   :  { %v9452_v12 = vadd.f32 1e-05, %v9451_v25 }
0x347b   :  { %11902 = vrsqrt.f32 %v9452_v12 }
0x3488   :  { %v11903_v43 = vpop.eup %11902 }
0x3489   :  { %v9454_v56 = vmul.f32 %v11903_v43, %v9446_v57 }
0x348b   :  { %v9459_v63 = vmul.f32 %v9458_v53, %v9454_v56 }
0x348d   :  { %v9464_v5 = vadd.f32 %v9463_v49, %v9459_v63 }
0x348f   :  { %11449 = vmatmul.mubr.msk.f32.vlgmr.msra.gmra.mxu0 %vm241_vm2, %v9464_v5 }
0x354f   :  { %v9534_v62 = vpop.f32.mrf.mxu0 }
0x3550   :  { %9538 = vst.msk [vmem:[%s15227_s29] sm:$0x3] %vm254_vm3, %v9534_v62 }
0x3551   :  { %v11450_v28 = vpop.f32.mrf.mxu0 }

</bundles_post_ra>
